<compile_context>
chip_gen: v7x
topology: tpu7x:2x2x1
jax: 0.10.0
libtpu: 0.0.40
codegen_flags: <defaults>
</compile_context>

<pallas_src>
import jax
import jax.numpy as jnp
from jax.experimental import pallas as pl
from jax.experimental.pallas import tpu as pltpu

NEG_SLOPE = 0.01          # nn.LeakyReLU default
_MXU_MIN_CH = 16          # static threshold for the MXU matmul path


def _round_up(a, b):
    return (a + b - 1) // b * b


def _lrelu(v):
    # 2 VALU ops instead of cmp+mul+select (valid because NEG_SLOPE < 1).
    return jnp.maximum(v, NEG_SLOPE * v)


# --------------------------------------------------------------------------------------
# Fused kernel body (all layers, flip conjugation folded in).
# --------------------------------------------------------------------------------------
def _make_kernel(plan, k, T, HWt, n_mxu):
    num_layers = len(plan)

    def kernel(x_ref, prm_ref, *rest):
        mxu = rest[:n_mxu]
        o_ref = rest[n_mxu]
        buf0, buf1 = rest[n_mxu + 1], rest[n_mxu + 2]

        def rd(src, lead, c, t):
            v = src[0, c, t, :] if lead else src[c, t, :]
            return v.astype(jnp.float32)

        def wr(dst, lead, c, t, val):
            if lead:
                dst[0, c, t, :] = val.astype(dst.dtype)
            else:
                dst[c, t, :] = val.astype(dst.dtype)

        src, src_lead = x_ref, True
        cur_T = T

        for li, lp in enumerate(plan):
            cin, co = lp["cin"], lp["co"]
            last = li == num_layers - 1
            if last:
                dst, dst_lead = o_ref, True
            else:
                dst, dst_lead = (buf0, False) if li % 2 == 0 else (buf1, False)

            if lp["mxu"]:
                # -------- MXU path: per-output-time (Co,Cin)x(Cin,HWt) matmuls --------
                w2r = mxu[lp["a_w2"]]
                b2v = mxu[lp["a_b2"]][...].astype(jnp.float32)        # (co, 1)
                cs = pl.ds(0, cin)

                def conv(wref, taps):
                    acc = jnp.zeros((co, HWt), jnp.float32)
                    for dt, t in enumerate(taps):
                        acc = acc + jnp.dot(
                            wref[dt].astype(jnp.float32),
                            rd(src, src_lead, cs, t),
                            preferred_element_type=jnp.float32)
                    return acc

                if k == 2:
                    for s in range(cur_T - 1):
                        wr(dst, dst_lead, pl.ds(0, co), s,
                           _lrelu(conv(w2r, (s + 1, s)) + b2v))
                    cur_T -= 1
                else:
                    w1r = mxu[lp["a_w1"]]
                    b1v = mxu[lp["a_b1"]][...].astype(jnp.float32)
                    To1 = cur_T - k + 1
                    first = _lrelu(conv(w1r, tuple(k - 1 - d for d in range(k))) + b1v)
                    for i in range(1, To1):
                        row = _lrelu(
                            conv(w1r, tuple(i + k - 1 - d for d in range(k))) + b1v)
                        wr(dst, dst_lead, pl.ds(0, co), i + k - 1, row)
                    for m in range(k - 1):
                        head = first - _lrelu(conv(w2r, (m + 1, m)) + b2v)
                        wr(dst, dst_lead, pl.ds(0, co), m + 1, head)
                        if m == 0:
                            wr(dst, dst_lead, pl.ds(0, co), 0, head)
            else:
                # -------- VPU path: unrolled scalar-weight FMAs from packed SMEM ------
                def conv_slab(w_off, taps, To, b_off, cc):
                    # accumulator starts at the bias (saves one add per output row)
                    acc = jnp.full((To, HWt), prm_ref[b_off + cc], jnp.float32)
                    for dt, t0 in enumerate(taps):
                        for ci in range(cin):
                            w = prm_ref[w_off + (dt * co + cc) * cin + ci]
                            acc = acc + w * rd(src, src_lead, ci, pl.ds(t0, To))
                    return _lrelu(acc)

                if k == 2:
                    To = cur_T - 1
                    for cc in range(co):
                        wr(dst, dst_lead, cc, pl.ds(0, To),
                           conv_slab(lp["o_w2"], (1, 0), To, lp["o_b2"], cc))
                    cur_T -= 1
                else:
                    To1 = cur_T - k + 1
                    taps1 = tuple(k - 1 - d for d in range(k))
                    for cc in range(co):
                        y1 = conv_slab(lp["o_w1"], taps1, To1, lp["o_b1"], cc)
                        y2 = conv_slab(lp["o_w2"], (1, 0), k - 1, lp["o_b2"], cc)
                        first = y1[0:1, :]
                        if To1 > 1:
                            wr(dst, dst_lead, cc, pl.ds(k, To1 - 1), y1[1:, :])
                        wr(dst, dst_lead, cc, pl.ds(1, k - 1), first - y2)
                        wr(dst, dst_lead, cc, pl.ds(0, 1), first - y2[0:1, :])

            src, src_lead = dst, dst_lead

    return kernel


# --------------------------------------------------------------------------------------
# Wrapper: tiling, parameter packing, pallas_call
# --------------------------------------------------------------------------------------
def temporal_reversed_block(x5, params, k, *, hw_tile_cap=2048,
                            vmem_budget_bytes=12 << 20):
    """x5: (N, C, T, H, W) float32 (PyTorch NCDHW). Returns (N, Co_last, T_out, H, W)."""
    N, C0, T, H, W = x5.shape
    HW = H * W
    num_layers = len(params)
    Co_last = params[-1]["co"]
    T_out = T if k > 2 else T - num_layers
    if k == 2:
        assert T > num_layers, "time axis too short for a k==2 stack"
    else:
        assert T >= k, "time axis shorter than the temporal kernel"

    # channels flowing through the ping-pong scratch buffers
    mids = [p["co"] for p in params[:-1]]
    C_buf = _round_up(max(mids), 8) if mids else 8

    # lane tile: multiple of 128, sized against a v7x-safe per-step VMEM budget
    per_col = 4 * (2 * C0 * T + 2 * Co_last * T_out + 2 * C_buf * T)
    hwt = min(hw_tile_cap,
              max(128, (vmem_budget_bytes // per_col) // 128 * 128),
              _round_up(HW, 128))
    HWt = max(128, hwt // 128 * 128)
    HW_pad = _round_up(HW, HWt)
    n_hw = HW_pad // HWt

    x = x5.reshape(N, C0, T, HW)
    if HW_pad != HW:
        x = jnp.pad(x, ((0, 0), (0, 0), (0, 0), (0, HW_pad - HW)))

    # per-layer plan: packed SMEM scalars (VPU path) / whole-array VMEM operands (MXU)
    plan, smem_pieces, mxu_arrays = [], [], []
    smem_len = 0

    def add_smem(arr):
        nonlocal smem_len
        off = smem_len
        flat = arr.reshape(-1).astype(jnp.float32)
        smem_pieces.append(flat)
        smem_len += flat.shape[0]
        return off

    def add_mxu(arr):
        mxu_arrays.append(arr.astype(jnp.float32))
        return len(mxu_arrays) - 1

    for p in params:
        cin, co = p["cin"], p["co"]
        use_mxu = (cin >= _MXU_MIN_CH and co >= _MXU_MIN_CH
                   and cin % 8 == 0 and co % 8 == 0)
        lp = dict(cin=cin, co=co, mxu=use_mxu)
        if use_mxu:
            if k > 2:
                lp["a_w1"] = add_mxu(p["w1_k"])               # (k, co, cin), BN-folded
                lp["a_b1"] = add_mxu(p["b1"].reshape(co, 1))
            lp["a_w2"] = add_mxu(p["w2_k"])                   # (2, co, cin)
            lp["a_b2"] = add_mxu(p["b2"].reshape(co, 1))
        else:
            if k > 2:
                lp["o_w1"] = add_smem(p["w1_k"])
                lp["o_b1"] = add_smem(p["b1"])
            lp["o_w2"] = add_smem(p["w2_k"])
            lp["o_b2"] = add_smem(p["b2"])
        plan.append(lp)

    if not smem_pieces:
        smem_pieces.append(jnp.zeros((8,), jnp.float32))      # keep SMEM operand valid
    prm = jnp.concatenate(smem_pieces)

    in_specs = [pl.BlockSpec((1, C0, T, HWt), lambda n, h: (n, 0, 0, h)),
                pl.BlockSpec(memory_space=pltpu.MemorySpace.SMEM)]
    for arr in mxu_arrays:
        in_specs.append(pl.BlockSpec(arr.shape,
                                     lambda n, h, _nd=arr.ndim: (0,) * _nd))
    out_specs = pl.BlockSpec((1, Co_last, T_out, HWt), lambda n, h: (n, 0, 0, h))

    est = per_col * HWt + sum(int(a.size) * 8 for a in mxu_arrays) + (1 << 20)
    vmem_limit = int(min(max(4 * est, 32 << 20), 64 << 20))

    kernel = _make_kernel(plan, k, T, HWt, len(mxu_arrays))

    out = pl.pallas_call(
        kernel,
        out_shape=jax.ShapeDtypeStruct((N, Co_last, T_out, HW_pad), x.dtype),
        grid=(N, n_hw),
        in_specs=in_specs,
        out_specs=out_specs,
        scratch_shapes=[pltpu.VMEM((C_buf, T, HWt), jnp.float32),
                        pltpu.VMEM((C_buf, T, HWt), jnp.float32)],
        compiler_params=pltpu.CompilerParams(
            dimension_semantics=("parallel", "parallel"),
            vmem_limit_bytes=vmem_limit),
    )(x, prm, *mxu_arrays)

    return out[..., :HW].reshape(N, Co_last, T_out, H, W)


# --------------------------------------------------------------------------------------
# Pure-JAX reference (mirrors the PyTorch forward literally: flip -> layers -> flip)
# --------------------------------------------------------------------------------------
def _ref_rnet(x, p, k):
    HIGH = jax.lax.Precision.HIGHEST

    def conv(xin, w_pt):                      # w_pt: (Co, Cin, kk)
        kk = w_pt.shape[-1]
        To = xin.shape[2] - kk + 1
        return sum(jnp.einsum("oc,nctp->notp", w_pt[:, :, dt],
                              xin[:, :, dt:dt + To, :], precision=HIGH)
                   for dt in range(kk))

    def bn_lrelu(y, s, b):
        y = y * s.reshape(1, -1, 1, 1) + b.reshape(1, -1, 1, 1)
        return jnp.where(y >= 0, y, NEG_SLOPE * y)

    if k == 2:
        return bn_lrelu(conv(x, p["w2_pt"]), p["scale2"], p["shift2"])
    y1 = bn_lrelu(conv(x, p["w1_pt"]), p["scale1"], p["shift1"])
    y2 = bn_lrelu(conv(x[:, :, x.shape[2] - k:, :], p["w2_pt"]), p["scale2"], p["shift2"])
    y2p = jnp.concatenate([y2, y2[:, :, -1:, :]], axis=2)     # replication pad
    return jnp.concatenate([y1[:, :, :-1, :], y1[:, :, -1:, :] - y2p], axis=2)


def _ref_block(x5, params, k):
    N, C, T, H, W = x5.shape
    h = jnp.flip(x5, axis=2).reshape(N, C, T, H * W)
    for p in params:
        h = _ref_rnet(h, p, k)
    return jnp.flip(h.reshape(N, -1, h.shape[2], H, W), axis=2)


# --------------------------------------------------------------------------------------
# Deterministic parameters matching the module's channel progression
# --------------------------------------------------------------------------------------
def init_params(key, num_layers, in_ch, out_ch, k, w_scale=0.5, eps=1e-5):
    params = []
    cin = in_ch
    intermed = out_ch
    for i in range(num_layers):
        intermed *= 2
        if i == num_layers - 1:
            intermed = out_ch
        co = intermed

        key, kw1, kw2, kg1, kb1, km1, kv1, kg2, kb2, km2, kv2 = jax.random.split(key, 11)
        w1_pt = w_scale * jax.random.normal(kw1, (co, cin, k), jnp.float32)
        w2_pt = w_scale * jax.random.normal(kw2, (co, cin, 2), jnp.float32)

        def bn(kg, kb, km, kv):
            gamma = 1.0 + 0.1 * jax.random.normal(kg, (co,), jnp.float32)
            beta = 0.1 * jax.random.normal(kb, (co,), jnp.float32)
            mean = 0.1 * jax.random.normal(km, (co,), jnp.float32)
            var = 1.0 + 0.1 * jnp.abs(jax.random.normal(kv, (co,), jnp.float32))
            scale = gamma * jax.lax.rsqrt(var + eps)
            shift = beta - mean * scale
            return scale, shift

        s1, sh1 = bn(kg1, kb1, km1, kv1)
        s2, sh2 = bn(kg2, kb2, km2, kv2)

        # Fold the BN scale into the conv weights (conv has bias=False, affine precedes
        # LeakyReLU).  Tap-major (dt, co, ci) layout is used both as the MXU operand and
        # flattened for SMEM scalar reads: index = (dt*Co + co)*Cin + ci.
        w1_k = jnp.transpose(w1_pt * s1[:, None, None], (2, 0, 1))
        w2_k = jnp.transpose(w2_pt * s2[:, None, None], (2, 0, 1))

        params.append(dict(cin=cin, co=co,
                           w1_k=w1_k, w2_k=w2_k, b1=sh1, b2=sh2,
                           w1_pt=w1_pt, w2_pt=w2_pt,
                           scale1=s1, shift1=sh1, scale2=s2, shift2=sh2))
        cin = co
    return params


def _run_case(name, key, *, N, Cin, T, H, W, Cout, num_layers, k,
              w_scale=0.5, atol=1e-4, rtol=1e-4):
    kx, kp = jax.random.split(key)
    x = jax.random.normal(kx, (N, Cin, T, H, W), jnp.float32)
    params = init_params(kp, num_layers, Cin, Cout, k, w_scale=w_scale)
    out = jax.block_until_ready(temporal_reversed_block(x, params, k))
    ref = _ref_block(x, params, k)
    T_out = T if k > 2 else T - num_layers
    assert out.shape == (N, Cout, T_out, H, W), (name, out.shape)
    if not bool(jnp.allclose(out, ref, atol=atol, rtol=rtol)):
        err = float(jnp.max(jnp.abs(out - ref)))
        raise AssertionError(f"{name}: kernel/reference mismatch, max abs err = {err}")


if __name__ == "__main__":
    keys = jax.random.split(jax.random.PRNGKey(0), 4)
    # Primary config (module ablation defaults): VPU scalar-weight path, k=3.
    _run_case("k3_small", keys[0], N=2, Cin=2, T=8, H=16, W=16,
              Cout=4, num_layers=2, k=3)
    # Flip-conjugated replication-pad algebra at a different temporal kernel size.
    _run_case("k4_small", keys[1], N=2, Cin=2, T=8, H=16, W=16,
              Cout=4, num_layers=2, k=4)
    # k == 2 stack (time axis shrinks by one per layer).
    _run_case("k2_small", keys[2], N=2, Cin=2, T=8, H=16, W=16,
              Cout=4, num_layers=2, k=2)
    # Larger channel counts -> MXU matmul path.  Looser tolerance: the f32 MXU matmul
    # may run as reduced-precision passes depending on backend precision defaults.
    _run_case("k3_mxu", keys[3], N=1, Cin=16, T=8, H=16, W=16,
              Cout=32, num_layers=2, k=3, w_scale=0.08, atol=5e-2, rtol=5e-2)
    print("KERNEL_OK")
</pallas_src>

<mosaic_0001>
module attributes {stable_mosaic.version = 11 : i64} {
  func.func @kernel(%arg0: i32, %arg1: i32, %arg2: memref<1x2x8x256xf32, #tpu.memory_space<vmem>>, %arg3: memref<264xf32, #tpu.memory_space<smem>>, %arg4: memref<1x4x8x256xf32, #tpu.memory_space<vmem>>, %arg5: memref<8x8x256xf32, #tpu.memory_space<vmem>>, %arg6: memref<8x8x256xf32, #tpu.memory_space<vmem>>) attributes {dimension_semantics = [#tpu.dimension_semantics<parallel>, #tpu.dimension_semantics<parallel>], iteration_bounds = array<i64: 2, 1>, scalar_prefetch = 0 : i64, scratch_operands = 2 : i64, tpu.core_type = #tpu.core_type<tc>, window_params = [{transform_indices = @transform_0, window_bounds = array<i64: 1, 2, 8, 256>}, {transform_indices = @transform_1, window_bounds = array<i64: 264>}, {transform_indices = @transform_2, window_bounds = array<i64: 1, 4, 8, 256>}]} {
    %c48 = arith.constant 48 : index
    %0 = memref.load %arg3[%c48] : memref<264xf32, #tpu.memory_space<smem>>
    %1 = vector.broadcast %0 : f32 to vector<6x256xf32>
    %c0 = arith.constant 0 : index
    %2 = memref.load %arg3[%c0] : memref<264xf32, #tpu.memory_space<smem>>
    %c0_0 = arith.constant 0 : index
    %c0_1 = arith.constant 0 : index
    %c2 = arith.constant 2 : index
    %c0_2 = arith.constant 0 : index
    %3 = vector.load %arg2[%c0_0, %c0_1, %c2, %c0_2] : memref<1x2x8x256xf32, #tpu.memory_space<vmem>>, vector<1x1x6x256xf32>
    %4 = vector.shape_cast %3 : vector<1x1x6x256xf32> to vector<6x256xf32>
    %5 = vector.broadcast %2 : f32 to vector<6x256xf32>
    %6 = arith.mulf %5, %4 : vector<6x256xf32>
    %7 = arith.addf %1, %6 : vector<6x256xf32>
    %c1 = arith.constant 1 : index
    %8 = memref.load %arg3[%c1] : memref<264xf32, #tpu.memory_space<smem>>
    %c0_3 = arith.constant 0 : index
    %c1_4 = arith.constant 1 : index
    %c2_5 = arith.constant 2 : index
    %c0_6 = arith.constant 0 : index
    %9 = vector.load %arg2[%c0_3, %c1_4, %c2_5, %c0_6] : memref<1x2x8x256xf32, #tpu.memory_space<vmem>>, vector<1x1x6x256xf32>
    %10 = vector.shape_cast %9 : vector<1x1x6x256xf32> to vector<6x256xf32>
    %11 = vector.broadcast %8 : f32 to vector<6x256xf32>
    %12 = arith.mulf %11, %10 : vector<6x256xf32>
    %13 = arith.addf %7, %12 : vector<6x256xf32>
    %c16 = arith.constant 16 : index
    %14 = memref.load %arg3[%c16] : memref<264xf32, #tpu.memory_space<smem>>
    %c0_7 = arith.constant 0 : index
    %c0_8 = arith.constant 0 : index
    %c1_9 = arith.constant 1 : index
    %c0_10 = arith.constant 0 : index
    %15 = vector.load %arg2[%c0_7, %c0_8, %c1_9, %c0_10] : memref<1x2x8x256xf32, #tpu.memory_space<vmem>>, vector<1x1x6x256xf32>
    %16 = vector.shape_cast %15 : vector<1x1x6x256xf32> to vector<6x256xf32>
    %17 = vector.broadcast %14 : f32 to vector<6x256xf32>
    %18 = arith.mulf %17, %16 : vector<6x256xf32>
    %19 = arith.addf %13, %18 : vector<6x256xf32>
    %c17 = arith.constant 17 : index
    %20 = memref.load %arg3[%c17] : memref<264xf32, #tpu.memory_space<smem>>
    %c0_11 = arith.constant 0 : index
    %c1_12 = arith.constant 1 : index
    %c1_13 = arith.constant 1 : index
    %c0_14 = arith.constant 0 : index
    %21 = vector.load %arg2[%c0_11, %c1_12, %c1_13, %c0_14] : memref<1x2x8x256xf32, #tpu.memory_space<vmem>>, vector<1x1x6x256xf32>
    %22 = vector.shape_cast %21 : vector<1x1x6x256xf32> to vector<6x256xf32>
    %23 = vector.broadcast %20 : f32 to vector<6x256xf32>
    %24 = arith.mulf %23, %22 : vector<6x256xf32>
    %25 = arith.addf %19, %24 : vector<6x256xf32>
    %c32 = arith.constant 32 : index
    %26 = memref.load %arg3[%c32] : memref<264xf32, #tpu.memory_space<smem>>
    %c0_15 = arith.constant 0 : index
    %c0_16 = arith.constant 0 : index
    %c0_17 = arith.constant 0 : index
    %c0_18 = arith.constant 0 : index
    %27 = vector.load %arg2[%c0_15, %c0_16, %c0_17, %c0_18] : memref<1x2x8x256xf32, #tpu.memory_space<vmem>>, vector<1x1x6x256xf32>
    %28 = vector.shape_cast %27 : vector<1x1x6x256xf32> to vector<6x256xf32>
    %29 = vector.broadcast %26 : f32 to vector<6x256xf32>
    %30 = arith.mulf %29, %28 : vector<6x256xf32>
    %31 = arith.addf %25, %30 : vector<6x256xf32>
    %c33 = arith.constant 33 : index
    %32 = memref.load %arg3[%c33] : memref<264xf32, #tpu.memory_space<smem>>
    %c0_19 = arith.constant 0 : index
    %c1_20 = arith.constant 1 : index
    %c0_21 = arith.constant 0 : index
    %c0_22 = arith.constant 0 : index
    %33 = vector.load %arg2[%c0_19, %c1_20, %c0_21, %c0_22] : memref<1x2x8x256xf32, #tpu.memory_space<vmem>>, vector<1x1x6x256xf32>
    %34 = vector.shape_cast %33 : vector<1x1x6x256xf32> to vector<6x256xf32>
    %35 = vector.broadcast %32 : f32 to vector<6x256xf32>
    %36 = arith.mulf %35, %34 : vector<6x256xf32>
    %37 = arith.addf %31, %36 : vector<6x256xf32>
    %cst = arith.constant 0.00999999977 : f32
    %38 = vector.broadcast %cst : f32 to vector<6x256xf32>
    %39 = arith.mulf %38, %37 : vector<6x256xf32>
    %40 = arith.maximumf %37, %39 : vector<6x256xf32>
    %c88 = arith.constant 88 : index
    %41 = memref.load %arg3[%c88] : memref<264xf32, #tpu.memory_space<smem>>
    %42 = vector.broadcast %41 : f32 to vector<2x256xf32>
    %c56 = arith.constant 56 : index
    %43 = memref.load %arg3[%c56] : memref<264xf32, #tpu.memory_space<smem>>
    %c0_23 = arith.constant 0 : index
    %c0_24 = arith.constant 0 : index
    %c1_25 = arith.constant 1 : index
    %c0_26 = arith.constant 0 : index
    %44 = vector.load %arg2[%c0_23, %c0_24, %c1_25, %c0_26] : memref<1x2x8x256xf32, #tpu.memory_space<vmem>>, vector<1x1x2x256xf32>
    %45 = vector.shape_cast %44 : vector<1x1x2x256xf32> to vector<2x256xf32>
    %46 = vector.broadcast %43 : f32 to vector<2x256xf32>
    %47 = arith.mulf %46, %45 : vector<2x256xf32>
    %48 = arith.addf %42, %47 : vector<2x256xf32>
    %c57 = arith.constant 57 : index
    %49 = memref.load %arg3[%c57] : memref<264xf32, #tpu.memory_space<smem>>
    %c0_27 = arith.constant 0 : index
    %c1_28 = arith.constant 1 : index
    %c1_29 = arith.constant 1 : index
    %c0_30 = arith.constant 0 : index
    %50 = vector.load %arg2[%c0_27, %c1_28, %c1_29, %c0_30] : memref<1x2x8x256xf32, #tpu.memory_space<vmem>>, vector<1x1x2x256xf32>
    %51 = vector.shape_cast %50 : vector<1x1x2x256xf32> to vector<2x256xf32>
    %52 = vector.broadcast %49 : f32 to vector<2x256xf32>
    %53 = arith.mulf %52, %51 : vector<2x256xf32>
    %54 = arith.addf %48, %53 : vector<2x256xf32>
    %c72 = arith.constant 72 : index
    %55 = memref.load %arg3[%c72] : memref<264xf32, #tpu.memory_space<smem>>
    %c0_31 = arith.constant 0 : index
    %c0_32 = arith.constant 0 : index
    %c0_33 = arith.constant 0 : index
    %c0_34 = arith.constant 0 : index
    %56 = vector.load %arg2[%c0_31, %c0_32, %c0_33, %c0_34] : memref<1x2x8x256xf32, #tpu.memory_space<vmem>>, vector<1x1x2x256xf32>
    %57 = vector.shape_cast %56 : vector<1x1x2x256xf32> to vector<2x256xf32>
    %58 = vector.broadcast %55 : f32 to vector<2x256xf32>
    %59 = arith.mulf %58, %57 : vector<2x256xf32>
    %60 = arith.addf %54, %59 : vector<2x256xf32>
    %c73 = arith.constant 73 : index
    %61 = memref.load %arg3[%c73] : memref<264xf32, #tpu.memory_space<smem>>
    %c0_35 = arith.constant 0 : index
    %c1_36 = arith.constant 1 : index
    %c0_37 = arith.constant 0 : index
    %c0_38 = arith.constant 0 : index
    %62 = vector.load %arg2[%c0_35, %c1_36, %c0_37, %c0_38] : memref<1x2x8x256xf32, #tpu.memory_space<vmem>>, vector<1x1x2x256xf32>
    %63 = vector.shape_cast %62 : vector<1x1x2x256xf32> to vector<2x256xf32>
    %64 = vector.broadcast %61 : f32 to vector<2x256xf32>
    %65 = arith.mulf %64, %63 : vector<2x256xf32>
    %66 = arith.addf %60, %65 : vector<2x256xf32>
    %cst_39 = arith.constant 0.00999999977 : f32
    %67 = vector.broadcast %cst_39 : f32 to vector<2x256xf32>
    %68 = arith.mulf %67, %66 : vector<2x256xf32>
    %69 = arith.maximumf %66, %68 : vector<2x256xf32>
    %70 = vector.extract_strided_slice %40 {offsets = [0, 0], sizes = [1, 256], strides = [1, 1]} : vector<6x256xf32> to vector<1x256xf32>
    %71 = vector.extract_strided_slice %40 {offsets = [1, 0], sizes = [5, 256], strides = [1, 1]} : vector<6x256xf32> to vector<5x256xf32>
    %c0_40 = arith.constant 0 : index
    %c3 = arith.constant 3 : index
    %c0_41 = arith.constant 0 : index
    %72 = vector.load %arg5[%c0_40, %c3, %c0_41] : memref<8x8x256xf32, #tpu.memory_space<vmem>>, vector<1x5x256xf32>
    %73 = vector.shape_cast %72 : vector<1x5x256xf32> to vector<5x256xf32>
    %74 = vector.shape_cast %71 : vector<5x256xf32> to vector<1x5x256xf32>
    tpu.vector_store %arg5[%c0_40, %c3, %c0_41], %74 {strides = array<i32>} : memref<8x8x256xf32, #tpu.memory_space<vmem>>, vector<1x5x256xf32>,
    %75 = vector.broadcast %70 : vector<1x256xf32> to vector<2x256xf32>
    %76 = arith.subf %75, %69 : vector<2x256xf32>
    %c0_42 = arith.constant 0 : index
    %c1_43 = arith.constant 1 : index
    %c0_44 = arith.constant 0 : index
    %77 = vector.load %arg5[%c0_42, %c1_43, %c0_44] : memref<8x8x256xf32, #tpu.memory_space<vmem>>, vector<1x2x256xf32>
    %78 = vector.shape_cast %77 : vector<1x2x256xf32> to vector<2x256xf32>
    %79 = vector.shape_cast %76 : vector<2x256xf32> to vector<1x2x256xf32>
    tpu.vector_store %arg5[%c0_42, %c1_43, %c0_44], %79 {strides = array<i32>} : memref<8x8x256xf32, #tpu.memory_space<vmem>>, vector<1x2x256xf32>,
    %80 = vector.extract_strided_slice %69 {offsets = [0, 0], sizes = [1, 256], strides = [1, 1]} : vector<2x256xf32> to vector<1x256xf32>
    %81 = arith.subf %70, %80 : vector<1x256xf32>
    %c0_45 = arith.constant 0 : index
    %c0_46 = arith.constant 0 : index
    %c0_47 = arith.constant 0 : index
    %82 = vector.load %arg5[%c0_45, %c0_46, %c0_47] : memref<8x8x256xf32, #tpu.memory_space<vmem>>, vector<1x1x256xf32>
    %83 = vector.shape_cast %82 : vector<1x1x256xf32> to vector<1x256xf32>
    %84 = vector.shape_cast %81 : vector<1x256xf32> to vector<1x1x256xf32>
    tpu.vector_store %arg5[%c0_45, %c0_46, %c0_47], %84 {strides = array<i32>} : memref<8x8x256xf32, #tpu.memory_space<vmem>>, vector<1x1x256xf32>,
    %c49 = arith.constant 49 : index
    %85 = memref.load %arg3[%c49] : memref<264xf32, #tpu.memory_space<smem>>
    %86 = vector.broadcast %85 : f32 to vector<6x256xf32>
    %c2_48 = arith.constant 2 : index
    %87 = memref.load %arg3[%c2_48] : memref<264xf32, #tpu.memory_space<smem>>
    %c0_49 = arith.constant 0 : index
    %c0_50 = arith.constant 0 : index
    %c2_51 = arith.constant 2 : index
    %c0_52 = arith.constant 0 : index
    %88 = vector.load %arg2[%c0_49, %c0_50, %c2_51, %c0_52] : memref<1x2x8x256xf32, #tpu.memory_space<vmem>>, vector<1x1x6x256xf32>
    %89 = vector.shape_cast %88 : vector<1x1x6x256xf32> to vector<6x256xf32>
    %90 = vector.broadcast %87 : f32 to vector<6x256xf32>
    %91 = arith.mulf %90, %89 : vector<6x256xf32>
    %92 = arith.addf %86, %91 : vector<6x256xf32>
    %c3_53 = arith.constant 3 : index
    %93 = memref.load %arg3[%c3_53] : memref<264xf32, #tpu.memory_space<smem>>
    %c0_54 = arith.constant 0 : index
    %c1_55 = arith.constant 1 : index
    %c2_56 = arith.constant 2 : index
    %c0_57 = arith.constant 0 : index
    %94 = vector.load %arg2[%c0_54, %c1_55, %c2_56, %c0_57] : memref<1x2x8x256xf32, #tpu.memory_space<vmem>>, vector<1x1x6x256xf32>
    %95 = vector.shape_cast %94 : vector<1x1x6x256xf32> to vector<6x256xf32>
    %96 = vector.broadcast %93 : f32 to vector<6x256xf32>
    %97 = arith.mulf %96, %95 : vector<6x256xf32>
    %98 = arith.addf %92, %97 : vector<6x256xf32>
    %c18 = arith.constant 18 : index
    %99 = memref.load %arg3[%c18] : memref<264xf32, #tpu.memory_space<smem>>
    %c0_58 = arith.constant 0 : index
    %c0_59 = arith.constant 0 : index
    %c1_60 = arith.constant 1 : index
    %c0_61 = arith.constant 0 : index
    %100 = vector.load %arg2[%c0_58, %c0_59, %c1_60, %c0_61] : memref<1x2x8x256xf32, #tpu.memory_space<vmem>>, vector<1x1x6x256xf32>
    %101 = vector.shape_cast %100 : vector<1x1x6x256xf32> to vector<6x256xf32>
    %102 = vector.broadcast %99 : f32 to vector<6x256xf32>
    %103 = arith.mulf %102, %101 : vector<6x256xf32>
    %104 = arith.addf %98, %103 : vector<6x256xf32>
    %c19 = arith.constant 19 : index
    %105 = memref.load %arg3[%c19] : memref<264xf32, #tpu.memory_space<smem>>
    %c0_62 = arith.constant 0 : index
    %c1_63 = arith.constant 1 : index
    %c1_64 = arith.constant 1 : index
    %c0_65 = arith.constant 0 : index
    %106 = vector.load %arg2[%c0_62, %c1_63, %c1_64, %c0_65] : memref<1x2x8x256xf32, #tpu.memory_space<vmem>>, vector<1x1x6x256xf32>
    %107 = vector.shape_cast %106 : vector<1x1x6x256xf32> to vector<6x256xf32>
    %108 = vector.broadcast %105 : f32 to vector<6x256xf32>
    %109 = arith.mulf %108, %107 : vector<6x256xf32>
    %110 = arith.addf %104, %109 : vector<6x256xf32>
    %c34 = arith.constant 34 : index
    %111 = memref.load %arg3[%c34] : memref<264xf32, #tpu.memory_space<smem>>
    %c0_66 = arith.constant 0 : index
    %c0_67 = arith.constant 0 : index
    %c0_68 = arith.constant 0 : index
    %c0_69 = arith.constant 0 : index
    %112 = vector.load %arg2[%c0_66, %c0_67, %c0_68, %c0_69] : memref<1x2x8x256xf32, #tpu.memory_space<vmem>>, vector<1x1x6x256xf32>
    %113 = vector.shape_cast %112 : vector<1x1x6x256xf32> to vector<6x256xf32>
    %114 = vector.broadcast %111 : f32 to vector<6x256xf32>
    %115 = arith.mulf %114, %113 : vector<6x256xf32>
    %116 = arith.addf %110, %115 : vector<6x256xf32>
    %c35 = arith.constant 35 : index
    %117 = memref.load %arg3[%c35] : memref<264xf32, #tpu.memory_space<smem>>
    %c0_70 = arith.constant 0 : index
    %c1_71 = arith.constant 1 : index
    %c0_72 = arith.constant 0 : index
    %c0_73 = arith.constant 0 : index
    %118 = vector.load %arg2[%c0_70, %c1_71, %c0_72, %c0_73] : memref<1x2x8x256xf32, #tpu.memory_space<vmem>>, vector<1x1x6x256xf32>
    %119 = vector.shape_cast %118 : vector<1x1x6x256xf32> to vector<6x256xf32>
    %120 = vector.broadcast %117 : f32 to vector<6x256xf32>
    %121 = arith.mulf %120, %119 : vector<6x256xf32>
    %122 = arith.addf %116, %121 : vector<6x256xf32>
    %cst_74 = arith.constant 0.00999999977 : f32
    %123 = vector.broadcast %cst_74 : f32 to vector<6x256xf32>
    %124 = arith.mulf %123, %122 : vector<6x256xf32>
    %125 = arith.maximumf %122, %124 : vector<6x256xf32>
    %c89 = arith.constant 89 : index
    %126 = memref.load %arg3[%c89] : memref<264xf32, #tpu.memory_space<smem>>
    %127 = vector.broadcast %126 : f32 to vector<2x256xf32>
    %c58 = arith.constant 58 : index
    %128 = memref.load %arg3[%c58] : memref<264xf32, #tpu.memory_space<smem>>
    %c0_75 = arith.constant 0 : index
    %c0_76 = arith.constant 0 : index
    %c1_77 = arith.constant 1 : index
    %c0_78 = arith.constant 0 : index
    %129 = vector.load %arg2[%c0_75, %c0_76, %c1_77, %c0_78] : memref<1x2x8x256xf32, #tpu.memory_space<vmem>>, vector<1x1x2x256xf32>
    %130 = vector.shape_cast %129 : vector<1x1x2x256xf32> to vector<2x256xf32>
    %131 = vector.broadcast %128 : f32 to vector<2x256xf32>
    %132 = arith.mulf %131, %130 : vector<2x256xf32>
    %133 = arith.addf %127, %132 : vector<2x256xf32>
    %c59 = arith.constant 59 : index
    %134 = memref.load %arg3[%c59] : memref<264xf32, #tpu.memory_space<smem>>
    %c0_79 = arith.constant 0 : index
    %c1_80 = arith.constant 1 : index
    %c1_81 = arith.constant 1 : index
    %c0_82 = arith.constant 0 : index
    %135 = vector.load %arg2[%c0_79, %c1_80, %c1_81, %c0_82] : memref<1x2x8x256xf32, #tpu.memory_space<vmem>>, vector<1x1x2x256xf32>
    %136 = vector.shape_cast %135 : vector<1x1x2x256xf32> to vector<2x256xf32>
    %137 = vector.broadcast %134 : f32 to vector<2x256xf32>
    %138 = arith.mulf %137, %136 : vector<2x256xf32>
    %139 = arith.addf %133, %138 : vector<2x256xf32>
    %c74 = arith.constant 74 : index
    %140 = memref.load %arg3[%c74] : memref<264xf32, #tpu.memory_space<smem>>
    %c0_83 = arith.constant 0 : index
    %c0_84 = arith.constant 0 : index
    %c0_85 = arith.constant 0 : index
    %c0_86 = arith.constant 0 : index
    %141 = vector.load %arg2[%c0_83, %c0_84, %c0_85, %c0_86] : memref<1x2x8x256xf32, #tpu.memory_space<vmem>>, vector<1x1x2x256xf32>
    %142 = vector.shape_cast %141 : vector<1x1x2x256xf32> to vector<2x256xf32>
    %143 = vector.broadcast %140 : f32 to vector<2x256xf32>
    %144 = arith.mulf %143, %142 : vector<2x256xf32>
    %145 = arith.addf %139, %144 : vector<2x256xf32>
    %c75 = arith.constant 75 : index
    %146 = memref.load %arg3[%c75] : memref<264xf32, #tpu.memory_space<smem>>
    %c0_87 = arith.constant 0 : index
    %c1_88 = arith.constant 1 : index
    %c0_89 = arith.constant 0 : index
    %c0_90 = arith.constant 0 : index
    %147 = vector.load %arg2[%c0_87, %c1_88, %c0_89, %c0_90] : memref<1x2x8x256xf32, #tpu.memory_space<vmem>>, vector<1x1x2x256xf32>
    %148 = vector.shape_cast %147 : vector<1x1x2x256xf32> to vector<2x256xf32>
    %149 = vector.broadcast %146 : f32 to vector<2x256xf32>
    %150 = arith.mulf %149, %148 : vector<2x256xf32>
    %151 = arith.addf %145, %150 : vector<2x256xf32>
    %cst_91 = arith.constant 0.00999999977 : f32
    %152 = vector.broadcast %cst_91 : f32 to vector<2x256xf32>
    %153 = arith.mulf %152, %151 : vector<2x256xf32>
    %154 = arith.maximumf %151, %153 : vector<2x256xf32>
    %155 = vector.extract_strided_slice %125 {offsets = [0, 0], sizes = [1, 256], strides = [1, 1]} : vector<6x256xf32> to vector<1x256xf32>
    %156 = vector.extract_strided_slice %125 {offsets = [1, 0], sizes = [5, 256], strides = [1, 1]} : vector<6x256xf32> to vector<5x256xf32>
    %c1_92 = arith.constant 1 : index
    %c3_93 = arith.constant 3 : index
    %c0_94 = arith.constant 0 : index
    %157 = vector.load %arg5[%c1_92, %c3_93, %c0_94] : memref<8x8x256xf32, #tpu.memory_space<vmem>>, vector<1x5x256xf32>
    %158 = vector.shape_cast %157 : vector<1x5x256xf32> to vector<5x256xf32>
    %159 = vector.shape_cast %156 : vector<5x256xf32> to vector<1x5x256xf32>
    tpu.vector_store %arg5[%c1_92, %c3_93, %c0_94], %159 {strides = array<i32>} : memref<8x8x256xf32, #tpu.memory_space<vmem>>, vector<1x5x256xf32>,
    %160 = vector.broadcast %155 : vector<1x256xf32> to vector<2x256xf32>
    %161 = arith.subf %160, %154 : vector<2x256xf32>
    %c1_95 = arith.constant 1 : index
    %c1_96 = arith.constant 1 : index
    %c0_97 = arith.constant 0 : index
    %162 = vector.load %arg5[%c1_95, %c1_96, %c0_97] : memref<8x8x256xf32, #tpu.memory_space<vmem>>, vector<1x2x256xf32>
    %163 = vector.shape_cast %162 : vector<1x2x256xf32> to vector<2x256xf32>
    %164 = vector.shape_cast %161 : vector<2x256xf32> to vector<1x2x256xf32>
    tpu.vector_store %arg5[%c1_95, %c1_96, %c0_97], %164 {strides = array<i32>} : memref<8x8x256xf32, #tpu.memory_space<vmem>>, vector<1x2x256xf32>,
    %165 = vector.extract_strided_slice %154 {offsets = [0, 0], sizes = [1, 256], strides = [1, 1]} : vector<2x256xf32> to vector<1x256xf32>
    %166 = arith.subf %155, %165 : vector<1x256xf32>
    %c1_98 = arith.constant 1 : index
    %c0_99 = arith.constant 0 : index
    %c0_100 = arith.constant 0 : index
    %167 = vector.load %arg5[%c1_98, %c0_99, %c0_100] : memref<8x8x256xf32, #tpu.memory_space<vmem>>, vector<1x1x256xf32>
    %168 = vector.shape_cast %167 : vector<1x1x256xf32> to vector<1x256xf32>
    %169 = vector.shape_cast %166 : vector<1x256xf32> to vector<1x1x256xf32>
    tpu.vector_store %arg5[%c1_98, %c0_99, %c0_100], %169 {strides = array<i32>} : memref<8x8x256xf32, #tpu.memory_space<vmem>>, vector<1x1x256xf32>,
    %c50 = arith.constant 50 : index
    %170 = memref.load %arg3[%c50] : memref<264xf32, #tpu.memory_space<smem>>
    %171 = vector.broadcast %170 : f32 to vector<6x256xf32>
    %c4 = arith.constant 4 : index
    %172 = memref.load %arg3[%c4] : memref<264xf32, #tpu.memory_space<smem>>
    %c0_101 = arith.constant 0 : index
    %c0_102 = arith.constant 0 : index
    %c2_103 = arith.constant 2 : index
    %c0_104 = arith.constant 0 : index
    %173 = vector.load %arg2[%c0_101, %c0_102, %c2_103, %c0_104] : memref<1x2x8x256xf32, #tpu.memory_space<vmem>>, vector<1x1x6x256xf32>
    %174 = vector.shape_cast %173 : vector<1x1x6x256xf32> to vector<6x256xf32>
    %175 = vector.broadcast %172 : f32 to vector<6x256xf32>
    %176 = arith.mulf %175, %174 : vector<6x256xf32>
    %177 = arith.addf %171, %176 : vector<6x256xf32>
    %c5 = arith.constant 5 : index
    %178 = memref.load %arg3[%c5] : memref<264xf32, #tpu.memory_space<smem>>
    %c0_105 = arith.constant 0 : index
    %c1_106 = arith.constant 1 : index
    %c2_107 = arith.constant 2 : index
    %c0_108 = arith.constant 0 : index
    %179 = vector.load %arg2[%c0_105, %c1_106, %c2_107, %c0_108] : memref<1x2x8x256xf32, #tpu.memory_space<vmem>>, vector<1x1x6x256xf32>
    %180 = vector.shape_cast %179 : vector<1x1x6x256xf32> to vector<6x256xf32>
    %181 = vector.broadcast %178 : f32 to vector<6x256xf32>
    %182 = arith.mulf %181, %180 : vector<6x256xf32>
    %183 = arith.addf %177, %182 : vector<6x256xf32>
    %c20 = arith.constant 20 : index
    %184 = memref.load %arg3[%c20] : memref<264xf32, #tpu.memory_space<smem>>
    %c0_109 = arith.constant 0 : index
    %c0_110 = arith.constant 0 : index
    %c1_111 = arith.constant 1 : index
    %c0_112 = arith.constant 0 : index
    %185 = vector.load %arg2[%c0_109, %c0_110, %c1_111, %c0_112] : memref<1x2x8x256xf32, #tpu.memory_space<vmem>>, vector<1x1x6x256xf32>
    %186 = vector.shape_cast %185 : vector<1x1x6x256xf32> to vector<6x256xf32>
    %187 = vector.broadcast %184 : f32 to vector<6x256xf32>
    %188 = arith.mulf %187, %186 : vector<6x256xf32>
    %189 = arith.addf %183, %188 : vector<6x256xf32>
    %c21 = arith.constant 21 : index
    %190 = memref.load %arg3[%c21] : memref<264xf32, #tpu.memory_space<smem>>
    %c0_113 = arith.constant 0 : index
    %c1_114 = arith.constant 1 : index
    %c1_115 = arith.constant 1 : index
    %c0_116 = arith.constant 0 : index
    %191 = vector.load %arg2[%c0_113, %c1_114, %c1_115, %c0_116] : memref<1x2x8x256xf32, #tpu.memory_space<vmem>>, vector<1x1x6x256xf32>
    %192 = vector.shape_cast %191 : vector<1x1x6x256xf32> to vector<6x256xf32>
    %193 = vector.broadcast %190 : f32 to vector<6x256xf32>
    %194 = arith.mulf %193, %192 : vector<6x256xf32>
    %195 = arith.addf %189, %194 : vector<6x256xf32>
    %c36 = arith.constant 36 : index
    %196 = memref.load %arg3[%c36] : memref<264xf32, #tpu.memory_space<smem>>
    %c0_117 = arith.constant 0 : index
    %c0_118 = arith.constant 0 : index
    %c0_119 = arith.constant 0 : index
    %c0_120 = arith.constant 0 : index
    %197 = vector.load %arg2[%c0_117, %c0_118, %c0_119, %c0_120] : memref<1x2x8x256xf32, #tpu.memory_space<vmem>>, vector<1x1x6x256xf32>
    %198 = vector.shape_cast %197 : vector<1x1x6x256xf32> to vector<6x256xf32>
    %199 = vector.broadcast %196 : f32 to vector<6x256xf32>
    %200 = arith.mulf %199, %198 : vector<6x256xf32>
    %201 = arith.addf %195, %200 : vector<6x256xf32>
    %c37 = arith.constant 37 : index
    %202 = memref.load %arg3[%c37] : memref<264xf32, #tpu.memory_space<smem>>
    %c0_121 = arith.constant 0 : index
    %c1_122 = arith.constant 1 : index
    %c0_123 = arith.constant 0 : index
    %c0_124 = arith.constant 0 : index
    %203 = vector.load %arg2[%c0_121, %c1_122, %c0_123, %c0_124] : memref<1x2x8x256xf32, #tpu.memory_space<vmem>>, vector<1x1x6x256xf32>
    %204 = vector.shape_cast %203 : vector<1x1x6x256xf32> to vector<6x256xf32>
    %205 = vector.broadcast %202 : f32 to vector<6x256xf32>
    %206 = arith.mulf %205, %204 : vector<6x256xf32>
    %207 = arith.addf %201, %206 : vector<6x256xf32>
    %cst_125 = arith.constant 0.00999999977 : f32
    %208 = vector.broadcast %cst_125 : f32 to vector<6x256xf32>
    %209 = arith.mulf %208, %207 : vector<6x256xf32>
    %210 = arith.maximumf %207, %209 : vector<6x256xf32>
    %c90 = arith.constant 90 : index
    %211 = memref.load %arg3[%c90] : memref<264xf32, #tpu.memory_space<smem>>
    %212 = vector.broadcast %211 : f32 to vector<2x256xf32>
    %c60 = arith.constant 60 : index
    %213 = memref.load %arg3[%c60] : memref<264xf32, #tpu.memory_space<smem>>
    %c0_126 = arith.constant 0 : index
    %c0_127 = arith.constant 0 : index
    %c1_128 = arith.constant 1 : index
    %c0_129 = arith.constant 0 : index
    %214 = vector.load %arg2[%c0_126, %c0_127, %c1_128, %c0_129] : memref<1x2x8x256xf32, #tpu.memory_space<vmem>>, vector<1x1x2x256xf32>
    %215 = vector.shape_cast %214 : vector<1x1x2x256xf32> to vector<2x256xf32>
    %216 = vector.broadcast %213 : f32 to vector<2x256xf32>
    %217 = arith.mulf %216, %215 : vector<2x256xf32>
    %218 = arith.addf %212, %217 : vector<2x256xf32>
    %c61 = arith.constant 61 : index
    %219 = memref.load %arg3[%c61] : memref<264xf32, #tpu.memory_space<smem>>
    %c0_130 = arith.constant 0 : index
    %c1_131 = arith.constant 1 : index
    %c1_132 = arith.constant 1 : index
    %c0_133 = arith.constant 0 : index
    %220 = vector.load %arg2[%c0_130, %c1_131, %c1_132, %c0_133] : memref<1x2x8x256xf32, #tpu.memory_space<vmem>>, vector<1x1x2x256xf32>
    %221 = vector.shape_cast %220 : vector<1x1x2x256xf32> to vector<2x256xf32>
    %222 = vector.broadcast %219 : f32 to vector<2x256xf32>
    %223 = arith.mulf %222, %221 : vector<2x256xf32>
    %224 = arith.addf %218, %223 : vector<2x256xf32>
    %c76 = arith.constant 76 : index
    %225 = memref.load %arg3[%c76] : memref<264xf32, #tpu.memory_space<smem>>
    %c0_134 = arith.constant 0 : index
    %c0_135 = arith.constant 0 : index
    %c0_136 = arith.constant 0 : index
    %c0_137 = arith.constant 0 : index
    %226 = vector.load %arg2[%c0_134, %c0_135, %c0_136, %c0_137] : memref<1x2x8x256xf32, #tpu.memory_space<vmem>>, vector<1x1x2x256xf32>
    %227 = vector.shape_cast %226 : vector<1x1x2x256xf32> to vector<2x256xf32>
    %228 = vector.broadcast %225 : f32 to vector<2x256xf32>
    %229 = arith.mulf %228, %227 : vector<2x256xf32>
    %230 = arith.addf %224, %229 : vector<2x256xf32>
    %c77 = arith.constant 77 : index
    %231 = memref.load %arg3[%c77] : memref<264xf32, #tpu.memory_space<smem>>
    %c0_138 = arith.constant 0 : index
    %c1_139 = arith.constant 1 : index
    %c0_140 = arith.constant 0 : index
    %c0_141 = arith.constant 0 : index
    %232 = vector.load %arg2[%c0_138, %c1_139, %c0_140, %c0_141] : memref<1x2x8x256xf32, #tpu.memory_space<vmem>>, vector<1x1x2x256xf32>
    %233 = vector.shape_cast %232 : vector<1x1x2x256xf32> to vector<2x256xf32>
    %234 = vector.broadcast %231 : f32 to vector<2x256xf32>
    %235 = arith.mulf %234, %233 : vector<2x256xf32>
    %236 = arith.addf %230, %235 : vector<2x256xf32>
    %cst_142 = arith.constant 0.00999999977 : f32
    %237 = vector.broadcast %cst_142 : f32 to vector<2x256xf32>
    %238 = arith.mulf %237, %236 : vector<2x256xf32>
    %239 = arith.maximumf %236, %238 : vector<2x256xf32>
    %240 = vector.extract_strided_slice %210 {offsets = [0, 0], sizes = [1, 256], strides = [1, 1]} : vector<6x256xf32> to vector<1x256xf32>
    %241 = vector.extract_strided_slice %210 {offsets = [1, 0], sizes = [5, 256], strides = [1, 1]} : vector<6x256xf32> to vector<5x256xf32>
    %c2_143 = arith.constant 2 : index
    %c3_144 = arith.constant 3 : index
    %c0_145 = arith.constant 0 : index
    %242 = vector.load %arg5[%c2_143, %c3_144, %c0_145] : memref<8x8x256xf32, #tpu.memory_space<vmem>>, vector<1x5x256xf32>
    %243 = vector.shape_cast %242 : vector<1x5x256xf32> to vector<5x256xf32>
    %244 = vector.shape_cast %241 : vector<5x256xf32> to vector<1x5x256xf32>
    tpu.vector_store %arg5[%c2_143, %c3_144, %c0_145], %244 {strides = array<i32>} : memref<8x8x256xf32, #tpu.memory_space<vmem>>, vector<1x5x256xf32>,
    %245 = vector.broadcast %240 : vector<1x256xf32> to vector<2x256xf32>
    %246 = arith.subf %245, %239 : vector<2x256xf32>
    %c2_146 = arith.constant 2 : index
    %c1_147 = arith.constant 1 : index
    %c0_148 = arith.constant 0 : index
    %247 = vector.load %arg5[%c2_146, %c1_147, %c0_148] : memref<8x8x256xf32, #tpu.memory_space<vmem>>, vector<1x2x256xf32>
    %248 = vector.shape_cast %247 : vector<1x2x256xf32> to vector<2x256xf32>
    %249 = vector.shape_cast %246 : vector<2x256xf32> to vector<1x2x256xf32>
    tpu.vector_store %arg5[%c2_146, %c1_147, %c0_148], %249 {strides = array<i32>} : memref<8x8x256xf32, #tpu.memory_space<vmem>>, vector<1x2x256xf32>,
    %250 = vector.extract_strided_slice %239 {offsets = [0, 0], sizes = [1, 256], strides = [1, 1]} : vector<2x256xf32> to vector<1x256xf32>
    %251 = arith.subf %240, %250 : vector<1x256xf32>
    %c2_149 = arith.constant 2 : index
    %c0_150 = arith.constant 0 : index
    %c0_151 = arith.constant 0 : index
    %252 = vector.load %arg5[%c2_149, %c0_150, %c0_151] : memref<8x8x256xf32, #tpu.memory_space<vmem>>, vector<1x1x256xf32>
    %253 = vector.shape_cast %252 : vector<1x1x256xf32> to vector<1x256xf32>
    %254 = vector.shape_cast %251 : vector<1x256xf32> to vector<1x1x256xf32>
    tpu.vector_store %arg5[%c2_149, %c0_150, %c0_151], %254 {strides = array<i32>} : memref<8x8x256xf32, #tpu.memory_space<vmem>>, vector<1x1x256xf32>,
    %c51 = arith.constant 51 : index
    %255 = memref.load %arg3[%c51] : memref<264xf32, #tpu.memory_space<smem>>
    %256 = vector.broadcast %255 : f32 to vector<6x256xf32>
    %c6 = arith.constant 6 : index
    %257 = memref.load %arg3[%c6] : memref<264xf32, #tpu.memory_space<smem>>
    %c0_152 = arith.constant 0 : index
    %c0_153 = arith.constant 0 : index
    %c2_154 = arith.constant 2 : index
    %c0_155 = arith.constant 0 : index
    %258 = vector.load %arg2[%c0_152, %c0_153, %c2_154, %c0_155] : memref<1x2x8x256xf32, #tpu.memory_space<vmem>>, vector<1x1x6x256xf32>
    %259 = vector.shape_cast %258 : vector<1x1x6x256xf32> to vector<6x256xf32>
    %260 = vector.broadcast %257 : f32 to vector<6x256xf32>
    %261 = arith.mulf %260, %259 : vector<6x256xf32>
    %262 = arith.addf %256, %261 : vector<6x256xf32>
    %c7 = arith.constant 7 : index
    %263 = memref.load %arg3[%c7] : memref<264xf32, #tpu.memory_space<smem>>
    %c0_156 = arith.constant 0 : index
    %c1_157 = arith.constant 1 : index
    %c2_158 = arith.constant 2 : index
    %c0_159 = arith.constant 0 : index
    %264 = vector.load %arg2[%c0_156, %c1_157, %c2_158, %c0_159] : memref<1x2x8x256xf32, #tpu.memory_space<vmem>>, vector<1x1x6x256xf32>
    %265 = vector.shape_cast %264 : vector<1x1x6x256xf32> to vector<6x256xf32>
    %266 = vector.broadcast %263 : f32 to vector<6x256xf32>
    %267 = arith.mulf %266, %265 : vector<6x256xf32>
    %268 = arith.addf %262, %267 : vector<6x256xf32>
    %c22 = arith.constant 22 : index
    %269 = memref.load %arg3[%c22] : memref<264xf32, #tpu.memory_space<smem>>
    %c0_160 = arith.constant 0 : index
    %c0_161 = arith.constant 0 : index
    %c1_162 = arith.constant 1 : index
    %c0_163 = arith.constant 0 : index
    %270 = vector.load %arg2[%c0_160, %c0_161, %c1_162, %c0_163] : memref<1x2x8x256xf32, #tpu.memory_space<vmem>>, vector<1x1x6x256xf32>
    %271 = vector.shape_cast %270 : vector<1x1x6x256xf32> to vector<6x256xf32>
    %272 = vector.broadcast %269 : f32 to vector<6x256xf32>
    %273 = arith.mulf %272, %271 : vector<6x256xf32>
    %274 = arith.addf %268, %273 : vector<6x256xf32>
    %c23 = arith.constant 23 : index
    %275 = memref.load %arg3[%c23] : memref<264xf32, #tpu.memory_space<smem>>
    %c0_164 = arith.constant 0 : index
    %c1_165 = arith.constant 1 : index
    %c1_166 = arith.constant 1 : index
    %c0_167 = arith.constant 0 : index
    %276 = vector.load %arg2[%c0_164, %c1_165, %c1_166, %c0_167] : memref<1x2x8x256xf32, #tpu.memory_space<vmem>>, vector<1x1x6x256xf32>
    %277 = vector.shape_cast %276 : vector<1x1x6x256xf32> to vector<6x256xf32>
    %278 = vector.broadcast %275 : f32 to vector<6x256xf32>
    %279 = arith.mulf %278, %277 : vector<6x256xf32>
    %280 = arith.addf %274, %279 : vector<6x256xf32>
    %c38 = arith.constant 38 : index
    %281 = memref.load %arg3[%c38] : memref<264xf32, #tpu.memory_space<smem>>
    %c0_168 = arith.constant 0 : index
    %c0_169 = arith.constant 0 : index
    %c0_170 = arith.constant 0 : index
    %c0_171 = arith.constant 0 : index
    %282 = vector.load %arg2[%c0_168, %c0_169, %c0_170, %c0_171] : memref<1x2x8x256xf32, #tpu.memory_space<vmem>>, vector<1x1x6x256xf32>
    %283 = vector.shape_cast %282 : vector<1x1x6x256xf32> to vector<6x256xf32>
    %284 = vector.broadcast %281 : f32 to vector<6x256xf32>
    %285 = arith.mulf %284, %283 : vector<6x256xf32>
    %286 = arith.addf %280, %285 : vector<6x256xf32>
    %c39 = arith.constant 39 : index
    %287 = memref.load %arg3[%c39] : memref<264xf32, #tpu.memory_space<smem>>
    %c0_172 = arith.constant 0 : index
    %c1_173 = arith.constant 1 : index
    %c0_174 = arith.constant 0 : index
    %c0_175 = arith.constant 0 : index
    %288 = vector.load %arg2[%c0_172, %c1_173, %c0_174, %c0_175] : memref<1x2x8x256xf32, #tpu.memory_space<vmem>>, vector<1x1x6x256xf32>
    %289 = vector.shape_cast %288 : vector<1x1x6x256xf32> to vector<6x256xf32>
    %290 = vector.broadcast %287 : f32 to vector<6x256xf32>
    %291 = arith.mulf %290, %289 : vector<6x256xf32>
    %292 = arith.addf %286, %291 : vector<6x256xf32>
    %cst_176 = arith.constant 0.00999999977 : f32
    %293 = vector.broadcast %cst_176 : f32 to vector<6x256xf32>
    %294 = arith.mulf %293, %292 : vector<6x256xf32>
    %295 = arith.maximumf %292, %294 : vector<6x256xf32>
    %c91 = arith.constant 91 : index
    %296 = memref.load %arg3[%c91] : memref<264xf32, #tpu.memory_space<smem>>
    %297 = vector.broadcast %296 : f32 to vector<2x256xf32>
    %c62 = arith.constant 62 : index
    %298 = memref.load %arg3[%c62] : memref<264xf32, #tpu.memory_space<smem>>
    %c0_177 = arith.constant 0 : index
    %c0_178 = arith.constant 0 : index
    %c1_179 = arith.constant 1 : index
    %c0_180 = arith.constant 0 : index
    %299 = vector.load %arg2[%c0_177, %c0_178, %c1_179, %c0_180] : memref<1x2x8x256xf32, #tpu.memory_space<vmem>>, vector<1x1x2x256xf32>
    %300 = vector.shape_cast %299 : vector<1x1x2x256xf32> to vector<2x256xf32>
    %301 = vector.broadcast %298 : f32 to vector<2x256xf32>
    %302 = arith.mulf %301, %300 : vector<2x256xf32>
    %303 = arith.addf %297, %302 : vector<2x256xf32>
    %c63 = arith.constant 63 : index
    %304 = memref.load %arg3[%c63] : memref<264xf32, #tpu.memory_space<smem>>
    %c0_181 = arith.constant 0 : index
    %c1_182 = arith.constant 1 : index
    %c1_183 = arith.constant 1 : index
    %c0_184 = arith.constant 0 : index
    %305 = vector.load %arg2[%c0_181, %c1_182, %c1_183, %c0_184] : memref<1x2x8x256xf32, #tpu.memory_space<vmem>>, vector<1x1x2x256xf32>
    %306 = vector.shape_cast %305 : vector<1x1x2x256xf32> to vector<2x256xf32>
    %307 = vector.broadcast %304 : f32 to vector<2x256xf32>
    %308 = arith.mulf %307, %306 : vector<2x256xf32>
    %309 = arith.addf %303, %308 : vector<2x256xf32>
    %c78 = arith.constant 78 : index
    %310 = memref.load %arg3[%c78] : memref<264xf32, #tpu.memory_space<smem>>
    %c0_185 = arith.constant 0 : index
    %c0_186 = arith.constant 0 : index
    %c0_187 = arith.constant 0 : index
    %c0_188 = arith.constant 0 : index
    %311 = vector.load %arg2[%c0_185, %c0_186, %c0_187, %c0_188] : memref<1x2x8x256xf32, #tpu.memory_space<vmem>>, vector<1x1x2x256xf32>
    %312 = vector.shape_cast %311 : vector<1x1x2x256xf32> to vector<2x256xf32>
    %313 = vector.broadcast %310 : f32 to vector<2x256xf32>
    %314 = arith.mulf %313, %312 : vector<2x256xf32>
    %315 = arith.addf %309, %314 : vector<2x256xf32>
    %c79 = arith.constant 79 : index
    %316 = memref.load %arg3[%c79] : memref<264xf32, #tpu.memory_space<smem>>
    %c0_189 = arith.constant 0 : index
    %c1_190 = arith.constant 1 : index
    %c0_191 = arith.constant 0 : index
    %c0_192 = arith.constant 0 : index
    %317 = vector.load %arg2[%c0_189, %c1_190, %c0_191, %c0_192] : memref<1x2x8x256xf32, #tpu.memory_space<vmem>>, vector<1x1x2x256xf32>
    %318 = vector.shape_cast %317 : vector<1x1x2x256xf32> to vector<2x256xf32>
    %319 = vector.broadcast %316 : f32 to vector<2x256xf32>
    %320 = arith.mulf %319, %318 : vector<2x256xf32>
    %321 = arith.addf %315, %320 : vector<2x256xf32>
    %cst_193 = arith.constant 0.00999999977 : f32
    %322 = vector.broadcast %cst_193 : f32 to vector<2x256xf32>
    %323 = arith.mulf %322, %321 : vector<2x256xf32>
    %324 = arith.maximumf %321, %323 : vector<2x256xf32>
    %325 = vector.extract_strided_slice %295 {offsets = [0, 0], sizes = [1, 256], strides = [1, 1]} : vector<6x256xf32> to vector<1x256xf32>
    %326 = vector.extract_strided_slice %295 {offsets = [1, 0], sizes = [5, 256], strides = [1, 1]} : vector<6x256xf32> to vector<5x256xf32>
    %c3_194 = arith.constant 3 : index
    %c3_195 = arith.constant 3 : index
    %c0_196 = arith.constant 0 : index
    %327 = vector.load %arg5[%c3_194, %c3_195, %c0_196] : memref<8x8x256xf32, #tpu.memory_space<vmem>>, vector<1x5x256xf32>
    %328 = vector.shape_cast %327 : vector<1x5x256xf32> to vector<5x256xf32>
    %329 = vector.shape_cast %326 : vector<5x256xf32> to vector<1x5x256xf32>
    tpu.vector_store %arg5[%c3_194, %c3_195, %c0_196], %329 {strides = array<i32>} : memref<8x8x256xf32, #tpu.memory_space<vmem>>, vector<1x5x256xf32>,
    %330 = vector.broadcast %325 : vector<1x256xf32> to vector<2x256xf32>
    %331 = arith.subf %330, %324 : vector<2x256xf32>
    %c3_197 = arith.constant 3 : index
    %c1_198 = arith.constant 1 : index
    %c0_199 = arith.constant 0 : index
    %332 = vector.load %arg5[%c3_197, %c1_198, %c0_199] : memref<8x8x256xf32, #tpu.memory_space<vmem>>, vector<1x2x256xf32>
    %333 = vector.shape_cast %332 : vector<1x2x256xf32> to vector<2x256xf32>
    %334 = vector.shape_cast %331 : vector<2x256xf32> to vector<1x2x256xf32>
    tpu.vector_store %arg5[%c3_197, %c1_198, %c0_199], %334 {strides = array<i32>} : memref<8x8x256xf32, #tpu.memory_space<vmem>>, vector<1x2x256xf32>,
    %335 = vector.extract_strided_slice %324 {offsets = [0, 0], sizes = [1, 256], strides = [1, 1]} : vector<2x256xf32> to vector<1x256xf32>
    %336 = arith.subf %325, %335 : vector<1x256xf32>
    %c3_200 = arith.constant 3 : index
    %c0_201 = arith.constant 0 : index
    %c0_202 = arith.constant 0 : index
    %337 = vector.load %arg5[%c3_200, %c0_201, %c0_202] : memref<8x8x256xf32, #tpu.memory_space<vmem>>, vector<1x1x256xf32>
    %338 = vector.shape_cast %337 : vector<1x1x256xf32> to vector<1x256xf32>
    %339 = vector.shape_cast %336 : vector<1x256xf32> to vector<1x1x256xf32>
    tpu.vector_store %arg5[%c3_200, %c0_201, %c0_202], %339 {strides = array<i32>} : memref<8x8x256xf32, #tpu.memory_space<vmem>>, vector<1x1x256xf32>,
    %c52 = arith.constant 52 : index
    %340 = memref.load %arg3[%c52] : memref<264xf32, #tpu.memory_space<smem>>
    %341 = vector.broadcast %340 : f32 to vector<6x256xf32>
    %c8 = arith.constant 8 : index
    %342 = memref.load %arg3[%c8] : memref<264xf32, #tpu.memory_space<smem>>
    %c0_203 = arith.constant 0 : index
    %c0_204 = arith.constant 0 : index
    %c2_205 = arith.constant 2 : index
    %c0_206 = arith.constant 0 : index
    %343 = vector.load %arg2[%c0_203, %c0_204, %c2_205, %c0_206] : memref<1x2x8x256xf32, #tpu.memory_space<vmem>>, vector<1x1x6x256xf32>
    %344 = vector.shape_cast %343 : vector<1x1x6x256xf32> to vector<6x256xf32>
    %345 = vector.broadcast %342 : f32 to vector<6x256xf32>
    %346 = arith.mulf %345, %344 : vector<6x256xf32>
    %347 = arith.addf %341, %346 : vector<6x256xf32>
    %c9 = arith.constant 9 : index
    %348 = memref.load %arg3[%c9] : memref<264xf32, #tpu.memory_space<smem>>
    %c0_207 = arith.constant 0 : index
    %c1_208 = arith.constant 1 : index
    %c2_209 = arith.constant 2 : index
    %c0_210 = arith.constant 0 : index
    %349 = vector.load %arg2[%c0_207, %c1_208, %c2_209, %c0_210] : memref<1x2x8x256xf32, #tpu.memory_space<vmem>>, vector<1x1x6x256xf32>
    %350 = vector.shape_cast %349 : vector<1x1x6x256xf32> to vector<6x256xf32>
    %351 = vector.broadcast %348 : f32 to vector<6x256xf32>
    %352 = arith.mulf %351, %350 : vector<6x256xf32>
    %353 = arith.addf %347, %352 : vector<6x256xf32>
    %c24 = arith.constant 24 : index
    %354 = memref.load %arg3[%c24] : memref<264xf32, #tpu.memory_space<smem>>
    %c0_211 = arith.constant 0 : index
    %c0_212 = arith.constant 0 : index
    %c1_213 = arith.constant 1 : index
    %c0_214 = arith.constant 0 : index
    %355 = vector.load %arg2[%c0_211, %c0_212, %c1_213, %c0_214] : memref<1x2x8x256xf32, #tpu.memory_space<vmem>>, vector<1x1x6x256xf32>
    %356 = vector.shape_cast %355 : vector<1x1x6x256xf32> to vector<6x256xf32>
    %357 = vector.broadcast %354 : f32 to vector<6x256xf32>
    %358 = arith.mulf %357, %356 : vector<6x256xf32>
    %359 = arith.addf %353, %358 : vector<6x256xf32>
    %c25 = arith.constant 25 : index
    %360 = memref.load %arg3[%c25] : memref<264xf32, #tpu.memory_space<smem>>
    %c0_215 = arith.constant 0 : index
    %c1_216 = arith.constant 1 : index
    %c1_217 = arith.constant 1 : index
    %c0_218 = arith.constant 0 : index
    %361 = vector.load %arg2[%c0_215, %c1_216, %c1_217, %c0_218] : memref<1x2x8x256xf32, #tpu.memory_space<vmem>>, vector<1x1x6x256xf32>
    %362 = vector.shape_cast %361 : vector<1x1x6x256xf32> to vector<6x256xf32>
    %363 = vector.broadcast %360 : f32 to vector<6x256xf32>
    %364 = arith.mulf %363, %362 : vector<6x256xf32>
    %365 = arith.addf %359, %364 : vector<6x256xf32>
    %c40 = arith.constant 40 : index
    %366 = memref.load %arg3[%c40] : memref<264xf32, #tpu.memory_space<smem>>
    %c0_219 = arith.constant 0 : index
    %c0_220 = arith.constant 0 : index
    %c0_221 = arith.constant 0 : index
    %c0_222 = arith.constant 0 : index
    %367 = vector.load %arg2[%c0_219, %c0_220, %c0_221, %c0_222] : memref<1x2x8x256xf32, #tpu.memory_space<vmem>>, vector<1x1x6x256xf32>
    %368 = vector.shape_cast %367 : vector<1x1x6x256xf32> to vector<6x256xf32>
    %369 = vector.broadcast %366 : f32 to vector<6x256xf32>
    %370 = arith.mulf %369, %368 : vector<6x256xf32>
    %371 = arith.addf %365, %370 : vector<6x256xf32>
    %c41 = arith.constant 41 : index
    %372 = memref.load %arg3[%c41] : memref<264xf32, #tpu.memory_space<smem>>
    %c0_223 = arith.constant 0 : index
    %c1_224 = arith.constant 1 : index
    %c0_225 = arith.constant 0 : index
    %c0_226 = arith.constant 0 : index
    %373 = vector.load %arg2[%c0_223, %c1_224, %c0_225, %c0_226] : memref<1x2x8x256xf32, #tpu.memory_space<vmem>>, vector<1x1x6x256xf32>
    %374 = vector.shape_cast %373 : vector<1x1x6x256xf32> to vector<6x256xf32>
    %375 = vector.broadcast %372 : f32 to vector<6x256xf32>
    %376 = arith.mulf %375, %374 : vector<6x256xf32>
    %377 = arith.addf %371, %376 : vector<6x256xf32>
    %cst_227 = arith.constant 0.00999999977 : f32
    %378 = vector.broadcast %cst_227 : f32 to vector<6x256xf32>
    %379 = arith.mulf %378, %377 : vector<6x256xf32>
    %380 = arith.maximumf %377, %379 : vector<6x256xf32>
    %c92 = arith.constant 92 : index
    %381 = memref.load %arg3[%c92] : memref<264xf32, #tpu.memory_space<smem>>
    %382 = vector.broadcast %381 : f32 to vector<2x256xf32>
    %c64 = arith.constant 64 : index
    %383 = memref.load %arg3[%c64] : memref<264xf32, #tpu.memory_space<smem>>
    %c0_228 = arith.constant 0 : index
    %c0_229 = arith.constant 0 : index
    %c1_230 = arith.constant 1 : index
    %c0_231 = arith.constant 0 : index
    %384 = vector.load %arg2[%c0_228, %c0_229, %c1_230, %c0_231] : memref<1x2x8x256xf32, #tpu.memory_space<vmem>>, vector<1x1x2x256xf32>
    %385 = vector.shape_cast %384 : vector<1x1x2x256xf32> to vector<2x256xf32>
    %386 = vector.broadcast %383 : f32 to vector<2x256xf32>
    %387 = arith.mulf %386, %385 : vector<2x256xf32>
    %388 = arith.addf %382, %387 : vector<2x256xf32>
    %c65 = arith.constant 65 : index
    %389 = memref.load %arg3[%c65] : memref<264xf32, #tpu.memory_space<smem>>
    %c0_232 = arith.constant 0 : index
    %c1_233 = arith.constant 1 : index
    %c1_234 = arith.constant 1 : index
    %c0_235 = arith.constant 0 : index
    %390 = vector.load %arg2[%c0_232, %c1_233, %c1_234, %c0_235] : memref<1x2x8x256xf32, #tpu.memory_space<vmem>>, vector<1x1x2x256xf32>
    %391 = vector.shape_cast %390 : vector<1x1x2x256xf32> to vector<2x256xf32>
    %392 = vector.broadcast %389 : f32 to vector<2x256xf32>
    %393 = arith.mulf %392, %391 : vector<2x256xf32>
    %394 = arith.addf %388, %393 : vector<2x256xf32>
    %c80 = arith.constant 80 : index
    %395 = memref.load %arg3[%c80] : memref<264xf32, #tpu.memory_space<smem>>
    %c0_236 = arith.constant 0 : index
    %c0_237 = arith.constant 0 : index
    %c0_238 = arith.constant 0 : index
    %c0_239 = arith.constant 0 : index
    %396 = vector.load %arg2[%c0_236, %c0_237, %c0_238, %c0_239] : memref<1x2x8x256xf32, #tpu.memory_space<vmem>>, vector<1x1x2x256xf32>
    %397 = vector.shape_cast %396 : vector<1x1x2x256xf32> to vector<2x256xf32>
    %398 = vector.broadcast %395 : f32 to vector<2x256xf32>
    %399 = arith.mulf %398, %397 : vector<2x256xf32>
    %400 = arith.addf %394, %399 : vector<2x256xf32>
    %c81 = arith.constant 81 : index
    %401 = memref.load %arg3[%c81] : memref<264xf32, #tpu.memory_space<smem>>
    %c0_240 = arith.constant 0 : index
    %c1_241 = arith.constant 1 : index
    %c0_242 = arith.constant 0 : index
    %c0_243 = arith.constant 0 : index
    %402 = vector.load %arg2[%c0_240, %c1_241, %c0_242, %c0_243] : memref<1x2x8x256xf32, #tpu.memory_space<vmem>>, vector<1x1x2x256xf32>
    %403 = vector.shape_cast %402 : vector<1x1x2x256xf32> to vector<2x256xf32>
    %404 = vector.broadcast %401 : f32 to vector<2x256xf32>
    %405 = arith.mulf %404, %403 : vector<2x256xf32>
    %406 = arith.addf %400, %405 : vector<2x256xf32>
    %cst_244 = arith.constant 0.00999999977 : f32
    %407 = vector.broadcast %cst_244 : f32 to vector<2x256xf32>
    %408 = arith.mulf %407, %406 : vector<2x256xf32>
    %409 = arith.maximumf %406, %408 : vector<2x256xf32>
    %410 = vector.extract_strided_slice %380 {offsets = [0, 0], sizes = [1, 256], strides = [1, 1]} : vector<6x256xf32> to vector<1x256xf32>
    %411 = vector.extract_strided_slice %380 {offsets = [1, 0], sizes = [5, 256], strides = [1, 1]} : vector<6x256xf32> to vector<5x256xf32>
    %c4_245 = arith.constant 4 : index
    %c3_246 = arith.constant 3 : index
    %c0_247 = arith.constant 0 : index
    %412 = vector.load %arg5[%c4_245, %c3_246, %c0_247] : memref<8x8x256xf32, #tpu.memory_space<vmem>>, vector<1x5x256xf32>
    %413 = vector.shape_cast %412 : vector<1x5x256xf32> to vector<5x256xf32>
    %414 = vector.shape_cast %411 : vector<5x256xf32> to vector<1x5x256xf32>
    tpu.vector_store %arg5[%c4_245, %c3_246, %c0_247], %414 {strides = array<i32>} : memref<8x8x256xf32, #tpu.memory_space<vmem>>, vector<1x5x256xf32>,
    %415 = vector.broadcast %410 : vector<1x256xf32> to vector<2x256xf32>
    %416 = arith.subf %415, %409 : vector<2x256xf32>
    %c4_248 = arith.constant 4 : index
    %c1_249 = arith.constant 1 : index
    %c0_250 = arith.constant 0 : index
    %417 = vector.load %arg5[%c4_248, %c1_249, %c0_250] : memref<8x8x256xf32, #tpu.memory_space<vmem>>, vector<1x2x256xf32>
    %418 = vector.shape_cast %417 : vector<1x2x256xf32> to vector<2x256xf32>
    %419 = vector.shape_cast %416 : vector<2x256xf32> to vector<1x2x256xf32>
    tpu.vector_store %arg5[%c4_248, %c1_249, %c0_250], %419 {strides = array<i32>} : memref<8x8x256xf32, #tpu.memory_space<vmem>>, vector<1x2x256xf32>,
    %420 = vector.extract_strided_slice %409 {offsets = [0, 0], sizes = [1, 256], strides = [1, 1]} : vector<2x256xf32> to vector<1x256xf32>
    %421 = arith.subf %410, %420 : vector<1x256xf32>
    %c4_251 = arith.constant 4 : index
    %c0_252 = arith.constant 0 : index
    %c0_253 = arith.constant 0 : index
    %422 = vector.load %arg5[%c4_251, %c0_252, %c0_253] : memref<8x8x256xf32, #tpu.memory_space<vmem>>, vector<1x1x256xf32>
    %423 = vector.shape_cast %422 : vector<1x1x256xf32> to vector<1x256xf32>
    %424 = vector.shape_cast %421 : vector<1x256xf32> to vector<1x1x256xf32>
    tpu.vector_store %arg5[%c4_251, %c0_252, %c0_253], %424 {strides = array<i32>} : memref<8x8x256xf32, #tpu.memory_space<vmem>>, vector<1x1x256xf32>,
    %c53 = arith.constant 53 : index
    %425 = memref.load %arg3[%c53] : memref<264xf32, #tpu.memory_space<smem>>
    %426 = vector.broadcast %425 : f32 to vector<6x256xf32>
    %c10 = arith.constant 10 : index
    %427 = memref.load %arg3[%c10] : memref<264xf32, #tpu.memory_space<smem>>
    %c0_254 = arith.constant 0 : index
    %c0_255 = arith.constant 0 : index
    %c2_256 = arith.constant 2 : index
    %c0_257 = arith.constant 0 : index
    %428 = vector.load %arg2[%c0_254, %c0_255, %c2_256, %c0_257] : memref<1x2x8x256xf32, #tpu.memory_space<vmem>>, vector<1x1x6x256xf32>
    %429 = vector.shape_cast %428 : vector<1x1x6x256xf32> to vector<6x256xf32>
    %430 = vector.broadcast %427 : f32 to vector<6x256xf32>
    %431 = arith.mulf %430, %429 : vector<6x256xf32>
    %432 = arith.addf %426, %431 : vector<6x256xf32>
    %c11 = arith.constant 11 : index
    %433 = memref.load %arg3[%c11] : memref<264xf32, #tpu.memory_space<smem>>
    %c0_258 = arith.constant 0 : index
    %c1_259 = arith.constant 1 : index
    %c2_260 = arith.constant 2 : index
    %c0_261 = arith.constant 0 : index
    %434 = vector.load %arg2[%c0_258, %c1_259, %c2_260, %c0_261] : memref<1x2x8x256xf32, #tpu.memory_space<vmem>>, vector<1x1x6x256xf32>
    %435 = vector.shape_cast %434 : vector<1x1x6x256xf32> to vector<6x256xf32>
    %436 = vector.broadcast %433 : f32 to vector<6x256xf32>
    %437 = arith.mulf %436, %435 : vector<6x256xf32>
    %438 = arith.addf %432, %437 : vector<6x256xf32>
    %c26 = arith.constant 26 : index
    %439 = memref.load %arg3[%c26] : memref<264xf32, #tpu.memory_space<smem>>
    %c0_262 = arith.constant 0 : index
    %c0_263 = arith.constant 0 : index
    %c1_264 = arith.constant 1 : index
    %c0_265 = arith.constant 0 : index
    %440 = vector.load %arg2[%c0_262, %c0_263, %c1_264, %c0_265] : memref<1x2x8x256xf32, #tpu.memory_space<vmem>>, vector<1x1x6x256xf32>
    %441 = vector.shape_cast %440 : vector<1x1x6x256xf32> to vector<6x256xf32>
    %442 = vector.broadcast %439 : f32 to vector<6x256xf32>
    %443 = arith.mulf %442, %441 : vector<6x256xf32>
    %444 = arith.addf %438, %443 : vector<6x256xf32>
    %c27 = arith.constant 27 : index
    %445 = memref.load %arg3[%c27] : memref<264xf32, #tpu.memory_space<smem>>
    %c0_266 = arith.constant 0 : index
    %c1_267 = arith.constant 1 : index
    %c1_268 = arith.constant 1 : index
    %c0_269 = arith.constant 0 : index
    %446 = vector.load %arg2[%c0_266, %c1_267, %c1_268, %c0_269] : memref<1x2x8x256xf32, #tpu.memory_space<vmem>>, vector<1x1x6x256xf32>
    %447 = vector.shape_cast %446 : vector<1x1x6x256xf32> to vector<6x256xf32>
    %448 = vector.broadcast %445 : f32 to vector<6x256xf32>
    %449 = arith.mulf %448, %447 : vector<6x256xf32>
    %450 = arith.addf %444, %449 : vector<6x256xf32>
    %c42 = arith.constant 42 : index
    %451 = memref.load %arg3[%c42] : memref<264xf32, #tpu.memory_space<smem>>
    %c0_270 = arith.constant 0 : index
    %c0_271 = arith.constant 0 : index
    %c0_272 = arith.constant 0 : index
    %c0_273 = arith.constant 0 : index
    %452 = vector.load %arg2[%c0_270, %c0_271, %c0_272, %c0_273] : memref<1x2x8x256xf32, #tpu.memory_space<vmem>>, vector<1x1x6x256xf32>
    %453 = vector.shape_cast %452 : vector<1x1x6x256xf32> to vector<6x256xf32>
    %454 = vector.broadcast %451 : f32 to vector<6x256xf32>
    %455 = arith.mulf %454, %453 : vector<6x256xf32>
    %456 = arith.addf %450, %455 : vector<6x256xf32>
    %c43 = arith.constant 43 : index
    %457 = memref.load %arg3[%c43] : memref<264xf32, #tpu.memory_space<smem>>
    %c0_274 = arith.constant 0 : index
    %c1_275 = arith.constant 1 : index
    %c0_276 = arith.constant 0 : index
    %c0_277 = arith.constant 0 : index
    %458 = vector.load %arg2[%c0_274, %c1_275, %c0_276, %c0_277] : memref<1x2x8x256xf32, #tpu.memory_space<vmem>>, vector<1x1x6x256xf32>
    %459 = vector.shape_cast %458 : vector<1x1x6x256xf32> to vector<6x256xf32>
    %460 = vector.broadcast %457 : f32 to vector<6x256xf32>
    %461 = arith.mulf %460, %459 : vector<6x256xf32>
    %462 = arith.addf %456, %461 : vector<6x256xf32>
    %cst_278 = arith.constant 0.00999999977 : f32
    %463 = vector.broadcast %cst_278 : f32 to vector<6x256xf32>
    %464 = arith.mulf %463, %462 : vector<6x256xf32>
    %465 = arith.maximumf %462, %464 : vector<6x256xf32>
    %c93 = arith.constant 93 : index
    %466 = memref.load %arg3[%c93] : memref<264xf32, #tpu.memory_space<smem>>
    %467 = vector.broadcast %466 : f32 to vector<2x256xf32>
    %c66 = arith.constant 66 : index
    %468 = memref.load %arg3[%c66] : memref<264xf32, #tpu.memory_space<smem>>
    %c0_279 = arith.constant 0 : index
    %c0_280 = arith.constant 0 : index
    %c1_281 = arith.constant 1 : index
    %c0_282 = arith.constant 0 : index
    %469 = vector.load %arg2[%c0_279, %c0_280, %c1_281, %c0_282] : memref<1x2x8x256xf32, #tpu.memory_space<vmem>>, vector<1x1x2x256xf32>
    %470 = vector.shape_cast %469 : vector<1x1x2x256xf32> to vector<2x256xf32>
    %471 = vector.broadcast %468 : f32 to vector<2x256xf32>
    %472 = arith.mulf %471, %470 : vector<2x256xf32>
    %473 = arith.addf %467, %472 : vector<2x256xf32>
    %c67 = arith.constant 67 : index
    %474 = memref.load %arg3[%c67] : memref<264xf32, #tpu.memory_space<smem>>
    %c0_283 = arith.constant 0 : index
    %c1_284 = arith.constant 1 : index
    %c1_285 = arith.constant 1 : index
    %c0_286 = arith.constant 0 : index
    %475 = vector.load %arg2[%c0_283, %c1_284, %c1_285, %c0_286] : memref<1x2x8x256xf32, #tpu.memory_space<vmem>>, vector<1x1x2x256xf32>
    %476 = vector.shape_cast %475 : vector<1x1x2x256xf32> to vector<2x256xf32>
    %477 = vector.broadcast %474 : f32 to vector<2x256xf32>
    %478 = arith.mulf %477, %476 : vector<2x256xf32>
    %479 = arith.addf %473, %478 : vector<2x256xf32>
    %c82 = arith.constant 82 : index
    %480 = memref.load %arg3[%c82] : memref<264xf32, #tpu.memory_space<smem>>
    %c0_287 = arith.constant 0 : index
    %c0_288 = arith.constant 0 : index
    %c0_289 = arith.constant 0 : index
    %c0_290 = arith.constant 0 : index
    %481 = vector.load %arg2[%c0_287, %c0_288, %c0_289, %c0_290] : memref<1x2x8x256xf32, #tpu.memory_space<vmem>>, vector<1x1x2x256xf32>
    %482 = vector.shape_cast %481 : vector<1x1x2x256xf32> to vector<2x256xf32>
    %483 = vector.broadcast %480 : f32 to vector<2x256xf32>
    %484 = arith.mulf %483, %482 : vector<2x256xf32>
    %485 = arith.addf %479, %484 : vector<2x256xf32>
    %c83 = arith.constant 83 : index
    %486 = memref.load %arg3[%c83] : memref<264xf32, #tpu.memory_space<smem>>
    %c0_291 = arith.constant 0 : index
    %c1_292 = arith.constant 1 : index
    %c0_293 = arith.constant 0 : index
    %c0_294 = arith.constant 0 : index
    %487 = vector.load %arg2[%c0_291, %c1_292, %c0_293, %c0_294] : memref<1x2x8x256xf32, #tpu.memory_space<vmem>>, vector<1x1x2x256xf32>
    %488 = vector.shape_cast %487 : vector<1x1x2x256xf32> to vector<2x256xf32>
    %489 = vector.broadcast %486 : f32 to vector<2x256xf32>
    %490 = arith.mulf %489, %488 : vector<2x256xf32>
    %491 = arith.addf %485, %490 : vector<2x256xf32>
    %cst_295 = arith.constant 0.00999999977 : f32
    %492 = vector.broadcast %cst_295 : f32 to vector<2x256xf32>
    %493 = arith.mulf %492, %491 : vector<2x256xf32>
    %494 = arith.maximumf %491, %493 : vector<2x256xf32>
    %495 = vector.extract_strided_slice %465 {offsets = [0, 0], sizes = [1, 256], strides = [1, 1]} : vector<6x256xf32> to vector<1x256xf32>
    %496 = vector.extract_strided_slice %465 {offsets = [1, 0], sizes = [5, 256], strides = [1, 1]} : vector<6x256xf32> to vector<5x256xf32>
    %c5_296 = arith.constant 5 : index
    %c3_297 = arith.constant 3 : index
    %c0_298 = arith.constant 0 : index
    %497 = vector.load %arg5[%c5_296, %c3_297, %c0_298] : memref<8x8x256xf32, #tpu.memory_space<vmem>>, vector<1x5x256xf32>
    %498 = vector.shape_cast %497 : vector<1x5x256xf32> to vector<5x256xf32>
    %499 = vector.shape_cast %496 : vector<5x256xf32> to vector<1x5x256xf32>
    tpu.vector_store %arg5[%c5_296, %c3_297, %c0_298], %499 {strides = array<i32>} : memref<8x8x256xf32, #tpu.memory_space<vmem>>, vector<1x5x256xf32>,
    %500 = vector.broadcast %495 : vector<1x256xf32> to vector<2x256xf32>
    %501 = arith.subf %500, %494 : vector<2x256xf32>
    %c5_299 = arith.constant 5 : index
    %c1_300 = arith.constant 1 : index
    %c0_301 = arith.constant 0 : index
    %502 = vector.load %arg5[%c5_299, %c1_300, %c0_301] : memref<8x8x256xf32, #tpu.memory_space<vmem>>, vector<1x2x256xf32>
    %503 = vector.shape_cast %502 : vector<1x2x256xf32> to vector<2x256xf32>
    %504 = vector.shape_cast %501 : vector<2x256xf32> to vector<1x2x256xf32>
    tpu.vector_store %arg5[%c5_299, %c1_300, %c0_301], %504 {strides = array<i32>} : memref<8x8x256xf32, #tpu.memory_space<vmem>>, vector<1x2x256xf32>,
    %505 = vector.extract_strided_slice %494 {offsets = [0, 0], sizes = [1, 256], strides = [1, 1]} : vector<2x256xf32> to vector<1x256xf32>
    %506 = arith.subf %495, %505 : vector<1x256xf32>
    %c5_302 = arith.constant 5 : index
    %c0_303 = arith.constant 0 : index
    %c0_304 = arith.constant 0 : index
    %507 = vector.load %arg5[%c5_302, %c0_303, %c0_304] : memref<8x8x256xf32, #tpu.memory_space<vmem>>, vector<1x1x256xf32>
    %508 = vector.shape_cast %507 : vector<1x1x256xf32> to vector<1x256xf32>
    %509 = vector.shape_cast %506 : vector<1x256xf32> to vector<1x1x256xf32>
    tpu.vector_store %arg5[%c5_302, %c0_303, %c0_304], %509 {strides = array<i32>} : memref<8x8x256xf32, #tpu.memory_space<vmem>>, vector<1x1x256xf32>,
    %c54 = arith.constant 54 : index
    %510 = memref.load %arg3[%c54] : memref<264xf32, #tpu.memory_space<smem>>
    %511 = vector.broadcast %510 : f32 to vector<6x256xf32>
    %c12 = arith.constant 12 : index
    %512 = memref.load %arg3[%c12] : memref<264xf32, #tpu.memory_space<smem>>
    %c0_305 = arith.constant 0 : index
    %c0_306 = arith.constant 0 : index
    %c2_307 = arith.constant 2 : index
    %c0_308 = arith.constant 0 : index
    %513 = vector.load %arg2[%c0_305, %c0_306, %c2_307, %c0_308] : memref<1x2x8x256xf32, #tpu.memory_space<vmem>>, vector<1x1x6x256xf32>
    %514 = vector.shape_cast %513 : vector<1x1x6x256xf32> to vector<6x256xf32>
    %515 = vector.broadcast %512 : f32 to vector<6x256xf32>
    %516 = arith.mulf %515, %514 : vector<6x256xf32>
    %517 = arith.addf %511, %516 : vector<6x256xf32>
    %c13 = arith.constant 13 : index
    %518 = memref.load %arg3[%c13] : memref<264xf32, #tpu.memory_space<smem>>
    %c0_309 = arith.constant 0 : index
    %c1_310 = arith.constant 1 : index
    %c2_311 = arith.constant 2 : index
    %c0_312 = arith.constant 0 : index
    %519 = vector.load %arg2[%c0_309, %c1_310, %c2_311, %c0_312] : memref<1x2x8x256xf32, #tpu.memory_space<vmem>>, vector<1x1x6x256xf32>
    %520 = vector.shape_cast %519 : vector<1x1x6x256xf32> to vector<6x256xf32>
    %521 = vector.broadcast %518 : f32 to vector<6x256xf32>
    %522 = arith.mulf %521, %520 : vector<6x256xf32>
    %523 = arith.addf %517, %522 : vector<6x256xf32>
    %c28 = arith.constant 28 : index
    %524 = memref.load %arg3[%c28] : memref<264xf32, #tpu.memory_space<smem>>
    %c0_313 = arith.constant 0 : index
    %c0_314 = arith.constant 0 : index
    %c1_315 = arith.constant 1 : index
    %c0_316 = arith.constant 0 : index
    %525 = vector.load %arg2[%c0_313, %c0_314, %c1_315, %c0_316] : memref<1x2x8x256xf32, #tpu.memory_space<vmem>>, vector<1x1x6x256xf32>
    %526 = vector.shape_cast %525 : vector<1x1x6x256xf32> to vector<6x256xf32>
    %527 = vector.broadcast %524 : f32 to vector<6x256xf32>
    %528 = arith.mulf %527, %526 : vector<6x256xf32>
    %529 = arith.addf %523, %528 : vector<6x256xf32>
    %c29 = arith.constant 29 : index
    %530 = memref.load %arg3[%c29] : memref<264xf32, #tpu.memory_space<smem>>
    %c0_317 = arith.constant 0 : index
    %c1_318 = arith.constant 1 : index
    %c1_319 = arith.constant 1 : index
    %c0_320 = arith.constant 0 : index
    %531 = vector.load %arg2[%c0_317, %c1_318, %c1_319, %c0_320] : memref<1x2x8x256xf32, #tpu.memory_space<vmem>>, vector<1x1x6x256xf32>
    %532 = vector.shape_cast %531 : vector<1x1x6x256xf32> to vector<6x256xf32>
    %533 = vector.broadcast %530 : f32 to vector<6x256xf32>
    %534 = arith.mulf %533, %532 : vector<6x256xf32>
    %535 = arith.addf %529, %534 : vector<6x256xf32>
    %c44 = arith.constant 44 : index
    %536 = memref.load %arg3[%c44] : memref<264xf32, #tpu.memory_space<smem>>
    %c0_321 = arith.constant 0 : index
    %c0_322 = arith.constant 0 : index
    %c0_323 = arith.constant 0 : index
    %c0_324 = arith.constant 0 : index
    %537 = vector.load %arg2[%c0_321, %c0_322, %c0_323, %c0_324] : memref<1x2x8x256xf32, #tpu.memory_space<vmem>>, vector<1x1x6x256xf32>
    %538 = vector.shape_cast %537 : vector<1x1x6x256xf32> to vector<6x256xf32>
    %539 = vector.broadcast %536 : f32 to vector<6x256xf32>
    %540 = arith.mulf %539, %538 : vector<6x256xf32>
    %541 = arith.addf %535, %540 : vector<6x256xf32>
    %c45 = arith.constant 45 : index
    %542 = memref.load %arg3[%c45] : memref<264xf32, #tpu.memory_space<smem>>
    %c0_325 = arith.constant 0 : index
    %c1_326 = arith.constant 1 : index
    %c0_327 = arith.constant 0 : index
    %c0_328 = arith.constant 0 : index
    %543 = vector.load %arg2[%c0_325, %c1_326, %c0_327, %c0_328] : memref<1x2x8x256xf32, #tpu.memory_space<vmem>>, vector<1x1x6x256xf32>
    %544 = vector.shape_cast %543 : vector<1x1x6x256xf32> to vector<6x256xf32>
    %545 = vector.broadcast %542 : f32 to vector<6x256xf32>
    %546 = arith.mulf %545, %544 : vector<6x256xf32>
    %547 = arith.addf %541, %546 : vector<6x256xf32>
    %cst_329 = arith.constant 0.00999999977 : f32
    %548 = vector.broadcast %cst_329 : f32 to vector<6x256xf32>
    %549 = arith.mulf %548, %547 : vector<6x256xf32>
    %550 = arith.maximumf %547, %549 : vector<6x256xf32>
    %c94 = arith.constant 94 : index
    %551 = memref.load %arg3[%c94] : memref<264xf32, #tpu.memory_space<smem>>
    %552 = vector.broadcast %551 : f32 to vector<2x256xf32>
    %c68 = arith.constant 68 : index
    %553 = memref.load %arg3[%c68] : memref<264xf32, #tpu.memory_space<smem>>
    %c0_330 = arith.constant 0 : index
    %c0_331 = arith.constant 0 : index
    %c1_332 = arith.constant 1 : index
    %c0_333 = arith.constant 0 : index
    %554 = vector.load %arg2[%c0_330, %c0_331, %c1_332, %c0_333] : memref<1x2x8x256xf32, #tpu.memory_space<vmem>>, vector<1x1x2x256xf32>
    %555 = vector.shape_cast %554 : vector<1x1x2x256xf32> to vector<2x256xf32>
    %556 = vector.broadcast %553 : f32 to vector<2x256xf32>
    %557 = arith.mulf %556, %555 : vector<2x256xf32>
    %558 = arith.addf %552, %557 : vector<2x256xf32>
    %c69 = arith.constant 69 : index
    %559 = memref.load %arg3[%c69] : memref<264xf32, #tpu.memory_space<smem>>
    %c0_334 = arith.constant 0 : index
    %c1_335 = arith.constant 1 : index
    %c1_336 = arith.constant 1 : index
    %c0_337 = arith.constant 0 : index
    %560 = vector.load %arg2[%c0_334, %c1_335, %c1_336, %c0_337] : memref<1x2x8x256xf32, #tpu.memory_space<vmem>>, vector<1x1x2x256xf32>
    %561 = vector.shape_cast %560 : vector<1x1x2x256xf32> to vector<2x256xf32>
    %562 = vector.broadcast %559 : f32 to vector<2x256xf32>
    %563 = arith.mulf %562, %561 : vector<2x256xf32>
    %564 = arith.addf %558, %563 : vector<2x256xf32>
    %c84 = arith.constant 84 : index
    %565 = memref.load %arg3[%c84] : memref<264xf32, #tpu.memory_space<smem>>
    %c0_338 = arith.constant 0 : index
    %c0_339 = arith.constant 0 : index
    %c0_340 = arith.constant 0 : index
    %c0_341 = arith.constant 0 : index
    %566 = vector.load %arg2[%c0_338, %c0_339, %c0_340, %c0_341] : memref<1x2x8x256xf32, #tpu.memory_space<vmem>>, vector<1x1x2x256xf32>
    %567 = vector.shape_cast %566 : vector<1x1x2x256xf32> to vector<2x256xf32>
    %568 = vector.broadcast %565 : f32 to vector<2x256xf32>
    %569 = arith.mulf %568, %567 : vector<2x256xf32>
    %570 = arith.addf %564, %569 : vector<2x256xf32>
    %c85 = arith.constant 85 : index
    %571 = memref.load %arg3[%c85] : memref<264xf32, #tpu.memory_space<smem>>
    %c0_342 = arith.constant 0 : index
    %c1_343 = arith.constant 1 : index
    %c0_344 = arith.constant 0 : index
    %c0_345 = arith.constant 0 : index
    %572 = vector.load %arg2[%c0_342, %c1_343, %c0_344, %c0_345] : memref<1x2x8x256xf32, #tpu.memory_space<vmem>>, vector<1x1x2x256xf32>
    %573 = vector.shape_cast %572 : vector<1x1x2x256xf32> to vector<2x256xf32>
    %574 = vector.broadcast %571 : f32 to vector<2x256xf32>
    %575 = arith.mulf %574, %573 : vector<2x256xf32>
    %576 = arith.addf %570, %575 : vector<2x256xf32>
    %cst_346 = arith.constant 0.00999999977 : f32
    %577 = vector.broadcast %cst_346 : f32 to vector<2x256xf32>
    %578 = arith.mulf %577, %576 : vector<2x256xf32>
    %579 = arith.maximumf %576, %578 : vector<2x256xf32>
    %580 = vector.extract_strided_slice %550 {offsets = [0, 0], sizes = [1, 256], strides = [1, 1]} : vector<6x256xf32> to vector<1x256xf32>
    %581 = vector.extract_strided_slice %550 {offsets = [1, 0], sizes = [5, 256], strides = [1, 1]} : vector<6x256xf32> to vector<5x256xf32>
    %c6_347 = arith.constant 6 : index
    %c3_348 = arith.constant 3 : index
    %c0_349 = arith.constant 0 : index
    %582 = vector.load %arg5[%c6_347, %c3_348, %c0_349] : memref<8x8x256xf32, #tpu.memory_space<vmem>>, vector<1x5x256xf32>
    %583 = vector.shape_cast %582 : vector<1x5x256xf32> to vector<5x256xf32>
    %584 = vector.shape_cast %581 : vector<5x256xf32> to vector<1x5x256xf32>
    tpu.vector_store %arg5[%c6_347, %c3_348, %c0_349], %584 {strides = array<i32>} : memref<8x8x256xf32, #tpu.memory_space<vmem>>, vector<1x5x256xf32>,
    %585 = vector.broadcast %580 : vector<1x256xf32> to vector<2x256xf32>
    %586 = arith.subf %585, %579 : vector<2x256xf32>
    %c6_350 = arith.constant 6 : index
    %c1_351 = arith.constant 1 : index
    %c0_352 = arith.constant 0 : index
    %587 = vector.load %arg5[%c6_350, %c1_351, %c0_352] : memref<8x8x256xf32, #tpu.memory_space<vmem>>, vector<1x2x256xf32>
    %588 = vector.shape_cast %587 : vector<1x2x256xf32> to vector<2x256xf32>
    %589 = vector.shape_cast %586 : vector<2x256xf32> to vector<1x2x256xf32>
    tpu.vector_store %arg5[%c6_350, %c1_351, %c0_352], %589 {strides = array<i32>} : memref<8x8x256xf32, #tpu.memory_space<vmem>>, vector<1x2x256xf32>,
    %590 = vector.extract_strided_slice %579 {offsets = [0, 0], sizes = [1, 256], strides = [1, 1]} : vector<2x256xf32> to vector<1x256xf32>
    %591 = arith.subf %580, %590 : vector<1x256xf32>
    %c6_353 = arith.constant 6 : index
    %c0_354 = arith.constant 0 : index
    %c0_355 = arith.constant 0 : index
    %592 = vector.load %arg5[%c6_353, %c0_354, %c0_355] : memref<8x8x256xf32, #tpu.memory_space<vmem>>, vector<1x1x256xf32>
    %593 = vector.shape_cast %592 : vector<1x1x256xf32> to vector<1x256xf32>
    %594 = vector.shape_cast %591 : vector<1x256xf32> to vector<1x1x256xf32>
    tpu.vector_store %arg5[%c6_353, %c0_354, %c0_355], %594 {strides = array<i32>} : memref<8x8x256xf32, #tpu.memory_space<vmem>>, vector<1x1x256xf32>,
    %c55 = arith.constant 55 : index
    %595 = memref.load %arg3[%c55] : memref<264xf32, #tpu.memory_space<smem>>
    %596 = vector.broadcast %595 : f32 to vector<6x256xf32>
    %c14 = arith.constant 14 : index
    %597 = memref.load %arg3[%c14] : memref<264xf32, #tpu.memory_space<smem>>
    %c0_356 = arith.constant 0 : index
    %c0_357 = arith.constant 0 : index
    %c2_358 = arith.constant 2 : index
    %c0_359 = arith.constant 0 : index
    %598 = vector.load %arg2[%c0_356, %c0_357, %c2_358, %c0_359] : memref<1x2x8x256xf32, #tpu.memory_space<vmem>>, vector<1x1x6x256xf32>
    %599 = vector.shape_cast %598 : vector<1x1x6x256xf32> to vector<6x256xf32>
    %600 = vector.broadcast %597 : f32 to vector<6x256xf32>
    %601 = arith.mulf %600, %599 : vector<6x256xf32>
    %602 = arith.addf %596, %601 : vector<6x256xf32>
    %c15 = arith.constant 15 : index
    %603 = memref.load %arg3[%c15] : memref<264xf32, #tpu.memory_space<smem>>
    %c0_360 = arith.constant 0 : index
    %c1_361 = arith.constant 1 : index
    %c2_362 = arith.constant 2 : index
    %c0_363 = arith.constant 0 : index
    %604 = vector.load %arg2[%c0_360, %c1_361, %c2_362, %c0_363] : memref<1x2x8x256xf32, #tpu.memory_space<vmem>>, vector<1x1x6x256xf32>
    %605 = vector.shape_cast %604 : vector<1x1x6x256xf32> to vector<6x256xf32>
    %606 = vector.broadcast %603 : f32 to vector<6x256xf32>
    %607 = arith.mulf %606, %605 : vector<6x256xf32>
    %608 = arith.addf %602, %607 : vector<6x256xf32>
    %c30 = arith.constant 30 : index
    %609 = memref.load %arg3[%c30] : memref<264xf32, #tpu.memory_space<smem>>
    %c0_364 = arith.constant 0 : index
    %c0_365 = arith.constant 0 : index
    %c1_366 = arith.constant 1 : index
    %c0_367 = arith.constant 0 : index
    %610 = vector.load %arg2[%c0_364, %c0_365, %c1_366, %c0_367] : memref<1x2x8x256xf32, #tpu.memory_space<vmem>>, vector<1x1x6x256xf32>
    %611 = vector.shape_cast %610 : vector<1x1x6x256xf32> to vector<6x256xf32>
    %612 = vector.broadcast %609 : f32 to vector<6x256xf32>
    %613 = arith.mulf %612, %611 : vector<6x256xf32>
    %614 = arith.addf %608, %613 : vector<6x256xf32>
    %c31 = arith.constant 31 : index
    %615 = memref.load %arg3[%c31] : memref<264xf32, #tpu.memory_space<smem>>
    %c0_368 = arith.constant 0 : index
    %c1_369 = arith.constant 1 : index
    %c1_370 = arith.constant 1 : index
    %c0_371 = arith.constant 0 : index
    %616 = vector.load %arg2[%c0_368, %c1_369, %c1_370, %c0_371] : memref<1x2x8x256xf32, #tpu.memory_space<vmem>>, vector<1x1x6x256xf32>
    %617 = vector.shape_cast %616 : vector<1x1x6x256xf32> to vector<6x256xf32>
    %618 = vector.broadcast %615 : f32 to vector<6x256xf32>
    %619 = arith.mulf %618, %617 : vector<6x256xf32>
    %620 = arith.addf %614, %619 : vector<6x256xf32>
    %c46 = arith.constant 46 : index
    %621 = memref.load %arg3[%c46] : memref<264xf32, #tpu.memory_space<smem>>
    %c0_372 = arith.constant 0 : index
    %c0_373 = arith.constant 0 : index
    %c0_374 = arith.constant 0 : index
    %c0_375 = arith.constant 0 : index
    %622 = vector.load %arg2[%c0_372, %c0_373, %c0_374, %c0_375] : memref<1x2x8x256xf32, #tpu.memory_space<vmem>>, vector<1x1x6x256xf32>
    %623 = vector.shape_cast %622 : vector<1x1x6x256xf32> to vector<6x256xf32>
    %624 = vector.broadcast %621 : f32 to vector<6x256xf32>
    %625 = arith.mulf %624, %623 : vector<6x256xf32>
    %626 = arith.addf %620, %625 : vector<6x256xf32>
    %c47 = arith.constant 47 : index
    %627 = memref.load %arg3[%c47] : memref<264xf32, #tpu.memory_space<smem>>
    %c0_376 = arith.constant 0 : index
    %c1_377 = arith.constant 1 : index
    %c0_378 = arith.constant 0 : index
    %c0_379 = arith.constant 0 : index
    %628 = vector.load %arg2[%c0_376, %c1_377, %c0_378, %c0_379] : memref<1x2x8x256xf32, #tpu.memory_space<vmem>>, vector<1x1x6x256xf32>
    %629 = vector.shape_cast %628 : vector<1x1x6x256xf32> to vector<6x256xf32>
    %630 = vector.broadcast %627 : f32 to vector<6x256xf32>
    %631 = arith.mulf %630, %629 : vector<6x256xf32>
    %632 = arith.addf %626, %631 : vector<6x256xf32>
    %cst_380 = arith.constant 0.00999999977 : f32
    %633 = vector.broadcast %cst_380 : f32 to vector<6x256xf32>
    %634 = arith.mulf %633, %632 : vector<6x256xf32>
    %635 = arith.maximumf %632, %634 : vector<6x256xf32>
    %c95 = arith.constant 95 : index
    %636 = memref.load %arg3[%c95] : memref<264xf32, #tpu.memory_space<smem>>
    %637 = vector.broadcast %636 : f32 to vector<2x256xf32>
    %c70 = arith.constant 70 : index
    %638 = memref.load %arg3[%c70] : memref<264xf32, #tpu.memory_space<smem>>
    %c0_381 = arith.constant 0 : index
    %c0_382 = arith.constant 0 : index
    %c1_383 = arith.constant 1 : index
    %c0_384 = arith.constant 0 : index
    %639 = vector.load %arg2[%c0_381, %c0_382, %c1_383, %c0_384] : memref<1x2x8x256xf32, #tpu.memory_space<vmem>>, vector<1x1x2x256xf32>
    %640 = vector.shape_cast %639 : vector<1x1x2x256xf32> to vector<2x256xf32>
    %641 = vector.broadcast %638 : f32 to vector<2x256xf32>
    %642 = arith.mulf %641, %640 : vector<2x256xf32>
    %643 = arith.addf %637, %642 : vector<2x256xf32>
    %c71 = arith.constant 71 : index
    %644 = memref.load %arg3[%c71] : memref<264xf32, #tpu.memory_space<smem>>
    %c0_385 = arith.constant 0 : index
    %c1_386 = arith.constant 1 : index
    %c1_387 = arith.constant 1 : index
    %c0_388 = arith.constant 0 : index
    %645 = vector.load %arg2[%c0_385, %c1_386, %c1_387, %c0_388] : memref<1x2x8x256xf32, #tpu.memory_space<vmem>>, vector<1x1x2x256xf32>
    %646 = vector.shape_cast %645 : vector<1x1x2x256xf32> to vector<2x256xf32>
    %647 = vector.broadcast %644 : f32 to vector<2x256xf32>
    %648 = arith.mulf %647, %646 : vector<2x256xf32>
    %649 = arith.addf %643, %648 : vector<2x256xf32>
    %c86 = arith.constant 86 : index
    %650 = memref.load %arg3[%c86] : memref<264xf32, #tpu.memory_space<smem>>
    %c0_389 = arith.constant 0 : index
    %c0_390 = arith.constant 0 : index
    %c0_391 = arith.constant 0 : index
    %c0_392 = arith.constant 0 : index
    %651 = vector.load %arg2[%c0_389, %c0_390, %c0_391, %c0_392] : memref<1x2x8x256xf32, #tpu.memory_space<vmem>>, vector<1x1x2x256xf32>
    %652 = vector.shape_cast %651 : vector<1x1x2x256xf32> to vector<2x256xf32>
    %653 = vector.broadcast %650 : f32 to vector<2x256xf32>
    %654 = arith.mulf %653, %652 : vector<2x256xf32>
    %655 = arith.addf %649, %654 : vector<2x256xf32>
    %c87 = arith.constant 87 : index
    %656 = memref.load %arg3[%c87] : memref<264xf32, #tpu.memory_space<smem>>
    %c0_393 = arith.constant 0 : index
    %c1_394 = arith.constant 1 : index
    %c0_395 = arith.constant 0 : index
    %c0_396 = arith.constant 0 : index
    %657 = vector.load %arg2[%c0_393, %c1_394, %c0_395, %c0_396] : memref<1x2x8x256xf32, #tpu.memory_space<vmem>>, vector<1x1x2x256xf32>
    %658 = vector.shape_cast %657 : vector<1x1x2x256xf32> to vector<2x256xf32>
    %659 = vector.broadcast %656 : f32 to vector<2x256xf32>
    %660 = arith.mulf %659, %658 : vector<2x256xf32>
    %661 = arith.addf %655, %660 : vector<2x256xf32>
    %cst_397 = arith.constant 0.00999999977 : f32
    %662 = vector.broadcast %cst_397 : f32 to vector<2x256xf32>
    %663 = arith.mulf %662, %661 : vector<2x256xf32>
    %664 = arith.maximumf %661, %663 : vector<2x256xf32>
    %665 = vector.extract_strided_slice %635 {offsets = [0, 0], sizes = [1, 256], strides = [1, 1]} : vector<6x256xf32> to vector<1x256xf32>
    %666 = vector.extract_strided_slice %635 {offsets = [1, 0], sizes = [5, 256], strides = [1, 1]} : vector<6x256xf32> to vector<5x256xf32>
    %c7_398 = arith.constant 7 : index
    %c3_399 = arith.constant 3 : index
    %c0_400 = arith.constant 0 : index
    %667 = vector.load %arg5[%c7_398, %c3_399, %c0_400] : memref<8x8x256xf32, #tpu.memory_space<vmem>>, vector<1x5x256xf32>
    %668 = vector.shape_cast %667 : vector<1x5x256xf32> to vector<5x256xf32>
    %669 = vector.shape_cast %666 : vector<5x256xf32> to vector<1x5x256xf32>
    tpu.vector_store %arg5[%c7_398, %c3_399, %c0_400], %669 {strides = array<i32>} : memref<8x8x256xf32, #tpu.memory_space<vmem>>, vector<1x5x256xf32>,
    %670 = vector.broadcast %665 : vector<1x256xf32> to vector<2x256xf32>
    %671 = arith.subf %670, %664 : vector<2x256xf32>
    %c7_401 = arith.constant 7 : index
    %c1_402 = arith.constant 1 : index
    %c0_403 = arith.constant 0 : index
    %672 = vector.load %arg5[%c7_401, %c1_402, %c0_403] : memref<8x8x256xf32, #tpu.memory_space<vmem>>, vector<1x2x256xf32>
    %673 = vector.shape_cast %672 : vector<1x2x256xf32> to vector<2x256xf32>
    %674 = vector.shape_cast %671 : vector<2x256xf32> to vector<1x2x256xf32>
    tpu.vector_store %arg5[%c7_401, %c1_402, %c0_403], %674 {strides = array<i32>} : memref<8x8x256xf32, #tpu.memory_space<vmem>>, vector<1x2x256xf32>,
    %675 = vector.extract_strided_slice %664 {offsets = [0, 0], sizes = [1, 256], strides = [1, 1]} : vector<2x256xf32> to vector<1x256xf32>
    %676 = arith.subf %665, %675 : vector<1x256xf32>
    %c7_404 = arith.constant 7 : index
    %c0_405 = arith.constant 0 : index
    %c0_406 = arith.constant 0 : index
    %677 = vector.load %arg5[%c7_404, %c0_405, %c0_406] : memref<8x8x256xf32, #tpu.memory_space<vmem>>, vector<1x1x256xf32>
    %678 = vector.shape_cast %677 : vector<1x1x256xf32> to vector<1x256xf32>
    %679 = vector.shape_cast %676 : vector<1x256xf32> to vector<1x1x256xf32>
    tpu.vector_store %arg5[%c7_404, %c0_405, %c0_406], %679 {strides = array<i32>} : memref<8x8x256xf32, #tpu.memory_space<vmem>>, vector<1x1x256xf32>,
    %c192 = arith.constant 192 : index
    %680 = memref.load %arg3[%c192] : memref<264xf32, #tpu.memory_space<smem>>
    %681 = vector.broadcast %680 : f32 to vector<6x256xf32>
    %c96 = arith.constant 96 : index
    %682 = memref.load %arg3[%c96] : memref<264xf32, #tpu.memory_space<smem>>
    %c0_407 = arith.constant 0 : index
    %c2_408 = arith.constant 2 : index
    %c0_409 = arith.constant 0 : index
    %683 = vector.load %arg5[%c0_407, %c2_408, %c0_409] : memref<8x8x256xf32, #tpu.memory_space<vmem>>, vector<1x6x256xf32>
    %684 = vector.shape_cast %683 : vector<1x6x256xf32> to vector<6x256xf32>
    %685 = vector.broadcast %682 : f32 to vector<6x256xf32>
    %686 = arith.mulf %685, %684 : vector<6x256xf32>
    %687 = arith.addf %681, %686 : vector<6x256xf32>
    %c97 = arith.constant 97 : index
    %688 = memref.load %arg3[%c97] : memref<264xf32, #tpu.memory_space<smem>>
    %c1_410 = arith.constant 1 : index
    %c2_411 = arith.constant 2 : index
    %c0_412 = arith.constant 0 : index
    %689 = vector.load %arg5[%c1_410, %c2_411, %c0_412] : memref<8x8x256xf32, #tpu.memory_space<vmem>>, vector<1x6x256xf32>
    %690 = vector.shape_cast %689 : vector<1x6x256xf32> to vector<6x256xf32>
    %691 = vector.broadcast %688 : f32 to vector<6x256xf32>
    %692 = arith.mulf %691, %690 : vector<6x256xf32>
    %693 = arith.addf %687, %692 : vector<6x256xf32>
    %c98 = arith.constant 98 : index
    %694 = memref.load %arg3[%c98] : memref<264xf32, #tpu.memory_space<smem>>
    %c2_413 = arith.constant 2 : index
    %c2_414 = arith.constant 2 : index
    %c0_415 = arith.constant 0 : index
    %695 = vector.load %arg5[%c2_413, %c2_414, %c0_415] : memref<8x8x256xf32, #tpu.memory_space<vmem>>, vector<1x6x256xf32>
    %696 = vector.shape_cast %695 : vector<1x6x256xf32> to vector<6x256xf32>
    %697 = vector.broadcast %694 : f32 to vector<6x256xf32>
    %698 = arith.mulf %697, %696 : vector<6x256xf32>
    %699 = arith.addf %693, %698 : vector<6x256xf32>
    %c99 = arith.constant 99 : index
    %700 = memref.load %arg3[%c99] : memref<264xf32, #tpu.memory_space<smem>>
    %c3_416 = arith.constant 3 : index
    %c2_417 = arith.constant 2 : index
    %c0_418 = arith.constant 0 : index
    %701 = vector.load %arg5[%c3_416, %c2_417, %c0_418] : memref<8x8x256xf32, #tpu.memory_space<vmem>>, vector<1x6x256xf32>
    %702 = vector.shape_cast %701 : vector<1x6x256xf32> to vector<6x256xf32>
    %703 = vector.broadcast %700 : f32 to vector<6x256xf32>
    %704 = arith.mulf %703, %702 : vector<6x256xf32>
    %705 = arith.addf %699, %704 : vector<6x256xf32>
    %c100 = arith.constant 100 : index
    %706 = memref.load %arg3[%c100] : memref<264xf32, #tpu.memory_space<smem>>
    %c4_419 = arith.constant 4 : index
    %c2_420 = arith.constant 2 : index
    %c0_421 = arith.constant 0 : index
    %707 = vector.load %arg5[%c4_419, %c2_420, %c0_421] : memref<8x8x256xf32, #tpu.memory_space<vmem>>, vector<1x6x256xf32>
    %708 = vector.shape_cast %707 : vector<1x6x256xf32> to vector<6x256xf32>
    %709 = vector.broadcast %706 : f32 to vector<6x256xf32>
    %710 = arith.mulf %709, %708 : vector<6x256xf32>
    %711 = arith.addf %705, %710 : vector<6x256xf32>
    %c101 = arith.constant 101 : index
    %712 = memref.load %arg3[%c101] : memref<264xf32, #tpu.memory_space<smem>>
    %c5_422 = arith.constant 5 : index
    %c2_423 = arith.constant 2 : index
    %c0_424 = arith.constant 0 : index
    %713 = vector.load %arg5[%c5_422, %c2_423, %c0_424] : memref<8x8x256xf32, #tpu.memory_space<vmem>>, vector<1x6x256xf32>
    %714 = vector.shape_cast %713 : vector<1x6x256xf32> to vector<6x256xf32>
    %715 = vector.broadcast %712 : f32 to vector<6x256xf32>
    %716 = arith.mulf %715, %714 : vector<6x256xf32>
    %717 = arith.addf %711, %716 : vector<6x256xf32>
    %c102 = arith.constant 102 : index
    %718 = memref.load %arg3[%c102] : memref<264xf32, #tpu.memory_space<smem>>
    %c6_425 = arith.constant 6 : index
    %c2_426 = arith.constant 2 : index
    %c0_427 = arith.constant 0 : index
    %719 = vector.load %arg5[%c6_425, %c2_426, %c0_427] : memref<8x8x256xf32, #tpu.memory_space<vmem>>, vector<1x6x256xf32>
    %720 = vector.shape_cast %719 : vector<1x6x256xf32> to vector<6x256xf32>
    %721 = vector.broadcast %718 : f32 to vector<6x256xf32>
    %722 = arith.mulf %721, %720 : vector<6x256xf32>
    %723 = arith.addf %717, %722 : vector<6x256xf32>
    %c103 = arith.constant 103 : index
    %724 = memref.load %arg3[%c103] : memref<264xf32, #tpu.memory_space<smem>>
    %c7_428 = arith.constant 7 : index
    %c2_429 = arith.constant 2 : index
    %c0_430 = arith.constant 0 : index
    %725 = vector.load %arg5[%c7_428, %c2_429, %c0_430] : memref<8x8x256xf32, #tpu.memory_space<vmem>>, vector<1x6x256xf32>
    %726 = vector.shape_cast %725 : vector<1x6x256xf32> to vector<6x256xf32>
    %727 = vector.broadcast %724 : f32 to vector<6x256xf32>
    %728 = arith.mulf %727, %726 : vector<6x256xf32>
    %729 = arith.addf %723, %728 : vector<6x256xf32>
    %c128 = arith.constant 128 : index
    %730 = memref.load %arg3[%c128] : memref<264xf32, #tpu.memory_space<smem>>
    %c0_431 = arith.constant 0 : index
    %c1_432 = arith.constant 1 : index
    %c0_433 = arith.constant 0 : index
    %731 = vector.load %arg5[%c0_431, %c1_432, %c0_433] : memref<8x8x256xf32, #tpu.memory_space<vmem>>, vector<1x6x256xf32>
    %732 = vector.shape_cast %731 : vector<1x6x256xf32> to vector<6x256xf32>
    %733 = vector.broadcast %730 : f32 to vector<6x256xf32>
    %734 = arith.mulf %733, %732 : vector<6x256xf32>
    %735 = arith.addf %729, %734 : vector<6x256xf32>
    %c129 = arith.constant 129 : index
    %736 = memref.load %arg3[%c129] : memref<264xf32, #tpu.memory_space<smem>>
    %c1_434 = arith.constant 1 : index
    %c1_435 = arith.constant 1 : index
    %c0_436 = arith.constant 0 : index
    %737 = vector.load %arg5[%c1_434, %c1_435, %c0_436] : memref<8x8x256xf32, #tpu.memory_space<vmem>>, vector<1x6x256xf32>
    %738 = vector.shape_cast %737 : vector<1x6x256xf32> to vector<6x256xf32>
    %739 = vector.broadcast %736 : f32 to vector<6x256xf32>
    %740 = arith.mulf %739, %738 : vector<6x256xf32>
    %741 = arith.addf %735, %740 : vector<6x256xf32>
    %c130 = arith.constant 130 : index
    %742 = memref.load %arg3[%c130] : memref<264xf32, #tpu.memory_space<smem>>
    %c2_437 = arith.constant 2 : index
    %c1_438 = arith.constant 1 : index
    %c0_439 = arith.constant 0 : index
    %743 = vector.load %arg5[%c2_437, %c1_438, %c0_439] : memref<8x8x256xf32, #tpu.memory_space<vmem>>, vector<1x6x256xf32>
    %744 = vector.shape_cast %743 : vector<1x6x256xf32> to vector<6x256xf32>
    %745 = vector.broadcast %742 : f32 to vector<6x256xf32>
    %746 = arith.mulf %745, %744 : vector<6x256xf32>
    %747 = arith.addf %741, %746 : vector<6x256xf32>
    %c131 = arith.constant 131 : index
    %748 = memref.load %arg3[%c131] : memref<264xf32, #tpu.memory_space<smem>>
    %c3_440 = arith.constant 3 : index
    %c1_441 = arith.constant 1 : index
    %c0_442 = arith.constant 0 : index
    %749 = vector.load %arg5[%c3_440, %c1_441, %c0_442] : memref<8x8x256xf32, #tpu.memory_space<vmem>>, vector<1x6x256xf32>
    %750 = vector.shape_cast %749 : vector<1x6x256xf32> to vector<6x256xf32>
    %751 = vector.broadcast %748 : f32 to vector<6x256xf32>
    %752 = arith.mulf %751, %750 : vector<6x256xf32>
    %753 = arith.addf %747, %752 : vector<6x256xf32>
    %c132 = arith.constant 132 : index
    %754 = memref.load %arg3[%c132] : memref<264xf32, #tpu.memory_space<smem>>
    %c4_443 = arith.constant 4 : index
    %c1_444 = arith.constant 1 : index
    %c0_445 = arith.constant 0 : index
    %755 = vector.load %arg5[%c4_443, %c1_444, %c0_445] : memref<8x8x256xf32, #tpu.memory_space<vmem>>, vector<1x6x256xf32>
    %756 = vector.shape_cast %755 : vector<1x6x256xf32> to vector<6x256xf32>
    %757 = vector.broadcast %754 : f32 to vector<6x256xf32>
    %758 = arith.mulf %757, %756 : vector<6x256xf32>
    %759 = arith.addf %753, %758 : vector<6x256xf32>
    %c133 = arith.constant 133 : index
    %760 = memref.load %arg3[%c133] : memref<264xf32, #tpu.memory_space<smem>>
    %c5_446 = arith.constant 5 : index
    %c1_447 = arith.constant 1 : index
    %c0_448 = arith.constant 0 : index
    %761 = vector.load %arg5[%c5_446, %c1_447, %c0_448] : memref<8x8x256xf32, #tpu.memory_space<vmem>>, vector<1x6x256xf32>
    %762 = vector.shape_cast %761 : vector<1x6x256xf32> to vector<6x256xf32>
    %763 = vector.broadcast %760 : f32 to vector<6x256xf32>
    %764 = arith.mulf %763, %762 : vector<6x256xf32>
    %765 = arith.addf %759, %764 : vector<6x256xf32>
    %c134 = arith.constant 134 : index
    %766 = memref.load %arg3[%c134] : memref<264xf32, #tpu.memory_space<smem>>
    %c6_449 = arith.constant 6 : index
    %c1_450 = arith.constant 1 : index
    %c0_451 = arith.constant 0 : index
    %767 = vector.load %arg5[%c6_449, %c1_450, %c0_451] : memref<8x8x256xf32, #tpu.memory_space<vmem>>, vector<1x6x256xf32>
    %768 = vector.shape_cast %767 : vector<1x6x256xf32> to vector<6x256xf32>
    %769 = vector.broadcast %766 : f32 to vector<6x256xf32>
    %770 = arith.mulf %769, %768 : vector<6x256xf32>
    %771 = arith.addf %765, %770 : vector<6x256xf32>
    %c135 = arith.constant 135 : index
    %772 = memref.load %arg3[%c135] : memref<264xf32, #tpu.memory_space<smem>>
    %c7_452 = arith.constant 7 : index
    %c1_453 = arith.constant 1 : index
    %c0_454 = arith.constant 0 : index
    %773 = vector.load %arg5[%c7_452, %c1_453, %c0_454] : memref<8x8x256xf32, #tpu.memory_space<vmem>>, vector<1x6x256xf32>
    %774 = vector.shape_cast %773 : vector<1x6x256xf32> to vector<6x256xf32>
    %775 = vector.broadcast %772 : f32 to vector<6x256xf32>
    %776 = arith.mulf %775, %774 : vector<6x256xf32>
    %777 = arith.addf %771, %776 : vector<6x256xf32>
    %c160 = arith.constant 160 : index
    %778 = memref.load %arg3[%c160] : memref<264xf32, #tpu.memory_space<smem>>
    %c0_455 = arith.constant 0 : index
    %c0_456 = arith.constant 0 : index
    %c0_457 = arith.constant 0 : index
    %779 = vector.load %arg5[%c0_455, %c0_456, %c0_457] : memref<8x8x256xf32, #tpu.memory_space<vmem>>, vector<1x6x256xf32>
    %780 = vector.shape_cast %779 : vector<1x6x256xf32> to vector<6x256xf32>
    %781 = vector.broadcast %778 : f32 to vector<6x256xf32>
    %782 = arith.mulf %781, %780 : vector<6x256xf32>
    %783 = arith.addf %777, %782 : vector<6x256xf32>
    %c161 = arith.constant 161 : index
    %784 = memref.load %arg3[%c161] : memref<264xf32, #tpu.memory_space<smem>>
    %c1_458 = arith.constant 1 : index
    %c0_459 = arith.constant 0 : index
    %c0_460 = arith.constant 0 : index
    %785 = vector.load %arg5[%c1_458, %c0_459, %c0_460] : memref<8x8x256xf32, #tpu.memory_space<vmem>>, vector<1x6x256xf32>
    %786 = vector.shape_cast %785 : vector<1x6x256xf32> to vector<6x256xf32>
    %787 = vector.broadcast %784 : f32 to vector<6x256xf32>
    %788 = arith.mulf %787, %786 : vector<6x256xf32>
    %789 = arith.addf %783, %788 : vector<6x256xf32>
    %c162 = arith.constant 162 : index
    %790 = memref.load %arg3[%c162] : memref<264xf32, #tpu.memory_space<smem>>
    %c2_461 = arith.constant 2 : index
    %c0_462 = arith.constant 0 : index
    %c0_463 = arith.constant 0 : index
    %791 = vector.load %arg5[%c2_461, %c0_462, %c0_463] : memref<8x8x256xf32, #tpu.memory_space<vmem>>, vector<1x6x256xf32>
    %792 = vector.shape_cast %791 : vector<1x6x256xf32> to vector<6x256xf32>
    %793 = vector.broadcast %790 : f32 to vector<6x256xf32>
    %794 = arith.mulf %793, %792 : vector<6x256xf32>
    %795 = arith.addf %789, %794 : vector<6x256xf32>
    %c163 = arith.constant 163 : index
    %796 = memref.load %arg3[%c163] : memref<264xf32, #tpu.memory_space<smem>>
    %c3_464 = arith.constant 3 : index
    %c0_465 = arith.constant 0 : index
    %c0_466 = arith.constant 0 : index
    %797 = vector.load %arg5[%c3_464, %c0_465, %c0_466] : memref<8x8x256xf32, #tpu.memory_space<vmem>>, vector<1x6x256xf32>
    %798 = vector.shape_cast %797 : vector<1x6x256xf32> to vector<6x256xf32>
    %799 = vector.broadcast %796 : f32 to vector<6x256xf32>
    %800 = arith.mulf %799, %798 : vector<6x256xf32>
    %801 = arith.addf %795, %800 : vector<6x256xf32>
    %c164 = arith.constant 164 : index
    %802 = memref.load %arg3[%c164] : memref<264xf32, #tpu.memory_space<smem>>
    %c4_467 = arith.constant 4 : index
    %c0_468 = arith.constant 0 : index
    %c0_469 = arith.constant 0 : index
    %803 = vector.load %arg5[%c4_467, %c0_468, %c0_469] : memref<8x8x256xf32, #tpu.memory_space<vmem>>, vector<1x6x256xf32>
    %804 = vector.shape_cast %803 : vector<1x6x256xf32> to vector<6x256xf32>
    %805 = vector.broadcast %802 : f32 to vector<6x256xf32>
    %806 = arith.mulf %805, %804 : vector<6x256xf32>
    %807 = arith.addf %801, %806 : vector<6x256xf32>
    %c165 = arith.constant 165 : index
    %808 = memref.load %arg3[%c165] : memref<264xf32, #tpu.memory_space<smem>>
    %c5_470 = arith.constant 5 : index
    %c0_471 = arith.constant 0 : index
    %c0_472 = arith.constant 0 : index
    %809 = vector.load %arg5[%c5_470, %c0_471, %c0_472] : memref<8x8x256xf32, #tpu.memory_space<vmem>>, vector<1x6x256xf32>
    %810 = vector.shape_cast %809 : vector<1x6x256xf32> to vector<6x256xf32>
    %811 = vector.broadcast %808 : f32 to vector<6x256xf32>
    %812 = arith.mulf %811, %810 : vector<6x256xf32>
    %813 = arith.addf %807, %812 : vector<6x256xf32>
    %c166 = arith.constant 166 : index
    %814 = memref.load %arg3[%c166] : memref<264xf32, #tpu.memory_space<smem>>
    %c6_473 = arith.constant 6 : index
    %c0_474 = arith.constant 0 : index
    %c0_475 = arith.constant 0 : index
    %815 = vector.load %arg5[%c6_473, %c0_474, %c0_475] : memref<8x8x256xf32, #tpu.memory_space<vmem>>, vector<1x6x256xf32>
    %816 = vector.shape_cast %815 : vector<1x6x256xf32> to vector<6x256xf32>
    %817 = vector.broadcast %814 : f32 to vector<6x256xf32>
    %818 = arith.mulf %817, %816 : vector<6x256xf32>
    %819 = arith.addf %813, %818 : vector<6x256xf32>
    %c167 = arith.constant 167 : index
    %820 = memref.load %arg3[%c167] : memref<264xf32, #tpu.memory_space<smem>>
    %c7_476 = arith.constant 7 : index
    %c0_477 = arith.constant 0 : index
    %c0_478 = arith.constant 0 : index
    %821 = vector.load %arg5[%c7_476, %c0_477, %c0_478] : memref<8x8x256xf32, #tpu.memory_space<vmem>>, vector<1x6x256xf32>
    %822 = vector.shape_cast %821 : vector<1x6x256xf32> to vector<6x256xf32>
    %823 = vector.broadcast %820 : f32 to vector<6x256xf32>
    %824 = arith.mulf %823, %822 : vector<6x256xf32>
    %825 = arith.addf %819, %824 : vector<6x256xf32>
    %cst_479 = arith.constant 0.00999999977 : f32
    %826 = vector.broadcast %cst_479 : f32 to vector<6x256xf32>
    %827 = arith.mulf %826, %825 : vector<6x256xf32>
    %828 = arith.maximumf %825, %827 : vector<6x256xf32>
    %c260 = arith.constant 260 : index
    %829 = memref.load %arg3[%c260] : memref<264xf32, #tpu.memory_space<smem>>
    %830 = vector.broadcast %829 : f32 to vector<2x256xf32>
    %c196 = arith.constant 196 : index
    %831 = memref.load %arg3[%c196] : memref<264xf32, #tpu.memory_space<smem>>
    %c0_480 = arith.constant 0 : index
    %c1_481 = arith.constant 1 : index
    %c0_482 = arith.constant 0 : index
    %832 = vector.load %arg5[%c0_480, %c1_481, %c0_482] : memref<8x8x256xf32, #tpu.memory_space<vmem>>, vector<1x2x256xf32>
    %833 = vector.shape_cast %832 : vector<1x2x256xf32> to vector<2x256xf32>
    %834 = vector.broadcast %831 : f32 to vector<2x256xf32>
    %835 = arith.mulf %834, %833 : vector<2x256xf32>
    %836 = arith.addf %830, %835 : vector<2x256xf32>
    %c197 = arith.constant 197 : index
    %837 = memref.load %arg3[%c197] : memref<264xf32, #tpu.memory_space<smem>>
    %c1_483 = arith.constant 1 : index
    %c1_484 = arith.constant 1 : index
    %c0_485 = arith.constant 0 : index
    %838 = vector.load %arg5[%c1_483, %c1_484, %c0_485] : memref<8x8x256xf32, #tpu.memory_space<vmem>>, vector<1x2x256xf32>
    %839 = vector.shape_cast %838 : vector<1x2x256xf32> to vector<2x256xf32>
    %840 = vector.broadcast %837 : f32 to vector<2x256xf32>
    %841 = arith.mulf %840, %839 : vector<2x256xf32>
    %842 = arith.addf %836, %841 : vector<2x256xf32>
    %c198 = arith.constant 198 : index
    %843 = memref.load %arg3[%c198] : memref<264xf32, #tpu.memory_space<smem>>
    %c2_486 = arith.constant 2 : index
    %c1_487 = arith.constant 1 : index
    %c0_488 = arith.constant 0 : index
    %844 = vector.load %arg5[%c2_486, %c1_487, %c0_488] : memref<8x8x256xf32, #tpu.memory_space<vmem>>, vector<1x2x256xf32>
    %845 = vector.shape_cast %844 : vector<1x2x256xf32> to vector<2x256xf32>
    %846 = vector.broadcast %843 : f32 to vector<2x256xf32>
    %847 = arith.mulf %846, %845 : vector<2x256xf32>
    %848 = arith.addf %842, %847 : vector<2x256xf32>
    %c199 = arith.constant 199 : index
    %849 = memref.load %arg3[%c199] : memref<264xf32, #tpu.memory_space<smem>>
    %c3_489 = arith.constant 3 : index
    %c1_490 = arith.constant 1 : index
    %c0_491 = arith.constant 0 : index
    %850 = vector.load %arg5[%c3_489, %c1_490, %c0_491] : memref<8x8x256xf32, #tpu.memory_space<vmem>>, vector<1x2x256xf32>
    %851 = vector.shape_cast %850 : vector<1x2x256xf32> to vector<2x256xf32>
    %852 = vector.broadcast %849 : f32 to vector<2x256xf32>
    %853 = arith.mulf %852, %851 : vector<2x256xf32>
    %854 = arith.addf %848, %853 : vector<2x256xf32>
    %c200 = arith.constant 200 : index
    %855 = memref.load %arg3[%c200] : memref<264xf32, #tpu.memory_space<smem>>
    %c4_492 = arith.constant 4 : index
    %c1_493 = arith.constant 1 : index
    %c0_494 = arith.constant 0 : index
    %856 = vector.load %arg5[%c4_492, %c1_493, %c0_494] : memref<8x8x256xf32, #tpu.memory_space<vmem>>, vector<1x2x256xf32>
    %857 = vector.shape_cast %856 : vector<1x2x256xf32> to vector<2x256xf32>
    %858 = vector.broadcast %855 : f32 to vector<2x256xf32>
    %859 = arith.mulf %858, %857 : vector<2x256xf32>
    %860 = arith.addf %854, %859 : vector<2x256xf32>
    %c201 = arith.constant 201 : index
    %861 = memref.load %arg3[%c201] : memref<264xf32, #tpu.memory_space<smem>>
    %c5_495 = arith.constant 5 : index
    %c1_496 = arith.constant 1 : index
    %c0_497 = arith.constant 0 : index
    %862 = vector.load %arg5[%c5_495, %c1_496, %c0_497] : memref<8x8x256xf32, #tpu.memory_space<vmem>>, vector<1x2x256xf32>
    %863 = vector.shape_cast %862 : vector<1x2x256xf32> to vector<2x256xf32>
    %864 = vector.broadcast %861 : f32 to vector<2x256xf32>
    %865 = arith.mulf %864, %863 : vector<2x256xf32>
    %866 = arith.addf %860, %865 : vector<2x256xf32>
    %c202 = arith.constant 202 : index
    %867 = memref.load %arg3[%c202] : memref<264xf32, #tpu.memory_space<smem>>
    %c6_498 = arith.constant 6 : index
    %c1_499 = arith.constant 1 : index
    %c0_500 = arith.constant 0 : index
    %868 = vector.load %arg5[%c6_498, %c1_499, %c0_500] : memref<8x8x256xf32, #tpu.memory_space<vmem>>, vector<1x2x256xf32>
    %869 = vector.shape_cast %868 : vector<1x2x256xf32> to vector<2x256xf32>
    %870 = vector.broadcast %867 : f32 to vector<2x256xf32>
    %871 = arith.mulf %870, %869 : vector<2x256xf32>
    %872 = arith.addf %866, %871 : vector<2x256xf32>
    %c203 = arith.constant 203 : index
    %873 = memref.load %arg3[%c203] : memref<264xf32, #tpu.memory_space<smem>>
    %c7_501 = arith.constant 7 : index
    %c1_502 = arith.constant 1 : index
    %c0_503 = arith.constant 0 : index
    %874 = vector.load %arg5[%c7_501, %c1_502, %c0_503] : memref<8x8x256xf32, #tpu.memory_space<vmem>>, vector<1x2x256xf32>
    %875 = vector.shape_cast %874 : vector<1x2x256xf32> to vector<2x256xf32>
    %876 = vector.broadcast %873 : f32 to vector<2x256xf32>
    %877 = arith.mulf %876, %875 : vector<2x256xf32>
    %878 = arith.addf %872, %877 : vector<2x256xf32>
    %c228 = arith.constant 228 : index
    %879 = memref.load %arg3[%c228] : memref<264xf32, #tpu.memory_space<smem>>
    %c0_504 = arith.constant 0 : index
    %c0_505 = arith.constant 0 : index
    %c0_506 = arith.constant 0 : index
    %880 = vector.load %arg5[%c0_504, %c0_505, %c0_506] : memref<8x8x256xf32, #tpu.memory_space<vmem>>, vector<1x2x256xf32>
    %881 = vector.shape_cast %880 : vector<1x2x256xf32> to vector<2x256xf32>
    %882 = vector.broadcast %879 : f32 to vector<2x256xf32>
    %883 = arith.mulf %882, %881 : vector<2x256xf32>
    %884 = arith.addf %878, %883 : vector<2x256xf32>
    %c229 = arith.constant 229 : index
    %885 = memref.load %arg3[%c229] : memref<264xf32, #tpu.memory_space<smem>>
    %c1_507 = arith.constant 1 : index
    %c0_508 = arith.constant 0 : index
    %c0_509 = arith.constant 0 : index
    %886 = vector.load %arg5[%c1_507, %c0_508, %c0_509] : memref<8x8x256xf32, #tpu.memory_space<vmem>>, vector<1x2x256xf32>
    %887 = vector.shape_cast %886 : vector<1x2x256xf32> to vector<2x256xf32>
    %888 = vector.broadcast %885 : f32 to vector<2x256xf32>
    %889 = arith.mulf %888, %887 : vector<2x256xf32>
    %890 = arith.addf %884, %889 : vector<2x256xf32>
    %c230 = arith.constant 230 : index
    %891 = memref.load %arg3[%c230] : memref<264xf32, #tpu.memory_space<smem>>
    %c2_510 = arith.constant 2 : index
    %c0_511 = arith.constant 0 : index
    %c0_512 = arith.constant 0 : index
    %892 = vector.load %arg5[%c2_510, %c0_511, %c0_512] : memref<8x8x256xf32, #tpu.memory_space<vmem>>, vector<1x2x256xf32>
    %893 = vector.shape_cast %892 : vector<1x2x256xf32> to vector<2x256xf32>
    %894 = vector.broadcast %891 : f32 to vector<2x256xf32>
    %895 = arith.mulf %894, %893 : vector<2x256xf32>
    %896 = arith.addf %890, %895 : vector<2x256xf32>
    %c231 = arith.constant 231 : index
    %897 = memref.load %arg3[%c231] : memref<264xf32, #tpu.memory_space<smem>>
    %c3_513 = arith.constant 3 : index
    %c0_514 = arith.constant 0 : index
    %c0_515 = arith.constant 0 : index
    %898 = vector.load %arg5[%c3_513, %c0_514, %c0_515] : memref<8x8x256xf32, #tpu.memory_space<vmem>>, vector<1x2x256xf32>
    %899 = vector.shape_cast %898 : vector<1x2x256xf32> to vector<2x256xf32>
    %900 = vector.broadcast %897 : f32 to vector<2x256xf32>
    %901 = arith.mulf %900, %899 : vector<2x256xf32>
    %902 = arith.addf %896, %901 : vector<2x256xf32>
    %c232 = arith.constant 232 : index
    %903 = memref.load %arg3[%c232] : memref<264xf32, #tpu.memory_space<smem>>
    %c4_516 = arith.constant 4 : index
    %c0_517 = arith.constant 0 : index
    %c0_518 = arith.constant 0 : index
    %904 = vector.load %arg5[%c4_516, %c0_517, %c0_518] : memref<8x8x256xf32, #tpu.memory_space<vmem>>, vector<1x2x256xf32>
    %905 = vector.shape_cast %904 : vector<1x2x256xf32> to vector<2x256xf32>
    %906 = vector.broadcast %903 : f32 to vector<2x256xf32>
    %907 = arith.mulf %906, %905 : vector<2x256xf32>
    %908 = arith.addf %902, %907 : vector<2x256xf32>
    %c233 = arith.constant 233 : index
    %909 = memref.load %arg3[%c233] : memref<264xf32, #tpu.memory_space<smem>>
    %c5_519 = arith.constant 5 : index
    %c0_520 = arith.constant 0 : index
    %c0_521 = arith.constant 0 : index
    %910 = vector.load %arg5[%c5_519, %c0_520, %c0_521] : memref<8x8x256xf32, #tpu.memory_space<vmem>>, vector<1x2x256xf32>
    %911 = vector.shape_cast %910 : vector<1x2x256xf32> to vector<2x256xf32>
    %912 = vector.broadcast %909 : f32 to vector<2x256xf32>
    %913 = arith.mulf %912, %911 : vector<2x256xf32>
    %914 = arith.addf %908, %913 : vector<2x256xf32>
    %c234 = arith.constant 234 : index
    %915 = memref.load %arg3[%c234] : memref<264xf32, #tpu.memory_space<smem>>
    %c6_522 = arith.constant 6 : index
    %c0_523 = arith.constant 0 : index
    %c0_524 = arith.constant 0 : index
    %916 = vector.load %arg5[%c6_522, %c0_523, %c0_524] : memref<8x8x256xf32, #tpu.memory_space<vmem>>, vector<1x2x256xf32>
    %917 = vector.shape_cast %916 : vector<1x2x256xf32> to vector<2x256xf32>
    %918 = vector.broadcast %915 : f32 to vector<2x256xf32>
    %919 = arith.mulf %918, %917 : vector<2x256xf32>
    %920 = arith.addf %914, %919 : vector<2x256xf32>
    %c235 = arith.constant 235 : index
    %921 = memref.load %arg3[%c235] : memref<264xf32, #tpu.memory_space<smem>>
    %c7_525 = arith.constant 7 : index
    %c0_526 = arith.constant 0 : index
    %c0_527 = arith.constant 0 : index
    %922 = vector.load %arg5[%c7_525, %c0_526, %c0_527] : memref<8x8x256xf32, #tpu.memory_space<vmem>>, vector<1x2x256xf32>
    %923 = vector.shape_cast %922 : vector<1x2x256xf32> to vector<2x256xf32>
    %924 = vector.broadcast %921 : f32 to vector<2x256xf32>
    %925 = arith.mulf %924, %923 : vector<2x256xf32>
    %926 = arith.addf %920, %925 : vector<2x256xf32>
    %cst_528 = arith.constant 0.00999999977 : f32
    %927 = vector.broadcast %cst_528 : f32 to vector<2x256xf32>
    %928 = arith.mulf %927, %926 : vector<2x256xf32>
    %929 = arith.maximumf %926, %928 : vector<2x256xf32>
    %930 = vector.extract_strided_slice %828 {offsets = [0, 0], sizes = [1, 256], strides = [1, 1]} : vector<6x256xf32> to vector<1x256xf32>
    %931 = vector.extract_strided_slice %828 {offsets = [1, 0], sizes = [5, 256], strides = [1, 1]} : vector<6x256xf32> to vector<5x256xf32>
    %c0_529 = arith.constant 0 : index
    %c0_530 = arith.constant 0 : index
    %c3_531 = arith.constant 3 : index
    %c0_532 = arith.constant 0 : index
    %932 = vector.load %arg4[%c0_529, %c0_530, %c3_531, %c0_532] : memref<1x4x8x256xf32, #tpu.memory_space<vmem>>, vector<1x1x5x256xf32>
    %933 = vector.shape_cast %932 : vector<1x1x5x256xf32> to vector<5x256xf32>
    %934 = vector.shape_cast %931 : vector<5x256xf32> to vector<1x1x5x256xf32>
    tpu.vector_store %arg4[%c0_529, %c0_530, %c3_531, %c0_532], %934 {strides = array<i32>} : memref<1x4x8x256xf32, #tpu.memory_space<vmem>>, vector<1x1x5x256xf32>,
    %935 = vector.broadcast %930 : vector<1x256xf32> to vector<2x256xf32>
    %936 = arith.subf %935, %929 : vector<2x256xf32>
    %c0_533 = arith.constant 0 : index
    %c0_534 = arith.constant 0 : index
    %c1_535 = arith.constant 1 : index
    %c0_536 = arith.constant 0 : index
    %937 = vector.load %arg4[%c0_533, %c0_534, %c1_535, %c0_536] : memref<1x4x8x256xf32, #tpu.memory_space<vmem>>, vector<1x1x2x256xf32>
    %938 = vector.shape_cast %937 : vector<1x1x2x256xf32> to vector<2x256xf32>
    %939 = vector.shape_cast %936 : vector<2x256xf32> to vector<1x1x2x256xf32>
    tpu.vector_store %arg4[%c0_533, %c0_534, %c1_535, %c0_536], %939 {strides = array<i32>} : memref<1x4x8x256xf32, #tpu.memory_space<vmem>>, vector<1x1x2x256xf32>,
    %940 = vector.extract_strided_slice %929 {offsets = [0, 0], sizes = [1, 256], strides = [1, 1]} : vector<2x256xf32> to vector<1x256xf32>
    %941 = arith.subf %930, %940 : vector<1x256xf32>
    %c0_537 = arith.constant 0 : index
    %c0_538 = arith.constant 0 : index
    %c0_539 = arith.constant 0 : index
    %c0_540 = arith.constant 0 : index
    %942 = vector.load %arg4[%c0_537, %c0_538, %c0_539, %c0_540] : memref<1x4x8x256xf32, #tpu.memory_space<vmem>>, vector<1x1x1x256xf32>
    %943 = vector.shape_cast %942 : vector<1x1x1x256xf32> to vector<1x256xf32>
    %944 = vector.shape_cast %941 : vector<1x256xf32> to vector<1x1x1x256xf32>
    tpu.vector_store %arg4[%c0_537, %c0_538, %c0_539, %c0_540], %944 {strides = array<i32>} : memref<1x4x8x256xf32, #tpu.memory_space<vmem>>, vector<1x1x1x256xf32>,
    %c193 = arith.constant 193 : index
    %945 = memref.load %arg3[%c193] : memref<264xf32, #tpu.memory_space<smem>>
    %946 = vector.broadcast %945 : f32 to vector<6x256xf32>
    %c104 = arith.constant 104 : index
    %947 = memref.load %arg3[%c104] : memref<264xf32, #tpu.memory_space<smem>>
    %c0_541 = arith.constant 0 : index
    %c2_542 = arith.constant 2 : index
    %c0_543 = arith.constant 0 : index
    %948 = vector.load %arg5[%c0_541, %c2_542, %c0_543] : memref<8x8x256xf32, #tpu.memory_space<vmem>>, vector<1x6x256xf32>
    %949 = vector.shape_cast %948 : vector<1x6x256xf32> to vector<6x256xf32>
    %950 = vector.broadcast %947 : f32 to vector<6x256xf32>
    %951 = arith.mulf %950, %949 : vector<6x256xf32>
    %952 = arith.addf %946, %951 : vector<6x256xf32>
    %c105 = arith.constant 105 : index
    %953 = memref.load %arg3[%c105] : memref<264xf32, #tpu.memory_space<smem>>
    %c1_544 = arith.constant 1 : index
    %c2_545 = arith.constant 2 : index
    %c0_546 = arith.constant 0 : index
    %954 = vector.load %arg5[%c1_544, %c2_545, %c0_546] : memref<8x8x256xf32, #tpu.memory_space<vmem>>, vector<1x6x256xf32>
    %955 = vector.shape_cast %954 : vector<1x6x256xf32> to vector<6x256xf32>
    %956 = vector.broadcast %953 : f32 to vector<6x256xf32>
    %957 = arith.mulf %956, %955 : vector<6x256xf32>
    %958 = arith.addf %952, %957 : vector<6x256xf32>
    %c106 = arith.constant 106 : index
    %959 = memref.load %arg3[%c106] : memref<264xf32, #tpu.memory_space<smem>>
    %c2_547 = arith.constant 2 : index
    %c2_548 = arith.constant 2 : index
    %c0_549 = arith.constant 0 : index
    %960 = vector.load %arg5[%c2_547, %c2_548, %c0_549] : memref<8x8x256xf32, #tpu.memory_space<vmem>>, vector<1x6x256xf32>
    %961 = vector.shape_cast %960 : vector<1x6x256xf32> to vector<6x256xf32>
    %962 = vector.broadcast %959 : f32 to vector<6x256xf32>
    %963 = arith.mulf %962, %961 : vector<6x256xf32>
    %964 = arith.addf %958, %963 : vector<6x256xf32>
    %c107 = arith.constant 107 : index
    %965 = memref.load %arg3[%c107] : memref<264xf32, #tpu.memory_space<smem>>
    %c3_550 = arith.constant 3 : index
    %c2_551 = arith.constant 2 : index
    %c0_552 = arith.constant 0 : index
    %966 = vector.load %arg5[%c3_550, %c2_551, %c0_552] : memref<8x8x256xf32, #tpu.memory_space<vmem>>, vector<1x6x256xf32>
    %967 = vector.shape_cast %966 : vector<1x6x256xf32> to vector<6x256xf32>
    %968 = vector.broadcast %965 : f32 to vector<6x256xf32>
    %969 = arith.mulf %968, %967 : vector<6x256xf32>
    %970 = arith.addf %964, %969 : vector<6x256xf32>
    %c108 = arith.constant 108 : index
    %971 = memref.load %arg3[%c108] : memref<264xf32, #tpu.memory_space<smem>>
    %c4_553 = arith.constant 4 : index
    %c2_554 = arith.constant 2 : index
    %c0_555 = arith.constant 0 : index
    %972 = vector.load %arg5[%c4_553, %c2_554, %c0_555] : memref<8x8x256xf32, #tpu.memory_space<vmem>>, vector<1x6x256xf32>
    %973 = vector.shape_cast %972 : vector<1x6x256xf32> to vector<6x256xf32>
    %974 = vector.broadcast %971 : f32 to vector<6x256xf32>
    %975 = arith.mulf %974, %973 : vector<6x256xf32>
    %976 = arith.addf %970, %975 : vector<6x256xf32>
    %c109 = arith.constant 109 : index
    %977 = memref.load %arg3[%c109] : memref<264xf32, #tpu.memory_space<smem>>
    %c5_556 = arith.constant 5 : index
    %c2_557 = arith.constant 2 : index
    %c0_558 = arith.constant 0 : index
    %978 = vector.load %arg5[%c5_556, %c2_557, %c0_558] : memref<8x8x256xf32, #tpu.memory_space<vmem>>, vector<1x6x256xf32>
    %979 = vector.shape_cast %978 : vector<1x6x256xf32> to vector<6x256xf32>
    %980 = vector.broadcast %977 : f32 to vector<6x256xf32>
    %981 = arith.mulf %980, %979 : vector<6x256xf32>
    %982 = arith.addf %976, %981 : vector<6x256xf32>
    %c110 = arith.constant 110 : index
    %983 = memref.load %arg3[%c110] : memref<264xf32, #tpu.memory_space<smem>>
    %c6_559 = arith.constant 6 : index
    %c2_560 = arith.constant 2 : index
    %c0_561 = arith.constant 0 : index
    %984 = vector.load %arg5[%c6_559, %c2_560, %c0_561] : memref<8x8x256xf32, #tpu.memory_space<vmem>>, vector<1x6x256xf32>
    %985 = vector.shape_cast %984 : vector<1x6x256xf32> to vector<6x256xf32>
    %986 = vector.broadcast %983 : f32 to vector<6x256xf32>
    %987 = arith.mulf %986, %985 : vector<6x256xf32>
    %988 = arith.addf %982, %987 : vector<6x256xf32>
    %c111 = arith.constant 111 : index
    %989 = memref.load %arg3[%c111] : memref<264xf32, #tpu.memory_space<smem>>
    %c7_562 = arith.constant 7 : index
    %c2_563 = arith.constant 2 : index
    %c0_564 = arith.constant 0 : index
    %990 = vector.load %arg5[%c7_562, %c2_563, %c0_564] : memref<8x8x256xf32, #tpu.memory_space<vmem>>, vector<1x6x256xf32>
    %991 = vector.shape_cast %990 : vector<1x6x256xf32> to vector<6x256xf32>
    %992 = vector.broadcast %989 : f32 to vector<6x256xf32>
    %993 = arith.mulf %992, %991 : vector<6x256xf32>
    %994 = arith.addf %988, %993 : vector<6x256xf32>
    %c136 = arith.constant 136 : index
    %995 = memref.load %arg3[%c136] : memref<264xf32, #tpu.memory_space<smem>>
    %c0_565 = arith.constant 0 : index
    %c1_566 = arith.constant 1 : index
    %c0_567 = arith.constant 0 : index
    %996 = vector.load %arg5[%c0_565, %c1_566, %c0_567] : memref<8x8x256xf32, #tpu.memory_space<vmem>>, vector<1x6x256xf32>
    %997 = vector.shape_cast %996 : vector<1x6x256xf32> to vector<6x256xf32>
    %998 = vector.broadcast %995 : f32 to vector<6x256xf32>
    %999 = arith.mulf %998, %997 : vector<6x256xf32>
    %1000 = arith.addf %994, %999 : vector<6x256xf32>
    %c137 = arith.constant 137 : index
    %1001 = memref.load %arg3[%c137] : memref<264xf32, #tpu.memory_space<smem>>
    %c1_568 = arith.constant 1 : index
    %c1_569 = arith.constant 1 : index
    %c0_570 = arith.constant 0 : index
    %1002 = vector.load %arg5[%c1_568, %c1_569, %c0_570] : memref<8x8x256xf32, #tpu.memory_space<vmem>>, vector<1x6x256xf32>
    %1003 = vector.shape_cast %1002 : vector<1x6x256xf32> to vector<6x256xf32>
    %1004 = vector.broadcast %1001 : f32 to vector<6x256xf32>
    %1005 = arith.mulf %1004, %1003 : vector<6x256xf32>
    %1006 = arith.addf %1000, %1005 : vector<6x256xf32>
    %c138 = arith.constant 138 : index
    %1007 = memref.load %arg3[%c138] : memref<264xf32, #tpu.memory_space<smem>>
    %c2_571 = arith.constant 2 : index
    %c1_572 = arith.constant 1 : index
    %c0_573 = arith.constant 0 : index
    %1008 = vector.load %arg5[%c2_571, %c1_572, %c0_573] : memref<8x8x256xf32, #tpu.memory_space<vmem>>, vector<1x6x256xf32>
    %1009 = vector.shape_cast %1008 : vector<1x6x256xf32> to vector<6x256xf32>
    %1010 = vector.broadcast %1007 : f32 to vector<6x256xf32>
    %1011 = arith.mulf %1010, %1009 : vector<6x256xf32>
    %1012 = arith.addf %1006, %1011 : vector<6x256xf32>
    %c139 = arith.constant 139 : index
    %1013 = memref.load %arg3[%c139] : memref<264xf32, #tpu.memory_space<smem>>
    %c3_574 = arith.constant 3 : index
    %c1_575 = arith.constant 1 : index
    %c0_576 = arith.constant 0 : index
    %1014 = vector.load %arg5[%c3_574, %c1_575, %c0_576] : memref<8x8x256xf32, #tpu.memory_space<vmem>>, vector<1x6x256xf32>
    %1015 = vector.shape_cast %1014 : vector<1x6x256xf32> to vector<6x256xf32>
    %1016 = vector.broadcast %1013 : f32 to vector<6x256xf32>
    %1017 = arith.mulf %1016, %1015 : vector<6x256xf32>
    %1018 = arith.addf %1012, %1017 : vector<6x256xf32>
    %c140 = arith.constant 140 : index
    %1019 = memref.load %arg3[%c140] : memref<264xf32, #tpu.memory_space<smem>>
    %c4_577 = arith.constant 4 : index
    %c1_578 = arith.constant 1 : index
    %c0_579 = arith.constant 0 : index
    %1020 = vector.load %arg5[%c4_577, %c1_578, %c0_579] : memref<8x8x256xf32, #tpu.memory_space<vmem>>, vector<1x6x256xf32>
    %1021 = vector.shape_cast %1020 : vector<1x6x256xf32> to vector<6x256xf32>
    %1022 = vector.broadcast %1019 : f32 to vector<6x256xf32>
    %1023 = arith.mulf %1022, %1021 : vector<6x256xf32>
    %1024 = arith.addf %1018, %1023 : vector<6x256xf32>
    %c141 = arith.constant 141 : index
    %1025 = memref.load %arg3[%c141] : memref<264xf32, #tpu.memory_space<smem>>
    %c5_580 = arith.constant 5 : index
    %c1_581 = arith.constant 1 : index
    %c0_582 = arith.constant 0 : index
    %1026 = vector.load %arg5[%c5_580, %c1_581, %c0_582] : memref<8x8x256xf32, #tpu.memory_space<vmem>>, vector<1x6x256xf32>
    %1027 = vector.shape_cast %1026 : vector<1x6x256xf32> to vector<6x256xf32>
    %1028 = vector.broadcast %1025 : f32 to vector<6x256xf32>
    %1029 = arith.mulf %1028, %1027 : vector<6x256xf32>
    %1030 = arith.addf %1024, %1029 : vector<6x256xf32>
    %c142 = arith.constant 142 : index
    %1031 = memref.load %arg3[%c142] : memref<264xf32, #tpu.memory_space<smem>>
    %c6_583 = arith.constant 6 : index
    %c1_584 = arith.constant 1 : index
    %c0_585 = arith.constant 0 : index
    %1032 = vector.load %arg5[%c6_583, %c1_584, %c0_585] : memref<8x8x256xf32, #tpu.memory_space<vmem>>, vector<1x6x256xf32>
    %1033 = vector.shape_cast %1032 : vector<1x6x256xf32> to vector<6x256xf32>
    %1034 = vector.broadcast %1031 : f32 to vector<6x256xf32>
    %1035 = arith.mulf %1034, %1033 : vector<6x256xf32>
    %1036 = arith.addf %1030, %1035 : vector<6x256xf32>
    %c143 = arith.constant 143 : index
    %1037 = memref.load %arg3[%c143] : memref<264xf32, #tpu.memory_space<smem>>
    %c7_586 = arith.constant 7 : index
    %c1_587 = arith.constant 1 : index
    %c0_588 = arith.constant 0 : index
    %1038 = vector.load %arg5[%c7_586, %c1_587, %c0_588] : memref<8x8x256xf32, #tpu.memory_space<vmem>>, vector<1x6x256xf32>
    %1039 = vector.shape_cast %1038 : vector<1x6x256xf32> to vector<6x256xf32>
    %1040 = vector.broadcast %1037 : f32 to vector<6x256xf32>
    %1041 = arith.mulf %1040, %1039 : vector<6x256xf32>
    %1042 = arith.addf %1036, %1041 : vector<6x256xf32>
    %c168 = arith.constant 168 : index
    %1043 = memref.load %arg3[%c168] : memref<264xf32, #tpu.memory_space<smem>>
    %c0_589 = arith.constant 0 : index
    %c0_590 = arith.constant 0 : index
    %c0_591 = arith.constant 0 : index
    %1044 = vector.load %arg5[%c0_589, %c0_590, %c0_591] : memref<8x8x256xf32, #tpu.memory_space<vmem>>, vector<1x6x256xf32>
    %1045 = vector.shape_cast %1044 : vector<1x6x256xf32> to vector<6x256xf32>
    %1046 = vector.broadcast %1043 : f32 to vector<6x256xf32>
    %1047 = arith.mulf %1046, %1045 : vector<6x256xf32>
    %1048 = arith.addf %1042, %1047 : vector<6x256xf32>
    %c169 = arith.constant 169 : index
    %1049 = memref.load %arg3[%c169] : memref<264xf32, #tpu.memory_space<smem>>
    %c1_592 = arith.constant 1 : index
    %c0_593 = arith.constant 0 : index
    %c0_594 = arith.constant 0 : index
    %1050 = vector.load %arg5[%c1_592, %c0_593, %c0_594] : memref<8x8x256xf32, #tpu.memory_space<vmem>>, vector<1x6x256xf32>
    %1051 = vector.shape_cast %1050 : vector<1x6x256xf32> to vector<6x256xf32>
    %1052 = vector.broadcast %1049 : f32 to vector<6x256xf32>
    %1053 = arith.mulf %1052, %1051 : vector<6x256xf32>
    %1054 = arith.addf %1048, %1053 : vector<6x256xf32>
    %c170 = arith.constant 170 : index
    %1055 = memref.load %arg3[%c170] : memref<264xf32, #tpu.memory_space<smem>>
    %c2_595 = arith.constant 2 : index
    %c0_596 = arith.constant 0 : index
    %c0_597 = arith.constant 0 : index
    %1056 = vector.load %arg5[%c2_595, %c0_596, %c0_597] : memref<8x8x256xf32, #tpu.memory_space<vmem>>, vector<1x6x256xf32>
    %1057 = vector.shape_cast %1056 : vector<1x6x256xf32> to vector<6x256xf32>
    %1058 = vector.broadcast %1055 : f32 to vector<6x256xf32>
    %1059 = arith.mulf %1058, %1057 : vector<6x256xf32>
    %1060 = arith.addf %1054, %1059 : vector<6x256xf32>
    %c171 = arith.constant 171 : index
    %1061 = memref.load %arg3[%c171] : memref<264xf32, #tpu.memory_space<smem>>
    %c3_598 = arith.constant 3 : index
    %c0_599 = arith.constant 0 : index
    %c0_600 = arith.constant 0 : index
    %1062 = vector.load %arg5[%c3_598, %c0_599, %c0_600] : memref<8x8x256xf32, #tpu.memory_space<vmem>>, vector<1x6x256xf32>
    %1063 = vector.shape_cast %1062 : vector<1x6x256xf32> to vector<6x256xf32>
    %1064 = vector.broadcast %1061 : f32 to vector<6x256xf32>
    %1065 = arith.mulf %1064, %1063 : vector<6x256xf32>
    %1066 = arith.addf %1060, %1065 : vector<6x256xf32>
    %c172 = arith.constant 172 : index
    %1067 = memref.load %arg3[%c172] : memref<264xf32, #tpu.memory_space<smem>>
    %c4_601 = arith.constant 4 : index
    %c0_602 = arith.constant 0 : index
    %c0_603 = arith.constant 0 : index
    %1068 = vector.load %arg5[%c4_601, %c0_602, %c0_603] : memref<8x8x256xf32, #tpu.memory_space<vmem>>, vector<1x6x256xf32>
    %1069 = vector.shape_cast %1068 : vector<1x6x256xf32> to vector<6x256xf32>
    %1070 = vector.broadcast %1067 : f32 to vector<6x256xf32>
    %1071 = arith.mulf %1070, %1069 : vector<6x256xf32>
    %1072 = arith.addf %1066, %1071 : vector<6x256xf32>
    %c173 = arith.constant 173 : index
    %1073 = memref.load %arg3[%c173] : memref<264xf32, #tpu.memory_space<smem>>
    %c5_604 = arith.constant 5 : index
    %c0_605 = arith.constant 0 : index
    %c0_606 = arith.constant 0 : index
    %1074 = vector.load %arg5[%c5_604, %c0_605, %c0_606] : memref<8x8x256xf32, #tpu.memory_space<vmem>>, vector<1x6x256xf32>
    %1075 = vector.shape_cast %1074 : vector<1x6x256xf32> to vector<6x256xf32>
    %1076 = vector.broadcast %1073 : f32 to vector<6x256xf32>
    %1077 = arith.mulf %1076, %1075 : vector<6x256xf32>
    %1078 = arith.addf %1072, %1077 : vector<6x256xf32>
    %c174 = arith.constant 174 : index
    %1079 = memref.load %arg3[%c174] : memref<264xf32, #tpu.memory_space<smem>>
    %c6_607 = arith.constant 6 : index
    %c0_608 = arith.constant 0 : index
    %c0_609 = arith.constant 0 : index
    %1080 = vector.load %arg5[%c6_607, %c0_608, %c0_609] : memref<8x8x256xf32, #tpu.memory_space<vmem>>, vector<1x6x256xf32>
    %1081 = vector.shape_cast %1080 : vector<1x6x256xf32> to vector<6x256xf32>
    %1082 = vector.broadcast %1079 : f32 to vector<6x256xf32>
    %1083 = arith.mulf %1082, %1081 : vector<6x256xf32>
    %1084 = arith.addf %1078, %1083 : vector<6x256xf32>
    %c175 = arith.constant 175 : index
    %1085 = memref.load %arg3[%c175] : memref<264xf32, #tpu.memory_space<smem>>
    %c7_610 = arith.constant 7 : index
    %c0_611 = arith.constant 0 : index
    %c0_612 = arith.constant 0 : index
    %1086 = vector.load %arg5[%c7_610, %c0_611, %c0_612] : memref<8x8x256xf32, #tpu.memory_space<vmem>>, vector<1x6x256xf32>
    %1087 = vector.shape_cast %1086 : vector<1x6x256xf32> to vector<6x256xf32>
    %1088 = vector.broadcast %1085 : f32 to vector<6x256xf32>
    %1089 = arith.mulf %1088, %1087 : vector<6x256xf32>
    %1090 = arith.addf %1084, %1089 : vector<6x256xf32>
    %cst_613 = arith.constant 0.00999999977 : f32
    %1091 = vector.broadcast %cst_613 : f32 to vector<6x256xf32>
    %1092 = arith.mulf %1091, %1090 : vector<6x256xf32>
    %1093 = arith.maximumf %1090, %1092 : vector<6x256xf32>
    %c261 = arith.constant 261 : index
    %1094 = memref.load %arg3[%c261] : memref<264xf32, #tpu.memory_space<smem>>
    %1095 = vector.broadcast %1094 : f32 to vector<2x256xf32>
    %c204 = arith.constant 204 : index
    %1096 = memref.load %arg3[%c204] : memref<264xf32, #tpu.memory_space<smem>>
    %c0_614 = arith.constant 0 : index
    %c1_615 = arith.constant 1 : index
    %c0_616 = arith.constant 0 : index
    %1097 = vector.load %arg5[%c0_614, %c1_615, %c0_616] : memref<8x8x256xf32, #tpu.memory_space<vmem>>, vector<1x2x256xf32>
    %1098 = vector.shape_cast %1097 : vector<1x2x256xf32> to vector<2x256xf32>
    %1099 = vector.broadcast %1096 : f32 to vector<2x256xf32>
    %1100 = arith.mulf %1099, %1098 : vector<2x256xf32>
    %1101 = arith.addf %1095, %1100 : vector<2x256xf32>
    %c205 = arith.constant 205 : index
    %1102 = memref.load %arg3[%c205] : memref<264xf32, #tpu.memory_space<smem>>
    %c1_617 = arith.constant 1 : index
    %c1_618 = arith.constant 1 : index
    %c0_619 = arith.constant 0 : index
    %1103 = vector.load %arg5[%c1_617, %c1_618, %c0_619] : memref<8x8x256xf32, #tpu.memory_space<vmem>>, vector<1x2x256xf32>
    %1104 = vector.shape_cast %1103 : vector<1x2x256xf32> to vector<2x256xf32>
    %1105 = vector.broadcast %1102 : f32 to vector<2x256xf32>
    %1106 = arith.mulf %1105, %1104 : vector<2x256xf32>
    %1107 = arith.addf %1101, %1106 : vector<2x256xf32>
    %c206 = arith.constant 206 : index
    %1108 = memref.load %arg3[%c206] : memref<264xf32, #tpu.memory_space<smem>>
    %c2_620 = arith.constant 2 : index
    %c1_621 = arith.constant 1 : index
    %c0_622 = arith.constant 0 : index
    %1109 = vector.load %arg5[%c2_620, %c1_621, %c0_622] : memref<8x8x256xf32, #tpu.memory_space<vmem>>, vector<1x2x256xf32>
    %1110 = vector.shape_cast %1109 : vector<1x2x256xf32> to vector<2x256xf32>
    %1111 = vector.broadcast %1108 : f32 to vector<2x256xf32>
    %1112 = arith.mulf %1111, %1110 : vector<2x256xf32>
    %1113 = arith.addf %1107, %1112 : vector<2x256xf32>
    %c207 = arith.constant 207 : index
    %1114 = memref.load %arg3[%c207] : memref<264xf32, #tpu.memory_space<smem>>
    %c3_623 = arith.constant 3 : index
    %c1_624 = arith.constant 1 : index
    %c0_625 = arith.constant 0 : index
    %1115 = vector.load %arg5[%c3_623, %c1_624, %c0_625] : memref<8x8x256xf32, #tpu.memory_space<vmem>>, vector<1x2x256xf32>
    %1116 = vector.shape_cast %1115 : vector<1x2x256xf32> to vector<2x256xf32>
    %1117 = vector.broadcast %1114 : f32 to vector<2x256xf32>
    %1118 = arith.mulf %1117, %1116 : vector<2x256xf32>
    %1119 = arith.addf %1113, %1118 : vector<2x256xf32>
    %c208 = arith.constant 208 : index
    %1120 = memref.load %arg3[%c208] : memref<264xf32, #tpu.memory_space<smem>>
    %c4_626 = arith.constant 4 : index
    %c1_627 = arith.constant 1 : index
    %c0_628 = arith.constant 0 : index
    %1121 = vector.load %arg5[%c4_626, %c1_627, %c0_628] : memref<8x8x256xf32, #tpu.memory_space<vmem>>, vector<1x2x256xf32>
    %1122 = vector.shape_cast %1121 : vector<1x2x256xf32> to vector<2x256xf32>
    %1123 = vector.broadcast %1120 : f32 to vector<2x256xf32>
    %1124 = arith.mulf %1123, %1122 : vector<2x256xf32>
    %1125 = arith.addf %1119, %1124 : vector<2x256xf32>
    %c209 = arith.constant 209 : index
    %1126 = memref.load %arg3[%c209] : memref<264xf32, #tpu.memory_space<smem>>
    %c5_629 = arith.constant 5 : index
    %c1_630 = arith.constant 1 : index
    %c0_631 = arith.constant 0 : index
    %1127 = vector.load %arg5[%c5_629, %c1_630, %c0_631] : memref<8x8x256xf32, #tpu.memory_space<vmem>>, vector<1x2x256xf32>
    %1128 = vector.shape_cast %1127 : vector<1x2x256xf32> to vector<2x256xf32>
    %1129 = vector.broadcast %1126 : f32 to vector<2x256xf32>
    %1130 = arith.mulf %1129, %1128 : vector<2x256xf32>
    %1131 = arith.addf %1125, %1130 : vector<2x256xf32>
    %c210 = arith.constant 210 : index
    %1132 = memref.load %arg3[%c210] : memref<264xf32, #tpu.memory_space<smem>>
    %c6_632 = arith.constant 6 : index
    %c1_633 = arith.constant 1 : index
    %c0_634 = arith.constant 0 : index
    %1133 = vector.load %arg5[%c6_632, %c1_633, %c0_634] : memref<8x8x256xf32, #tpu.memory_space<vmem>>, vector<1x2x256xf32>
    %1134 = vector.shape_cast %1133 : vector<1x2x256xf32> to vector<2x256xf32>
    %1135 = vector.broadcast %1132 : f32 to vector<2x256xf32>
    %1136 = arith.mulf %1135, %1134 : vector<2x256xf32>
    %1137 = arith.addf %1131, %1136 : vector<2x256xf32>
    %c211 = arith.constant 211 : index
    %1138 = memref.load %arg3[%c211] : memref<264xf32, #tpu.memory_space<smem>>
    %c7_635 = arith.constant 7 : index
    %c1_636 = arith.constant 1 : index
    %c0_637 = arith.constant 0 : index
    %1139 = vector.load %arg5[%c7_635, %c1_636, %c0_637] : memref<8x8x256xf32, #tpu.memory_space<vmem>>, vector<1x2x256xf32>
    %1140 = vector.shape_cast %1139 : vector<1x2x256xf32> to vector<2x256xf32>
    %1141 = vector.broadcast %1138 : f32 to vector<2x256xf32>
    %1142 = arith.mulf %1141, %1140 : vector<2x256xf32>
    %1143 = arith.addf %1137, %1142 : vector<2x256xf32>
    %c236 = arith.constant 236 : index
    %1144 = memref.load %arg3[%c236] : memref<264xf32, #tpu.memory_space<smem>>
    %c0_638 = arith.constant 0 : index
    %c0_639 = arith.constant 0 : index
    %c0_640 = arith.constant 0 : index
    %1145 = vector.load %arg5[%c0_638, %c0_639, %c0_640] : memref<8x8x256xf32, #tpu.memory_space<vmem>>, vector<1x2x256xf32>
    %1146 = vector.shape_cast %1145 : vector<1x2x256xf32> to vector<2x256xf32>
    %1147 = vector.broadcast %1144 : f32 to vector<2x256xf32>
    %1148 = arith.mulf %1147, %1146 : vector<2x256xf32>
    %1149 = arith.addf %1143, %1148 : vector<2x256xf32>
    %c237 = arith.constant 237 : index
    %1150 = memref.load %arg3[%c237] : memref<264xf32, #tpu.memory_space<smem>>
    %c1_641 = arith.constant 1 : index
    %c0_642 = arith.constant 0 : index
    %c0_643 = arith.constant 0 : index
    %1151 = vector.load %arg5[%c1_641, %c0_642, %c0_643] : memref<8x8x256xf32, #tpu.memory_space<vmem>>, vector<1x2x256xf32>
    %1152 = vector.shape_cast %1151 : vector<1x2x256xf32> to vector<2x256xf32>
    %1153 = vector.broadcast %1150 : f32 to vector<2x256xf32>
    %1154 = arith.mulf %1153, %1152 : vector<2x256xf32>
    %1155 = arith.addf %1149, %1154 : vector<2x256xf32>
    %c238 = arith.constant 238 : index
    %1156 = memref.load %arg3[%c238] : memref<264xf32, #tpu.memory_space<smem>>
    %c2_644 = arith.constant 2 : index
    %c0_645 = arith.constant 0 : index
    %c0_646 = arith.constant 0 : index
    %1157 = vector.load %arg5[%c2_644, %c0_645, %c0_646] : memref<8x8x256xf32, #tpu.memory_space<vmem>>, vector<1x2x256xf32>
    %1158 = vector.shape_cast %1157 : vector<1x2x256xf32> to vector<2x256xf32>
    %1159 = vector.broadcast %1156 : f32 to vector<2x256xf32>
    %1160 = arith.mulf %1159, %1158 : vector<2x256xf32>
    %1161 = arith.addf %1155, %1160 : vector<2x256xf32>
    %c239 = arith.constant 239 : index
    %1162 = memref.load %arg3[%c239] : memref<264xf32, #tpu.memory_space<smem>>
    %c3_647 = arith.constant 3 : index
    %c0_648 = arith.constant 0 : index
    %c0_649 = arith.constant 0 : index
    %1163 = vector.load %arg5[%c3_647, %c0_648, %c0_649] : memref<8x8x256xf32, #tpu.memory_space<vmem>>, vector<1x2x256xf32>
    %1164 = vector.shape_cast %1163 : vector<1x2x256xf32> to vector<2x256xf32>
    %1165 = vector.broadcast %1162 : f32 to vector<2x256xf32>
    %1166 = arith.mulf %1165, %1164 : vector<2x256xf32>
    %1167 = arith.addf %1161, %1166 : vector<2x256xf32>
    %c240 = arith.constant 240 : index
    %1168 = memref.load %arg3[%c240] : memref<264xf32, #tpu.memory_space<smem>>
    %c4_650 = arith.constant 4 : index
    %c0_651 = arith.constant 0 : index
    %c0_652 = arith.constant 0 : index
    %1169 = vector.load %arg5[%c4_650, %c0_651, %c0_652] : memref<8x8x256xf32, #tpu.memory_space<vmem>>, vector<1x2x256xf32>
    %1170 = vector.shape_cast %1169 : vector<1x2x256xf32> to vector<2x256xf32>
    %1171 = vector.broadcast %1168 : f32 to vector<2x256xf32>
    %1172 = arith.mulf %1171, %1170 : vector<2x256xf32>
    %1173 = arith.addf %1167, %1172 : vector<2x256xf32>
    %c241 = arith.constant 241 : index
    %1174 = memref.load %arg3[%c241] : memref<264xf32, #tpu.memory_space<smem>>
    %c5_653 = arith.constant 5 : index
    %c0_654 = arith.constant 0 : index
    %c0_655 = arith.constant 0 : index
    %1175 = vector.load %arg5[%c5_653, %c0_654, %c0_655] : memref<8x8x256xf32, #tpu.memory_space<vmem>>, vector<1x2x256xf32>
    %1176 = vector.shape_cast %1175 : vector<1x2x256xf32> to vector<2x256xf32>
    %1177 = vector.broadcast %1174 : f32 to vector<2x256xf32>
    %1178 = arith.mulf %1177, %1176 : vector<2x256xf32>
    %1179 = arith.addf %1173, %1178 : vector<2x256xf32>
    %c242 = arith.constant 242 : index
    %1180 = memref.load %arg3[%c242] : memref<264xf32, #tpu.memory_space<smem>>
    %c6_656 = arith.constant 6 : index
    %c0_657 = arith.constant 0 : index
    %c0_658 = arith.constant 0 : index
    %1181 = vector.load %arg5[%c6_656, %c0_657, %c0_658] : memref<8x8x256xf32, #tpu.memory_space<vmem>>, vector<1x2x256xf32>
    %1182 = vector.shape_cast %1181 : vector<1x2x256xf32> to vector<2x256xf32>
    %1183 = vector.broadcast %1180 : f32 to vector<2x256xf32>
    %1184 = arith.mulf %1183, %1182 : vector<2x256xf32>
    %1185 = arith.addf %1179, %1184 : vector<2x256xf32>
    %c243 = arith.constant 243 : index
    %1186 = memref.load %arg3[%c243] : memref<264xf32, #tpu.memory_space<smem>>
    %c7_659 = arith.constant 7 : index
    %c0_660 = arith.constant 0 : index
    %c0_661 = arith.constant 0 : index
    %1187 = vector.load %arg5[%c7_659, %c0_660, %c0_661] : memref<8x8x256xf32, #tpu.memory_space<vmem>>, vector<1x2x256xf32>
    %1188 = vector.shape_cast %1187 : vector<1x2x256xf32> to vector<2x256xf32>
    %1189 = vector.broadcast %1186 : f32 to vector<2x256xf32>
    %1190 = arith.mulf %1189, %1188 : vector<2x256xf32>
    %1191 = arith.addf %1185, %1190 : vector<2x256xf32>
    %cst_662 = arith.constant 0.00999999977 : f32
    %1192 = vector.broadcast %cst_662 : f32 to vector<2x256xf32>
    %1193 = arith.mulf %1192, %1191 : vector<2x256xf32>
    %1194 = arith.maximumf %1191, %1193 : vector<2x256xf32>
    %1195 = vector.extract_strided_slice %1093 {offsets = [0, 0], sizes = [1, 256], strides = [1, 1]} : vector<6x256xf32> to vector<1x256xf32>
    %1196 = vector.extract_strided_slice %1093 {offsets = [1, 0], sizes = [5, 256], strides = [1, 1]} : vector<6x256xf32> to vector<5x256xf32>
    %c0_663 = arith.constant 0 : index
    %c1_664 = arith.constant 1 : index
    %c3_665 = arith.constant 3 : index
    %c0_666 = arith.constant 0 : index
    %1197 = vector.load %arg4[%c0_663, %c1_664, %c3_665, %c0_666] : memref<1x4x8x256xf32, #tpu.memory_space<vmem>>, vector<1x1x5x256xf32>
    %1198 = vector.shape_cast %1197 : vector<1x1x5x256xf32> to vector<5x256xf32>
    %1199 = vector.shape_cast %1196 : vector<5x256xf32> to vector<1x1x5x256xf32>
    tpu.vector_store %arg4[%c0_663, %c1_664, %c3_665, %c0_666], %1199 {strides = array<i32>} : memref<1x4x8x256xf32, #tpu.memory_space<vmem>>, vector<1x1x5x256xf32>,
    %1200 = vector.broadcast %1195 : vector<1x256xf32> to vector<2x256xf32>
    %1201 = arith.subf %1200, %1194 : vector<2x256xf32>
    %c0_667 = arith.constant 0 : index
    %c1_668 = arith.constant 1 : index
    %c1_669 = arith.constant 1 : index
    %c0_670 = arith.constant 0 : index
    %1202 = vector.load %arg4[%c0_667, %c1_668, %c1_669, %c0_670] : memref<1x4x8x256xf32, #tpu.memory_space<vmem>>, vector<1x1x2x256xf32>
    %1203 = vector.shape_cast %1202 : vector<1x1x2x256xf32> to vector<2x256xf32>
    %1204 = vector.shape_cast %1201 : vector<2x256xf32> to vector<1x1x2x256xf32>
    tpu.vector_store %arg4[%c0_667, %c1_668, %c1_669, %c0_670], %1204 {strides = array<i32>} : memref<1x4x8x256xf32, #tpu.memory_space<vmem>>, vector<1x1x2x256xf32>,
    %1205 = vector.extract_strided_slice %1194 {offsets = [0, 0], sizes = [1, 256], strides = [1, 1]} : vector<2x256xf32> to vector<1x256xf32>
    %1206 = arith.subf %1195, %1205 : vector<1x256xf32>
    %c0_671 = arith.constant 0 : index
    %c1_672 = arith.constant 1 : index
    %c0_673 = arith.constant 0 : index
    %c0_674 = arith.constant 0 : index
    %1207 = vector.load %arg4[%c0_671, %c1_672, %c0_673, %c0_674] : memref<1x4x8x256xf32, #tpu.memory_space<vmem>>, vector<1x1x1x256xf32>
    %1208 = vector.shape_cast %1207 : vector<1x1x1x256xf32> to vector<1x256xf32>
    %1209 = vector.shape_cast %1206 : vector<1x256xf32> to vector<1x1x1x256xf32>
    tpu.vector_store %arg4[%c0_671, %c1_672, %c0_673, %c0_674], %1209 {strides = array<i32>} : memref<1x4x8x256xf32, #tpu.memory_space<vmem>>, vector<1x1x1x256xf32>,
    %c194 = arith.constant 194 : index
    %1210 = memref.load %arg3[%c194] : memref<264xf32, #tpu.memory_space<smem>>
    %1211 = vector.broadcast %1210 : f32 to vector<6x256xf32>
    %c112 = arith.constant 112 : index
    %1212 = memref.load %arg3[%c112] : memref<264xf32, #tpu.memory_space<smem>>
    %c0_675 = arith.constant 0 : index
    %c2_676 = arith.constant 2 : index
    %c0_677 = arith.constant 0 : index
    %1213 = vector.load %arg5[%c0_675, %c2_676, %c0_677] : memref<8x8x256xf32, #tpu.memory_space<vmem>>, vector<1x6x256xf32>
    %1214 = vector.shape_cast %1213 : vector<1x6x256xf32> to vector<6x256xf32>
    %1215 = vector.broadcast %1212 : f32 to vector<6x256xf32>
    %1216 = arith.mulf %1215, %1214 : vector<6x256xf32>
    %1217 = arith.addf %1211, %1216 : vector<6x256xf32>
    %c113 = arith.constant 113 : index
    %1218 = memref.load %arg3[%c113] : memref<264xf32, #tpu.memory_space<smem>>
    %c1_678 = arith.constant 1 : index
    %c2_679 = arith.constant 2 : index
    %c0_680 = arith.constant 0 : index
    %1219 = vector.load %arg5[%c1_678, %c2_679, %c0_680] : memref<8x8x256xf32, #tpu.memory_space<vmem>>, vector<1x6x256xf32>
    %1220 = vector.shape_cast %1219 : vector<1x6x256xf32> to vector<6x256xf32>
    %1221 = vector.broadcast %1218 : f32 to vector<6x256xf32>
    %1222 = arith.mulf %1221, %1220 : vector<6x256xf32>
    %1223 = arith.addf %1217, %1222 : vector<6x256xf32>
    %c114 = arith.constant 114 : index
    %1224 = memref.load %arg3[%c114] : memref<264xf32, #tpu.memory_space<smem>>
    %c2_681 = arith.constant 2 : index
    %c2_682 = arith.constant 2 : index
    %c0_683 = arith.constant 0 : index
    %1225 = vector.load %arg5[%c2_681, %c2_682, %c0_683] : memref<8x8x256xf32, #tpu.memory_space<vmem>>, vector<1x6x256xf32>
    %1226 = vector.shape_cast %1225 : vector<1x6x256xf32> to vector<6x256xf32>
    %1227 = vector.broadcast %1224 : f32 to vector<6x256xf32>
    %1228 = arith.mulf %1227, %1226 : vector<6x256xf32>
    %1229 = arith.addf %1223, %1228 : vector<6x256xf32>
    %c115 = arith.constant 115 : index
    %1230 = memref.load %arg3[%c115] : memref<264xf32, #tpu.memory_space<smem>>
    %c3_684 = arith.constant 3 : index
    %c2_685 = arith.constant 2 : index
    %c0_686 = arith.constant 0 : index
    %1231 = vector.load %arg5[%c3_684, %c2_685, %c0_686] : memref<8x8x256xf32, #tpu.memory_space<vmem>>, vector<1x6x256xf32>
    %1232 = vector.shape_cast %1231 : vector<1x6x256xf32> to vector<6x256xf32>
    %1233 = vector.broadcast %1230 : f32 to vector<6x256xf32>
    %1234 = arith.mulf %1233, %1232 : vector<6x256xf32>
    %1235 = arith.addf %1229, %1234 : vector<6x256xf32>
    %c116 = arith.constant 116 : index
    %1236 = memref.load %arg3[%c116] : memref<264xf32, #tpu.memory_space<smem>>
    %c4_687 = arith.constant 4 : index
    %c2_688 = arith.constant 2 : index
    %c0_689 = arith.constant 0 : index
    %1237 = vector.load %arg5[%c4_687, %c2_688, %c0_689] : memref<8x8x256xf32, #tpu.memory_space<vmem>>, vector<1x6x256xf32>
    %1238 = vector.shape_cast %1237 : vector<1x6x256xf32> to vector<6x256xf32>
    %1239 = vector.broadcast %1236 : f32 to vector<6x256xf32>
    %1240 = arith.mulf %1239, %1238 : vector<6x256xf32>
    %1241 = arith.addf %1235, %1240 : vector<6x256xf32>
    %c117 = arith.constant 117 : index
    %1242 = memref.load %arg3[%c117] : memref<264xf32, #tpu.memory_space<smem>>
    %c5_690 = arith.constant 5 : index
    %c2_691 = arith.constant 2 : index
    %c0_692 = arith.constant 0 : index
    %1243 = vector.load %arg5[%c5_690, %c2_691, %c0_692] : memref<8x8x256xf32, #tpu.memory_space<vmem>>, vector<1x6x256xf32>
    %1244 = vector.shape_cast %1243 : vector<1x6x256xf32> to vector<6x256xf32>
    %1245 = vector.broadcast %1242 : f32 to vector<6x256xf32>
    %1246 = arith.mulf %1245, %1244 : vector<6x256xf32>
    %1247 = arith.addf %1241, %1246 : vector<6x256xf32>
    %c118 = arith.constant 118 : index
    %1248 = memref.load %arg3[%c118] : memref<264xf32, #tpu.memory_space<smem>>
    %c6_693 = arith.constant 6 : index
    %c2_694 = arith.constant 2 : index
    %c0_695 = arith.constant 0 : index
    %1249 = vector.load %arg5[%c6_693, %c2_694, %c0_695] : memref<8x8x256xf32, #tpu.memory_space<vmem>>, vector<1x6x256xf32>
    %1250 = vector.shape_cast %1249 : vector<1x6x256xf32> to vector<6x256xf32>
    %1251 = vector.broadcast %1248 : f32 to vector<6x256xf32>
    %1252 = arith.mulf %1251, %1250 : vector<6x256xf32>
    %1253 = arith.addf %1247, %1252 : vector<6x256xf32>
    %c119 = arith.constant 119 : index
    %1254 = memref.load %arg3[%c119] : memref<264xf32, #tpu.memory_space<smem>>
    %c7_696 = arith.constant 7 : index
    %c2_697 = arith.constant 2 : index
    %c0_698 = arith.constant 0 : index
    %1255 = vector.load %arg5[%c7_696, %c2_697, %c0_698] : memref<8x8x256xf32, #tpu.memory_space<vmem>>, vector<1x6x256xf32>
    %1256 = vector.shape_cast %1255 : vector<1x6x256xf32> to vector<6x256xf32>
    %1257 = vector.broadcast %1254 : f32 to vector<6x256xf32>
    %1258 = arith.mulf %1257, %1256 : vector<6x256xf32>
    %1259 = arith.addf %1253, %1258 : vector<6x256xf32>
    %c144 = arith.constant 144 : index
    %1260 = memref.load %arg3[%c144] : memref<264xf32, #tpu.memory_space<smem>>
    %c0_699 = arith.constant 0 : index
    %c1_700 = arith.constant 1 : index
    %c0_701 = arith.constant 0 : index
    %1261 = vector.load %arg5[%c0_699, %c1_700, %c0_701] : memref<8x8x256xf32, #tpu.memory_space<vmem>>, vector<1x6x256xf32>
    %1262 = vector.shape_cast %1261 : vector<1x6x256xf32> to vector<6x256xf32>
    %1263 = vector.broadcast %1260 : f32 to vector<6x256xf32>
    %1264 = arith.mulf %1263, %1262 : vector<6x256xf32>
    %1265 = arith.addf %1259, %1264 : vector<6x256xf32>
    %c145 = arith.constant 145 : index
    %1266 = memref.load %arg3[%c145] : memref<264xf32, #tpu.memory_space<smem>>
    %c1_702 = arith.constant 1 : index
    %c1_703 = arith.constant 1 : index
    %c0_704 = arith.constant 0 : index
    %1267 = vector.load %arg5[%c1_702, %c1_703, %c0_704] : memref<8x8x256xf32, #tpu.memory_space<vmem>>, vector<1x6x256xf32>
    %1268 = vector.shape_cast %1267 : vector<1x6x256xf32> to vector<6x256xf32>
    %1269 = vector.broadcast %1266 : f32 to vector<6x256xf32>
    %1270 = arith.mulf %1269, %1268 : vector<6x256xf32>
    %1271 = arith.addf %1265, %1270 : vector<6x256xf32>
    %c146 = arith.constant 146 : index
    %1272 = memref.load %arg3[%c146] : memref<264xf32, #tpu.memory_space<smem>>
    %c2_705 = arith.constant 2 : index
    %c1_706 = arith.constant 1 : index
    %c0_707 = arith.constant 0 : index
    %1273 = vector.load %arg5[%c2_705, %c1_706, %c0_707] : memref<8x8x256xf32, #tpu.memory_space<vmem>>, vector<1x6x256xf32>
    %1274 = vector.shape_cast %1273 : vector<1x6x256xf32> to vector<6x256xf32>
    %1275 = vector.broadcast %1272 : f32 to vector<6x256xf32>
    %1276 = arith.mulf %1275, %1274 : vector<6x256xf32>
    %1277 = arith.addf %1271, %1276 : vector<6x256xf32>
    %c147 = arith.constant 147 : index
    %1278 = memref.load %arg3[%c147] : memref<264xf32, #tpu.memory_space<smem>>
    %c3_708 = arith.constant 3 : index
    %c1_709 = arith.constant 1 : index
    %c0_710 = arith.constant 0 : index
    %1279 = vector.load %arg5[%c3_708, %c1_709, %c0_710] : memref<8x8x256xf32, #tpu.memory_space<vmem>>, vector<1x6x256xf32>
    %1280 = vector.shape_cast %1279 : vector<1x6x256xf32> to vector<6x256xf32>
    %1281 = vector.broadcast %1278 : f32 to vector<6x256xf32>
    %1282 = arith.mulf %1281, %1280 : vector<6x256xf32>
    %1283 = arith.addf %1277, %1282 : vector<6x256xf32>
    %c148 = arith.constant 148 : index
    %1284 = memref.load %arg3[%c148] : memref<264xf32, #tpu.memory_space<smem>>
    %c4_711 = arith.constant 4 : index
    %c1_712 = arith.constant 1 : index
    %c0_713 = arith.constant 0 : index
    %1285 = vector.load %arg5[%c4_711, %c1_712, %c0_713] : memref<8x8x256xf32, #tpu.memory_space<vmem>>, vector<1x6x256xf32>
    %1286 = vector.shape_cast %1285 : vector<1x6x256xf32> to vector<6x256xf32>
    %1287 = vector.broadcast %1284 : f32 to vector<6x256xf32>
    %1288 = arith.mulf %1287, %1286 : vector<6x256xf32>
    %1289 = arith.addf %1283, %1288 : vector<6x256xf32>
    %c149 = arith.constant 149 : index
    %1290 = memref.load %arg3[%c149] : memref<264xf32, #tpu.memory_space<smem>>
    %c5_714 = arith.constant 5 : index
    %c1_715 = arith.constant 1 : index
    %c0_716 = arith.constant 0 : index
    %1291 = vector.load %arg5[%c5_714, %c1_715, %c0_716] : memref<8x8x256xf32, #tpu.memory_space<vmem>>, vector<1x6x256xf32>
    %1292 = vector.shape_cast %1291 : vector<1x6x256xf32> to vector<6x256xf32>
    %1293 = vector.broadcast %1290 : f32 to vector<6x256xf32>
    %1294 = arith.mulf %1293, %1292 : vector<6x256xf32>
    %1295 = arith.addf %1289, %1294 : vector<6x256xf32>
    %c150 = arith.constant 150 : index
    %1296 = memref.load %arg3[%c150] : memref<264xf32, #tpu.memory_space<smem>>
    %c6_717 = arith.constant 6 : index
    %c1_718 = arith.constant 1 : index
    %c0_719 = arith.constant 0 : index
    %1297 = vector.load %arg5[%c6_717, %c1_718, %c0_719] : memref<8x8x256xf32, #tpu.memory_space<vmem>>, vector<1x6x256xf32>
    %1298 = vector.shape_cast %1297 : vector<1x6x256xf32> to vector<6x256xf32>
    %1299 = vector.broadcast %1296 : f32 to vector<6x256xf32>
    %1300 = arith.mulf %1299, %1298 : vector<6x256xf32>
    %1301 = arith.addf %1295, %1300 : vector<6x256xf32>
    %c151 = arith.constant 151 : index
    %1302 = memref.load %arg3[%c151] : memref<264xf32, #tpu.memory_space<smem>>
    %c7_720 = arith.constant 7 : index
    %c1_721 = arith.constant 1 : index
    %c0_722 = arith.constant 0 : index
    %1303 = vector.load %arg5[%c7_720, %c1_721, %c0_722] : memref<8x8x256xf32, #tpu.memory_space<vmem>>, vector<1x6x256xf32>
    %1304 = vector.shape_cast %1303 : vector<1x6x256xf32> to vector<6x256xf32>
    %1305 = vector.broadcast %1302 : f32 to vector<6x256xf32>
    %1306 = arith.mulf %1305, %1304 : vector<6x256xf32>
    %1307 = arith.addf %1301, %1306 : vector<6x256xf32>
    %c176 = arith.constant 176 : index
    %1308 = memref.load %arg3[%c176] : memref<264xf32, #tpu.memory_space<smem>>
    %c0_723 = arith.constant 0 : index
    %c0_724 = arith.constant 0 : index
    %c0_725 = arith.constant 0 : index
    %1309 = vector.load %arg5[%c0_723, %c0_724, %c0_725] : memref<8x8x256xf32, #tpu.memory_space<vmem>>, vector<1x6x256xf32>
    %1310 = vector.shape_cast %1309 : vector<1x6x256xf32> to vector<6x256xf32>
    %1311 = vector.broadcast %1308 : f32 to vector<6x256xf32>
    %1312 = arith.mulf %1311, %1310 : vector<6x256xf32>
    %1313 = arith.addf %1307, %1312 : vector<6x256xf32>
    %c177 = arith.constant 177 : index
    %1314 = memref.load %arg3[%c177] : memref<264xf32, #tpu.memory_space<smem>>
    %c1_726 = arith.constant 1 : index
    %c0_727 = arith.constant 0 : index
    %c0_728 = arith.constant 0 : index
    %1315 = vector.load %arg5[%c1_726, %c0_727, %c0_728] : memref<8x8x256xf32, #tpu.memory_space<vmem>>, vector<1x6x256xf32>
    %1316 = vector.shape_cast %1315 : vector<1x6x256xf32> to vector<6x256xf32>
    %1317 = vector.broadcast %1314 : f32 to vector<6x256xf32>
    %1318 = arith.mulf %1317, %1316 : vector<6x256xf32>
    %1319 = arith.addf %1313, %1318 : vector<6x256xf32>
    %c178 = arith.constant 178 : index
    %1320 = memref.load %arg3[%c178] : memref<264xf32, #tpu.memory_space<smem>>
    %c2_729 = arith.constant 2 : index
    %c0_730 = arith.constant 0 : index
    %c0_731 = arith.constant 0 : index
    %1321 = vector.load %arg5[%c2_729, %c0_730, %c0_731] : memref<8x8x256xf32, #tpu.memory_space<vmem>>, vector<1x6x256xf32>
    %1322 = vector.shape_cast %1321 : vector<1x6x256xf32> to vector<6x256xf32>
    %1323 = vector.broadcast %1320 : f32 to vector<6x256xf32>
    %1324 = arith.mulf %1323, %1322 : vector<6x256xf32>
    %1325 = arith.addf %1319, %1324 : vector<6x256xf32>
    %c179 = arith.constant 179 : index
    %1326 = memref.load %arg3[%c179] : memref<264xf32, #tpu.memory_space<smem>>
    %c3_732 = arith.constant 3 : index
    %c0_733 = arith.constant 0 : index
    %c0_734 = arith.constant 0 : index
    %1327 = vector.load %arg5[%c3_732, %c0_733, %c0_734] : memref<8x8x256xf32, #tpu.memory_space<vmem>>, vector<1x6x256xf32>
    %1328 = vector.shape_cast %1327 : vector<1x6x256xf32> to vector<6x256xf32>
    %1329 = vector.broadcast %1326 : f32 to vector<6x256xf32>
    %1330 = arith.mulf %1329, %1328 : vector<6x256xf32>
    %1331 = arith.addf %1325, %1330 : vector<6x256xf32>
    %c180 = arith.constant 180 : index
    %1332 = memref.load %arg3[%c180] : memref<264xf32, #tpu.memory_space<smem>>
    %c4_735 = arith.constant 4 : index
    %c0_736 = arith.constant 0 : index
    %c0_737 = arith.constant 0 : index
    %1333 = vector.load %arg5[%c4_735, %c0_736, %c0_737] : memref<8x8x256xf32, #tpu.memory_space<vmem>>, vector<1x6x256xf32>
    %1334 = vector.shape_cast %1333 : vector<1x6x256xf32> to vector<6x256xf32>
    %1335 = vector.broadcast %1332 : f32 to vector<6x256xf32>
    %1336 = arith.mulf %1335, %1334 : vector<6x256xf32>
    %1337 = arith.addf %1331, %1336 : vector<6x256xf32>
    %c181 = arith.constant 181 : index
    %1338 = memref.load %arg3[%c181] : memref<264xf32, #tpu.memory_space<smem>>
    %c5_738 = arith.constant 5 : index
    %c0_739 = arith.constant 0 : index
    %c0_740 = arith.constant 0 : index
    %1339 = vector.load %arg5[%c5_738, %c0_739, %c0_740] : memref<8x8x256xf32, #tpu.memory_space<vmem>>, vector<1x6x256xf32>
    %1340 = vector.shape_cast %1339 : vector<1x6x256xf32> to vector<6x256xf32>
    %1341 = vector.broadcast %1338 : f32 to vector<6x256xf32>
    %1342 = arith.mulf %1341, %1340 : vector<6x256xf32>
    %1343 = arith.addf %1337, %1342 : vector<6x256xf32>
    %c182 = arith.constant 182 : index
    %1344 = memref.load %arg3[%c182] : memref<264xf32, #tpu.memory_space<smem>>
    %c6_741 = arith.constant 6 : index
    %c0_742 = arith.constant 0 : index
    %c0_743 = arith.constant 0 : index
    %1345 = vector.load %arg5[%c6_741, %c0_742, %c0_743] : memref<8x8x256xf32, #tpu.memory_space<vmem>>, vector<1x6x256xf32>
    %1346 = vector.shape_cast %1345 : vector<1x6x256xf32> to vector<6x256xf32>
    %1347 = vector.broadcast %1344 : f32 to vector<6x256xf32>
    %1348 = arith.mulf %1347, %1346 : vector<6x256xf32>
    %1349 = arith.addf %1343, %1348 : vector<6x256xf32>
    %c183 = arith.constant 183 : index
    %1350 = memref.load %arg3[%c183] : memref<264xf32, #tpu.memory_space<smem>>
    %c7_744 = arith.constant 7 : index
    %c0_745 = arith.constant 0 : index
    %c0_746 = arith.constant 0 : index
    %1351 = vector.load %arg5[%c7_744, %c0_745, %c0_746] : memref<8x8x256xf32, #tpu.memory_space<vmem>>, vector<1x6x256xf32>
    %1352 = vector.shape_cast %1351 : vector<1x6x256xf32> to vector<6x256xf32>
    %1353 = vector.broadcast %1350 : f32 to vector<6x256xf32>
    %1354 = arith.mulf %1353, %1352 : vector<6x256xf32>
    %1355 = arith.addf %1349, %1354 : vector<6x256xf32>
    %cst_747 = arith.constant 0.00999999977 : f32
    %1356 = vector.broadcast %cst_747 : f32 to vector<6x256xf32>
    %1357 = arith.mulf %1356, %1355 : vector<6x256xf32>
    %1358 = arith.maximumf %1355, %1357 : vector<6x256xf32>
    %c262 = arith.constant 262 : index
    %1359 = memref.load %arg3[%c262] : memref<264xf32, #tpu.memory_space<smem>>
    %1360 = vector.broadcast %1359 : f32 to vector<2x256xf32>
    %c212 = arith.constant 212 : index
    %1361 = memref.load %arg3[%c212] : memref<264xf32, #tpu.memory_space<smem>>
    %c0_748 = arith.constant 0 : index
    %c1_749 = arith.constant 1 : index
    %c0_750 = arith.constant 0 : index
    %1362 = vector.load %arg5[%c0_748, %c1_749, %c0_750] : memref<8x8x256xf32, #tpu.memory_space<vmem>>, vector<1x2x256xf32>
    %1363 = vector.shape_cast %1362 : vector<1x2x256xf32> to vector<2x256xf32>
    %1364 = vector.broadcast %1361 : f32 to vector<2x256xf32>
    %1365 = arith.mulf %1364, %1363 : vector<2x256xf32>
    %1366 = arith.addf %1360, %1365 : vector<2x256xf32>
    %c213 = arith.constant 213 : index
    %1367 = memref.load %arg3[%c213] : memref<264xf32, #tpu.memory_space<smem>>
    %c1_751 = arith.constant 1 : index
    %c1_752 = arith.constant 1 : index
    %c0_753 = arith.constant 0 : index
    %1368 = vector.load %arg5[%c1_751, %c1_752, %c0_753] : memref<8x8x256xf32, #tpu.memory_space<vmem>>, vector<1x2x256xf32>
    %1369 = vector.shape_cast %1368 : vector<1x2x256xf32> to vector<2x256xf32>
    %1370 = vector.broadcast %1367 : f32 to vector<2x256xf32>
    %1371 = arith.mulf %1370, %1369 : vector<2x256xf32>
    %1372 = arith.addf %1366, %1371 : vector<2x256xf32>
    %c214 = arith.constant 214 : index
    %1373 = memref.load %arg3[%c214] : memref<264xf32, #tpu.memory_space<smem>>
    %c2_754 = arith.constant 2 : index
    %c1_755 = arith.constant 1 : index
    %c0_756 = arith.constant 0 : index
    %1374 = vector.load %arg5[%c2_754, %c1_755, %c0_756] : memref<8x8x256xf32, #tpu.memory_space<vmem>>, vector<1x2x256xf32>
    %1375 = vector.shape_cast %1374 : vector<1x2x256xf32> to vector<2x256xf32>
    %1376 = vector.broadcast %1373 : f32 to vector<2x256xf32>
    %1377 = arith.mulf %1376, %1375 : vector<2x256xf32>
    %1378 = arith.addf %1372, %1377 : vector<2x256xf32>
    %c215 = arith.constant 215 : index
    %1379 = memref.load %arg3[%c215] : memref<264xf32, #tpu.memory_space<smem>>
    %c3_757 = arith.constant 3 : index
    %c1_758 = arith.constant 1 : index
    %c0_759 = arith.constant 0 : index
    %1380 = vector.load %arg5[%c3_757, %c1_758, %c0_759] : memref<8x8x256xf32, #tpu.memory_space<vmem>>, vector<1x2x256xf32>
    %1381 = vector.shape_cast %1380 : vector<1x2x256xf32> to vector<2x256xf32>
    %1382 = vector.broadcast %1379 : f32 to vector<2x256xf32>
    %1383 = arith.mulf %1382, %1381 : vector<2x256xf32>
    %1384 = arith.addf %1378, %1383 : vector<2x256xf32>
    %c216 = arith.constant 216 : index
    %1385 = memref.load %arg3[%c216] : memref<264xf32, #tpu.memory_space<smem>>
    %c4_760 = arith.constant 4 : index
    %c1_761 = arith.constant 1 : index
    %c0_762 = arith.constant 0 : index
    %1386 = vector.load %arg5[%c4_760, %c1_761, %c0_762] : memref<8x8x256xf32, #tpu.memory_space<vmem>>, vector<1x2x256xf32>
    %1387 = vector.shape_cast %1386 : vector<1x2x256xf32> to vector<2x256xf32>
    %1388 = vector.broadcast %1385 : f32 to vector<2x256xf32>
    %1389 = arith.mulf %1388, %1387 : vector<2x256xf32>
    %1390 = arith.addf %1384, %1389 : vector<2x256xf32>
    %c217 = arith.constant 217 : index
    %1391 = memref.load %arg3[%c217] : memref<264xf32, #tpu.memory_space<smem>>
    %c5_763 = arith.constant 5 : index
    %c1_764 = arith.constant 1 : index
    %c0_765 = arith.constant 0 : index
    %1392 = vector.load %arg5[%c5_763, %c1_764, %c0_765] : memref<8x8x256xf32, #tpu.memory_space<vmem>>, vector<1x2x256xf32>
    %1393 = vector.shape_cast %1392 : vector<1x2x256xf32> to vector<2x256xf32>
    %1394 = vector.broadcast %1391 : f32 to vector<2x256xf32>
    %1395 = arith.mulf %1394, %1393 : vector<2x256xf32>
    %1396 = arith.addf %1390, %1395 : vector<2x256xf32>
    %c218 = arith.constant 218 : index
    %1397 = memref.load %arg3[%c218] : memref<264xf32, #tpu.memory_space<smem>>
    %c6_766 = arith.constant 6 : index
    %c1_767 = arith.constant 1 : index
    %c0_768 = arith.constant 0 : index
    %1398 = vector.load %arg5[%c6_766, %c1_767, %c0_768] : memref<8x8x256xf32, #tpu.memory_space<vmem>>, vector<1x2x256xf32>
    %1399 = vector.shape_cast %1398 : vector<1x2x256xf32> to vector<2x256xf32>
    %1400 = vector.broadcast %1397 : f32 to vector<2x256xf32>
    %1401 = arith.mulf %1400, %1399 : vector<2x256xf32>
    %1402 = arith.addf %1396, %1401 : vector<2x256xf32>
    %c219 = arith.constant 219 : index
    %1403 = memref.load %arg3[%c219] : memref<264xf32, #tpu.memory_space<smem>>
    %c7_769 = arith.constant 7 : index
    %c1_770 = arith.constant 1 : index
    %c0_771 = arith.constant 0 : index
    %1404 = vector.load %arg5[%c7_769, %c1_770, %c0_771] : memref<8x8x256xf32, #tpu.memory_space<vmem>>, vector<1x2x256xf32>
    %1405 = vector.shape_cast %1404 : vector<1x2x256xf32> to vector<2x256xf32>
    %1406 = vector.broadcast %1403 : f32 to vector<2x256xf32>
    %1407 = arith.mulf %1406, %1405 : vector<2x256xf32>
    %1408 = arith.addf %1402, %1407 : vector<2x256xf32>
    %c244 = arith.constant 244 : index
    %1409 = memref.load %arg3[%c244] : memref<264xf32, #tpu.memory_space<smem>>
    %c0_772 = arith.constant 0 : index
    %c0_773 = arith.constant 0 : index
    %c0_774 = arith.constant 0 : index
    %1410 = vector.load %arg5[%c0_772, %c0_773, %c0_774] : memref<8x8x256xf32, #tpu.memory_space<vmem>>, vector<1x2x256xf32>
    %1411 = vector.shape_cast %1410 : vector<1x2x256xf32> to vector<2x256xf32>
    %1412 = vector.broadcast %1409 : f32 to vector<2x256xf32>
    %1413 = arith.mulf %1412, %1411 : vector<2x256xf32>
    %1414 = arith.addf %1408, %1413 : vector<2x256xf32>
    %c245 = arith.constant 245 : index
    %1415 = memref.load %arg3[%c245] : memref<264xf32, #tpu.memory_space<smem>>
    %c1_775 = arith.constant 1 : index
    %c0_776 = arith.constant 0 : index
    %c0_777 = arith.constant 0 : index
    %1416 = vector.load %arg5[%c1_775, %c0_776, %c0_777] : memref<8x8x256xf32, #tpu.memory_space<vmem>>, vector<1x2x256xf32>
    %1417 = vector.shape_cast %1416 : vector<1x2x256xf32> to vector<2x256xf32>
    %1418 = vector.broadcast %1415 : f32 to vector<2x256xf32>
    %1419 = arith.mulf %1418, %1417 : vector<2x256xf32>
    %1420 = arith.addf %1414, %1419 : vector<2x256xf32>
    %c246 = arith.constant 246 : index
    %1421 = memref.load %arg3[%c246] : memref<264xf32, #tpu.memory_space<smem>>
    %c2_778 = arith.constant 2 : index
    %c0_779 = arith.constant 0 : index
    %c0_780 = arith.constant 0 : index
    %1422 = vector.load %arg5[%c2_778, %c0_779, %c0_780] : memref<8x8x256xf32, #tpu.memory_space<vmem>>, vector<1x2x256xf32>
    %1423 = vector.shape_cast %1422 : vector<1x2x256xf32> to vector<2x256xf32>
    %1424 = vector.broadcast %1421 : f32 to vector<2x256xf32>
    %1425 = arith.mulf %1424, %1423 : vector<2x256xf32>
    %1426 = arith.addf %1420, %1425 : vector<2x256xf32>
    %c247 = arith.constant 247 : index
    %1427 = memref.load %arg3[%c247] : memref<264xf32, #tpu.memory_space<smem>>
    %c3_781 = arith.constant 3 : index
    %c0_782 = arith.constant 0 : index
    %c0_783 = arith.constant 0 : index
    %1428 = vector.load %arg5[%c3_781, %c0_782, %c0_783] : memref<8x8x256xf32, #tpu.memory_space<vmem>>, vector<1x2x256xf32>
    %1429 = vector.shape_cast %1428 : vector<1x2x256xf32> to vector<2x256xf32>
    %1430 = vector.broadcast %1427 : f32 to vector<2x256xf32>
    %1431 = arith.mulf %1430, %1429 : vector<2x256xf32>
    %1432 = arith.addf %1426, %1431 : vector<2x256xf32>
    %c248 = arith.constant 248 : index
    %1433 = memref.load %arg3[%c248] : memref<264xf32, #tpu.memory_space<smem>>
    %c4_784 = arith.constant 4 : index
    %c0_785 = arith.constant 0 : index
    %c0_786 = arith.constant 0 : index
    %1434 = vector.load %arg5[%c4_784, %c0_785, %c0_786] : memref<8x8x256xf32, #tpu.memory_space<vmem>>, vector<1x2x256xf32>
    %1435 = vector.shape_cast %1434 : vector<1x2x256xf32> to vector<2x256xf32>
    %1436 = vector.broadcast %1433 : f32 to vector<2x256xf32>
    %1437 = arith.mulf %1436, %1435 : vector<2x256xf32>
    %1438 = arith.addf %1432, %1437 : vector<2x256xf32>
    %c249 = arith.constant 249 : index
    %1439 = memref.load %arg3[%c249] : memref<264xf32, #tpu.memory_space<smem>>
    %c5_787 = arith.constant 5 : index
    %c0_788 = arith.constant 0 : index
    %c0_789 = arith.constant 0 : index
    %1440 = vector.load %arg5[%c5_787, %c0_788, %c0_789] : memref<8x8x256xf32, #tpu.memory_space<vmem>>, vector<1x2x256xf32>
    %1441 = vector.shape_cast %1440 : vector<1x2x256xf32> to vector<2x256xf32>
    %1442 = vector.broadcast %1439 : f32 to vector<2x256xf32>
    %1443 = arith.mulf %1442, %1441 : vector<2x256xf32>
    %1444 = arith.addf %1438, %1443 : vector<2x256xf32>
    %c250 = arith.constant 250 : index
    %1445 = memref.load %arg3[%c250] : memref<264xf32, #tpu.memory_space<smem>>
    %c6_790 = arith.constant 6 : index
    %c0_791 = arith.constant 0 : index
    %c0_792 = arith.constant 0 : index
    %1446 = vector.load %arg5[%c6_790, %c0_791, %c0_792] : memref<8x8x256xf32, #tpu.memory_space<vmem>>, vector<1x2x256xf32>
    %1447 = vector.shape_cast %1446 : vector<1x2x256xf32> to vector<2x256xf32>
    %1448 = vector.broadcast %1445 : f32 to vector<2x256xf32>
    %1449 = arith.mulf %1448, %1447 : vector<2x256xf32>
    %1450 = arith.addf %1444, %1449 : vector<2x256xf32>
    %c251 = arith.constant 251 : index
    %1451 = memref.load %arg3[%c251] : memref<264xf32, #tpu.memory_space<smem>>
    %c7_793 = arith.constant 7 : index
    %c0_794 = arith.constant 0 : index
    %c0_795 = arith.constant 0 : index
    %1452 = vector.load %arg5[%c7_793, %c0_794, %c0_795] : memref<8x8x256xf32, #tpu.memory_space<vmem>>, vector<1x2x256xf32>
    %1453 = vector.shape_cast %1452 : vector<1x2x256xf32> to vector<2x256xf32>
    %1454 = vector.broadcast %1451 : f32 to vector<2x256xf32>
    %1455 = arith.mulf %1454, %1453 : vector<2x256xf32>
    %1456 = arith.addf %1450, %1455 : vector<2x256xf32>
    %cst_796 = arith.constant 0.00999999977 : f32
    %1457 = vector.broadcast %cst_796 : f32 to vector<2x256xf32>
    %1458 = arith.mulf %1457, %1456 : vector<2x256xf32>
    %1459 = arith.maximumf %1456, %1458 : vector<2x256xf32>
    %1460 = vector.extract_strided_slice %1358 {offsets = [0, 0], sizes = [1, 256], strides = [1, 1]} : vector<6x256xf32> to vector<1x256xf32>
    %1461 = vector.extract_strided_slice %1358 {offsets = [1, 0], sizes = [5, 256], strides = [1, 1]} : vector<6x256xf32> to vector<5x256xf32>
    %c0_797 = arith.constant 0 : index
    %c2_798 = arith.constant 2 : index
    %c3_799 = arith.constant 3 : index
    %c0_800 = arith.constant 0 : index
    %1462 = vector.load %arg4[%c0_797, %c2_798, %c3_799, %c0_800] : memref<1x4x8x256xf32, #tpu.memory_space<vmem>>, vector<1x1x5x256xf32>
    %1463 = vector.shape_cast %1462 : vector<1x1x5x256xf32> to vector<5x256xf32>
    %1464 = vector.shape_cast %1461 : vector<5x256xf32> to vector<1x1x5x256xf32>
    tpu.vector_store %arg4[%c0_797, %c2_798, %c3_799, %c0_800], %1464 {strides = array<i32>} : memref<1x4x8x256xf32, #tpu.memory_space<vmem>>, vector<1x1x5x256xf32>,
    %1465 = vector.broadcast %1460 : vector<1x256xf32> to vector<2x256xf32>
    %1466 = arith.subf %1465, %1459 : vector<2x256xf32>
    %c0_801 = arith.constant 0 : index
    %c2_802 = arith.constant 2 : index
    %c1_803 = arith.constant 1 : index
    %c0_804 = arith.constant 0 : index
    %1467 = vector.load %arg4[%c0_801, %c2_802, %c1_803, %c0_804] : memref<1x4x8x256xf32, #tpu.memory_space<vmem>>, vector<1x1x2x256xf32>
    %1468 = vector.shape_cast %1467 : vector<1x1x2x256xf32> to vector<2x256xf32>
    %1469 = vector.shape_cast %1466 : vector<2x256xf32> to vector<1x1x2x256xf32>
    tpu.vector_store %arg4[%c0_801, %c2_802, %c1_803, %c0_804], %1469 {strides = array<i32>} : memref<1x4x8x256xf32, #tpu.memory_space<vmem>>, vector<1x1x2x256xf32>,
    %1470 = vector.extract_strided_slice %1459 {offsets = [0, 0], sizes = [1, 256], strides = [1, 1]} : vector<2x256xf32> to vector<1x256xf32>
    %1471 = arith.subf %1460, %1470 : vector<1x256xf32>
    %c0_805 = arith.constant 0 : index
    %c2_806 = arith.constant 2 : index
    %c0_807 = arith.constant 0 : index
    %c0_808 = arith.constant 0 : index
    %1472 = vector.load %arg4[%c0_805, %c2_806, %c0_807, %c0_808] : memref<1x4x8x256xf32, #tpu.memory_space<vmem>>, vector<1x1x1x256xf32>
    %1473 = vector.shape_cast %1472 : vector<1x1x1x256xf32> to vector<1x256xf32>
    %1474 = vector.shape_cast %1471 : vector<1x256xf32> to vector<1x1x1x256xf32>
    tpu.vector_store %arg4[%c0_805, %c2_806, %c0_807, %c0_808], %1474 {strides = array<i32>} : memref<1x4x8x256xf32, #tpu.memory_space<vmem>>, vector<1x1x1x256xf32>,
    %c195 = arith.constant 195 : index
    %1475 = memref.load %arg3[%c195] : memref<264xf32, #tpu.memory_space<smem>>
    %1476 = vector.broadcast %1475 : f32 to vector<6x256xf32>
    %c120 = arith.constant 120 : index
    %1477 = memref.load %arg3[%c120] : memref<264xf32, #tpu.memory_space<smem>>
    %c0_809 = arith.constant 0 : index
    %c2_810 = arith.constant 2 : index
    %c0_811 = arith.constant 0 : index
    %1478 = vector.load %arg5[%c0_809, %c2_810, %c0_811] : memref<8x8x256xf32, #tpu.memory_space<vmem>>, vector<1x6x256xf32>
    %1479 = vector.shape_cast %1478 : vector<1x6x256xf32> to vector<6x256xf32>
    %1480 = vector.broadcast %1477 : f32 to vector<6x256xf32>
    %1481 = arith.mulf %1480, %1479 : vector<6x256xf32>
    %1482 = arith.addf %1476, %1481 : vector<6x256xf32>
    %c121 = arith.constant 121 : index
    %1483 = memref.load %arg3[%c121] : memref<264xf32, #tpu.memory_space<smem>>
    %c1_812 = arith.constant 1 : index
    %c2_813 = arith.constant 2 : index
    %c0_814 = arith.constant 0 : index
    %1484 = vector.load %arg5[%c1_812, %c2_813, %c0_814] : memref<8x8x256xf32, #tpu.memory_space<vmem>>, vector<1x6x256xf32>
    %1485 = vector.shape_cast %1484 : vector<1x6x256xf32> to vector<6x256xf32>
    %1486 = vector.broadcast %1483 : f32 to vector<6x256xf32>
    %1487 = arith.mulf %1486, %1485 : vector<6x256xf32>
    %1488 = arith.addf %1482, %1487 : vector<6x256xf32>
    %c122 = arith.constant 122 : index
    %1489 = memref.load %arg3[%c122] : memref<264xf32, #tpu.memory_space<smem>>
    %c2_815 = arith.constant 2 : index
    %c2_816 = arith.constant 2 : index
    %c0_817 = arith.constant 0 : index
    %1490 = vector.load %arg5[%c2_815, %c2_816, %c0_817] : memref<8x8x256xf32, #tpu.memory_space<vmem>>, vector<1x6x256xf32>
    %1491 = vector.shape_cast %1490 : vector<1x6x256xf32> to vector<6x256xf32>
    %1492 = vector.broadcast %1489 : f32 to vector<6x256xf32>
    %1493 = arith.mulf %1492, %1491 : vector<6x256xf32>
    %1494 = arith.addf %1488, %1493 : vector<6x256xf32>
    %c123 = arith.constant 123 : index
    %1495 = memref.load %arg3[%c123] : memref<264xf32, #tpu.memory_space<smem>>
    %c3_818 = arith.constant 3 : index
    %c2_819 = arith.constant 2 : index
    %c0_820 = arith.constant 0 : index
    %1496 = vector.load %arg5[%c3_818, %c2_819, %c0_820] : memref<8x8x256xf32, #tpu.memory_space<vmem>>, vector<1x6x256xf32>
    %1497 = vector.shape_cast %1496 : vector<1x6x256xf32> to vector<6x256xf32>
    %1498 = vector.broadcast %1495 : f32 to vector<6x256xf32>
    %1499 = arith.mulf %1498, %1497 : vector<6x256xf32>
    %1500 = arith.addf %1494, %1499 : vector<6x256xf32>
    %c124 = arith.constant 124 : index
    %1501 = memref.load %arg3[%c124] : memref<264xf32, #tpu.memory_space<smem>>
    %c4_821 = arith.constant 4 : index
    %c2_822 = arith.constant 2 : index
    %c0_823 = arith.constant 0 : index
    %1502 = vector.load %arg5[%c4_821, %c2_822, %c0_823] : memref<8x8x256xf32, #tpu.memory_space<vmem>>, vector<1x6x256xf32>
    %1503 = vector.shape_cast %1502 : vector<1x6x256xf32> to vector<6x256xf32>
    %1504 = vector.broadcast %1501 : f32 to vector<6x256xf32>
    %1505 = arith.mulf %1504, %1503 : vector<6x256xf32>
    %1506 = arith.addf %1500, %1505 : vector<6x256xf32>
    %c125 = arith.constant 125 : index
    %1507 = memref.load %arg3[%c125] : memref<264xf32, #tpu.memory_space<smem>>
    %c5_824 = arith.constant 5 : index
    %c2_825 = arith.constant 2 : index
    %c0_826 = arith.constant 0 : index
    %1508 = vector.load %arg5[%c5_824, %c2_825, %c0_826] : memref<8x8x256xf32, #tpu.memory_space<vmem>>, vector<1x6x256xf32>
    %1509 = vector.shape_cast %1508 : vector<1x6x256xf32> to vector<6x256xf32>
    %1510 = vector.broadcast %1507 : f32 to vector<6x256xf32>
    %1511 = arith.mulf %1510, %1509 : vector<6x256xf32>
    %1512 = arith.addf %1506, %1511 : vector<6x256xf32>
    %c126 = arith.constant 126 : index
    %1513 = memref.load %arg3[%c126] : memref<264xf32, #tpu.memory_space<smem>>
    %c6_827 = arith.constant 6 : index
    %c2_828 = arith.constant 2 : index
    %c0_829 = arith.constant 0 : index
    %1514 = vector.load %arg5[%c6_827, %c2_828, %c0_829] : memref<8x8x256xf32, #tpu.memory_space<vmem>>, vector<1x6x256xf32>
    %1515 = vector.shape_cast %1514 : vector<1x6x256xf32> to vector<6x256xf32>
    %1516 = vector.broadcast %1513 : f32 to vector<6x256xf32>
    %1517 = arith.mulf %1516, %1515 : vector<6x256xf32>
    %1518 = arith.addf %1512, %1517 : vector<6x256xf32>
    %c127 = arith.constant 127 : index
    %1519 = memref.load %arg3[%c127] : memref<264xf32, #tpu.memory_space<smem>>
    %c7_830 = arith.constant 7 : index
    %c2_831 = arith.constant 2 : index
    %c0_832 = arith.constant 0 : index
    %1520 = vector.load %arg5[%c7_830, %c2_831, %c0_832] : memref<8x8x256xf32, #tpu.memory_space<vmem>>, vector<1x6x256xf32>
    %1521 = vector.shape_cast %1520 : vector<1x6x256xf32> to vector<6x256xf32>
    %1522 = vector.broadcast %1519 : f32 to vector<6x256xf32>
    %1523 = arith.mulf %1522, %1521 : vector<6x256xf32>
    %1524 = arith.addf %1518, %1523 : vector<6x256xf32>
    %c152 = arith.constant 152 : index
    %1525 = memref.load %arg3[%c152] : memref<264xf32, #tpu.memory_space<smem>>
    %c0_833 = arith.constant 0 : index
    %c1_834 = arith.constant 1 : index
    %c0_835 = arith.constant 0 : index
    %1526 = vector.load %arg5[%c0_833, %c1_834, %c0_835] : memref<8x8x256xf32, #tpu.memory_space<vmem>>, vector<1x6x256xf32>
    %1527 = vector.shape_cast %1526 : vector<1x6x256xf32> to vector<6x256xf32>
    %1528 = vector.broadcast %1525 : f32 to vector<6x256xf32>
    %1529 = arith.mulf %1528, %1527 : vector<6x256xf32>
    %1530 = arith.addf %1524, %1529 : vector<6x256xf32>
    %c153 = arith.constant 153 : index
    %1531 = memref.load %arg3[%c153] : memref<264xf32, #tpu.memory_space<smem>>
    %c1_836 = arith.constant 1 : index
    %c1_837 = arith.constant 1 : index
    %c0_838 = arith.constant 0 : index
    %1532 = vector.load %arg5[%c1_836, %c1_837, %c0_838] : memref<8x8x256xf32, #tpu.memory_space<vmem>>, vector<1x6x256xf32>
    %1533 = vector.shape_cast %1532 : vector<1x6x256xf32> to vector<6x256xf32>
    %1534 = vector.broadcast %1531 : f32 to vector<6x256xf32>
    %1535 = arith.mulf %1534, %1533 : vector<6x256xf32>
    %1536 = arith.addf %1530, %1535 : vector<6x256xf32>
    %c154 = arith.constant 154 : index
    %1537 = memref.load %arg3[%c154] : memref<264xf32, #tpu.memory_space<smem>>
    %c2_839 = arith.constant 2 : index
    %c1_840 = arith.constant 1 : index
    %c0_841 = arith.constant 0 : index
    %1538 = vector.load %arg5[%c2_839, %c1_840, %c0_841] : memref<8x8x256xf32, #tpu.memory_space<vmem>>, vector<1x6x256xf32>
    %1539 = vector.shape_cast %1538 : vector<1x6x256xf32> to vector<6x256xf32>
    %1540 = vector.broadcast %1537 : f32 to vector<6x256xf32>
    %1541 = arith.mulf %1540, %1539 : vector<6x256xf32>
    %1542 = arith.addf %1536, %1541 : vector<6x256xf32>
    %c155 = arith.constant 155 : index
    %1543 = memref.load %arg3[%c155] : memref<264xf32, #tpu.memory_space<smem>>
    %c3_842 = arith.constant 3 : index
    %c1_843 = arith.constant 1 : index
    %c0_844 = arith.constant 0 : index
    %1544 = vector.load %arg5[%c3_842, %c1_843, %c0_844] : memref<8x8x256xf32, #tpu.memory_space<vmem>>, vector<1x6x256xf32>
    %1545 = vector.shape_cast %1544 : vector<1x6x256xf32> to vector<6x256xf32>
    %1546 = vector.broadcast %1543 : f32 to vector<6x256xf32>
    %1547 = arith.mulf %1546, %1545 : vector<6x256xf32>
    %1548 = arith.addf %1542, %1547 : vector<6x256xf32>
    %c156 = arith.constant 156 : index
    %1549 = memref.load %arg3[%c156] : memref<264xf32, #tpu.memory_space<smem>>
    %c4_845 = arith.constant 4 : index
    %c1_846 = arith.constant 1 : index
    %c0_847 = arith.constant 0 : index
    %1550 = vector.load %arg5[%c4_845, %c1_846, %c0_847] : memref<8x8x256xf32, #tpu.memory_space<vmem>>, vector<1x6x256xf32>
    %1551 = vector.shape_cast %1550 : vector<1x6x256xf32> to vector<6x256xf32>
    %1552 = vector.broadcast %1549 : f32 to vector<6x256xf32>
    %1553 = arith.mulf %1552, %1551 : vector<6x256xf32>
    %1554 = arith.addf %1548, %1553 : vector<6x256xf32>
    %c157 = arith.constant 157 : index
    %1555 = memref.load %arg3[%c157] : memref<264xf32, #tpu.memory_space<smem>>
    %c5_848 = arith.constant 5 : index
    %c1_849 = arith.constant 1 : index
    %c0_850 = arith.constant 0 : index
    %1556 = vector.load %arg5[%c5_848, %c1_849, %c0_850] : memref<8x8x256xf32, #tpu.memory_space<vmem>>, vector<1x6x256xf32>
    %1557 = vector.shape_cast %1556 : vector<1x6x256xf32> to vector<6x256xf32>
    %1558 = vector.broadcast %1555 : f32 to vector<6x256xf32>
    %1559 = arith.mulf %1558, %1557 : vector<6x256xf32>
    %1560 = arith.addf %1554, %1559 : vector<6x256xf32>
    %c158 = arith.constant 158 : index
    %1561 = memref.load %arg3[%c158] : memref<264xf32, #tpu.memory_space<smem>>
    %c6_851 = arith.constant 6 : index
    %c1_852 = arith.constant 1 : index
    %c0_853 = arith.constant 0 : index
    %1562 = vector.load %arg5[%c6_851, %c1_852, %c0_853] : memref<8x8x256xf32, #tpu.memory_space<vmem>>, vector<1x6x256xf32>
    %1563 = vector.shape_cast %1562 : vector<1x6x256xf32> to vector<6x256xf32>
    %1564 = vector.broadcast %1561 : f32 to vector<6x256xf32>
    %1565 = arith.mulf %1564, %1563 : vector<6x256xf32>
    %1566 = arith.addf %1560, %1565 : vector<6x256xf32>
    %c159 = arith.constant 159 : index
    %1567 = memref.load %arg3[%c159] : memref<264xf32, #tpu.memory_space<smem>>
    %c7_854 = arith.constant 7 : index
    %c1_855 = arith.constant 1 : index
    %c0_856 = arith.constant 0 : index
    %1568 = vector.load %arg5[%c7_854, %c1_855, %c0_856] : memref<8x8x256xf32, #tpu.memory_space<vmem>>, vector<1x6x256xf32>
    %1569 = vector.shape_cast %1568 : vector<1x6x256xf32> to vector<6x256xf32>
    %1570 = vector.broadcast %1567 : f32 to vector<6x256xf32>
    %1571 = arith.mulf %1570, %1569 : vector<6x256xf32>
    %1572 = arith.addf %1566, %1571 : vector<6x256xf32>
    %c184 = arith.constant 184 : index
    %1573 = memref.load %arg3[%c184] : memref<264xf32, #tpu.memory_space<smem>>
    %c0_857 = arith.constant 0 : index
    %c0_858 = arith.constant 0 : index
    %c0_859 = arith.constant 0 : index
    %1574 = vector.load %arg5[%c0_857, %c0_858, %c0_859] : memref<8x8x256xf32, #tpu.memory_space<vmem>>, vector<1x6x256xf32>
    %1575 = vector.shape_cast %1574 : vector<1x6x256xf32> to vector<6x256xf32>
    %1576 = vector.broadcast %1573 : f32 to vector<6x256xf32>
    %1577 = arith.mulf %1576, %1575 : vector<6x256xf32>
    %1578 = arith.addf %1572, %1577 : vector<6x256xf32>
    %c185 = arith.constant 185 : index
    %1579 = memref.load %arg3[%c185] : memref<264xf32, #tpu.memory_space<smem>>
    %c1_860 = arith.constant 1 : index
    %c0_861 = arith.constant 0 : index
    %c0_862 = arith.constant 0 : index
    %1580 = vector.load %arg5[%c1_860, %c0_861, %c0_862] : memref<8x8x256xf32, #tpu.memory_space<vmem>>, vector<1x6x256xf32>
    %1581 = vector.shape_cast %1580 : vector<1x6x256xf32> to vector<6x256xf32>
    %1582 = vector.broadcast %1579 : f32 to vector<6x256xf32>
    %1583 = arith.mulf %1582, %1581 : vector<6x256xf32>
    %1584 = arith.addf %1578, %1583 : vector<6x256xf32>
    %c186 = arith.constant 186 : index
    %1585 = memref.load %arg3[%c186] : memref<264xf32, #tpu.memory_space<smem>>
    %c2_863 = arith.constant 2 : index
    %c0_864 = arith.constant 0 : index
    %c0_865 = arith.constant 0 : index
    %1586 = vector.load %arg5[%c2_863, %c0_864, %c0_865] : memref<8x8x256xf32, #tpu.memory_space<vmem>>, vector<1x6x256xf32>
    %1587 = vector.shape_cast %1586 : vector<1x6x256xf32> to vector<6x256xf32>
    %1588 = vector.broadcast %1585 : f32 to vector<6x256xf32>
    %1589 = arith.mulf %1588, %1587 : vector<6x256xf32>
    %1590 = arith.addf %1584, %1589 : vector<6x256xf32>
    %c187 = arith.constant 187 : index
    %1591 = memref.load %arg3[%c187] : memref<264xf32, #tpu.memory_space<smem>>
    %c3_866 = arith.constant 3 : index
    %c0_867 = arith.constant 0 : index
    %c0_868 = arith.constant 0 : index
    %1592 = vector.load %arg5[%c3_866, %c0_867, %c0_868] : memref<8x8x256xf32, #tpu.memory_space<vmem>>, vector<1x6x256xf32>
    %1593 = vector.shape_cast %1592 : vector<1x6x256xf32> to vector<6x256xf32>
    %1594 = vector.broadcast %1591 : f32 to vector<6x256xf32>
    %1595 = arith.mulf %1594, %1593 : vector<6x256xf32>
    %1596 = arith.addf %1590, %1595 : vector<6x256xf32>
    %c188 = arith.constant 188 : index
    %1597 = memref.load %arg3[%c188] : memref<264xf32, #tpu.memory_space<smem>>
    %c4_869 = arith.constant 4 : index
    %c0_870 = arith.constant 0 : index
    %c0_871 = arith.constant 0 : index
    %1598 = vector.load %arg5[%c4_869, %c0_870, %c0_871] : memref<8x8x256xf32, #tpu.memory_space<vmem>>, vector<1x6x256xf32>
    %1599 = vector.shape_cast %1598 : vector<1x6x256xf32> to vector<6x256xf32>
    %1600 = vector.broadcast %1597 : f32 to vector<6x256xf32>
    %1601 = arith.mulf %1600, %1599 : vector<6x256xf32>
    %1602 = arith.addf %1596, %1601 : vector<6x256xf32>
    %c189 = arith.constant 189 : index
    %1603 = memref.load %arg3[%c189] : memref<264xf32, #tpu.memory_space<smem>>
    %c5_872 = arith.constant 5 : index
    %c0_873 = arith.constant 0 : index
    %c0_874 = arith.constant 0 : index
    %1604 = vector.load %arg5[%c5_872, %c0_873, %c0_874] : memref<8x8x256xf32, #tpu.memory_space<vmem>>, vector<1x6x256xf32>
    %1605 = vector.shape_cast %1604 : vector<1x6x256xf32> to vector<6x256xf32>
    %1606 = vector.broadcast %1603 : f32 to vector<6x256xf32>
    %1607 = arith.mulf %1606, %1605 : vector<6x256xf32>
    %1608 = arith.addf %1602, %1607 : vector<6x256xf32>
    %c190 = arith.constant 190 : index
    %1609 = memref.load %arg3[%c190] : memref<264xf32, #tpu.memory_space<smem>>
    %c6_875 = arith.constant 6 : index
    %c0_876 = arith.constant 0 : index
    %c0_877 = arith.constant 0 : index
    %1610 = vector.load %arg5[%c6_875, %c0_876, %c0_877] : memref<8x8x256xf32, #tpu.memory_space<vmem>>, vector<1x6x256xf32>
    %1611 = vector.shape_cast %1610 : vector<1x6x256xf32> to vector<6x256xf32>
    %1612 = vector.broadcast %1609 : f32 to vector<6x256xf32>
    %1613 = arith.mulf %1612, %1611 : vector<6x256xf32>
    %1614 = arith.addf %1608, %1613 : vector<6x256xf32>
    %c191 = arith.constant 191 : index
    %1615 = memref.load %arg3[%c191] : memref<264xf32, #tpu.memory_space<smem>>
    %c7_878 = arith.constant 7 : index
    %c0_879 = arith.constant 0 : index
    %c0_880 = arith.constant 0 : index
    %1616 = vector.load %arg5[%c7_878, %c0_879, %c0_880] : memref<8x8x256xf32, #tpu.memory_space<vmem>>, vector<1x6x256xf32>
    %1617 = vector.shape_cast %1616 : vector<1x6x256xf32> to vector<6x256xf32>
    %1618 = vector.broadcast %1615 : f32 to vector<6x256xf32>
    %1619 = arith.mulf %1618, %1617 : vector<6x256xf32>
    %1620 = arith.addf %1614, %1619 : vector<6x256xf32>
    %cst_881 = arith.constant 0.00999999977 : f32
    %1621 = vector.broadcast %cst_881 : f32 to vector<6x256xf32>
    %1622 = arith.mulf %1621, %1620 : vector<6x256xf32>
    %1623 = arith.maximumf %1620, %1622 : vector<6x256xf32>
    %c263 = arith.constant 263 : index
    %1624 = memref.load %arg3[%c263] : memref<264xf32, #tpu.memory_space<smem>>
    %1625 = vector.broadcast %1624 : f32 to vector<2x256xf32>
    %c220 = arith.constant 220 : index
    %1626 = memref.load %arg3[%c220] : memref<264xf32, #tpu.memory_space<smem>>
    %c0_882 = arith.constant 0 : index
    %c1_883 = arith.constant 1 : index
    %c0_884 = arith.constant 0 : index
    %1627 = vector.load %arg5[%c0_882, %c1_883, %c0_884] : memref<8x8x256xf32, #tpu.memory_space<vmem>>, vector<1x2x256xf32>
    %1628 = vector.shape_cast %1627 : vector<1x2x256xf32> to vector<2x256xf32>
    %1629 = vector.broadcast %1626 : f32 to vector<2x256xf32>
    %1630 = arith.mulf %1629, %1628 : vector<2x256xf32>
    %1631 = arith.addf %1625, %1630 : vector<2x256xf32>
    %c221 = arith.constant 221 : index
    %1632 = memref.load %arg3[%c221] : memref<264xf32, #tpu.memory_space<smem>>
    %c1_885 = arith.constant 1 : index
    %c1_886 = arith.constant 1 : index
    %c0_887 = arith.constant 0 : index
    %1633 = vector.load %arg5[%c1_885, %c1_886, %c0_887] : memref<8x8x256xf32, #tpu.memory_space<vmem>>, vector<1x2x256xf32>
    %1634 = vector.shape_cast %1633 : vector<1x2x256xf32> to vector<2x256xf32>
    %1635 = vector.broadcast %1632 : f32 to vector<2x256xf32>
    %1636 = arith.mulf %1635, %1634 : vector<2x256xf32>
    %1637 = arith.addf %1631, %1636 : vector<2x256xf32>
    %c222 = arith.constant 222 : index
    %1638 = memref.load %arg3[%c222] : memref<264xf32, #tpu.memory_space<smem>>
    %c2_888 = arith.constant 2 : index
    %c1_889 = arith.constant 1 : index
    %c0_890 = arith.constant 0 : index
    %1639 = vector.load %arg5[%c2_888, %c1_889, %c0_890] : memref<8x8x256xf32, #tpu.memory_space<vmem>>, vector<1x2x256xf32>
    %1640 = vector.shape_cast %1639 : vector<1x2x256xf32> to vector<2x256xf32>
    %1641 = vector.broadcast %1638 : f32 to vector<2x256xf32>
    %1642 = arith.mulf %1641, %1640 : vector<2x256xf32>
    %1643 = arith.addf %1637, %1642 : vector<2x256xf32>
    %c223 = arith.constant 223 : index
    %1644 = memref.load %arg3[%c223] : memref<264xf32, #tpu.memory_space<smem>>
    %c3_891 = arith.constant 3 : index
    %c1_892 = arith.constant 1 : index
    %c0_893 = arith.constant 0 : index
    %1645 = vector.load %arg5[%c3_891, %c1_892, %c0_893] : memref<8x8x256xf32, #tpu.memory_space<vmem>>, vector<1x2x256xf32>
    %1646 = vector.shape_cast %1645 : vector<1x2x256xf32> to vector<2x256xf32>
    %1647 = vector.broadcast %1644 : f32 to vector<2x256xf32>
    %1648 = arith.mulf %1647, %1646 : vector<2x256xf32>
    %1649 = arith.addf %1643, %1648 : vector<2x256xf32>
    %c224 = arith.constant 224 : index
    %1650 = memref.load %arg3[%c224] : memref<264xf32, #tpu.memory_space<smem>>
    %c4_894 = arith.constant 4 : index
    %c1_895 = arith.constant 1 : index
    %c0_896 = arith.constant 0 : index
    %1651 = vector.load %arg5[%c4_894, %c1_895, %c0_896] : memref<8x8x256xf32, #tpu.memory_space<vmem>>, vector<1x2x256xf32>
    %1652 = vector.shape_cast %1651 : vector<1x2x256xf32> to vector<2x256xf32>
    %1653 = vector.broadcast %1650 : f32 to vector<2x256xf32>
    %1654 = arith.mulf %1653, %1652 : vector<2x256xf32>
    %1655 = arith.addf %1649, %1654 : vector<2x256xf32>
    %c225 = arith.constant 225 : index
    %1656 = memref.load %arg3[%c225] : memref<264xf32, #tpu.memory_space<smem>>
    %c5_897 = arith.constant 5 : index
    %c1_898 = arith.constant 1 : index
    %c0_899 = arith.constant 0 : index
    %1657 = vector.load %arg5[%c5_897, %c1_898, %c0_899] : memref<8x8x256xf32, #tpu.memory_space<vmem>>, vector<1x2x256xf32>
    %1658 = vector.shape_cast %1657 : vector<1x2x256xf32> to vector<2x256xf32>
    %1659 = vector.broadcast %1656 : f32 to vector<2x256xf32>
    %1660 = arith.mulf %1659, %1658 : vector<2x256xf32>
    %1661 = arith.addf %1655, %1660 : vector<2x256xf32>
    %c226 = arith.constant 226 : index
    %1662 = memref.load %arg3[%c226] : memref<264xf32, #tpu.memory_space<smem>>
    %c6_900 = arith.constant 6 : index
    %c1_901 = arith.constant 1 : index
    %c0_902 = arith.constant 0 : index
    %1663 = vector.load %arg5[%c6_900, %c1_901, %c0_902] : memref<8x8x256xf32, #tpu.memory_space<vmem>>, vector<1x2x256xf32>
    %1664 = vector.shape_cast %1663 : vector<1x2x256xf32> to vector<2x256xf32>
    %1665 = vector.broadcast %1662 : f32 to vector<2x256xf32>
    %1666 = arith.mulf %1665, %1664 : vector<2x256xf32>
    %1667 = arith.addf %1661, %1666 : vector<2x256xf32>
    %c227 = arith.constant 227 : index
    %1668 = memref.load %arg3[%c227] : memref<264xf32, #tpu.memory_space<smem>>
    %c7_903 = arith.constant 7 : index
    %c1_904 = arith.constant 1 : index
    %c0_905 = arith.constant 0 : index
    %1669 = vector.load %arg5[%c7_903, %c1_904, %c0_905] : memref<8x8x256xf32, #tpu.memory_space<vmem>>, vector<1x2x256xf32>
    %1670 = vector.shape_cast %1669 : vector<1x2x256xf32> to vector<2x256xf32>
    %1671 = vector.broadcast %1668 : f32 to vector<2x256xf32>
    %1672 = arith.mulf %1671, %1670 : vector<2x256xf32>
    %1673 = arith.addf %1667, %1672 : vector<2x256xf32>
    %c252 = arith.constant 252 : index
    %1674 = memref.load %arg3[%c252] : memref<264xf32, #tpu.memory_space<smem>>
    %c0_906 = arith.constant 0 : index
    %c0_907 = arith.constant 0 : index
    %c0_908 = arith.constant 0 : index
    %1675 = vector.load %arg5[%c0_906, %c0_907, %c0_908] : memref<8x8x256xf32, #tpu.memory_space<vmem>>, vector<1x2x256xf32>
    %1676 = vector.shape_cast %1675 : vector<1x2x256xf32> to vector<2x256xf32>
    %1677 = vector.broadcast %1674 : f32 to vector<2x256xf32>
    %1678 = arith.mulf %1677, %1676 : vector<2x256xf32>
    %1679 = arith.addf %1673, %1678 : vector<2x256xf32>
    %c253 = arith.constant 253 : index
    %1680 = memref.load %arg3[%c253] : memref<264xf32, #tpu.memory_space<smem>>
    %c1_909 = arith.constant 1 : index
    %c0_910 = arith.constant 0 : index
    %c0_911 = arith.constant 0 : index
    %1681 = vector.load %arg5[%c1_909, %c0_910, %c0_911] : memref<8x8x256xf32, #tpu.memory_space<vmem>>, vector<1x2x256xf32>
    %1682 = vector.shape_cast %1681 : vector<1x2x256xf32> to vector<2x256xf32>
    %1683 = vector.broadcast %1680 : f32 to vector<2x256xf32>
    %1684 = arith.mulf %1683, %1682 : vector<2x256xf32>
    %1685 = arith.addf %1679, %1684 : vector<2x256xf32>
    %c254 = arith.constant 254 : index
    %1686 = memref.load %arg3[%c254] : memref<264xf32, #tpu.memory_space<smem>>
    %c2_912 = arith.constant 2 : index
    %c0_913 = arith.constant 0 : index
    %c0_914 = arith.constant 0 : index
    %1687 = vector.load %arg5[%c2_912, %c0_913, %c0_914] : memref<8x8x256xf32, #tpu.memory_space<vmem>>, vector<1x2x256xf32>
    %1688 = vector.shape_cast %1687 : vector<1x2x256xf32> to vector<2x256xf32>
    %1689 = vector.broadcast %1686 : f32 to vector<2x256xf32>
    %1690 = arith.mulf %1689, %1688 : vector<2x256xf32>
    %1691 = arith.addf %1685, %1690 : vector<2x256xf32>
    %c255 = arith.constant 255 : index
    %1692 = memref.load %arg3[%c255] : memref<264xf32, #tpu.memory_space<smem>>
    %c3_915 = arith.constant 3 : index
    %c0_916 = arith.constant 0 : index
    %c0_917 = arith.constant 0 : index
    %1693 = vector.load %arg5[%c3_915, %c0_916, %c0_917] : memref<8x8x256xf32, #tpu.memory_space<vmem>>, vector<1x2x256xf32>
    %1694 = vector.shape_cast %1693 : vector<1x2x256xf32> to vector<2x256xf32>
    %1695 = vector.broadcast %1692 : f32 to vector<2x256xf32>
    %1696 = arith.mulf %1695, %1694 : vector<2x256xf32>
    %1697 = arith.addf %1691, %1696 : vector<2x256xf32>
    %c256 = arith.constant 256 : index
    %1698 = memref.load %arg3[%c256] : memref<264xf32, #tpu.memory_space<smem>>
    %c4_918 = arith.constant 4 : index
    %c0_919 = arith.constant 0 : index
    %c0_920 = arith.constant 0 : index
    %1699 = vector.load %arg5[%c4_918, %c0_919, %c0_920] : memref<8x8x256xf32, #tpu.memory_space<vmem>>, vector<1x2x256xf32>
    %1700 = vector.shape_cast %1699 : vector<1x2x256xf32> to vector<2x256xf32>
    %1701 = vector.broadcast %1698 : f32 to vector<2x256xf32>
    %1702 = arith.mulf %1701, %1700 : vector<2x256xf32>
    %1703 = arith.addf %1697, %1702 : vector<2x256xf32>
    %c257 = arith.constant 257 : index
    %1704 = memref.load %arg3[%c257] : memref<264xf32, #tpu.memory_space<smem>>
    %c5_921 = arith.constant 5 : index
    %c0_922 = arith.constant 0 : index
    %c0_923 = arith.constant 0 : index
    %1705 = vector.load %arg5[%c5_921, %c0_922, %c0_923] : memref<8x8x256xf32, #tpu.memory_space<vmem>>, vector<1x2x256xf32>
    %1706 = vector.shape_cast %1705 : vector<1x2x256xf32> to vector<2x256xf32>
    %1707 = vector.broadcast %1704 : f32 to vector<2x256xf32>
    %1708 = arith.mulf %1707, %1706 : vector<2x256xf32>
    %1709 = arith.addf %1703, %1708 : vector<2x256xf32>
    %c258 = arith.constant 258 : index
    %1710 = memref.load %arg3[%c258] : memref<264xf32, #tpu.memory_space<smem>>
    %c6_924 = arith.constant 6 : index
    %c0_925 = arith.constant 0 : index
    %c0_926 = arith.constant 0 : index
    %1711 = vector.load %arg5[%c6_924, %c0_925, %c0_926] : memref<8x8x256xf32, #tpu.memory_space<vmem>>, vector<1x2x256xf32>
    %1712 = vector.shape_cast %1711 : vector<1x2x256xf32> to vector<2x256xf32>
    %1713 = vector.broadcast %1710 : f32 to vector<2x256xf32>
    %1714 = arith.mulf %1713, %1712 : vector<2x256xf32>
    %1715 = arith.addf %1709, %1714 : vector<2x256xf32>
    %c259 = arith.constant 259 : index
    %1716 = memref.load %arg3[%c259] : memref<264xf32, #tpu.memory_space<smem>>
    %c7_927 = arith.constant 7 : index
    %c0_928 = arith.constant 0 : index
    %c0_929 = arith.constant 0 : index
    %1717 = vector.load %arg5[%c7_927, %c0_928, %c0_929] : memref<8x8x256xf32, #tpu.memory_space<vmem>>, vector<1x2x256xf32>
    %1718 = vector.shape_cast %1717 : vector<1x2x256xf32> to vector<2x256xf32>
    %1719 = vector.broadcast %1716 : f32 to vector<2x256xf32>
    %1720 = arith.mulf %1719, %1718 : vector<2x256xf32>
    %1721 = arith.addf %1715, %1720 : vector<2x256xf32>
    %cst_930 = arith.constant 0.00999999977 : f32
    %1722 = vector.broadcast %cst_930 : f32 to vector<2x256xf32>
    %1723 = arith.mulf %1722, %1721 : vector<2x256xf32>
    %1724 = arith.maximumf %1721, %1723 : vector<2x256xf32>
    %1725 = vector.extract_strided_slice %1623 {offsets = [0, 0], sizes = [1, 256], strides = [1, 1]} : vector<6x256xf32> to vector<1x256xf32>
    %1726 = vector.extract_strided_slice %1623 {offsets = [1, 0], sizes = [5, 256], strides = [1, 1]} : vector<6x256xf32> to vector<5x256xf32>
    %c0_931 = arith.constant 0 : index
    %c3_932 = arith.constant 3 : index
    %c3_933 = arith.constant 3 : index
    %c0_934 = arith.constant 0 : index
    %1727 = vector.load %arg4[%c0_931, %c3_932, %c3_933, %c0_934] : memref<1x4x8x256xf32, #tpu.memory_space<vmem>>, vector<1x1x5x256xf32>
    %1728 = vector.shape_cast %1727 : vector<1x1x5x256xf32> to vector<5x256xf32>
    %1729 = vector.shape_cast %1726 : vector<5x256xf32> to vector<1x1x5x256xf32>
    tpu.vector_store %arg4[%c0_931, %c3_932, %c3_933, %c0_934], %1729 {strides = array<i32>} : memref<1x4x8x256xf32, #tpu.memory_space<vmem>>, vector<1x1x5x256xf32>,
    %1730 = vector.broadcast %1725 : vector<1x256xf32> to vector<2x256xf32>
    %1731 = arith.subf %1730, %1724 : vector<2x256xf32>
    %c0_935 = arith.constant 0 : index
    %c3_936 = arith.constant 3 : index
    %c1_937 = arith.constant 1 : index
    %c0_938 = arith.constant 0 : index
    %1732 = vector.load %arg4[%c0_935, %c3_936, %c1_937, %c0_938] : memref<1x4x8x256xf32, #tpu.memory_space<vmem>>, vector<1x1x2x256xf32>
    %1733 = vector.shape_cast %1732 : vector<1x1x2x256xf32> to vector<2x256xf32>
    %1734 = vector.shape_cast %1731 : vector<2x256xf32> to vector<1x1x2x256xf32>
    tpu.vector_store %arg4[%c0_935, %c3_936, %c1_937, %c0_938], %1734 {strides = array<i32>} : memref<1x4x8x256xf32, #tpu.memory_space<vmem>>, vector<1x1x2x256xf32>,
    %1735 = vector.extract_strided_slice %1724 {offsets = [0, 0], sizes = [1, 256], strides = [1, 1]} : vector<2x256xf32> to vector<1x256xf32>
    %1736 = arith.subf %1725, %1735 : vector<1x256xf32>
    %c0_939 = arith.constant 0 : index
    %c3_940 = arith.constant 3 : index
    %c0_941 = arith.constant 0 : index
    %c0_942 = arith.constant 0 : index
    %1737 = vector.load %arg4[%c0_939, %c3_940, %c0_941, %c0_942] : memref<1x4x8x256xf32, #tpu.memory_space<vmem>>, vector<1x1x1x256xf32>
    %1738 = vector.shape_cast %1737 : vector<1x1x1x256xf32> to vector<1x256xf32>
    %1739 = vector.shape_cast %1736 : vector<1x256xf32> to vector<1x1x1x256xf32>
    tpu.vector_store %arg4[%c0_939, %c3_940, %c0_941, %c0_942], %1739 {strides = array<i32>} : memref<1x4x8x256xf32, #tpu.memory_space<vmem>>, vector<1x1x1x256xf32>,
    return
  }
  func.func @transform_0(%arg0: i32, %arg1: i32) -> (i32, i32, i32, i32) {
    %c0_i32 = arith.constant 0 : i32
    %c0_i32_0 = arith.constant 0 : i32
    %c0_i32_1 = arith.constant 0 : i32
    return %arg0, %c0_i32, %c0_i32_0, %arg1 : i32, i32, i32, i32
  }
  func.func @transform_1(%arg0: i32, %arg1: i32) -> i32 {
    %c0_i32 = arith.constant 0 : i32
    %c0_i32_0 = arith.constant 0 : i32
    return %c0_i32 : i32
  }
  func.func @transform_2(%arg0: i32, %arg1: i32) -> (i32, i32, i32, i32) {
    %c0_i32 = arith.constant 0 : i32
    %c0_i32_0 = arith.constant 0 : i32
    %c0_i32_1 = arith.constant 0 : i32
    return %arg0, %c0_i32, %c0_i32_0, %arg1 : i32, i32, i32, i32
  }
}

</mosaic_0001>

<bundles_post_ra>
// kernel: tpu_custom_call.1
= control target key start
LH: loop header
LB: loop body
LE: loop exit
PB: predicated region body
PF: predicated region fallthrough
CT: control target
= control target key end

     0   :  { %s7163_s0 = inlined_call_operand.hbm [shape: f32[2,2,8,256], index: 0, kind: input, shape index: {}]   ;;  %s7164_s1 = inlined_call_operand.hbm [shape: f32[264], index: 1, kind: input, shape index: {}]   ;;  %s7165_s2 = inlined_call_operand.hbm [shape: f32[2,4,8,256], index: 2, kind: output, shape index: {}]  }
   0x1   :  { %7228 = sst [smem:[#allocation60_spill]] %s7163_s0 }
   0x2   :  { %7229 = sst [smem:[#allocation61_spill]] %s7164_s1 }
   0x3   :  { %7230 = sst [smem:[#allocation62_spill]] %s7165_s2 }
   0x4   :  { %7 = vsyncpa [#allocation5], 0 }
   0x5   :  { %9 = vsyncpa [#allocation5 + $0x1], 0 }
   0x6   :  { %10 = vsyncpa [#allocation7], 0 }
   0x7   :  { %11 = vsyncpa [#allocation6], 0 }
   0x8   :  { %13 = vsyncpa [#allocation6 + $0x1], 0  ;;  %s4377_s9 = smov 0   ;;  %s4379_s10 = smov 0  }
   0x9   :  { %s4381_s11 = smov 0   ;;  %s4383_s12 = smov 0  }
   0xa   :  { %s4385_s13 = smov 0   ;;  %s4387_s14 = smov 0  }
   0xb LB: > { %7231 = sst [smem:[#allocation13_spill]] %s4332_s9  ;;  %s3768_s15 = sadd.s32 4294967295, %s4352_s14   ;;  %s4352_s14 = sphi %s4387_s14, %s19_s14   ;;  %s4348_s13 = sphi %s4385_s13, %s7480_s13   ;;  %s4344_s12 = sphi %s4383_s12, %s7479_s12   ;;  %s4340_s11 = sphi %s4381_s11, %s7478_s11   ;;  %s4336_s10 = sphi %s4379_s10, %s7477_s10   ;;  %s4332_s9 = sphi %s4377_s9, %s7476_s9  }
   0xc   : > { %7232 = sst [smem:[#allocation14_spill]] %s4336_s10  ;;  %s3769_s16 = sadd.s32 4294967294, %s4352_s14  }
   0xd   : > { %7233 = sst [smem:[#allocation15_spill]] %s4340_s11  ;;  %s40_s17 = sadd.s32 1, %s4340_s11 }
   0xe   : > { %7234 = sst [smem:[#allocation16_spill]] %s4344_s12  ;;  %p47_p0 = scmp.ne.s32.totalorder %s4340_s11, %s4336_s10 }
   0xf   : > { %7235 = sst [smem:[#allocation17_spill]] %s4348_s13  ;;  %p48_p1 = scmp.eq.s32.totalorder %s4352_s14, 0 }
  0x10   : > { %7236 = sst [smem:[#allocation18_spill]] %s4352_s14  ;;  %p53_p2 = scmp.ne.s32.totalorder %s4336_s10, %s4332_s9 }
  0x11   : > { %p4415_p3 = scmp.eq.s32.totalorder %s3768_s15, 0  ;;  %p100_p4 = scmp.eq.s32.totalorder %s3768_s15, 1 }
  0x12   : > { %p49_p5 = por %p48_p1, %p47_p0  ;;  %p106_p6 = scmp.eq.s32.totalorder %s3769_s16, 1 }
  0x13   : > { %s7237_s18 = scalar_select %p4415_p3, 1, 0 }
  0x14   : > { %p4421_p7 = por %p4415_p3, %p53_p2  ;;  %p4425_p8 = por %p100_p4, %p47_p0 }
  0x15   : > { %p4429_p9 = por %p106_p6, %p53_p2  ;;  %p3770_p10 = scmp.ge.s32.totalorder %s4352_s14, 1 }
  0x16   : > { %s7238_s19 = scalar_select %p4421_p7, 1, 0 }
  0x17   : > { %s7239_s20 = scalar_select %p4425_p8, 1, 0 }
  0x18   : > { %s7241_s21 = scalar_select %p4429_p9, 1, 0 }
  0x19   : > { %7240 = sst [smem:[#allocation19_spill]] %s7239_s20  ;;  %p113_p11 = scmp.lt.s32.totalorder %s4352_s14, 3 }
  0x1a   : > { %7242 = sst [smem:[#allocation20_spill]] %s7241_s21  ;;  %p4166_p1 = scmp.lt.s32.totalorder %s4352_s14, 2 }
  0x1b   : > { %p4436_p13 = pnand %p3770_p10, %p113_p11  ;;  %s135_s23 = sand.u32 1, %s4340_s11  }
  0x1c   : > { %p4444_p0 = pnand %p4166_p1, %p49_p5  ;;  %s31_s26 = sadd.s32 1, %s4348_s13 }
  0x1d   : > { %p4153_p7 = pneg %p4436_p13  ;;  %s3773_s27 = sshll.u32 %s135_s23, 5 }
  0x1e   : > { %p4457_p4 = scmp.ge.s32.totalorder %s31_s26, 2  ;;  %s7247_s1 = sld [smem:[#allocation61_spill]] }
  0x1f   : > { %p4450_p2 = pnand %p4153_p7, %p4415_p3 }
  0x21   : > { %p4225_p6 = pneg %p4450_p2 }
  0x24   : > { %s4223_s3 = scalar_lea.hbm %s7247_s1, 48  ;;  %s4228_s8 = scalar_lea.hbm %s7247_s1, 64 }
  0x25   : > { %p4224_p5 = scmp.ne.s32.totalorder %s7247_s1, %s4223_s3  ;;  %p4229_p11 = scmp.lt.u32.totalorder %s4228_s8, %s4223_s3 }
  0x26   : > { %p4230_p1 = scmp.lt.u32.totalorder %s4223_s3, %s7247_s1 }
  0x27   : > { %p4226_p7 = pnand %p4225_p6, %p4224_p5 }
  0x28   : > { %p4231_p12 = por %p4230_p1, %p4229_p11 }
  0x29   : > { %p4227_p10 = pneg %p4226_p7 }
  0x2b   : > { %p4232_p9 = pnand %p4231_p12, %p4227_p10 }
  0x2d   : > { %4235 = shalt.err (!%p4232_p9)
}
  0x2e   : > { %s4354_s29 = smov [#allocation8]   ;;  %s7482_s26 = smov (%p4457_p4, %s31_s26), 0 }
  0x2f   : > { %4156 = dma.hbm_to_smem (!%p4450_p2), %s7247_s1, 48, %s4354_s29, [#allocation7]  }
  0x30   : > { %7248 = sst [smem:[#allocation21_spill]] %s7482_s26  ;;  %s4143_s3 = sshll.u32 %s4348_s13, 9 }
  0x31   : > { %s35_s5 = ssub.s32 %s4348_s13, %s7482_s26  ;;  %s7249_s0 = sld [smem:[#allocation60_spill]] }
  0x32   : > { %p38_p9 = scmp.eq.s32.totalorder %s35_s5, 0  ;;  %s139_s8 = scalar_lea.vmem [#allocation4], %s3773_s27 }
  0x33   : > { %s148_s15 = sshll.u32 %s139_s8, 4  ;;  %s4501_s16 = scalar_lea.sflag [#allocation5], %s135_s23  ;;  %s4492_s15 = int_to_ptr.vmem [resolvable:$true] %s148_s15 }
  0x34   : > { %s4497_s28 = scalar_select %p38_p9, %s4340_s11, %s40_s17  }
  0x35   : > { %p4238_p2 = pneg %p4444_p0 }
  0x36   : > { %7250 = sst [smem:[#allocation22_spill]] %s4497_s28 }
  0x37   : > { %s4490_s7 = scalar_lea.hbm %s7249_s0, %s4143_s3  ;;  %s4241_s27 = scalar_lea.hbm %s7249_s0, 1024 }
  0x38   : > { %s4236_s29 = scalar_lea.hbm %s4490_s7, 512  ;;  %p4242_p6 = scmp.lt.u32.totalorder %s4490_s7, %s7249_s0 }
  0x39   : > { %p4237_p12 = scmp.ne.s32.totalorder %s4490_s7, %s4236_s29  ;;  %p4243_p7 = scmp.lt.u32.totalorder %s4241_s27, %s4236_s29 }
  0x3a   : > { %p4245_p11 = scmp.lt.u32.totalorder %s4236_s29, %s4490_s7 }
  0x3b   : > { %p4239_p4 = pnand %p4238_p2, %p4237_p12  ;;  %p4244_p10 = por %p4243_p7, %p4242_p6 }
  0x3d   : > { %p4240_p5 = pneg %p4239_p4  ;;  %p4246_p1 = por %p4245_p11, %p4244_p10 }
  0x3f   : > { %p4247_p9 = pnand %p4246_p1, %p4240_p5 }
  0x41   : > { %4250 = shalt.err (!%p4247_p9)
}
  0x42   : > { %s4251_s17 = scalar_lea.vmem %s4492_s15, 512  ;;  %s4355_s23 = smov [#allocation4]  }
  0x43   : > { %p4252_p12 = scmp.ne.s32.totalorder %s4492_s15, %s4251_s17  ;;  %s4256_s6 = sshll.u32 %s4355_s23, 4  ;;  %s4257_s6 = int_to_ptr.vmem [resolvable:$false] %s4256_s6 }
  0x44   : > { %s4258_s25 = scalar_lea.vmem %s4257_s6, 1024  ;;  %p4259_p3 = scmp.lt.s32.totalorder %s4492_s15, %s4257_s6 }
  0x45   : > { %p4254_p4 = pnand %p4252_p12, %p4238_p2  ;;  %p4260_p6 = scmp.lt.s32.totalorder %s4258_s25, %s4251_s17 }
  0x47   : > { %p4255_p8 = pneg %p4254_p4  ;;  %p4261_p7 = por %p4260_p6, %p4259_p3 }
  0x49   : > { %p4262_p10 = pnand %p4261_p7, %p4255_p8 }
  0x4b   : > { %4265 = shalt.err (!%p4262_p10)
}
  0x4c   : > { %s4356_s8 = smov 256   ;;  %s4357_s29 = smov 16  }
  0x4d   : > { %4160 = dma.hbm_to_vmem [thread:$0]  (!%p4444_p0), %s4490_s7, 512, %s4492_s15, %s4501_s16, %s4356_s8, %s4356_s8, %s4357_s29  }
  0x4e   : > { %160 = sbr.rel (%p4436_p13) target bundleno = 595 (0x253), region = 28 }
  0x55   : > { %s4532_s30 = sand.u32 1, %s4336_s10   ;;  %p7252_p3 = scmp.ne.s32.totalorder %s7238_s19, 0 }
  0x56   : > { %7251 = sst [smem:[#allocation23_spill]] %s4532_s30  ;;  %s3777_s4 = sshll.u32 %s4532_s30, 5 }
  0x57   : > { %s163_s27 = scalar_lea.sflag [#allocation5], %s4532_s30  ;;  %s4536_s3 = scalar_lea.vmem [#allocation4], %s3777_s4 }
  0x58   : > { %4319 = dma.done.wait (%p7252_p3), %s163_s27, 512  }
  0x59   : > { %4321 = vsyncadd (%p7252_p3), %s163_s27, 4294966784  ;;  %p7253_p8 = scmp.ne.s32.totalorder %s7237_s18, 0 }
  0x5b   : > { %4323 = dma.done.wait (%p7253_p8), [#allocation7], 48  }
  0x5c   : > { %4325 = vsyncadd (%p7253_p8), [#allocation7], 4294967248 }
  0x5d   : > { %175 = sfence }
  0x5e   : > { %s4546_s22 = sld [smem:[#allocation8 + $0x30]]  ;;  %s3781_s19 = sld [smem:[#allocation8 + $0x1]]  ;;  %v197_v0 = vld [vmem:[%s4536_s3] sm:$0xfc]  ;;  %v3782_v1 = vld [vmem:[%s4536_s3 + $0x10] sm:$0xfc]  ;;  %v7189_v9 = vlaneseq }
  0x5f   : > { %s196_s24 = sld [smem:[#allocation8]]  ;;  %s4550_s15 = sld [smem:[#allocation8 + $0x11]]  ;;  %v198_v2 = vld [vmem:[%s4536_s3 + $0x8] sm:$0xfc]  ;;  %v214_v3 = vld [vmem:[%s4536_s3] sm:$0x7e] }
  0x60   : > { %s4548_s7 = sld [smem:[#allocation8 + $0x10]]  ;;  %s4554_s18 = sld [smem:[#allocation8 + $0x21]]  ;;  %v3786_v4 = vld [vmem:[%s4536_s3 + $0x10] sm:$0x7e]  ;;  %v3783_v5 = vld [vmem:[%s4536_s3 + $0x18] sm:$0xfc] }
  0x61   : > { %s4552_s16 = sld [smem:[#allocation8 + $0x20]]  ;;  %v242_v8 = vld [vmem:[%s4536_s3] sm:$0x3f]  ;;  %v3790_v13 = vld [vmem:[%s4536_s3 + $0x10] sm:$0x3f]  ;;  %s4571_s23 = sld [smem:[#allocation8 + $0x39]] }
  0x62   : > { %s4564_s5 = sld [smem:[#allocation8 + $0x58]]  ;;  %v215_v15 = vld [vmem:[%s4536_s3 + $0x8] sm:$0x7e]  ;;  %v3787_v20 = vld [vmem:[%s4536_s3 + $0x18] sm:$0x7e]  ;;  %s4577_s25 = sld [smem:[#allocation8 + $0x49]] }
  0x63   : > { %s4566_s17 = sld [smem:[#allocation8 + $0x38]]  ;;  %v243_v25 = vld [vmem:[%s4536_s3 + $0x8] sm:$0x3f]  ;;  %v3791_v30 = vld [vmem:[%s4536_s3 + $0x18] sm:$0x3f]  ;;  %v4597_v58 = vshrl.u32 %v7189_v9, 7 }
  0x64   : > { %v195_v6 = vstv %s4546_s22  ;;  %v208_v11 = vstv %s3781_s19  ;;  %s4575_s6 = sld [smem:[#allocation8 + $0x48]]  ;;  %v276_v39 = vld [vmem:[%s4536_s3] sm:$0x6]  ;;  %v3795_v44 = vld [vmem:[%s4536_s3 + $0x10] sm:$0x6]  ;;  %s4607_s27 = sld [smem:[#allocation8 + $0x104]] }
  0x65   : > { %v199_v7 = vstv %s196_s24  ;;  %v209_v16 = vmul.f32 %v3782_v1, %v208_v11  ;;  %v230_v18 = vstv %s4550_s15  ;;  %v210_v19 = vmul.f32 %v3783_v5, %v208_v11  ;;  %v292_v49 = vld [vmem:[%s4536_s3] sm:$0x3]  ;;  %v3799_v54 = vld [vmem:[%s4536_s3 + $0x10] sm:$0x3]  ;;  %s4599_s8 = sld [smem:[#allocation8 + $0xc0]]  ;;  %s4609_s22 = sld [smem:[#allocation8 + $0xc4]] }
  0x66   : > { %v200_v10 = vmul.f32 %v199_v7, %v197_v0  ;;  %v216_v12 = vstv %s4548_s7  ;;  %v201_v14 = vmul.f32 %v199_v7, %v198_v2  ;;  %v231_v22 = vmul.f32 %v3786_v4, %v230_v18  ;;  %s4601_s29 = sld [smem:[#allocation8 + $0x60]]  ;;  %s4611_s24 = sld [smem:[#allocation8 + $0xc1]] }
  0x67   : > { %v217_v17 = vmul.f32 %v216_v12, %v214_v3  ;;  %v244_v23 = vstv %s4552_s16  ;;  %v258_v24 = vstv %s4554_s18  ;;  %v218_v33 = vmul.f32 %v216_v12, %v215_v15  ;;  %s4605_s4 = sld [smem:[#allocation8 + $0x80]]  ;;  %s4617_s15 = sld [smem:[#allocation8 + $0x31]] }
  0x68   : > { %v202_v21 = vadd.f32 %v200_v10, %v195_v6  ;;  %v245_v27 = vmul.f32 %v244_v23, %v242_v8  ;;  %v259_v28 = vmul.f32 %v3790_v13, %v258_v24  ;;  %v203_v29 = vadd.f32 %v201_v14, %v195_v6  ;;  %s4613_s19 = sld [smem:[#allocation8 + $0x68]]  ;;  %s4622_s16 = sld [smem:[#allocation8 + $0x2]]  ;;  %v277_v13 = vld [vmem:[%s4536_s3 + $0x8] sm:$0x6]  ;;  %v3796_v14 = vld [vmem:[%s4536_s3 + $0x18] sm:$0x6] }
  0x69   : > { %v221_v26 = vrot.slane %v217_v17, 7  ;;  %v235_v32 = vrot.slane %v231_v22, 7  ;;  %v232_v34 = vmul.f32 %v3787_v20, %v230_v18  ;;  %v246_v38 = vmul.f32 %v244_v23, %v243_v25  ;;  %s4615_s7 = sld [smem:[#allocation8 + $0x88]]  ;;  %s4624_s18 = sld [smem:[#allocation8 + $0x3]] }
  0x6a   : > { %v211_v31 = vadd.f32 %v209_v16, %v202_v21  ;;  %v249_v35 = vrot.slane %v245_v27, 6  ;;  %v263_v36 = vrot.slane %v259_v28, 6  ;;  %v212_v37 = vadd.f32 %v210_v19, %v203_v29  ;;  %v293_v16 = vld [vmem:[%s4536_s3 + $0x8] sm:$0x3]  ;;  %s4634_s0 = sld [smem:[#allocation8 + $0x22]]  ;;  %s4640_s1 = sld [smem:[#allocation8 + $0x105]] }
  0x6b   : > { %v222_v41 = vrot.slane %v218_v33, 7  ;;  %v236_v42 = vrot.slane %v232_v34, 7  ;;  %v260_v43 = vmul.f32 %v3791_v30, %v258_v24  ;;  %v250_v45 = vrot.slane %v246_v38, 6  ;;  %v3800_v21 = vld [vmem:[%s4536_s3 + $0x18] sm:$0x3]  ;;  %s4647_s26 = sld [smem:[#allocation8 + $0xcc]] }
  0x6c   : > { %v225_v40 = vadd.f32 %v221_v26, %v211_v31  ;;  %v274_v46 = vstv %s4564_s5  ;;  %v278_v47 = vstv %s4566_s17  ;;  %v286_v48 = vstv %s4571_s23  ;;  %s4649_s13 = sld [smem:[#allocation8 + $0x23]]  ;;  %s4652_s28 = sld [smem:[#allocation8 + $0xc2]]  ;;  %v373_v30 = vld [vmem:[%s4536_s3] sm:$0xfc] }
  0x6d   : > { %v226_v51 = vadd.f32 %v222_v41, %v212_v37  ;;  %v264_v52 = vrot.slane %v260_v43, 6  ;;  %v279_v53 = vmul.f32 %v278_v47, %v276_v39  ;;  %v287_v55 = vmul.f32 %v3795_v44, %v286_v48  ;;  %s4654_s11 = sld [smem:[#allocation8 + $0x70]]  ;;  %v3804_v34 = vld [vmem:[%s4536_s3 + $0x10] sm:$0xfc]  ;;  %s4667_s14 = sld [smem:[#allocation8 + $0x106]] }
  0x6e   : > { %v239_v50 = vadd.f32 %v235_v32, %v225_v40  ;;  %v294_v56 = vstv %s4575_s6  ;;  %v308_v57 = vstv %s4577_s25  ;;  %v4620_v8 = vsub.s32 2, %v4597_v58  ;;  %s4626_s6 = sld [smem:[#allocation8 + $0x12]]  ;;  %s4632_s25 = sld [smem:[#allocation8 + $0x13]]  ;;  %v3808_v44 = vld [vmem:[%s4536_s3 + $0x10] sm:$0x7e] }
  0x6f   : > { %v240_v60 = vadd.f32 %v236_v42, %v226_v51  ;;  %v281_v61 = vadd.f32 %v279_v53, %v274_v46  ;;  %v295_v62 = vmul.f32 %v294_v56, %v292_v49  ;;  %v309_v63 = vmul.f32 %v3799_v54, %v308_v57  ;;  %s4661_s10 = sld [smem:[#allocation8 + $0x90]]  ;;  %s4669_s17 = sld [smem:[#allocation8 + $0xd4]] }
  0x70   : > { %v253_v59 = vadd.f32 %v249_v35, %v239_v50  ;;  %v1575_v15 = vstv %s4599_s8  ;;  %v1579_v20 = vstv %s4601_s29  ;;  %v1643_v22 = vstv %s4605_s4  ;;  %v389_v35 = vld [vmem:[%s4536_s3] sm:$0x7e]  ;;  %s4679_s23 = sld [smem:[#allocation8 + $0xc3]]  ;;  %s4684_s5 = sld [smem:[#allocation8 + $0x98]] }
  0x71   : > { %v254_v1 = vadd.f32 %v250_v45, %v240_v60  ;;  %v289_v2 = vadd.f32 %v287_v55, %v281_v61  ;;  %v299_v3 = vrot.slane %v295_v62, 7  ;;  %v313_v4 = vrot.slane %v309_v63, 7  ;;  %v417_v45 = vld [vmem:[%s4536_s3] sm:$0x3f]  ;;  %v374_v50 = vld [vmem:[%s4536_s3 + $0x8] sm:$0xfc] }
  0x72   : > { %v267_v0 = vadd.f32 %v263_v36, %v253_v59  ;;  %v1869_v23 = vstv %s4607_s27  ;;  %v1873_v24 = vstv %s4609_s22  ;;  %v2094_v25 = vstv %s4611_s24  ;;  %v3812_v60 = vld [vmem:[%s4536_s3 + $0x10] sm:$0x3f]  ;;  %s4722_s21 = sld [smem:[#allocation8 + $0x4b]]  ;;  %s4764_s9 = sld [smem:[#allocation8 + $0x61]] }
  0x73   : > { %v268_v6 = vadd.f32 %v264_v52, %v254_v1  ;;  %v303_v7 = vadd.f32 %v299_v3, %v289_v2  ;;  %v280_v27 = vmul.f32 %v278_v47, %v277_v13  ;;  %v288_v28 = vmul.f32 %v3796_v14, %v286_v48  ;;  %v3805_v1 = vld [vmem:[%s4536_s3 + $0x18] sm:$0xfc]  ;;  %s4773_s2 = sld [smem:[#allocation8 + $0x81]]  ;;  %s4775_s20 = sld [smem:[#allocation8 + $0xc5]] }
  0x74   : > { %v269_v5 = vmul.f32 0.01, %v267_v0  ;;  %v296_v29 = vmul.f32 %v294_v56, %v293_v16  ;;  %v310_v31 = vmul.f32 %v3800_v21, %v308_v57  ;;  %v371_v32 = vstv %s4617_s15  ;;  %s4681_s15 = sld [smem:[#allocation8 + $0x78]]  ;;  %s4785_s12 = sld [smem:[#allocation8 + $0x69]] }
  0x75   : > { %v270_v11 = vmul.f32 0.01, %v268_v6  ;;  %v317_v12 = vadd.f32 %v313_v4, %v303_v7  ;;  %v375_v33 = vstv %s4622_s16  ;;  %v282_v38 = vadd.f32 %v280_v27, %v274_v46  ;;  %s4686_s16 = sld [smem:[#allocation8 + $0x107]]  ;;  %s4787_s30 = sld [smem:[#allocation8 + $0x89]] }
  0x76   : > { %v271_v10 = vmax.f32 %v267_v0, %v269_v5  ;;  %v300_v39 = vrot.slane %v296_v29, 7  ;;  %v314_v40 = vrot.slane %v310_v31, 7  ;;  %v376_v41 = vmul.f32 %v375_v33, %v373_v30  ;;  %7254 = sst [smem:[#allocation24_spill]] %s4679_s23  ;;  %v418_v30 = vld [vmem:[%s4536_s3 + $0x8] sm:$0x3f]  ;;  %s4864_s29 = sld [smem:[#allocation8 + $0x5]] }
  0x77   : > { %v4636_v17 = vmax.f32 %v268_v6, %v270_v11  ;;  %v319_v18 = vmul.f32 0.01, %v317_v12  ;;  %v383_v42 = vstv %s4624_s18  ;;  %v391_v43 = vstv %s4626_s6  ;;  %7256 = sst [smem:[#allocation26_spill]] %s4684_s5  ;;  %s4691_s18 = sld [smem:[#allocation8 + $0xdc]]  ;;  %v390_v6 = vld [vmem:[%s4536_s3 + $0x8] sm:$0x7e] }
  0x78   : > { %323 = vst [vmem:[#allocation2] sm:$0xf8] %v271_v10  ;;  %v328_v19 = vrot.slane %v271_v10, %v4620_v8  ;;  %v290_v48 = vadd.f32 %v288_v28, %v282_v38  ;;  %v384_v46 = vmul.f32 %v3804_v34, %v383_v42  ;;  %v392_v49 = vmul.f32 %v391_v43, %v389_v35  ;;  %v3813_v35 = vld [vmem:[%s4536_s3 + $0x18] sm:$0x3f]  ;;  %s4714_s6 = sld [smem:[#allocation8 + $0x3b]]  ;;  %s4871_s4 = sld [smem:[#allocation8 + $0x14]] }
  0x79   : > { %324 = vst [vmem:[#allocation2 + $0x8] sm:$0xf8] %v4636_v17  ;;  %v321_v26 = vmax.f32 %v317_v12, %v319_v18  ;;  %v378_v51 = vadd.f32 %v376_v41, %v371_v32  ;;  %v405_v52 = vstv %s4632_s25  ;;  %v419_v53 = vstv %s4634_s0  ;;  %s4697_s0 = sld [smem:[#allocation8 + $0x59]]  ;;  %s4716_s25 = sld [smem:[#allocation8 + $0x4a]] }
  0x7a   : > { %7255 = sst [smem:[#allocation25_spill]] %s4681_s15  ;;  %v433_v54 = vstv %s4649_s13  ;;  %v304_v55 = vadd.f32 %v300_v39, %v290_v48  ;;  %v396_v56 = vrot.slane %v392_v49, 7  ;;  %v406_v57 = vmul.f32 %v3808_v44, %v405_v52  ;;  %s4702_s13 = sld [smem:[#allocation8 + $0x3a]] }
  0x7b   : > { %v333_v36 = vsub.f32 %v328_v19, %v321_v26  ;;  %v339_v37 = vrot.slane %v321_v26, 7  ;;  %7257 = sst [smem:[#allocation27_spill]] %s4686_s16  ;;  %v420_v59 = vmul.f32 %v419_v53, %v417_v45  ;;  %v2098_v61 = vstv %s4613_s19  ;;  %v3809_v19 = vld [vmem:[%s4536_s3 + $0x18] sm:$0x7e]  ;;  %s4873_s22 = sld [smem:[#allocation8 + $0x15]] }
  0x7c   : > { %v2162_v62 = vstv %s4615_s7  ;;  %v386_v63 = vadd.f32 %v384_v46, %v378_v51  ;;  %v377_v0 = vmul.f32 %v375_v33, %v374_v50  ;;  %v2388_v2 = vstv %s4640_s1  ;;  %s4880_s19 = sld [smem:[#allocation8 + $0x24]]  ;;  %s4928_s27 = sld [smem:[#allocation8 + $0x99]] }
  0x7d   : > { %335 = vst [vmem:[#allocation2] sm:$0x6] %v333_v36  ;;  %v4677_v47 = vsub.f32 %v271_v10, %v339_v37  ;;  %7258 = sst [smem:[#allocation28_spill]] %s4691_s18  ;;  %v2392_v3 = vstv %s4647_s26  ;;  %v318_v4 = vadd.f32 %v314_v40, %v304_v55  ;;  %v410_v5 = vrot.slane %v406_v57, 7  ;;  %s4900_s26 = sld [smem:[#allocation8 + $0x25]] }
  0x7e   : > { %v2614_v7 = vstv %s4652_s28  ;;  %v2618_v10 = vstv %s4654_s11  ;;  %v400_v11 = vadd.f32 %v396_v56, %v386_v63  ;;  %v434_v12 = vmul.f32 %v3812_v60, %v433_v54  ;;  %s4923_s11 = sld [smem:[#allocation8 + $0x79]]  ;;  %s4965_s1 = sld [smem:[#allocation8 + $0x3c]] }
  0x7f   : > { %7259 = sst [smem:[#allocation29_spill]] %s4697_s0  ;;  %v2682_v13 = vstv %s4661_s10  ;;  %v2908_v14 = vstv %s4667_s14  ;;  %v424_v16 = vrot.slane %v420_v59, 6  ;;  %v385_v18 = vmul.f32 %v3805_v1, %v383_v42  ;;  %s4990_s14 = sld [smem:[#allocation8 + $0x4c]] }
  0x80   : > { %v320_v26 = vmul.f32 0.01, %v318_v4  ;;  %v414_v27 = vadd.f32 %v410_v5, %v400_v11  ;;  %v379_v28 = vadd.f32 %v377_v0, %v371_v32  ;;  %v393_v29 = vmul.f32 %v391_v43, %v390_v6  ;;  %v451_v11 = vld [vmem:[%s4536_s3] sm:$0x6]  ;;  %s5055_s8 = sld [smem:[#allocation8 + $0x72]]  ;;  %s5067_s7 = sld [smem:[#allocation8 + $0xd6]] }
  0x81   : > { %v2912_v31 = vstv %s4669_s17  ;;  %v3134_v33 = vstv %s4679_s23  ;;  %v3138_v34 = vstv %s4681_s15  ;;  %v3202_v37 = vstv %s4684_s5  ;;  %s4800_s15 = sld [smem:[#allocation8 + $0x71]]  ;;  %s4815_s5 = sld [smem:[#allocation8 + $0xd5]] }
  0x82   : > { %v3428_v38 = vstv %s4686_s16  ;;  %v332_v39 = vrot.slane %v4636_v17, %v4620_v8  ;;  %v438_v40 = vrot.slane %v434_v12, 6  ;;  %v3432_v44 = vstv %s4691_s18  ;;  %s4804_s18 = sld [smem:[#allocation8 + $0x91]]  ;;  %s4851_s16 = sld [smem:[#allocation8 + $0x32]] }
  0x83   : > { %v428_v45 = vadd.f32 %v424_v16, %v414_v27  ;;  %v407_v48 = vmul.f32 %v3809_v19, %v405_v52  ;;  %v4727_v50 = vmax.f32 %v318_v4, %v320_v26  ;;  %v387_v51 = vadd.f32 %v385_v18, %v379_v28  ;;  %v3817_v19 = vld [vmem:[%s4536_s3 + $0x10] sm:$0x6]  ;;  %s4853_s23 = sld [smem:[#allocation8 + $0x4]]  ;;  %s4942_s17 = sld [smem:[#allocation8 + $0xdd]] }
  0x84   : > { %v1577_v21 = vld [vmem:[#allocation2] sm:$0xfc]  ;;  %v397_v55 = vrot.slane %v393_v29, 7  ;;  %v421_v56 = vmul.f32 %v419_v53, %v418_v30  ;;  %v4733_v52 = vmul.f32 %v3813_v35, %v433_v54  ;;  %v449_v63 = vstv %s4697_s0  ;;  %v3821_v26 = vld [vmem:[%s4536_s3 + $0x10] sm:$0x3]  ;;  %s4798_s0 = sld [smem:[#allocation8 + $0xcd]] }
  0x85   : > { %v1641_v36 = vld [vmem:[#allocation2] sm:$0x7e]  ;;  %v1580_v32 = vmul.f32 %v1579_v20, %v1577_v21  ;;  %v453_v0 = vstv %s4702_s13  ;;  %v334_v6 = vsub.f32 %v332_v39, %v4727_v50  ;;  %v442_v18 = vadd.f32 %v438_v40, %v428_v45  ;;  %s4992_s13 = sld [smem:[#allocation8 + $0x4d]]  ;;  %s5076_s10 = sld [smem:[#allocation8 + $0x7a]] }
  0x86   : > { %v1871_v41 = vld [vmem:[#allocation2] sm:$0x6]  ;;  %v4731_v57 = vmul.f32 %v1643_v22, %v1641_v36  ;;  %v401_v30 = vadd.f32 %v397_v55, %v387_v51  ;;  %v411_v35 = vrot.slane %v407_v48, 7  ;;  %v469_v45 = vstv %s4716_s25  ;;  %s5025_s25 = sld [smem:[#allocation8 + $0x82]]  ;;  %s5100_s28 = sld [smem:[#allocation8 + $0x6]] }
  0x87   : > { %v2096_v42 = vld [vmem:[#allocation2] sm:$0xfc]  ;;  %v1874_v1 = vmul.f32 %v1873_v24, %v1871_v41  ;;  %v4749_v12 = vadd.f32 %v1580_v32, %v1575_v15  ;;  %v467_v21 = vld [vmem:[%s4536_s3] sm:$0x3]  ;;  %336 = vst [vmem:[#allocation2 + $0x8] sm:$0x6] %v334_v6  ;;  %v454_v41 = vmul.f32 %v453_v0, %v451_v11 }
  0x88   : > { %v2160_v43 = vld [vmem:[#allocation2] sm:$0x7e]  ;;  %v2099_v4 = vmul.f32 %v2098_v61, %v2096_v42  ;;  %v444_v40 = vmul.f32 0.01, %v442_v18  ;;  %v425_v32 = vrot.slane %v421_v56, 6  ;;  %v415_v42 = vadd.f32 %v411_v35, %v401_v30  ;;  %s5084_s24 = sld [smem:[#allocation8 + $0x9a]] }
  0x89   : > { %v2390_v46 = vld [vmem:[#allocation2] sm:$0x6]  ;;  %v4743_v53 = vmul.f32 %v2162_v62, %v2160_v43  ;;  %v461_v43 = vstv %s4714_s6  ;;  %v470_v55 = vmul.f32 %v469_v45, %v467_v21  ;;  %v439_v11 = vrot.slane %v4733_v52, 6  ;;  %s5023_s6 = sld [smem:[#allocation8 + $0x62]] }
  0x8a   : > { %v2616_v49 = vld [vmem:[#allocation2] sm:$0xfc]  ;;  %v2393_v54 = vmul.f32 %v2392_v3, %v2390_v46  ;;  %v483_v46 = vstv %s4722_s21  ;;  %v4777_v48 = vmax.f32 %v442_v18, %v444_v40  ;;  %v462_v51 = vmul.f32 %v3817_v19, %v461_v43  ;;  %s5098_s21 = sld [smem:[#allocation8 + $0xde]] }
  0x8b   : > { %v2680_v59 = vld [vmem:[#allocation2] sm:$0x7e]  ;;  %v2619_v16 = vmul.f32 %v2618_v10, %v2616_v49  ;;  %v456_v49 = vadd.f32 %v454_v41, %v449_v63  ;;  %v429_v6 = vadd.f32 %v425_v32, %v415_v42  ;;  %v474_v19 = vrot.slane %v470_v55, 7 }
  0x8c   : > { %v2910_v60 = vld [vmem:[#allocation2] sm:$0x6]  ;;  %v4760_v27 = vmul.f32 %v2682_v13, %v2680_v59  ;;  %499 = vst [vmem:[#allocation2 + $0x10] sm:$0xf8] %v4777_v48  ;;  %v4809_v21 = vadd.f32 %v1874_v1, %v1869_v23  ;;  %v4820_v30 = vadd.f32 %v2393_v54, %v2388_v2 }
  0x8d   : > { %v3136_v5 = vld [vmem:[#allocation2] sm:$0xfc]  ;;  %v2913_v28 = vmul.f32 %v2912_v31, %v2910_v60  ;;  %v340_v60 = vrot.slane %v4727_v50, 7  ;;  %v464_v18 = vadd.f32 %v462_v51, %v456_v49  ;;  %v4824_v35 = vadd.f32 %v2619_v16, %v2614_v7 }
  0x8e   : > { %v3200_v29 = vld [vmem:[#allocation2] sm:$0x7e]  ;;  %v3139_v36 = vmul.f32 %v3138_v34, %v3136_v5  ;;  %v484_v5 = vmul.f32 %v3821_v26, %v483_v46  ;;  %7261 = vst [vmem:[#allocation31_spill] sm:$0xff] %v4809_v21  ;;  %v4813_v26 = vadd.f32 %v2099_v4, %v2094_v25  ;;  %7262 = vst [vmem:[#allocation32_spill] sm:$0xff] %v4820_v30  ;;  %v1642_v1 = vld [vmem:[#allocation2 + $0x8] sm:$0x7e] }
  0x8f   : > { %v3430_v39 = vld [vmem:[#allocation2] sm:$0x6]  ;;  %v4791_v56 = vmul.f32 %v3202_v37, %v3200_v29  ;;  %v478_v40 = vadd.f32 %v474_v19, %v464_v18  ;;  %v4829_v32 = vadd.f32 %v2913_v28, %v2908_v14  ;;  %v1872_v42 = vld [vmem:[#allocation2 + $0x8] sm:$0x6]  ;;  %v4841_v49 = vsub.f32 %v4636_v17, %v340_v60 }
  0x90   : > { %v3433_v59 = vmul.f32 %v3432_v44, %v3430_v39  ;;  %v488_v29 = vrot.slane %v484_v5, 7  ;;  %v1578_v39 = vld [vmem:[#allocation2 + $0x8] sm:$0xfc]  ;;  %v4833_v41 = vadd.f32 %v3139_v36, %v3134_v33  ;;  %v443_v28 = vadd.f32 %v439_v11, %v429_v6 }
  0x91   : > { %7260 = vst [vmem:[#allocation30_spill] sm:$0xff] %v4791_v56  ;;  %7263 = vst [vmem:[#allocation33_spill] sm:$0xff] %v4829_v32  ;;  %v2097_v51 = vld [vmem:[#allocation2 + $0x8] sm:$0xfc]  ;;  %v1581_v36 = vmul.f32 %v1579_v20, %v1578_v39  ;;  %v4847_v5 = vmul.f32 %v1643_v22, %v1642_v1  ;;  %v7190_v19 = vstv %s4773_s2  ;;  %v1875_v17 = vmul.f32 %v1873_v24, %v1872_v42  ;;  %v468_v39 = vld [vmem:[%s4536_s3 + $0x8] sm:$0x3] }
  0x92   : > { %v4838_v16 = vadd.f32 %v3433_v59, %v3428_v38  ;;  %v492_v55 = vadd.f32 %v488_v29, %v478_v40  ;;  %v2161_v18 = vld [vmem:[#allocation2 + $0x8] sm:$0x7e]  ;;  %v7191_v59 = vstv %s4764_s9  ;;  %v504_v20 = vrot.slane %v4777_v48, %v4620_v8  ;;  %v3818_v29 = vld [vmem:[%s4536_s3 + $0x18] sm:$0x6] }
  0x93   : > { %v2391_v60 = vld [vmem:[#allocation2 + $0x8] sm:$0x6]  ;;  %v7192_v6 = vstv %s4775_s20  ;;  %v2100_v1 = vmul.f32 %v2098_v61, %v2097_v51  ;;  %v4877_v4 = vmul.f32 %v2162_v62, %v2161_v18  ;;  %v445_v52 = vmul.f32 0.01, %v443_v28 }
  0x94   : > { %7264 = vst [vmem:[#allocation34_spill] sm:$0xff] %v4838_v16  ;;  %v452_v11 = vld [vmem:[%s4536_s3 + $0x8] sm:$0x6]  ;;  %v494_v50 = vmul.f32 0.01, %v492_v55  ;;  %v4884_v61 = vadd.f32 %v1581_v36, %v1575_v15  ;;  %v2394_v54 = vmul.f32 %v2392_v3, %v2391_v60  ;;  %v4892_v9 = vadd.f32 %v1875_v17, %v1869_v23 }
  0x95   : > { %v2617_v40 = vld [vmem:[#allocation2 + $0x8] sm:$0xfc]  ;;  %v4896_v15 = vmax.f32 %v443_v28, %v445_v52  ;;  %v4904_v3 = vadd.f32 %v2100_v1, %v2094_v25  ;;  %v455_v60 = vmul.f32 %v453_v0, %v452_v11  ;;  %v463_v23 = vmul.f32 %v3818_v29, %v461_v43  ;;  %v3822_v52 = vld [vmem:[%s4536_s3 + $0x18] sm:$0x3]  ;;  %v545_v28 = vld [vmem:[%s4536_s3] sm:$0xfc] }
  0x96   : > { %v2681_v62 = vld [vmem:[#allocation2 + $0x8] sm:$0x7e]  ;;  %7265 = vst [vmem:[#allocation35_spill] sm:$0xff] %v4892_v9  ;;  %v2620_v24 = vmul.f32 %v2618_v10, %v2617_v40  ;;  %v4898_v36 = vmax.f32 %v492_v55, %v494_v50  ;;  %v471_v10 = vmul.f32 %v469_v45, %v468_v39  ;;  %v3826_v43 = vld [vmem:[%s4536_s3 + $0x10] sm:$0xfc]  ;;  %v543_v17 = vstv %s4851_s16  ;;  %s4981_s16 = sld [smem:[#allocation8 + $0x3d]] }
  0x97   : > { %v2911_v18 = vld [vmem:[#allocation2 + $0x8] sm:$0x6]  ;;  %v4917_v55 = vmul.f32 %v2682_v13, %v2681_v62  ;;  %500 = vst [vmem:[#allocation2 + $0x18] sm:$0xf8] %v4896_v15  ;;  %v457_v13 = vadd.f32 %v455_v60, %v449_v63  ;;  %v547_v11 = vstv %s4853_s23  ;;  %v3830_v29 = vld [vmem:[%s4536_s3 + $0x10] sm:$0x7e]  ;;  %v485_v1 = vmul.f32 %v3822_v52, %v483_v46 }
  0x98   : > { %v3137_v22 = vld [vmem:[#allocation2 + $0x8] sm:$0xfc]  ;;  %v2914_v25 = vmul.f32 %v2912_v31, %v2911_v18  ;;  %v509_v0 = vsub.f32 %v504_v20, %v4898_v36  ;;  %v561_v31 = vld [vmem:[%s4536_s3] sm:$0x7e]  ;;  %v475_v20 = vrot.slane %v471_v10, 7  ;;  %v563_v60 = vstv %s4871_s4  ;;  %s4959_s23 = sld [smem:[#allocation8 + $0x5a]] }
  0x99   : > { %7268 = vst [vmem:[#allocation36_spill] sm:$0xff] %v4917_v55  ;;  %v3140_v45 = vmul.f32 %v3138_v34, %v3137_v22  ;;  %v3201_v39 = vld [vmem:[#allocation2 + $0x8] sm:$0x7e]  ;;  %v548_v34 = vmul.f32 %v547_v11, %v545_v28  ;;  %v555_v22 = vstv %s4864_s29  ;;  %v465_v62 = vadd.f32 %v463_v23, %v457_v13  ;;  %v589_v46 = vld [vmem:[%s4536_s3] sm:$0x3f]  ;;  %s5032_s29 = sld [smem:[#allocation8 + $0xc6]] }
  0x9a   : > { %511 = vst [vmem:[#allocation2 + $0x10] sm:$0x6] %v509_v0  ;;  %v546_v40 = vld [vmem:[%s4536_s3 + $0x8] sm:$0xfc]  ;;  %v556_v18 = vmul.f32 %v3826_v43, %v555_v22  ;;  %v577_v50 = vstv %s4873_s22  ;;  %v564_v0 = vmul.f32 %v563_v60, %v561_v31  ;;  %v591_v52 = vstv %s4880_s19  ;;  %v3834_v43 = vld [vmem:[%s4536_s3 + $0x10] sm:$0x3f] }
  0x9b   : > { %v3431_v63 = vld [vmem:[#allocation2 + $0x8] sm:$0x6]  ;;  %v550_v10 = vadd.f32 %v548_v34, %v543_v17  ;;  %v578_v51 = vmul.f32 %v3830_v29, %v577_v50  ;;  %v4948_v28 = vadd.f32 %v2394_v54, %v2388_v2  ;;  %v4952_v42 = vadd.f32 %v2620_v24, %v2614_v7  ;;  %v3827_v34 = vld [vmem:[%s4536_s3 + $0x18] sm:$0xfc]  ;;  %s5034_s4 = sld [smem:[#allocation8 + $0x6a]]  ;;  %s5053_s19 = sld [smem:[#allocation8 + $0xce]] }
  0x9c   : > { %v4956_v23 = vmul.f32 %v3202_v37, %v3201_v39  ;;  %v549_v13 = vmul.f32 %v547_v11, %v546_v40  ;;  %v3434_v31 = vmul.f32 %v3432_v44, %v3431_v63  ;;  %v568_v2 = vrot.slane %v564_v0, 7  ;;  %v562_v11 = vld [vmem:[%s4536_s3 + $0x8] sm:$0x7e]  ;;  %s5045_s22 = sld [smem:[#allocation8 + $0x8a]]  ;;  %v733_v16 = vld [vmem:[%s4536_s3] sm:$0x7e] }
  0x9d   : > { %7271 = vst [vmem:[#allocation37_spill] sm:$0xff] %v4948_v28  ;;  %v558_v29 = vadd.f32 %v556_v18, %v550_v10  ;;  %v605_v54 = vstv %s4900_s26  ;;  %v479_v7 = vadd.f32 %v475_v20, %v465_v62  ;;  %v489_v37 = vrot.slane %v485_v1, 7  ;;  %v3831_v10 = vld [vmem:[%s4536_s3 + $0x18] sm:$0x7e]  ;;  %v590_v0 = vld [vmem:[%s4536_s3 + $0x8] sm:$0x3f] }
  0x9e   : > { %7272 = vst [vmem:[#allocation38_spill] sm:$0xff] %v4956_v23  ;;  %v582_v24 = vrot.slane %v578_v51, 7  ;;  %v592_v39 = vmul.f32 %v591_v52, %v589_v46  ;;  %v4971_v44 = vadd.f32 %v2914_v25, %v2908_v14  ;;  %v4975_v63 = vadd.f32 %v3140_v45, %v3134_v33  ;;  %v3835_v46 = vld [vmem:[%s4536_s3 + $0x18] sm:$0x3f]  ;;  %s5065_s26 = sld [smem:[#allocation8 + $0x92]] }
  0x9f   : > { %v572_v18 = vadd.f32 %v568_v2, %v558_v29  ;;  %v515_v20 = vrot.slane %v4898_v36, 7  ;;  %v606_v1 = vmul.f32 %v3834_v43, %v605_v54  ;;  %v551_v51 = vadd.f32 %v549_v13, %v543_v17  ;;  %7280 = sst [smem:[#allocation25_spill]] %s5032_s29  ;;  %s5139_s29 = sld [smem:[#allocation8 + $0x17]]  ;;  %v718_v28 = vld [vmem:[%s4536_s3 + $0x8] sm:$0xfc] }
  0xa0   : > { %7275 = vst [vmem:[#allocation39_spill] sm:$0xff] %v4971_v44  ;;  %v557_v62 = vmul.f32 %v3827_v34, %v555_v22  ;;  %v4986_v14 = vadd.f32 %v3434_v31, %v3428_v38  ;;  %v493_v17 = vadd.f32 %v489_v37, %v479_v7  ;;  %v596_v43 = vrot.slane %v592_v39, 6  ;;  %v906_v23 = vld [vmem:[%s4536_s3 + $0x8] sm:$0x7e] }
  0xa1   : > { %v1585_v45 = vld [vmem:[#allocation2 + $0x10] sm:$0xfc]  ;;  %v586_v22 = vadd.f32 %v582_v24, %v572_v18  ;;  %v565_v13 = vmul.f32 %v563_v60, %v562_v11  ;;  %v508_v31 = vrot.slane %v4896_v15, %v4620_v8  ;;  %v579_v2 = vmul.f32 %v3831_v10, %v577_v50 }
  0xa2   : > { %7276 = vst [vmem:[#allocation40_spill] sm:$0xff] %v4986_v14  ;;  %v1655_v36 = vld [vmem:[#allocation2 + $0x10] sm:$0x7e]  ;;  %v593_v34 = vmul.f32 %v591_v52, %v590_v0  ;;  %v4998_v40 = vsub.f32 %v4777_v48, %v515_v20  ;;  %v610_v24 = vrot.slane %v606_v1, 6  ;;  %v559_v60 = vadd.f32 %v557_v62, %v551_v51  ;;  %v623_v52 = vld [vmem:[%s4536_s3] sm:$0x6] }
  0xa3   : > { %v1879_v29 = vld [vmem:[#allocation2 + $0x10] sm:$0x6]  ;;  %v5000_v39 = vmul.f32 %v3835_v46, %v605_v54  ;;  %v1588_v11 = vmul.f32 %v7191_v59, %v1585_v45  ;;  %v5006_v18 = vmul.f32 %v7190_v19, %v1655_v36  ;;  %v7195_v50 = vstv %s4959_s23  ;;  %v639_v54 = vld [vmem:[%s4536_s3] sm:$0x3] }
  0xa4   : > { %v2104_v7 = vld [vmem:[#allocation2 + $0x10] sm:$0xfc]  ;;  %v7193_v10 = vstv %s4965_s1  ;;  %v5013_v48 = vmul.f32 %v7192_v6, %v1879_v29  ;;  %v495_v20 = vmul.f32 0.01, %v493_v17  ;;  %v600_v1 = vadd.f32 %v596_v43, %v586_v22 }
  0xa5   : > { %v2174_v37 = vld [vmem:[#allocation2 + $0x10] sm:$0x7e]  ;;  %v569_v38 = vrot.slane %v565_v13, 7  ;;  %v7278_v62 = vstv %s4785_s12  ;;  %v7279_v45 = vstv %s4787_s30  ;;  %v583_v19 = vrot.slane %v579_v2, 7 }
  0xa6   : > { %7277 = vst [vmem:[#allocation41_spill] sm:$0xff] %v5013_v48  ;;  %v2398_v0 = vld [vmem:[#allocation2 + $0x10] sm:$0x6]  ;;  %v2107_v46 = vmul.f32 %v7278_v62, %v2104_v7  ;;  %v5021_v36 = vmul.f32 %v7279_v45, %v2174_v37  ;;  %v597_v59 = vrot.slane %v593_v34, 6  ;;  %v5027_v6 = vmax.f32 %v493_v17, %v495_v20 }
  0xa7   : > { %v3839_v51 = vld [vmem:[%s4536_s3 + $0x10] sm:$0x6]  ;;  %v614_v22 = vadd.f32 %v610_v24, %v600_v1  ;;  %v573_v43 = vadd.f32 %v569_v38, %v559_v60  ;;  %v626_v13 = vmul.f32 %v7193_v10, %v623_v52  ;;  %v7281_v2 = vstv %s4798_s0 }
  0xa8   : > { %v2624_v29 = vld [vmem:[#allocation2 + $0x10] sm:$0xfc]  ;;  %v3843_v7 = vld [vmem:[%s4536_s3 + $0x10] sm:$0x3]  ;;  %v5038_v34 = vmul.f32 %v7281_v2, %v2398_v0  ;;  %v611_v17 = vrot.slane %v5000_v39, 6  ;;  %v633_v24 = vstv %s4981_s16  ;;  %v7194_v38 = vstv %s4990_s14  ;;  %s5110_s16 = sld [smem:[#allocation8 + $0x33]] }
  0xa9   : > { %v2694_v37 = vld [vmem:[#allocation2 + $0x10] sm:$0x7e]  ;;  %v510_v52 = vsub.f32 %v508_v31, %v5027_v6  ;;  %v616_v20 = vmul.f32 0.01, %v614_v22  ;;  %v587_v1 = vadd.f32 %v583_v19, %v573_v43  ;;  %v7283_v10 = vstv %s4800_s15 }
  0xaa   : > { %7282 = vst [vmem:[#allocation42_spill] sm:$0xff] %v5038_v34  ;;  %v3144_v62 = vld [vmem:[#allocation2 + $0x10] sm:$0xfc]  ;;  %v2627_v0 = vmul.f32 %v7283_v10, %v2624_v29  ;;  %v628_v2 = vadd.f32 %v626_v13, %v7195_v50  ;;  %v634_v33 = vmul.f32 %v3839_v51, %v633_v24  ;;  %v642_v39 = vmul.f32 %v7194_v38, %v639_v54  ;;  %v624_v51 = vld [vmem:[%s4536_s3 + $0x8] sm:$0x6] }
  0xab   : > { %v3214_v60 = vld [vmem:[#allocation2 + $0x10] sm:$0x7e]  ;;  %v7284_v31 = vstv %s4804_s18  ;;  %v7285_v43 = vstv %s4923_s11  ;;  %512 = vst [vmem:[#allocation2 + $0x18] sm:$0x6] %v510_v52  ;;  %v5063_v14 = vmax.f32 %v614_v22, %v616_v20  ;;  %v601_v10 = vadd.f32 %v597_v59, %v587_v1 }
  0xac   : > { %v5059_v25 = vmul.f32 %v7284_v31, %v2694_v37  ;;  %v2918_v19 = vld [vmem:[#allocation2 + $0x10] sm:$0x6]  ;;  %v3147_v45 = vmul.f32 %v7285_v43, %v3144_v62  ;;  %v7286_v54 = vstv %s4928_s27  ;;  %v636_v37 = vadd.f32 %v634_v33, %v628_v2  ;;  %v3840_v33 = vld [vmem:[%s4536_s3 + $0x18] sm:$0x6]  ;;  %v640_v43 = vld [vmem:[%s4536_s3 + $0x8] sm:$0x3] }
  0xad   : > { %v5072_v29 = vmul.f32 %v7286_v54, %v3214_v60  ;;  %v3438_v13 = vld [vmem:[#allocation2 + $0x10] sm:$0x6]  ;;  %v646_v31 = vrot.slane %v642_v39, 7  ;;  %v7288_v38 = vstv %s4992_s13  ;;  %v5079_v59 = vadd.f32 %v1588_v11, %v4749_v12  ;;  %671 = vst [vmem:[#allocation2 + $0x20] sm:$0xf8] %v5063_v14 }
  0xae   : > { %v656_v50 = vmul.f32 %v3843_v7, %v7288_v38  ;;  %v516_v62 = vrot.slane %v5027_v6, 7  ;;  %v615_v60 = vadd.f32 %v611_v17, %v601_v10  ;;  %v5088_v52 = vadd.f32 %v2107_v46, %v4813_v26  ;;  %v3844_v10 = vld [vmem:[%s4536_s3 + $0x18] sm:$0x3]  ;;  %v717_v7 = vld [vmem:[%s4536_s3] sm:$0xfc] }
  0xaf   : > { %7287 = vst [vmem:[#allocation43_spill] sm:$0xff] %v5072_v29  ;;  %v5092_v12 = vadd.f32 %v2627_v0, %v4824_v35  ;;  %v7289_v11 = vstv %s4815_s5  ;;  %v5104_v26 = vadd.f32 %v3147_v45, %v4833_v41  ;;  %v7291_v46 = vstv %s4942_s17  ;;  %v3848_v45 = vld [vmem:[%s4536_s3 + $0x10] sm:$0xfc] }
  0xb0   : > { %v5096_v38 = vmul.f32 %v7289_v11, %v2918_v19  ;;  %v5108_v35 = vmul.f32 %v7291_v46, %v3438_v13  ;;  %v617_v17 = vmul.f32 0.01, %v615_v60  ;;  %v650_v1 = vadd.f32 %v646_v31, %v636_v37 }
  0xb1   : > { %v660_v0 = vrot.slane %v656_v50, 7  ;;  %v7293_v2 = vstv %s4965_s1  ;;  %v5116_v19 = vsub.f32 %v4896_v15, %v516_v62  ;;  %v7294_v31 = vstv %s4959_s23  ;;  %s5129_s1 = sld [smem:[#allocation8 + $0x7]]  ;;  %s5137_s23 = sld [smem:[#allocation8 + $0x16]] }
  0xb2   : > { %7290 = vst [vmem:[#allocation44_spill] sm:$0xff] %v5096_v38  ;;  %7292 = vst [vmem:[#allocation45_spill] sm:$0xff] %v5108_v35  ;;  %v627_v39 = vmul.f32 %v7293_v2, %v624_v51  ;;  %v5118_v41 = vmax.f32 %v615_v60, %v617_v17  ;;  %v635_v51 = vmul.f32 %v3840_v33, %v633_v24  ;;  %v1586_v24 = vld [vmem:[#allocation2 + $0x18] sm:$0xfc]  ;;  %v7296_v20 = vstv %s4992_s13  ;;  %s5407_s13 = sld [smem:[#allocation8 + $0x28]] }
  0xb3   : > { %v676_v15 = vrot.slane %v5063_v14, %v4620_v8  ;;  %v1656_v33 = vld [vmem:[#allocation2 + $0x18] sm:$0x7e]  ;;  %v664_v17 = vadd.f32 %v660_v0, %v650_v1  ;;  %v657_v6 = vmul.f32 %v3844_v10, %v7296_v20  ;;  %v523_v0 = vcombine.low %v4998_v40, %v5116_v19 }
  0xb4   : > { %v629_v50 = vadd.f32 %v627_v39, %v7294_v31  ;;  %672 = vst [vmem:[#allocation2 + $0x28] sm:$0xf8] %v5118_v41  ;;  %v1880_v46 = vld [vmem:[#allocation2 + $0x18] sm:$0x6]  ;;  %v7295_v39 = vstv %s4990_s14  ;;  %s5155_s14 = sld [smem:[#allocation8 + $0x26]]  ;;  %v7297_v20 = vstv %s4764_s9  ;;  %v7299_v11 = vstv %s4775_s20  ;;  %s5173_s9 = sld [smem:[#allocation8 + $0x27]] }
  0xb5   : > { %v643_v31 = vmul.f32 %v7295_v39, %v640_v43  ;;  %v2105_v62 = vld [vmem:[#allocation2 + $0x18] sm:$0xfc]  ;;  %v719_v43 = vstv %s5100_s28  ;;  %v5159_v10 = vmul.f32 %v7297_v20, %v1586_v24  ;;  %v7298_v39 = vstv %s4773_s2  ;;  %s5228_s2 = sld [smem:[#allocation8 + $0x5b]]  ;;  %s5266_s20 = sld [smem:[#allocation8 + $0x3f]] }
  0xb6   : > { %v2175_v13 = vld [vmem:[#allocation2 + $0x18] sm:$0x7e]  ;;  %v637_v1 = vadd.f32 %v635_v51, %v629_v50  ;;  %v5163_v22 = vmul.f32 %v7298_v39, %v1656_v33  ;;  %v5167_v37 = vmul.f32 %v7299_v11, %v1880_v46  ;;  %v666_v50 = vmul.f32 0.01, %v664_v17  ;;  %s5462_s28 = sld [smem:[#allocation8 + $0x73]] }
  0xb7   : > { %v647_v51 = vrot.slane %v643_v31, 7  ;;  %v661_v40 = vrot.slane %v657_v6, 7  ;;  %v680_v19 = vrot.slane %v5118_v41, %v4620_v8  ;;  %v7301_v24 = vstv %s4785_s12  ;;  %v2399_v20 = vld [vmem:[#allocation2 + $0x18] sm:$0x6]  ;;  %s5244_s12 = sld [smem:[#allocation8 + $0x3e]] }
  0xb8   : > { %7300 = vst [vmem:[#allocation46_spill] sm:$0xff] %v5167_v37  ;;  %v5177_v33 = vmul.f32 %v7301_v24, %v2105_v62  ;;  %v7302_v11 = vstv %s4787_s30  ;;  %v720_v39 = vmul.f32 %v719_v43, %v717_v7  ;;  %v2625_v2 = vld [vmem:[#allocation2 + $0x18] sm:$0xfc]  ;;  %v668_v31 = vmax.f32 %v664_v17, %v666_v50  ;;  %v3852_v62 = vld [vmem:[%s4536_s3 + $0x10] sm:$0x7e]  ;;  %s7322_s30 = sld [smem:[#allocation25_spill]] }
  0xb9   : > { %v5181_v46 = vmul.f32 %v7302_v11, %v2175_v13  ;;  %v651_v6 = vadd.f32 %v647_v51, %v637_v1  ;;  %v4358_v54 = vmov 1966171168   ;;  %v727_v35 = vstv %s5129_s1  ;;  %v2695_v24 = vld [vmem:[#allocation2 + $0x18] sm:$0x7e]  ;;  %s5470_s1 = sld [smem:[#allocation8 + $0x51]] }
  0xba   : > { %v349_v60 = vunpack.c.l.s4 %v4358_v54  ;;  %v7303_v44 = vstv %s5110_s16  ;;  %v728_v11 = vmul.f32 %v3848_v45, %v727_v35  ;;  %v7199_v38 = vstv %s5137_s23  ;;  %v3145_v1 = vld [vmem:[#allocation2 + $0x18] sm:$0xfc] }
  0xbb   : > { %v722_v13 = vadd.f32 %v720_v39, %v7303_v44  ;;  %v7198_v32 = vstv %s5139_s29  ;;  %v7304_v7 = vstv %s4798_s0  ;;  %v681_v54 = vsub.f32 %v676_v15, %v668_v31  ;;  %s5370_s0 = sld [smem:[#allocation8 + $0x8]] }
  0xbc   : > { %v5192_v17 = vmul.f32 %v7304_v7, %v2399_v20  ;;  %v665_v50 = vadd.f32 %v661_v40, %v651_v6  ;;  %v350_v51 = vunpack.c.0.s8 %v349_v60  ;;  %v7306_v34 = vstv %s4800_s15  ;;  %v3215_v20 = vld [vmem:[#allocation2 + $0x18] sm:$0x7e]  ;;  %s5328_s15 = sld [smem:[#allocation8 + $0x4e]] }
  0xbd   : > { %v2628_v30 = vmul.f32 %v7306_v34, %v2625_v2  ;;  %v730_v37 = vadd.f32 %v728_v11, %v722_v13  ;;  %v736_v9 = vmul.f32 %v7199_v38, %v733_v16  ;;  %v750_v44 = vmul.f32 %v3852_v62, %v7198_v32  ;;  %683 = vst [vmem:[#allocation2 + $0x20] sm:$0x6] %v681_v54  ;;  %v761_v34 = vld [vmem:[%s4536_s3] sm:$0x3f] }
  0xbe   : > { %7305 = vst [vmem:[#allocation47_spill] sm:$0xff] %v5192_v17  ;;  %v7307_v45 = vstv %s4804_s18  ;;  %v667_v7 = vmul.f32 0.01, %v665_v50  ;;  %v5206_v15 = vsub.s32 %v350_v51, %v4597_v58  ;;  %v763_v60 = vstv %s5155_s14  ;;  %s5368_s18 = sld [smem:[#allocation8 + $0x34]]  ;;  %v889_v17 = vld [vmem:[%s4536_s3] sm:$0xfc] }
  0xbf   : > { %v5203_v39 = vmul.f32 %v7307_v45, %v2695_v24  ;;  %v7309_v2 = vstv %s4923_s11  ;;  %v687_v40 = vrot.slane %v668_v31, 7  ;;  %v740_v6 = vrot.slane %v736_v9, 7  ;;  %v3856_v45 = vld [vmem:[%s4536_s3 + $0x10] sm:$0x3f]  ;;  %s5385_s11 = sld [smem:[#allocation8 + $0x9]]  ;;  %s5494_s14 = sld [smem:[#allocation8 + $0x74]] }
  0xc0   : > { %v3148_v16 = vmul.f32 %v7309_v2, %v3145_v1  ;;  %v721_v62 = vmul.f32 %v719_v43, %v718_v28  ;;  %v669_v13 = vmax.f32 %v665_v50, %v667_v7  ;;  %v7310_v24 = vcombine.low %v4677_v47, %v4841_v49  ;;  %v3849_v28 = vld [vmem:[%s4536_s3 + $0x18] sm:$0xfc] }
  0xc1   : > { %7308 = vst [vmem:[#allocation48_spill] sm:$0xff] %v5203_v39  ;;  %v530_v54 = vrot.slane %v523_v0, %v5206_v15  ;;  %v777_v58 = vstv %s5173_s9  ;;  %v7311_v51 = vstv %s4928_s27  ;;  %v744_v38 = vadd.f32 %v740_v6, %v730_v37  ;;  %v2919_v0 = vld [vmem:[#allocation2 + $0x18] sm:$0x6]  ;;  %s5396_s27 = sld [smem:[#allocation8 + $0x18]]  ;;  %s5512_s9 = sld [smem:[#allocation8 + $0xa]] }
  0xc2   : > { %v354_v11 = vrot.slane %v7310_v24, %v5206_v15  ;;  %v5221_v32 = vmul.f32 %v7311_v51, %v3215_v20  ;;  %v754_v1 = vrot.slane %v750_v44, 7  ;;  %v764_v9 = vmul.f32 %v763_v60, %v761_v34  ;;  %v734_v34 = vld [vmem:[%s4536_s3 + $0x8] sm:$0x7e] }
  0xc3   : > { %v682_v43 = vsub.f32 %v680_v19, %v669_v13  ;;  %v688_v31 = vrot.slane %v669_v13, 7  ;;  %v537_v49 = vrot.slane %v530_v54, %v5206_v15  ;;  %v691_v50 = vsub.f32 %v5063_v14, %v687_v40  ;;  %v762_v14 = vld [vmem:[%s4536_s3 + $0x8] sm:$0x3f] }
  0xc4   : > { %7312 = vst [vmem:[#allocation49_spill] sm:$0xff] %v5221_v32  ;;  %v361_v47 = vrot.slane %v354_v11, %v5206_v15  ;;  %v7313_v20 = vlaneseq  ;;  %v7314_v37 = vmov 0  ;;  %v5236_v44 = vmul.f32 %v3856_v45, %v777_v58  ;;  %v3853_v11 = vld [vmem:[%s4536_s3 + $0x18] sm:$0x7e] }
  0xc5   : > { %v7317_v19 = vstv %s5110_s16  ;;  %684 = vst [vmem:[#allocation2 + $0x28] sm:$0x6] %v682_v43  ;;  %v692_v2 = vsub.f32 %v5118_v41, %v688_v31  ;;  %v538_v13 = vcombine.high %v537_v49, %v537_v49  ;;  %v729_v24 = vmul.f32 %v3849_v28, %v727_v35  ;;  %v3439_v45 = vld [vmem:[#allocation2 + $0x18] sm:$0x6]  ;;  %s5465_s16 = sld [smem:[#allocation8 + $0x50]] }
  0xc6   : > { %vm5232_vm0 = vcmp.lt.s32.totalorder %v7313_v20, 256  ;;  %v723_v7 = vadd.f32 %v721_v62, %v7317_v19  ;;  %v362_v6 = vcombine.high %v361_v47, %v361_v47  ;;  %v5248_v40 = vadd.f32 %v5159_v10, %v4884_v61  ;;  %v3857_v43 = vld [vmem:[%s4536_s3 + $0x18] sm:$0x3f]  ;;  %v1593_v61 = vld [vmem:[#allocation2 + $0x20] sm:$0xfc] }
  0xc7   : > { %v7315_v37 = vsel %vm5232_vm0, 4294967295, %v7314_v37  ;;  %v758_v62 = vadd.f32 %v754_v1, %v744_v38  ;;  %v768_v51 = vrot.slane %v764_v9, 6  ;;  %v5254_v41 = vadd.f32 %v5177_v33, %v4904_v3  ;;  %540 = vst.msk [vmem:[#allocation2 + $0x10] ss:$8 sm:$0x3] %vm5232_vm0, %v538_v13 }
  0xc8   : > { %7316 = vst [vmem:[#allocation50_spill] sm:$0xff] %v7315_v37  ;;  %v7318_v31 = vstv %s4815_s5  ;;  %368 = vst.msk [vmem:[#allocation2] ss:$8 sm:$0x3] %vm5232_vm0, %v362_v6  ;;  %v5269_v3 = vadd.f32 %v2628_v30, %v4952_v42  ;;  %v1669_v10 = vld [vmem:[#allocation2 + $0x20] sm:$0x7e]  ;;  %v695_v1 = vcombine.low %v691_v50, %v692_v2  ;;  %v5274_v49 = vadd.f32 %v3148_v16, %v4975_v63 }
  0xc9   : > { %v5260_v47 = vmul.f32 %v7318_v31, %v2919_v0  ;;  %v2112_v33 = vld [vmem:[#allocation2 + $0x20] sm:$0xfc]  ;;  %v782_v9 = vrot.slane %v5236_v44, 6  ;;  %v7320_v0 = vstv %s4942_s17  ;;  %v5280_v6 = vadd.f32 %v729_v24, %v723_v7  ;;  %s5330_s5 = sld [smem:[#allocation8 + $0x4f]]  ;;  %s5405_s17 = sld [smem:[#allocation8 + $0x19]] }
  0xca   : > { %v5278_v20 = vmul.f32 %v7320_v0, %v3439_v45  ;;  %v1887_v19 = vld [vmem:[#allocation2 + $0x20] sm:$0x6]  ;;  %v7323_v13 = vstv %s5137_s23  ;;  %v7324_v44 = vstv %s5023_s6  ;;  %v772_v45 = vadd.f32 %v768_v51, %v758_v62  ;;  %v3871_v32 = vld [vmem:[%s4536_s3 + $0x18] sm:$0xfc]  ;;  %s5481_s23 = sld [smem:[#allocation8 + $0x64]] }
  0xcb   : > { %7319 = vst [vmem:[#allocation51_spill] sm:$0xff] %v5260_v47  ;;  %v2188_v30 = vld [vmem:[#allocation2 + $0x20] sm:$0x7e]  ;;  %v5284_v50 = vmul.f32 %v7323_v13, %v734_v34  ;;  %v1596_v2 = vmul.f32 %v7324_v44, %v1593_v61  ;;  %v7325_v0 = vstv %s5139_s29  ;;  %v5294_v28 = vmul.f32 %v763_v60, %v762_v14  ;;  %s5445_s29 = sld [smem:[#allocation8 + $0x5c]] }
  0xcc   : > { %7321 = vst [vmem:[#allocation52_spill] sm:$0xff] %v5278_v20  ;;  %v2632_v42 = vld [vmem:[#allocation2 + $0x20] sm:$0xfc]  ;;  %v5290_v38 = vmul.f32 %v3853_v11, %v7325_v0  ;;  %v7326_v7 = vstv %s5025_s25  ;;  %v7327_v34 = vstv %s5034_s4  ;;  %v5302_v44 = vmul.f32 %v3857_v43, %v777_v58  ;;  %v1594_v0 = vld [vmem:[#allocation2 + $0x28] sm:$0xfc] }
  0xcd   : > { %v2708_v31 = vld [vmem:[#allocation2 + $0x20] sm:$0x7e]  ;;  %v5298_v24 = vmul.f32 %v7326_v7, %v1669_v10  ;;  %v2115_v61 = vmul.f32 %v7327_v34, %v2112_v33  ;;  %v7328_v54 = vstv %s7322_s30  ;;  %v7330_v11 = vstv %s5045_s22  ;;  %v1670_v20 = vld [vmem:[#allocation2 + $0x28] sm:$0x7e] }
  0xce   : > { %v3152_v63 = vld [vmem:[#allocation2 + $0x20] sm:$0xfc]  ;;  %v5307_v62 = vmul.f32 %v7328_v54, %v1887_v19  ;;  %v5311_v51 = vmul.f32 %v7330_v11, %v2188_v30  ;;  %v7331_v60 = vstv %s5055_s8  ;;  %v702_v10 = vrot.slane %v695_v1, %v5206_v15 }
  0xcf   : > { %v3228_v16 = vld [vmem:[#allocation2 + $0x20] sm:$0x7e]  ;;  %v2635_v14 = vmul.f32 %v7331_v60, %v2632_v42  ;;  %v7332_v7 = vstv %s5065_s26  ;;  %v7334_v34 = vstv %s5076_s10  ;;  %v7335_v54 = vstv %s5084_s24 }
  0xd0   : > { %v2406_v13 = vld [vmem:[#allocation2 + $0x20] sm:$0x6]  ;;  %7329 = vst [vmem:[#allocation53_spill] sm:$0xff] %v5307_v62  ;;  %v5319_v58 = vmul.f32 %v7332_v7, %v2708_v31  ;;  %v3155_v35 = vmul.f32 %v7334_v34, %v3152_v63  ;;  %v5325_v19 = vmul.f32 %v7335_v54, %v3228_v16  ;;  %v5333_v1 = vadd.f32 %v1596_v2, %v5079_v59  ;;  %v2113_v59 = vld [vmem:[#allocation2 + $0x28] sm:$0xfc] }
  0xd1   : > { %v795_v33 = vld [vmem:[%s4536_s3] sm:$0x6]  ;;  %v7337_v42 = vstv %s5053_s19  ;;  %v709_v11 = vrot.slane %v702_v10, %v5206_v15  ;;  %v786_v63 = vadd.f32 %v782_v9, %v772_v45  ;;  %v5342_v60 = vadd.f32 %v2115_v61, %v5088_v52  ;;  %v2189_v45 = vld [vmem:[#allocation2 + $0x28] sm:$0x7e]  ;;  %v3861_v52 = vld [vmem:[%s4536_s3 + $0x10] sm:$0x6] }
  0xd2   : > { %7333 = vst [vmem:[#allocation54_spill] sm:$0xff] %v5319_v58  ;;  %v2926_v43 = vld [vmem:[#allocation2 + $0x20] sm:$0x6]  ;;  %7336 = vst [vmem:[#allocation55_spill] sm:$0xff] %v5325_v19  ;;  %v5337_v31 = vmul.f32 %v7337_v42, %v2406_v13  ;;  %v7339_v7 = vstv %s5023_s6  ;;  %v7340_v54 = vstv %s5025_s25  ;;  %v5352_v13 = vadd.f32 %v2635_v14, %v5092_v12  ;;  %s5419_s6 = sld [smem:[#allocation8 + $0x29]]  ;;  %s5433_s25 = sld [smem:[#allocation8 + $0x63]] }
  0xd3   : > { %v1597_v34 = vmul.f32 %v7339_v7, %v1594_v0  ;;  %v5348_v30 = vmul.f32 %v7340_v54, %v1670_v20  ;;  %v7341_v10 = vstv %s5067_s7  ;;  %v7343_v42 = vstv %s5244_s12  ;;  %v811_v54 = vld [vmem:[%s4536_s3] sm:$0x3]  ;;  %v934_v19 = vld [vmem:[%s4536_s3 + $0x8] sm:$0x3f] }
  0xd4   : > { %7338 = vst [vmem:[#allocation56_spill] sm:$0xff] %v5337_v31  ;;  %v5356_v9 = vmul.f32 %v7341_v10, %v2926_v43  ;;  %v798_v16 = vmul.f32 %v7343_v42, %v795_v33  ;;  %v5363_v20 = vadd.f32 %v3155_v35, %v5104_v26  ;;  %v805_v7 = vstv %s5266_s20  ;;  %v2633_v33 = vld [vmem:[#allocation2 + $0x28] sm:$0xfc]  ;;  %s5529_s20 = sld [smem:[#allocation8 + $0x1b]] }
  0xd5   : > { %v7344_v12 = vstv %s5034_s4  ;;  %v710_v43 = vcombine.high %v709_v11, %v709_v11  ;;  %v788_v10 = vmul.f32 0.01, %v786_v63  ;;  %v741_v42 = vrot.slane %v5284_v50, 7  ;;  %s5450_s4 = sld [smem:[#allocation8 + $0x40]] }
  0xd6   : > { %7342 = vst [vmem:[#allocation57_spill] sm:$0xff] %v5356_v9  ;;  %v2116_v14 = vmul.f32 %v7344_v12, %v2113_v59  ;;  %v5376_v26 = vadd.f32 %v1597_v34, %v5248_v40  ;;  %v7345_v0 = vstv %s5045_s22  ;;  %v755_v59 = vrot.slane %v5290_v38, 7  ;;  %v3865_v12 = vld [vmem:[%s4536_s3 + $0x10] sm:$0x3]  ;;  %s5454_s22 = sld [smem:[#allocation8 + $0x41]] }
  0xd7   : > { %v5381_v61 = vmul.f32 %v7345_v0, %v2189_v45  ;;  %712 = vst.msk [vmem:[#allocation2 + $0x20] ss:$8 sm:$0x3] %vm5232_vm0, %v710_v43  ;;  %v5389_v50 = vmax.f32 %v786_v63, %v788_v10  ;;  %v745_v40 = vadd.f32 %v741_v42, %v5280_v6  ;;  %v769_v11 = vrot.slane %v5294_v28, 6  ;;  %v796_v45 = vld [vmem:[%s4536_s3 + $0x8] sm:$0x6] }
  0xd8   : > { %v7346_v34 = vstv %s5228_s2  ;;  %v7347_v38 = vstv %s5055_s8  ;;  %v806_v2 = vmul.f32 %v3861_v52, %v805_v7  ;;  %v813_v47 = vstv %s5328_s15  ;;  %v3862_v43 = vld [vmem:[%s4536_s3 + $0x18] sm:$0x6]  ;;  %s5460_s8 = sld [smem:[#allocation8 + $0x6b]]  ;;  %s5531_s15 = sld [smem:[#allocation8 + $0x2a]] }
  0xd9   : > { %v800_v35 = vadd.f32 %v798_v16, %v7346_v34  ;;  %v5400_v0 = vmul.f32 %v7347_v38, %v2633_v33  ;;  %v827_v9 = vstv %s5330_s5  ;;  %843 = vst [vmem:[#allocation2 + $0x30] sm:$0xf8] %v5389_v50  ;;  %v759_v28 = vadd.f32 %v755_v59, %v745_v40  ;;  %v812_v33 = vld [vmem:[%s4536_s3 + $0x8] sm:$0x3]  ;;  %v3866_v52 = vld [vmem:[%s4536_s3 + $0x18] sm:$0x3] }
  0xda   : > { %v783_v6 = vrot.slane %v5302_v44, 6  ;;  %v814_v63 = vmul.f32 %v813_v47, %v811_v54  ;;  %v828_v16 = vmul.f32 %v3865_v12, %v827_v9  ;;  %v5414_v10 = vadd.f32 %v2116_v14, %v5254_v41  ;;  %s5544_s5 = sld [smem:[#allocation8 + $0x2b]] }
  0xdb   : > { %v808_v34 = vadd.f32 %v806_v2, %v800_v35  ;;  %v848_v38 = vrot.slane %v5389_v50, %v4620_v8  ;;  %v773_v44 = vadd.f32 %v769_v11, %v759_v28  ;;  %v7348_v12 = vstv %s5244_s12  ;;  %v3870_v2 = vld [vmem:[%s4536_s3 + $0x10] sm:$0xfc]  ;;  %s5523_s12 = sld [smem:[#allocation8 + $0x1a]] }
  0xdc   : > { %v818_v54 = vrot.slane %v814_v63, 7  ;;  %v832_v59 = vrot.slane %v828_v16, 7  ;;  %v799_v40 = vmul.f32 %v7348_v12, %v796_v45  ;;  %v807_v41 = vmul.f32 %v3862_v43, %v805_v7  ;;  %v905_v12 = vld [vmem:[%s4536_s3] sm:$0x7e] }
  0xdd   : > { %v815_v14 = vmul.f32 %v813_v47, %v812_v33  ;;  %v829_v31 = vmul.f32 %v3866_v52, %v827_v9  ;;  %v887_v42 = vstv %s5368_s18  ;;  %v787_v35 = vadd.f32 %v783_v6, %v773_v44  ;;  %v3874_v33 = vld [vmem:[%s4536_s3 + $0x10] sm:$0x7e]  ;;  %v933_v6 = vld [vmem:[%s4536_s3] sm:$0x3f]  ;;  %s5570_s18 = sld [smem:[#allocation8 + $0x7c]] }
  0xde   : > { %v822_v62 = vadd.f32 %v818_v54, %v808_v34  ;;  %v7349_v48 = vstv %s5228_s2  ;;  %v891_v11 = vstv %s5370_s0  ;;  %v899_v45 = vstv %s5385_s11  ;;  %s5521_s2 = sld [smem:[#allocation8 + $0xb]]  ;;  %s5575_s0 = sld [smem:[#allocation8 + $0x5d]] }
  0xdf   : > { %v801_v21 = vadd.f32 %v799_v40, %v7349_v48  ;;  %v819_v28 = vrot.slane %v815_v14, 7  ;;  %v833_v63 = vrot.slane %v829_v31, 7  ;;  %v892_v16 = vmul.f32 %v891_v11, %v889_v17  ;;  %v3878_v14 = vld [vmem:[%s4536_s3 + $0x10] sm:$0x3f]  ;;  %s5578_s11 = sld [smem:[#allocation8 + $0x42]] }
  0xe0   : > { %v789_v47 = vmul.f32 0.01, %v787_v35  ;;  %v836_v9 = vadd.f32 %v832_v59, %v822_v62  ;;  %v900_v43 = vmul.f32 %v3870_v2, %v899_v45  ;;  %v907_v52 = vstv %s5396_s27  ;;  %v890_v62 = vld [vmem:[%s4536_s3 + $0x8] sm:$0xfc]  ;;  %s5582_s27 = sld [smem:[#allocation8 + $0x43]] }
  0xe1   : > { %v809_v7 = vadd.f32 %v807_v41, %v801_v21  ;;  %v894_v48 = vadd.f32 %v892_v16, %v887_v42  ;;  %v921_v34 = vstv %s5405_s17  ;;  %v935_v31 = vstv %s5407_s13  ;;  %v2709_v16 = vld [vmem:[#allocation2 + $0x28] sm:$0x7e]  ;;  %s5586_s17 = sld [smem:[#allocation8 + $0x52]]  ;;  %s5588_s13 = sld [smem:[#allocation8 + $0x53]] }
  0xe2   : > { %v5438_v17 = vmax.f32 %v787_v35, %v789_v47  ;;  %v838_v44 = vmul.f32 0.01, %v836_v9  ;;  %v908_v40 = vmul.f32 %v907_v52, %v905_v12  ;;  %v922_v59 = vmul.f32 %v3874_v33, %v921_v34 }
  0xe3   : > { %v823_v54 = vadd.f32 %v819_v28, %v809_v7  ;;  %v902_v21 = vadd.f32 %v900_v43, %v894_v48  ;;  %v936_v41 = vmul.f32 %v935_v31, %v933_v6  ;;  %v949_v2 = vstv %s5419_s6  ;;  %v3875_v48 = vld [vmem:[%s4536_s3 + $0x18] sm:$0x7e]  ;;  %s5602_s6 = sld [smem:[#allocation8 + $0x65]] }
  0xe4   : > { %844 = vst [vmem:[#allocation2 + $0x38] sm:$0xf8] %v5438_v17  ;;  %v840_v35 = vmax.f32 %v836_v9, %v838_v44  ;;  %v852_v28 = vrot.slane %v5438_v17, %v4620_v8  ;;  %v912_v12 = vrot.slane %v908_v40, 7  ;;  %v926_v7 = vrot.slane %v922_v59, 7 }
  0xe5   : > { %v837_v47 = vadd.f32 %v833_v63, %v823_v54  ;;  %v940_v43 = vrot.slane %v936_v41, 6  ;;  %v950_v33 = vmul.f32 %v3878_v14, %v949_v2  ;;  %v893_v6 = vmul.f32 %v891_v11, %v890_v62  ;;  %v3879_v14 = vld [vmem:[%s4536_s3 + $0x18] sm:$0x3f]  ;;  %v3153_v11 = vld [vmem:[#allocation2 + $0x28] sm:$0xfc] }
  0xe6   : > { %v853_v29 = vsub.f32 %v848_v38, %v840_v35  ;;  %v859_v56 = vrot.slane %v840_v35, 7  ;;  %v916_v55 = vadd.f32 %v912_v12, %v902_v21  ;;  %v7350_v63 = vstv %s5065_s26  ;;  %s5468_s26 = sld [smem:[#allocation8 + $0x7b]] }
  0xe7   : > { %v839_v39 = vmul.f32 0.01, %v837_v47  ;;  %v5458_v9 = vmul.f32 %v7350_v63, %v2709_v16  ;;  %v895_v44 = vadd.f32 %v893_v6, %v887_v42  ;;  %v901_v54 = vmul.f32 %v3871_v32, %v899_v45  ;;  %v3229_v32 = vld [vmem:[#allocation2 + $0x28] sm:$0x7e]  ;;  %v967_v45 = vld [vmem:[%s4536_s3] sm:$0x6] }
  0xe8   : > { %v909_v40 = vmul.f32 %v907_v52, %v906_v23  ;;  %855 = vst [vmem:[#allocation2 + $0x30] sm:$0x6] %v853_v29  ;;  %v930_v38 = vadd.f32 %v926_v7, %v916_v55  ;;  %v954_v21 = vrot.slane %v950_v33, 6  ;;  %v923_v59 = vmul.f32 %v3875_v48, %v921_v34 }
  0xe9   : > { %7351 = vst [vmem:[#allocation58_spill] sm:$0xff] %v5458_v9  ;;  %v841_v62 = vmax.f32 %v837_v47, %v839_v39  ;;  %v863_v41 = vsub.f32 %v5389_v50, %v859_v56  ;;  %v903_v16 = vadd.f32 %v901_v54, %v895_v44  ;;  %v937_v42 = vmul.f32 %v935_v31, %v934_v19  ;;  %v983_v44 = vld [vmem:[%s4536_s3] sm:$0x3]  ;;  %v1106_v9 = vld [vmem:[%s4536_s3 + $0x8] sm:$0x3f] }
  0xea   : > { %v913_v35 = vrot.slane %v909_v40, 7  ;;  %v944_v55 = vadd.f32 %v940_v43, %v930_v38  ;;  %v927_v39 = vrot.slane %v923_v59, 7  ;;  %v7352_v52 = vstv %s5076_s10  ;;  %s5489_s10 = sld [smem:[#allocation8 + $0x6c]]  ;;  %v3887_v38 = vld [vmem:[%s4536_s3 + $0x10] sm:$0x3] }
  0xeb   : > { %v854_v23 = vsub.f32 %v852_v28, %v841_v62  ;;  %v860_v29 = vrot.slane %v841_v62, 7  ;;  %v3156_v34 = vmul.f32 %v7352_v52, %v3153_v11  ;;  %v941_v56 = vrot.slane %v937_v42, 6  ;;  %v968_v42 = vld [vmem:[%s4536_s3 + $0x8] sm:$0x6] }
  0xec   : > { %v917_v47 = vadd.f32 %v913_v35, %v903_v16  ;;  %v951_v50 = vmul.f32 %v3879_v14, %v949_v2  ;;  %v5477_v19 = vadd.f32 %v5400_v0, %v5269_v3  ;;  %v958_v28 = vadd.f32 %v954_v21, %v944_v55  ;;  %v3883_v3 = vld [vmem:[%s4536_s3 + $0x10] sm:$0x6] }
  0xed   : > { %856 = vst [vmem:[#allocation2 + $0x38] sm:$0x6] %v854_v23  ;;  %v864_v31 = vsub.f32 %v5438_v17, %v860_v29  ;;  %v969_v12 = vstv %s5450_s4  ;;  %v7353_v43 = vstv %s5084_s24  ;;  %v965_v48 = vstv %s5445_s29  ;;  %s5510_s24 = sld [smem:[#allocation8 + $0x35]]  ;;  %s5618_s29 = sld [smem:[#allocation8 + $0x36]] }
  0xee   : > { %v5486_v33 = vmul.f32 %v7353_v43, %v3229_v32  ;;  %v931_v2 = vadd.f32 %v927_v39, %v917_v47  ;;  %v970_v6 = vmul.f32 %v969_v12, %v967_v45  ;;  %v960_v17 = vmul.f32 0.01, %v958_v28  ;;  %v984_v47 = vld [vmem:[%s4536_s3 + $0x8] sm:$0x3]  ;;  %v3893_v32 = vld [vmem:[%s4536_s3 + $0x18] sm:$0xfc] }
  0xef   : > { %v867_v0 = vcombine.low %v863_v41, %v864_v31  ;;  %v977_v63 = vstv %s5454_s22  ;;  %v5497_v54 = vadd.f32 %v3156_v34, %v5274_v49  ;;  %v1601_v40 = vld [vmem:[#allocation2 + $0x30] sm:$0xfc]  ;;  %v7210_v14 = vstv %s5433_s25  ;;  %v3884_v49 = vld [vmem:[%s4536_s3 + $0x18] sm:$0x6]  ;;  %s5620_s4 = sld [smem:[#allocation8 + $0xc]]  ;;  %s5639_s22 = sld [smem:[#allocation8 + $0xd]] }
  0xf0   : > { %7354 = vst [vmem:[#allocation59_spill] sm:$0xff] %v5486_v33  ;;  %v945_v11 = vadd.f32 %v941_v56, %v931_v2  ;;  %v955_v62 = vrot.slane %v951_v50, 6  ;;  %v2120_v21 = vld [vmem:[#allocation2 + $0x30] sm:$0xfc]  ;;  %v7209_v59 = vstv %s5460_s8  ;;  %v5503_v16 = vmax.f32 %v958_v28, %v960_v17  ;;  %v3888_v2 = vld [vmem:[%s4536_s3 + $0x18] sm:$0x3] }
  0xf1   : > { %v874_v41 = vrot.slane %v867_v0, %v5206_v15  ;;  %v985_v35 = vstv %s5465_s16  ;;  %v972_v23 = vadd.f32 %v970_v6, %v965_v48  ;;  %v978_v29 = vmul.f32 %v3883_v3, %v977_v63  ;;  %v2640_v50 = vld [vmem:[#allocation2 + $0x30] sm:$0xfc]  ;;  %v3897_v33 = vld [vmem:[%s4536_s3 + $0x18] sm:$0x7e]  ;;  %s5668_s16 = sld [smem:[#allocation8 + $0x2c]] }
  0xf2   : > { %v999_v55 = vstv %s5470_s1  ;;  %v1604_v39 = vmul.f32 %v7210_v14, %v1601_v40  ;;  %v7208_v45 = vstv %s5462_s28  ;;  %v7207_v52 = vstv %s5468_s26  ;;  %1015 = vst [vmem:[#allocation2 + $0x40] sm:$0xf8] %v5503_v16  ;;  %v3160_v40 = vld [vmem:[#allocation2 + $0x30] sm:$0xfc]  ;;  %s5717_s1 = sld [smem:[#allocation8 + $0x44]] }
  0xf3   : > { %v881_v34 = vrot.slane %v874_v41, %v5206_v15  ;;  %v2123_v56 = vmul.f32 %v7209_v59, %v2120_v21  ;;  %v959_v31 = vadd.f32 %v955_v62, %v945_v11  ;;  %v986_v28 = vmul.f32 %v985_v35, %v983_v44 }
  0xf4   : > { %v971_v43 = vmul.f32 %v969_v12, %v968_v42  ;;  %v1000_v3 = vmul.f32 %v3887_v38, %v999_v55  ;;  %v979_v17 = vmul.f32 %v3884_v49, %v977_v63  ;;  %v980_v41 = vadd.f32 %v978_v29, %v972_v23  ;;  %v1602_v58 = vld [vmem:[#allocation2 + $0x38] sm:$0xfc] }
  0xf5   : > { %v882_v6 = vcombine.high %v881_v34, %v881_v34  ;;  %v987_v11 = vmul.f32 %v985_v35, %v984_v47  ;;  %v5535_v12 = vadd.f32 %v1604_v39, %v5333_v1  ;;  %v5539_v44 = vmul.f32 %v7208_v45, %v2640_v50  ;;  %v3892_v39 = vld [vmem:[%s4536_s3 + $0x10] sm:$0xfc]  ;;  %v1077_v50 = vld [vmem:[%s4536_s3] sm:$0x7e] }
  0xf6   : > { %v973_v21 = vadd.f32 %v971_v43, %v965_v48  ;;  %v1001_v62 = vmul.f32 %v3888_v2, %v999_v55  ;;  %v5547_v48 = vadd.f32 %v2123_v56, %v5342_v60  ;;  %v961_v38 = vmul.f32 0.01, %v959_v31  ;;  %v1061_v55 = vld [vmem:[%s4536_s3] sm:$0xfc] }
  0xf7   : > { %884 = vst.msk [vmem:[#allocation2 + $0x30] ss:$8 sm:$0x3] %vm5232_vm0, %v882_v6  ;;  %v990_v1 = vrot.slane %v986_v28, 7  ;;  %v1020_v35 = vrot.slane %v5503_v16, %v4620_v8  ;;  %v5553_v42 = vmul.f32 %v7207_v52, %v3160_v40  ;;  %v1004_v49 = vrot.slane %v1000_v3, 7 }
  0xf8   : > { %v981_v23 = vadd.f32 %v979_v17, %v973_v21  ;;  %v991_v29 = vrot.slane %v987_v11, 7  ;;  %v5557_v34 = vmax.f32 %v959_v31, %v961_v38  ;;  %v1005_v47 = vrot.slane %v1001_v62, 7  ;;  %v3896_v28 = vld [vmem:[%s4536_s3 + $0x10] sm:$0x7e]  ;;  %v1105_v3 = vld [vmem:[%s4536_s3] sm:$0x3f] }
  0xf9   : > { %v994_v60 = vadd.f32 %v990_v1, %v980_v41  ;;  %v1059_v56 = vstv %s5510_s24  ;;  %v1063_v2 = vstv %s5512_s9  ;;  %v1071_v6 = vstv %s5521_s2  ;;  %v1062_v11 = vld [vmem:[%s4536_s3 + $0x8] sm:$0xfc]  ;;  %s5725_s24 = sld [smem:[#allocation8 + $0x5e]]  ;;  %s5727_s9 = sld [smem:[#allocation8 + $0x75]] }
  0xfa   : > { %v995_v43 = vadd.f32 %v991_v29, %v981_v23  ;;  %v1079_v40 = vstv %s5523_s12  ;;  %1016 = vst [vmem:[#allocation2 + $0x48] sm:$0xf8] %v5557_v34  ;;  %v1024_v31 = vrot.slane %v5557_v34, %v4620_v8  ;;  %v1064_v41 = vmul.f32 %v1063_v2, %v1061_v55  ;;  %v3900_v29 = vld [vmem:[%s4536_s3 + $0x10] sm:$0x3f]  ;;  %s5732_s2 = sld [smem:[#allocation8 + $0x55]] }
  0xfb   : > { %v1008_v17 = vadd.f32 %v1004_v49, %v994_v60  ;;  %v1072_v21 = vmul.f32 %v3892_v39, %v1071_v6  ;;  %v1080_v38 = vmul.f32 %v1079_v40, %v1077_v50  ;;  %v1093_v1 = vstv %s5529_s20  ;;  %s5738_s12 = sld [smem:[#allocation8 + $0x7d]]  ;;  %s5749_s20 = sld [smem:[#allocation8 + $0x66]] }
  0xfc   : > { %v1009_v62 = vadd.f32 %v1005_v47, %v995_v43  ;;  %v1107_v23 = vstv %s5531_s15  ;;  %v1066_v49 = vadd.f32 %v1064_v41, %v1059_v56  ;;  %v1094_v60 = vmul.f32 %v3896_v28, %v1093_v1  ;;  %v1078_v43 = vld [vmem:[%s4536_s3 + $0x8] sm:$0x7e]  ;;  %s5751_s15 = sld [smem:[#allocation8 + $0x6e]] }
  0xfd   : > { %v1010_v7 = vmul.f32 0.01, %v1008_v17  ;;  %v1108_v63 = vmul.f32 %v1107_v23, %v1105_v3  ;;  %v1084_v39 = vrot.slane %v1080_v38, 7  ;;  %v1121_v0 = vstv %s5544_s5  ;;  %s5775_s5 = sld [smem:[#allocation8 + $0xe]] }
  0xfe   : > { %v1011_v55 = vmul.f32 0.01, %v1009_v62  ;;  %v1065_v47 = vmul.f32 %v1063_v2, %v1062_v11  ;;  %v1074_v52 = vadd.f32 %v1072_v21, %v1066_v49  ;;  %v1098_v45 = vrot.slane %v1094_v60, 7  ;;  %v1139_v49 = vld [vmem:[%s4536_s3] sm:$0x6] }
  0xff   : > { %v1012_v50 = vmax.f32 %v1008_v17, %v1010_v7  ;;  %v1112_v59 = vrot.slane %v1108_v63, 6  ;;  %v1122_v41 = vmul.f32 %v3900_v29, %v1121_v0  ;;  %v1073_v3 = vmul.f32 %v3893_v32, %v1071_v6 }
 0x100   : > { %v1013_v14 = vmax.f32 %v1009_v62, %v1011_v55  ;;  %v1067_v28 = vadd.f32 %v1065_v47, %v1059_v56  ;;  %v1088_v7 = vadd.f32 %v1084_v39, %v1074_v52  ;;  %v1081_v17 = vmul.f32 %v1079_v40, %v1078_v43  ;;  %v2121_v55 = vld [vmem:[#allocation2 + $0x38] sm:$0xfc] }
 0x101   : > { %v1025_v38 = vsub.f32 %v1020_v35, %v1012_v50  ;;  %v1031_v2 = vrot.slane %v1012_v50, 7  ;;  %v1126_v11 = vrot.slane %v1122_v41, 6  ;;  %v1095_v29 = vmul.f32 %v3897_v33, %v1093_v1  ;;  %v3901_v35 = vld [vmem:[%s4536_s3 + $0x18] sm:$0x3f] }
 0x102   : > { %v1026_v63 = vsub.f32 %v1024_v31, %v1013_v14  ;;  %v1032_v21 = vrot.slane %v1013_v14, 7  ;;  %v1075_v56 = vadd.f32 %v1073_v3, %v1067_v28  ;;  %v1102_v6 = vadd.f32 %v1098_v45, %v1088_v7  ;;  %v2641_v39 = vld [vmem:[#allocation2 + $0x38] sm:$0xfc] }
 0x103   : > { %1027 = vst [vmem:[#allocation2 + $0x40] sm:$0x6] %v1025_v38  ;;  %v1035_v32 = vsub.f32 %v5503_v16, %v1031_v2  ;;  %v1085_v62 = vrot.slane %v1081_v17, 7  ;;  %v7355_v60 = vstv %s5433_s25  ;;  %v7214_v40 = vstv %s5570_s18  ;;  %s5604_s25 = sld [smem:[#allocation8 + $0x6d]]  ;;  %v1155_v17 = vld [vmem:[%s4536_s3] sm:$0x3] }
 0x104   : > { %v1605_v52 = vmul.f32 %v7355_v60, %v1602_v58  ;;  %1028 = vst [vmem:[#allocation2 + $0x48] sm:$0x6] %v1026_v63  ;;  %v1036_v14 = vsub.f32 %v5557_v34, %v1032_v21  ;;  %v1109_v31 = vmul.f32 %v1107_v23, %v1106_v9  ;;  %v1116_v16 = vadd.f32 %v1112_v59, %v1102_v6  ;;  %v3905_v34 = vld [vmem:[%s4536_s3 + $0x10] sm:$0x6]  ;;  %v3161_v9 = vld [vmem:[#allocation2 + $0x38] sm:$0xfc] }
 0x105   : > { %v1089_v45 = vadd.f32 %v1085_v62, %v1075_v56  ;;  %v1099_v33 = vrot.slane %v1095_v29, 7  ;;  %v1141_v1 = vstv %s5578_s11  ;;  %v1123_v43 = vmul.f32 %v3901_v35, %v1121_v0  ;;  %v3909_v21 = vld [vmem:[%s4536_s3 + $0x10] sm:$0x3]  ;;  %s5789_s11 = sld [smem:[#allocation8 + $0x1f]] }
 0x106   : > { %v1039_v47 = vcombine.low %v1035_v32, %v1036_v14  ;;  %v1137_v58 = vstv %s5575_s0  ;;  %v1142_v50 = vmul.f32 %v1141_v1, %v1139_v49  ;;  %v1130_v59 = vadd.f32 %v1126_v11, %v1116_v16  ;;  %s5787_s0 = sld [smem:[#allocation8 + $0x1e]] }
 0x107   : > { %v1103_v23 = vadd.f32 %v1099_v33, %v1089_v45  ;;  %v1113_v41 = vrot.slane %v1109_v31, 6  ;;  %v1149_v28 = vstv %s5582_s27  ;;  %v7356_v3 = vstv %s5460_s8  ;;  %s5641_s8 = sld [smem:[#allocation8 + $0x1c]]  ;;  %s5806_s27 = sld [smem:[#allocation8 + $0x2e]] }
 0x108   : > { %v2124_v38 = vmul.f32 %v7356_v3, %v2121_v55  ;;  %v7357_v0 = vstv %s5462_s28  ;;  %v1046_v7 = vrot.slane %v1039_v47, %v5206_v15  ;;  %v1157_v63 = vstv %s5586_s17  ;;  %s5666_s28 = sld [smem:[#allocation8 + $0x1d]]  ;;  %s5808_s17 = sld [smem:[#allocation8 + $0x2f]] }
 0x109   : > { %v2644_v2 = vmul.f32 %v7357_v0, %v2641_v39  ;;  %v1132_v56 = vmul.f32 0.01, %v1130_v59  ;;  %v1144_v32 = vadd.f32 %v1142_v50, %v1137_v58  ;;  %v1150_v6 = vmul.f32 %v3905_v34, %v1149_v28  ;;  %v1140_v0 = vld [vmem:[%s4536_s3 + $0x8] sm:$0x6] }
 0x10a   : > { %v1171_v62 = vstv %s5588_s13  ;;  %v5624_v11 = vadd.f32 %v5539_v44, %v5352_v13  ;;  %v7358_v29 = vstv %s5468_s26  ;;  %v1609_v49 = vld [vmem:[#allocation2 + $0x40] sm:$0xfc]  ;;  %v1053_v14 = vrot.slane %v1046_v7, %v5206_v15  ;;  %s5691_s26 = sld [smem:[#allocation8 + $0x2d]]  ;;  %s5830_s13 = sld [smem:[#allocation8 + $0x76]] }
 0x10b   : > { %v3164_v35 = vmul.f32 %v7358_v29, %v3161_v9  ;;  %v2128_v60 = vld [vmem:[#allocation2 + $0x40] sm:$0xfc]  ;;  %v1127_v31 = vrot.slane %v1123_v43, 6  ;;  %v5629_v39 = vmax.f32 %v1130_v59, %v1132_v56  ;;  %v1117_v16 = vadd.f32 %v1113_v41, %v1103_v23  ;;  %v1610_v23 = vld [vmem:[#allocation2 + $0x48] sm:$0xfc] }
 0x10c   : > { %v2648_v55 = vld [vmem:[#allocation2 + $0x40] sm:$0xfc]  ;;  %v1158_v45 = vmul.f32 %v1157_v63, %v1155_v17  ;;  %v1172_v33 = vmul.f32 %v3909_v21, %v1171_v62  ;;  %v5633_v47 = vadd.f32 %v5553_v42, %v5363_v20  ;;  %v7359_v13 = vstv %s5481_s23  ;;  %v2129_v41 = vld [vmem:[#allocation2 + $0x48] sm:$0xfc]  ;;  %v1156_v56 = vld [vmem:[%s4536_s3 + $0x8] sm:$0x3] }
 0x10d   : > { %v1612_v44 = vmul.f32 %v7359_v13, %v1609_v49  ;;  %v7360_v50 = vstv %s5489_s10  ;;  %v3168_v9 = vld [vmem:[#allocation2 + $0x40] sm:$0xfc]  ;;  %v1054_v43 = vcombine.high %v1053_v14, %v1053_v14  ;;  %v5644_v59 = vadd.f32 %v1605_v52, %v5376_v26  ;;  %1187 = vst [vmem:[#allocation2 + $0x50] sm:$0xf8] %v5629_v39  ;;  %s5720_s23 = sld [smem:[#allocation8 + $0x45]]  ;;  %s5722_s10 = sld [smem:[#allocation8 + $0x54]] }
 0x10e   : > { %v2131_v34 = vmul.f32 %v7360_v50, %v2128_v60  ;;  %v5647_v20 = vadd.f32 %v2124_v38, %v5414_v10  ;;  %v5650_v42 = vadd.f32 %v2644_v2, %v5477_v19  ;;  %v1152_v3 = vadd.f32 %v1150_v6, %v1144_v32  ;;  %v3906_v38 = vld [vmem:[%s4536_s3 + $0x18] sm:$0x6]  ;;  %v1250_v19 = vld [vmem:[%s4536_s3 + $0x8] sm:$0x7e] }
 0x10f   : > { %v5655_v7 = vadd.f32 %v3164_v35, %v5497_v54  ;;  %v7361_v26 = vstv %s5494_s14  ;;  %1056 = vst.msk [vmem:[#allocation2 + $0x40] ss:$8 sm:$0x3] %vm5232_vm0, %v1054_v43  ;;  %v5672_v54 = vmul.f32 %v7214_v40, %v3168_v9  ;;  %v1131_v2 = vadd.f32 %v1127_v31, %v1117_v16  ;;  %v3910_v32 = vld [vmem:[%s4536_s3 + $0x18] sm:$0x3] }
 0x110   : > { %v5659_v52 = vmul.f32 %v7361_v26, %v2648_v55  ;;  %v1162_v17 = vrot.slane %v1158_v45, 7  ;;  %v1176_v21 = vrot.slane %v1172_v33, 7  ;;  %v5677_v6 = vadd.f32 %v1612_v44, %v5535_v12  ;;  %v1233_v31 = vld [vmem:[%s4536_s3] sm:$0xfc]  ;;  %v3919_v10 = vld [vmem:[%s4536_s3 + $0x18] sm:$0x7e] }
 0x111   : > { %v5680_v29 = vadd.f32 %v2131_v34, %v5547_v48  ;;  %v7362_v35 = vmov %v7359_v13  ;;  %v7363_v60 = vmov %v7360_v50  ;;  %v1133_v55 = vmul.f32 0.01, %v1131_v2 }
 0x112   : > { %v5684_v49 = vmul.f32 %v7362_v35, %v1610_v23  ;;  %v5688_v14 = vmul.f32 %v7363_v60, %v2129_v41  ;;  %v1166_v16 = vadd.f32 %v1162_v17, %v1152_v3  ;;  %v1143_v12 = vmul.f32 %v1141_v1, %v1140_v0  ;;  %v3914_v23 = vld [vmem:[%s4536_s3 + $0x10] sm:$0xfc]  ;;  %v1249_v41 = vld [vmem:[%s4536_s3] sm:$0x7e]  ;;  %v1234_v17 = vld [vmem:[%s4536_s3 + $0x8] sm:$0xfc] }
 0x113   : > { %v1151_v48 = vmul.f32 %v3906_v38, %v1149_v28  ;;  %v1159_v45 = vmul.f32 %v1157_v63, %v1156_v56  ;;  %v1173_v33 = vmul.f32 %v3910_v32, %v1171_v62  ;;  %v1231_v13 = vstv %s5618_s29  ;;  %v3918_v3 = vld [vmem:[%s4536_s3 + $0x10] sm:$0x7e]  ;;  %v1277_v0 = vld [vmem:[%s4536_s3] sm:$0x3f]  ;;  %s5849_s29 = sld [smem:[#allocation8 + $0x5f]] }
 0x114   : > { %v1235_v44 = vstv %s5620_s4  ;;  %v5697_v50 = vmax.f32 %v1131_v2, %v1133_v55  ;;  %v1180_v34 = vadd.f32 %v1176_v21, %v1166_v16  ;;  %v1145_v9 = vadd.f32 %v1143_v12, %v1137_v58  ;;  %v3922_v60 = vld [vmem:[%s4536_s3 + $0x10] sm:$0x3f]  ;;  %s5851_s4 = sld [smem:[#allocation8 + $0x46]] }
 0x115   : > { %v1236_v43 = vmul.f32 %v1235_v44, %v1233_v31  ;;  %v1192_v1 = vrot.slane %v5629_v39, %v4620_v8  ;;  %v1163_v28 = vrot.slane %v1159_v45, 7  ;;  %v1243_v63 = vstv %s5639_s22  ;;  %v3915_v31 = vld [vmem:[%s4536_s3 + $0x18] sm:$0xfc]  ;;  %s5854_s22 = sld [smem:[#allocation8 + $0x47]] }
 0x116   : > { %v1251_v62 = vstv %s5641_s8  ;;  %1188 = vst [vmem:[#allocation2 + $0x58] sm:$0xf8] %v5697_v50  ;;  %v1182_v26 = vmul.f32 0.01, %v1180_v34  ;;  %v1153_v58 = vadd.f32 %v1151_v48, %v1145_v9  ;;  %v1177_v38 = vrot.slane %v1173_v33, 7  ;;  %s5860_s8 = sld [smem:[#allocation8 + $0x56]] }
 0x117   : > { %v1238_v2 = vadd.f32 %v1236_v43, %v1231_v13  ;;  %v1244_v21 = vmul.f32 %v3914_v23, %v1243_v63  ;;  %v1252_v56 = vmul.f32 %v1251_v62, %v1249_v41  ;;  %v1265_v32 = vstv %s5666_s28  ;;  %s5864_s28 = sld [smem:[#allocation8 + $0x57]] }
 0x118   : > { %v1279_v35 = vstv %s5668_s16  ;;  %v1184_v55 = vmax.f32 %v1180_v34, %v1182_v26  ;;  %v1167_v16 = vadd.f32 %v1163_v28, %v1153_v58  ;;  %v1266_v12 = vmul.f32 %v3918_v3, %v1265_v32  ;;  %v1278_v26 = vld [vmem:[%s4536_s3 + $0x8] sm:$0x3f]  ;;  %s5867_s16 = sld [smem:[#allocation8 + $0x7e]] }
 0x119   : > { %v1280_v45 = vmul.f32 %v1279_v35, %v1277_v0  ;;  %v1246_v48 = vadd.f32 %v1244_v21, %v1238_v2  ;;  %v1256_v33 = vrot.slane %v1252_v56, 7  ;;  %v1293_v9 = vstv %s5691_s26  ;;  %v3923_v21 = vld [vmem:[%s4536_s3 + $0x18] sm:$0x3f]  ;;  %s5908_s26 = sld [smem:[#allocation8 + $0x6f]] }
 0x11a   : > { %v1237_v43 = vmul.f32 %v1235_v44, %v1234_v17  ;;  %v1197_v23 = vsub.f32 %v1192_v1, %v1184_v55  ;;  %v1203_v41 = vrot.slane %v1184_v55, 7  ;;  %v1181_v34 = vadd.f32 %v1177_v38, %v1167_v16 }
 0x11b   : > { %v1270_v28 = vrot.slane %v1266_v12, 7  ;;  %v1260_v3 = vadd.f32 %v1256_v33, %v1246_v48  ;;  %v1284_v0 = vrot.slane %v1280_v45, 6  ;;  %v1294_v58 = vmul.f32 %v3922_v60, %v1293_v9  ;;  %v2649_v12 = vld [vmem:[#allocation2 + $0x48] sm:$0xfc]  ;;  %v3927_v33 = vld [vmem:[%s4536_s3 + $0x10] sm:$0x6] }
 0x11c   : > { %v1239_v40 = vadd.f32 %v1237_v43, %v1231_v13  ;;  %1199 = vst [vmem:[#allocation2 + $0x50] sm:$0x6] %v1197_v23  ;;  %v1183_v44 = vmul.f32 0.01, %v1181_v34  ;;  %v1196_v2 = vrot.slane %v5697_v50, %v4620_v8  ;;  %v1245_v17 = vmul.f32 %v3915_v31, %v1243_v63  ;;  %v1311_v31 = vld [vmem:[%s4536_s3] sm:$0x6] }
 0x11d   : > { %v1253_v1 = vmul.f32 %v1251_v62, %v1250_v19  ;;  %v1274_v38 = vadd.f32 %v1270_v28, %v1260_v3  ;;  %v1298_v56 = vrot.slane %v1294_v58, 6  ;;  %v1267_v55 = vmul.f32 %v3919_v10, %v1265_v32 }
 0x11e   : > { %v1281_v16 = vmul.f32 %v1279_v35, %v1278_v26  ;;  %v5736_v13 = vadd.f32 %v5659_v52, %v5624_v11  ;;  %v1185_v60 = vmax.f32 %v1181_v34, %v1183_v44  ;;  %v1247_v63 = vadd.f32 %v1245_v17, %v1239_v40  ;;  %v1327_v34 = vld [vmem:[%s4536_s3] sm:$0x3]  ;;  %v3169_v44 = vld [vmem:[#allocation2 + $0x48] sm:$0xfc] }
 0x11f   : > { %v1257_v19 = vrot.slane %v1253_v1, 7  ;;  %v1207_v62 = vsub.f32 %v5629_v39, %v1203_v41  ;;  %v1288_v10 = vadd.f32 %v1284_v0, %v1274_v38  ;;  %v1271_v32 = vrot.slane %v1267_v55, 7 }
 0x120   : > { %v1295_v35 = vmul.f32 %v3923_v21, %v1293_v9  ;;  %v1198_v45 = vsub.f32 %v1196_v2, %v1185_v60  ;;  %v1204_v11 = vrot.slane %v1185_v60, 7  ;;  %v1285_v48 = vrot.slane %v1281_v16, 6 }
 0x121   : > { %v1261_v52 = vadd.f32 %v1257_v19, %v1247_v63  ;;  %v1302_v43 = vadd.f32 %v1298_v56, %v1288_v10  ;;  %v1313_v23 = vstv %s5717_s1  ;;  %v1321_v40 = vstv %s5720_s23  ;;  %v1312_v10 = vld [vmem:[%s4536_s3 + $0x8] sm:$0x6]  ;;  %s5910_s1 = sld [smem:[#allocation8 + $0x77]]  ;;  %s5918_s23 = sld [smem:[#allocation8 + $0x84]] }
 0x122   : > { %v1329_v28 = vstv %s5722_s10  ;;  %1200 = vst [vmem:[#allocation2 + $0x58] sm:$0x6] %v1198_v45  ;;  %v1208_v39 = vsub.f32 %v5697_v50, %v1204_v11  ;;  %v1309_v41 = vstv %s5725_s24  ;;  %v1314_v26 = vmul.f32 %v1313_v23, %v1311_v31  ;;  %s5927_s10 = sld [smem:[#allocation8 + $0x85]]  ;;  %s5932_s24 = sld [smem:[#allocation8 + $0x86]] }
 0x123   : > { %v1275_v9 = vadd.f32 %v1271_v32, %v1261_v52  ;;  %v3173_v3 = vadd.f32 %v5672_v54, %v5633_v47  ;;  %v7364_v0 = vstv %s5494_s14  ;;  %v1617_v2 = vld [vmem:[#allocation2 + $0x50] sm:$0xfc]  ;;  %v1299_v50 = vrot.slane %v1295_v35, 6  ;;  %v3931_v54 = vld [vmem:[%s4536_s3 + $0x10] sm:$0x3]  ;;  %s5773_s14 = sld [smem:[#allocation8 + $0x37]] }
 0x124   : > { %v2652_v58 = vmul.f32 %v7364_v0, %v2649_v12  ;;  %v1322_v17 = vmul.f32 %v3927_v33, %v1321_v40  ;;  %v5759_v1 = vadd.f32 %v5684_v49, %v5644_v59  ;;  %v2136_v21 = vld [vmem:[#allocation2 + $0x50] sm:$0xfc]  ;;  %v2658_v38 = vstv %s5727_s9  ;;  %s5954_s9 = sld [smem:[#allocation8 + $0xa1]] }
 0x125   : > { %v1211_v56 = vcombine.low %v1207_v62, %v1208_v39  ;;  %v1330_v47 = vmul.f32 %v1329_v28, %v1327_v34  ;;  %v2656_v55 = vld [vmem:[#allocation2 + $0x50] sm:$0xfc]  ;;  %v1304_v16 = vmul.f32 0.01, %v1302_v43  ;;  %v1289_v60 = vadd.f32 %v1285_v48, %v1275_v9  ;;  %v3928_v34 = vld [vmem:[%s4536_s3 + $0x18] sm:$0x6] }
 0x126   : > { %v1316_v63 = vadd.f32 %v1314_v26, %v1309_v41  ;;  %v1343_v19 = vstv %s5732_s2  ;;  %v7365_v32 = vstv %s5570_s18  ;;  %v7366_v31 = vstv %s5602_s6  ;;  %v3176_v49 = vld [vmem:[#allocation2 + $0x50] sm:$0xfc]  ;;  %s5782_s18 = sld [smem:[#allocation8 + $0xf]]  ;;  %s5956_s2 = sld [smem:[#allocation8 + $0xa2]] }
 0x127   : > { %v3172_v35 = vmul.f32 %v7365_v32, %v3169_v44  ;;  %v1620_v59 = vmul.f32 %v7366_v31, %v1617_v2  ;;  %v3178_v12 = vstv %s5738_s12  ;;  %v1218_v62 = vrot.slane %v1211_v56, %v5206_v15  ;;  %s5961_s12 = sld [smem:[#allocation8 + $0x87]] }
 0x128   : > { %v7367_v45 = vstv %s5604_s25  ;;  %v5779_v52 = vmax.f32 %v1302_v43, %v1304_v16  ;;  %v1303_v48 = vadd.f32 %v1299_v50, %v1289_v60  ;;  %v1324_v33 = vadd.f32 %v1322_v17, %v1316_v63  ;;  %v1405_v60 = vld [vmem:[%s4536_s3] sm:$0xfc] }
 0x129   : > { %v2139_v11 = vmul.f32 %v7367_v45, %v2136_v21  ;;  %v2659_v39 = vmul.f32 %v2658_v38, %v2656_v55  ;;  %v1225_v9 = vrot.slane %v1218_v62, %v5206_v15  ;;  %v1334_v26 = vrot.slane %v1330_v47, 7  ;;  %v3940_v45 = vld [vmem:[%s4536_s3 + $0x10] sm:$0x7e] }
 0x12a   : > { %v1344_v0 = vmul.f32 %v3931_v54, %v1343_v19  ;;  %v5793_v43 = vadd.f32 %v5688_v14, %v5647_v20  ;;  %v5796_v44 = vadd.f32 %v2652_v58, %v5650_v42  ;;  %v3179_v2 = vmul.f32 %v3178_v12, %v3176_v49  ;;  %1359 = vst [vmem:[#allocation2 + $0x60] sm:$0xf8] %v5779_v52  ;;  %v1328_v54 = vld [vmem:[%s4536_s3 + $0x8] sm:$0x3] }
 0x12b   : > { %v1315_v50 = vmul.f32 %v1313_v23, %v1312_v10  ;;  %v5802_v17 = vadd.f32 %v3172_v35, %v5655_v7  ;;  %v1226_v21 = vcombine.high %v1225_v9, %v1225_v9  ;;  %v1627_v56 = vstv %s5749_s20  ;;  %v3932_v23 = vld [vmem:[%s4536_s3 + $0x18] sm:$0x3]  ;;  %s5963_s20 = sld [smem:[#allocation8 + $0xa3]] }
 0x12c   : > { %v1323_v47 = vmul.f32 %v3928_v34, %v1321_v40  ;;  %v1305_v20 = vmul.f32 0.01, %v1303_v48  ;;  %v1338_v42 = vadd.f32 %v1334_v26, %v1324_v33  ;;  %v1348_v14 = vrot.slane %v1344_v0, 7  ;;  %v1449_v0 = vld [vmem:[%s4536_s3] sm:$0x3f] }
 0x12d   : > { %v2146_v58 = vstv %s5751_s15  ;;  %v5813_v7 = vadd.f32 %v1620_v59, %v5677_v6  ;;  %v5816_v40 = vadd.f32 %v2139_v11, %v5680_v29  ;;  %v5819_v55 = vadd.f32 %v2659_v39, %v5736_v13  ;;  %1228 = vst.msk [vmem:[#allocation2 + $0x50] ss:$8 sm:$0x3] %vm5232_vm0, %v1226_v21  ;;  %v3936_v59 = vld [vmem:[%s4536_s3 + $0x10] sm:$0xfc]  ;;  %s5972_s15 = sld [smem:[#allocation8 + $0xa4]] }
 0x12e   : > { %v1317_v16 = vadd.f32 %v1315_v50, %v1309_v41  ;;  %v5824_v63 = vadd.f32 %v3179_v2, %v3173_v3  ;;  %v5826_v10 = vmax.f32 %v1303_v48, %v1305_v20  ;;  %v1352_v32 = vadd.f32 %v1348_v14, %v1338_v42  ;;  %v1421_v41 = vld [vmem:[%s4536_s3] sm:$0x7e]  ;;  %v3944_v2 = vld [vmem:[%s4536_s3 + $0x10] sm:$0x3f]  ;;  %v1406_v50 = vld [vmem:[%s4536_s3 + $0x8] sm:$0xfc] }
 0x12f   : > { %v1331_v6 = vmul.f32 %v1329_v28, %v1328_v54  ;;  %v1345_v13 = vmul.f32 %v3932_v23, %v1343_v19  ;;  %v1403_v35 = vstv %s5773_s14  ;;  %v1407_v31 = vstv %s5775_s5  ;;  %v3937_v42 = vld [vmem:[%s4536_s3 + $0x18] sm:$0xfc]  ;;  %s5981_s14 = sld [smem:[#allocation8 + $0xa5]]  ;;  %s5984_s5 = sld [smem:[#allocation8 + $0xa6]] }
 0x130   : > { %v1325_v29 = vadd.f32 %v1323_v47, %v1317_v16  ;;  %1360 = vst [vmem:[#allocation2 + $0x68] sm:$0xf8] %v5826_v10  ;;  %v1354_v3 = vmul.f32 0.01, %v1352_v32  ;;  %v1364_v49 = vrot.slane %v5779_v52, %v4620_v8  ;;  %v1408_v62 = vmul.f32 %v1407_v31, %v1405_v60 }
 0x131   : > { %v1335_v28 = vrot.slane %v1331_v6, 7  ;;  %v1349_v19 = vrot.slane %v1345_v13, 7  ;;  %v1415_v11 = vstv %s5782_s18  ;;  %v1423_v48 = vstv %s5787_s0  ;;  %s5995_s18 = sld [smem:[#allocation8 + $0x7f]] }
 0x132   : > { %v1437_v33 = vstv %s5789_s11  ;;  %v1356_v34 = vmax.f32 %v1352_v32, %v1354_v3  ;;  %v1410_v9 = vadd.f32 %v1408_v62, %v1403_v35  ;;  %v1416_v26 = vmul.f32 %v3936_v59, %v1415_v11  ;;  %v1422_v32 = vld [vmem:[%s4536_s3 + $0x8] sm:$0x7e]  ;;  %s6017_s0 = sld [smem:[#allocation8 + $0xa7]]  ;;  %s6055_s11 = sld [smem:[#allocation8 + $0x8b]] }
 0x133   : > { %v1339_v39 = vadd.f32 %v1335_v28, %v1325_v29  ;;  %v1424_v21 = vmul.f32 %v1423_v48, %v1421_v41  ;;  %v1438_v47 = vmul.f32 %v3940_v45, %v1437_v33  ;;  %v1451_v54 = vstv %s5806_s27  ;;  %v3941_v41 = vld [vmem:[%s4536_s3 + $0x18] sm:$0x7e]  ;;  %v1450_v45 = vld [vmem:[%s4536_s3 + $0x8] sm:$0x3f]  ;;  %s6068_s27 = sld [smem:[#allocation8 + $0x8c]] }
 0x134   : > { %v1465_v20 = vstv %s5808_s17  ;;  %v1369_v14 = vsub.f32 %v1364_v49, %v1356_v34  ;;  %v1375_v23 = vrot.slane %v1356_v34, 7  ;;  %v1418_v60 = vadd.f32 %v1416_v26, %v1410_v9  ;;  %v3945_v26 = vld [vmem:[%s4536_s3 + $0x18] sm:$0x3f]  ;;  %s6106_s17 = sld [smem:[#allocation8 + $0x8d]] }
 0x135   : > { %v1353_v16 = vadd.f32 %v1349_v19, %v1339_v39  ;;  %v1428_v6 = vrot.slane %v1424_v21, 7  ;;  %v1442_v29 = vrot.slane %v1438_v47, 7  ;;  %v1452_v13 = vmul.f32 %v1451_v54, %v1449_v0 }
 0x136   : > { %v1466_v59 = vmul.f32 %v3944_v2, %v1465_v20  ;;  %1371 = vst [vmem:[#allocation2 + $0x60] sm:$0x6] %v1369_v14  ;;  %v1368_v28 = vrot.slane %v5826_v10, %v4620_v8  ;;  %v1409_v49 = vmul.f32 %v1407_v31, %v1406_v50  ;;  %v1417_v62 = vmul.f32 %v3937_v42, %v1415_v11  ;;  %v1483_v14 = vld [vmem:[%s4536_s3] sm:$0x6] }
 0x137   : > { %v1355_v3 = vmul.f32 0.01, %v1353_v16  ;;  %v2666_v19 = vstv %s5830_s13  ;;  %v1432_v34 = vadd.f32 %v1428_v6, %v1418_v60  ;;  %v1456_v39 = vrot.slane %v1452_v13, 6  ;;  %v2137_v60 = vld [vmem:[#allocation2 + $0x58] sm:$0xfc]  ;;  %s6121_s13 = sld [smem:[#allocation8 + $0x8e]] }
 0x138   : > { %v1425_v9 = vmul.f32 %v1423_v48, %v1422_v32  ;;  %v1379_v0 = vsub.f32 %v5779_v52, %v1375_v23  ;;  %v1411_v21 = vadd.f32 %v1409_v49, %v1403_v35  ;;  %v1439_v31 = vmul.f32 %v3941_v41, %v1437_v33  ;;  %v1618_v48 = vld [vmem:[#allocation2 + $0x58] sm:$0xfc] }
 0x139   : > { %v1357_v2 = vmax.f32 %v1353_v16, %v1355_v3  ;;  %v1446_v11 = vadd.f32 %v1442_v29, %v1432_v34  ;;  %v1470_v50 = vrot.slane %v1466_v59, 6  ;;  %v1453_v42 = vmul.f32 %v1451_v54, %v1450_v45  ;;  %v3949_v29 = vld [vmem:[%s4536_s3 + $0x10] sm:$0x6]  ;;  %v3177_v34 = vld [vmem:[#allocation2 + $0x58] sm:$0xfc] }
 0x13a   : > { %v1429_v47 = vrot.slane %v1425_v9, 7  ;;  %v1419_v32 = vadd.f32 %v1417_v62, %v1411_v21  ;;  %v1467_v16 = vmul.f32 %v3945_v26, %v1465_v20  ;;  %v1443_v35 = vrot.slane %v1439_v31, 7  ;;  %v2657_v62 = vld [vmem:[#allocation2 + $0x58] sm:$0xfc] }
 0x13b   : > { %v1370_v52 = vsub.f32 %v1368_v28, %v1357_v2  ;;  %v1376_v23 = vrot.slane %v1357_v2, 7  ;;  %v1460_v6 = vadd.f32 %v1456_v39, %v1446_v11  ;;  %v1481_v33 = vstv %s5849_s29  ;;  %s6123_s29 = sld [smem:[#allocation8 + $0x8f]] }
 0x13c   : > { %v1485_v13 = vstv %s5851_s4  ;;  %v1433_v59 = vadd.f32 %v1429_v47, %v1419_v32  ;;  %v1493_v3 = vstv %s5854_s22  ;;  %v7368_v49 = vstv %s5602_s6  ;;  %s5895_s6 = sld [smem:[#allocation8 + $0x83]]  ;;  %s6130_s4 = sld [smem:[#allocation8 + $0xa8]] }
 0x13d   : > { %1372 = vst [vmem:[#allocation2 + $0x68] sm:$0x6] %v1370_v52  ;;  %v1380_v54 = vsub.f32 %v5826_v10, %v1376_v23  ;;  %v1486_v41 = vmul.f32 %v1485_v13, %v1483_v14  ;;  %v1621_v28 = vmul.f32 %v7368_v49, %v1618_v48  ;;  %v7369_v45 = vstv %s5604_s25  ;;  %v1499_v10 = vld [vmem:[%s4536_s3] sm:$0x3]  ;;  %v1625_v26 = vld [vmem:[#allocation2 + $0x60] sm:$0xfc] }
 0x13e   : > { %v2140_v20 = vmul.f32 %v7369_v45, %v2137_v60  ;;  %v1474_v39 = vadd.f32 %v1470_v50, %v1460_v6  ;;  %v1457_v9 = vrot.slane %v1453_v42, 6  ;;  %v2144_v2 = vld [vmem:[#allocation2 + $0x60] sm:$0xfc]  ;;  %v1471_v31 = vrot.slane %v1467_v16, 6  ;;  %v3953_v50 = vld [vmem:[%s4536_s3 + $0x10] sm:$0x3] }
 0x13f   : > { %v1383_v21 = vcombine.low %v1379_v0, %v1380_v54  ;;  %v1494_v11 = vmul.f32 %v3949_v29, %v1493_v3  ;;  %v1501_v47 = vstv %s5860_s8  ;;  %v2664_v14 = vld [vmem:[#allocation2 + $0x60] sm:$0xfc]  ;;  %v1447_v60 = vadd.f32 %v1443_v35, %v1433_v59  ;;  %s5903_s25 = sld [smem:[#allocation8 + $0x67]]  ;;  %v1484_v45 = vld [vmem:[%s4536_s3 + $0x8] sm:$0x6]  ;;  %s6161_s22 = sld [smem:[#allocation8 + $0xa9]] }
 0x140   : > { %v1476_v48 = vmul.f32 0.01, %v1474_v39  ;;  %v1488_v52 = vadd.f32 %v1486_v41, %v1481_v33  ;;  %v1515_v23 = vstv %s5864_s28  ;;  %v2660_v42 = vmul.f32 %v2658_v38, %v2657_v62  ;;  %v3184_v54 = vld [vmem:[#allocation2 + $0x60] sm:$0xfc]  ;;  %s6187_s8 = sld [smem:[#allocation8 + $0xaa]]  ;;  %s6189_s28 = sld [smem:[#allocation8 + $0xab]] }
 0x141   : > { %v3180_v32 = vmul.f32 %v3178_v12, %v3177_v34  ;;  %v7215_v6 = vstv %s5867_s16  ;;  %v1390_v0 = vrot.slane %v1383_v21, %v5206_v15  ;;  %v1628_v16 = vmul.f32 %v1627_v56, %v1625_v26  ;;  %v3950_v21 = vld [vmem:[%s4536_s3 + $0x18] sm:$0x6] }
 0x142   : > { %v2147_v29 = vmul.f32 %v2146_v58, %v2144_v2  ;;  %v5901_v35 = vmax.f32 %v1474_v39, %v1476_v48  ;;  %v1461_v59 = vadd.f32 %v1457_v9, %v1447_v60  ;;  %v2667_v38 = vmul.f32 %v2666_v19, %v2664_v14 }
 0x143   : > { %v1397_v12 = vrot.slane %v1390_v0, %v5206_v15  ;;  %v1502_v41 = vmul.f32 %v1501_v47, %v1499_v10  ;;  %v1516_v49 = vmul.f32 %v3953_v50, %v1515_v23  ;;  %v1623_v62 = vadd.f32 %v1621_v28, %v5759_v1  ;;  %v1500_v10 = vld [vmem:[%s4536_s3 + $0x8] sm:$0x3] }
 0x144   : > { %v2142_v34 = vadd.f32 %v2140_v20, %v5793_v43  ;;  %v1626_v39 = vld [vmem:[#allocation2 + $0x68] sm:$0xfc]  ;;  %1531 = vst [vmem:[#allocation2 + $0x70] sm:$0xf8] %v5901_v35  ;;  %v1475_v26 = vadd.f32 %v1471_v31, %v1461_v59  ;;  %v1496_v2 = vadd.f32 %v1494_v11, %v1488_v52  ;;  %v2662_v14 = vadd.f32 %v2660_v42, %v5796_v44  ;;  %v3954_v20 = vld [vmem:[%s4536_s3 + $0x18] sm:$0x3] }
 0x145   : > { %v2145_v9 = vld [vmem:[#allocation2 + $0x68] sm:$0xfc]  ;;  %v5922_v48 = vadd.f32 %v3180_v32, %v5802_v17  ;;  %v3187_v1 = vmul.f32 %v7215_v6, %v3184_v54  ;;  %v1398_v28 = vcombine.high %v1397_v12, %v1397_v12  ;;  %v5930_v31 = vadd.f32 %v1628_v16, %v5813_v7  ;;  %s5946_s3 = sld [smem:[#allocation8 + $0xa0]]  ;;  %v1683_v7 = vld [vmem:[#allocation2 + $0x30] sm:$0x7e] }
 0x146   : > { %v2665_v43 = vld [vmem:[#allocation2 + $0x68] sm:$0xfc]  ;;  %v1477_v11 = vmul.f32 0.01, %v1475_v26  ;;  %v1506_v60 = vrot.slane %v1502_v41, 7  ;;  %v1520_v52 = vrot.slane %v1516_v49, 7  ;;  %v5935_v44 = vadd.f32 %v2147_v29, %v5816_v40 }
 0x147   : > { %v5938_v17 = vadd.f32 %v2667_v38, %v5819_v55  ;;  %v1629_v50 = vmul.f32 %v1627_v56, %v1626_v39  ;;  %v2148_v42 = vmul.f32 %v2146_v58, %v2145_v9  ;;  %1400 = vst.msk [vmem:[#allocation2 + $0x60] ss:$8 sm:$0x3] %vm5232_vm0, %v1398_v28  ;;  %v2668_v32 = vmul.f32 %v2666_v19, %v2665_v43  ;;  %v1725_v43 = vld [vmem:[#allocation2 + $0x60] sm:$0x7e] }
 0x148   : > { %v5950_v40 = vmax.f32 %v1475_v26, %v1477_v11  ;;  %v1510_v0 = vadd.f32 %v1506_v60, %v1496_v2  ;;  %v1487_v55 = vmul.f32 %v1485_v13, %v1484_v45  ;;  %v1495_v56 = vmul.f32 %v3950_v21, %v1493_v3  ;;  %v1684_v6 = vld [vmem:[#allocation2 + $0x38] sm:$0x7e] }
 0x149   : > { %v1503_v58 = vmul.f32 %v1501_v47, %v1500_v10  ;;  %v1517_v16 = vmul.f32 %v3954_v20, %v1515_v23  ;;  %v1685_v29 = vstv %s5895_s6  ;;  %v5966_v19 = vadd.f32 %v3187_v1, %v5824_v63  ;;  %v1697_v63 = vld [vmem:[#allocation2 + $0x40] sm:$0x7e]  ;;  %v1711_v10 = vld [vmem:[#allocation2 + $0x50] sm:$0x7e]  ;;  %s6203_s6 = sld [smem:[#allocation8 + $0xac]] }
 0x14a   : > { %1532 = vst [vmem:[#allocation2 + $0x78] sm:$0xf8] %v5950_v40  ;;  %v1524_v13 = vadd.f32 %v1520_v52, %v1510_v0  ;;  %v1635_v54 = vstv %s5903_s25  ;;  %v1489_v59 = vadd.f32 %v1487_v55, %v1481_v33  ;;  %v1536_v3 = vrot.slane %v5901_v35, %v4620_v8  ;;  %v1753_v20 = vld [vmem:[#allocation2] sm:$0x3f]  ;;  %v1795_v0 = vld [vmem:[#allocation2 + $0x30] sm:$0x3f] }
 0x14b   : > { %v7223_v47 = vstv %s5908_s26  ;;  %v1507_v23 = vrot.slane %v1503_v58, 7  ;;  %v5979_v38 = vmul.f32 %v1685_v29, %v1683_v7  ;;  %v1521_v49 = vrot.slane %v1517_v16, 7  ;;  %v1781_v7 = vld [vmem:[#allocation2 + $0x20] sm:$0x3f]  ;;  %s6210_s25 = sld [smem:[#allocation8 + $0xad]] }
 0x14c   : > { %v1526_v12 = vmul.f32 0.01, %v1524_v13  ;;  %v1497_v41 = vadd.f32 %v1495_v56, %v1489_v59  ;;  %v1699_v33 = vstv %s5918_s23  ;;  %v5986_v45 = vadd.f32 %v1629_v50, %v1623_v62  ;;  %v1767_v50 = vld [vmem:[#allocation2 + $0x10] sm:$0x3f]  ;;  %s7410_s23 = sld [smem:[#allocation23_spill]] }
 0x14d   : > { %v5988_v39 = vadd.f32 %v2148_v42, %v2142_v34  ;;  %v5990_v9 = vadd.f32 %v2668_v32, %v2662_v14  ;;  %v7225_v26 = vstv %s5910_s1  ;;  %v1713_v1 = vstv %s5927_s10  ;;  %v1823_v59 = vld [vmem:[#allocation2 + $0x50] sm:$0x3f]  ;;  %s6303_s10 = sld [smem:[#allocation8 + $0x93]] }
 0x14e   : > { %v1528_v2 = vmax.f32 %v1524_v13, %v1526_v12  ;;  %v1511_v21 = vadd.f32 %v1507_v23, %v1497_v41  ;;  %v1727_v28 = vstv %s5932_s24  ;;  %v1540_v62 = vrot.slane %v5950_v40, %v4620_v8  ;;  %v1809_v13 = vld [vmem:[#allocation2 + $0x40] sm:$0x3f] }
 0x14f   : > { %v6002_v14 = vmul.f32 %v1699_v33, %v1697_v63  ;;  %v7222_v11 = vstv %s5946_s3  ;;  %v7216_v42 = vstv %s5954_s9  ;;  %v7221_v32 = vstv %s5956_s2  ;;  %v1837_v41 = vld [vmem:[#allocation2 + $0x60] sm:$0x3f] }
 0x150   : > { %v1541_v60 = vsub.f32 %v1536_v3, %v1528_v2  ;;  %v1525_v52 = vadd.f32 %v1521_v49, %v1511_v21  ;;  %v6009_v55 = vmul.f32 %v1713_v1, %v1711_v10  ;;  %v6013_v56 = vmul.f32 %v1727_v28, %v1725_v43 }
 0x151   : > { %v7224_v58 = vstv %s5961_s12  ;;  %v7217_v16 = vstv %s5963_s20  ;;  %v1547_v3 = vrot.slane %v1528_v2, 7  ;;  %v6021_v63 = vmul.f32 %v7222_v11, %v1753_v20 }
 0x152   : > { %1543 = vst [vmem:[#allocation2 + $0x70] sm:$0x6] %v1541_v60  ;;  %v1527_v23 = vmul.f32 0.01, %v1525_v52  ;;  %v7218_v12 = vstv %s5972_s15  ;;  %v6026_v49 = vmul.f32 %v7216_v42, %v1767_v50  ;;  %v6030_v21 = vmul.f32 %v7221_v32, %v1781_v7  ;;  %s3779_s24 = sshll.u32 %s7410_s23, 6 }
 0x153   : > { %v6034_v10 = vmul.f32 %v7217_v16, %v1795_v0  ;;  %v7219_v43 = vstv %s5981_s14  ;;  %v6039_v2 = vmul.f32 %v7218_v12, %v1809_v13  ;;  %v7220_v34 = vstv %s5984_s5  ;;  %v1698_v16 = vld [vmem:[#allocation2 + $0x48] sm:$0x7e] }
 0x154   : > { %v1529_v60 = vmax.f32 %v1525_v52, %v1527_v23  ;;  %v6043_v20 = vmul.f32 %v7219_v43, %v1823_v59  ;;  %v6051_v0 = vmul.f32 %v7220_v34, %v1837_v41  ;;  %v1551_v52 = vsub.f32 %v5901_v35, %v1547_v3  ;;  %v1712_v59 = vld [vmem:[#allocation2 + $0x58] sm:$0x7e]  ;;  %v1754_v43 = vld [vmem:[#allocation2 + $0x8] sm:$0x3f] }
 0x155   : > { %v6062_v7 = vmul.f32 %v1685_v29, %v1684_v6  ;;  %v1726_v35 = vld [vmem:[#allocation2 + $0x68] sm:$0x7e]  ;;  %v1796_v34 = vld [vmem:[#allocation2 + $0x38] sm:$0x3f] }
 0x156   : > { %v1542_v23 = vsub.f32 %v1540_v62, %v1529_v60  ;;  %v1548_v13 = vrot.slane %v1529_v60, 7  ;;  %v1768_v62 = vld [vmem:[#allocation2 + $0x18] sm:$0x3f]  ;;  %v1782_v41 = vld [vmem:[#allocation2 + $0x28] sm:$0x3f]  ;;  %v6086_v11 = vmul.f32 %v1727_v28, %v1726_v35  ;;  %v7371_v35 = vstv %s5954_s9  ;;  %s6322_s9 = sld [smem:[#allocation8 + $0x95]] }
 0x158   : > { %1544 = vst [vmem:[#allocation2 + $0x78] sm:$0x6] %v1542_v23  ;;  %v1552_v3 = vsub.f32 %v5950_v40, %v1548_v13  ;;  %v6074_v40 = vmul.f32 %v1699_v33, %v1698_v16  ;;  %v6078_v13 = vmul.f32 %v1713_v1, %v1712_v59  ;;  %v1810_v23 = vld [vmem:[#allocation2 + $0x48] sm:$0x3f]  ;;  %v7370_v59 = vstv %s5946_s3  ;;  %s6314_s3 = sld [smem:[#allocation8 + $0x94]] }
 0x159   : > { %v1633_v6 = vld [vmem:[#allocation2 + $0x70] sm:$0xfc]  ;;  %v7373_v1 = vstv %s5963_s20  ;;  %s6340_s20 = sld [smem:[#allocation8 + $0xb0]] }
 0x15a   : > { %v2152_v29 = vld [vmem:[#allocation2 + $0x70] sm:$0xfc]  ;;  %v1636_v50 = vmul.f32 %v1635_v54, %v1633_v6  ;;  %v1555_v60 = vcombine.low %v1551_v52, %v1552_v3  ;;  %v6097_v6 = vmul.f32 %v7370_v59, %v1754_v43  ;;  %v6115_v43 = vmul.f32 %v7373_v1, %v1796_v34  ;;  %v1838_v34 = vld [vmem:[#allocation2 + $0x68] sm:$0x3f] }
 0x15b   : > { %v2672_v12 = vld [vmem:[#allocation2 + $0x70] sm:$0xfc]  ;;  %v2155_v42 = vmul.f32 %v7223_v47, %v2152_v29  ;;  %v6104_v29 = vmul.f32 %v7371_v35, %v1768_v62  ;;  %v1824_v47 = vld [vmem:[#allocation2 + $0x58] sm:$0x3f] }
 0x15c   : > { %v1739_v32 = vld [vmem:[#allocation2 + $0x70] sm:$0x7e]  ;;  %v2675_v33 = vmul.f32 %v7225_v26, %v2672_v12  ;;  %v1638_v52 = vadd.f32 %v1636_v50, %v5930_v31  ;;  %v1562_v28 = vrot.slane %v1555_v60, %v5206_v15  ;;  %v7372_v12 = vstv %s5956_s2  ;;  %s6336_s2 = sld [smem:[#allocation8 + $0x96]] }
 0x15d   : > { %v6092_v16 = vmul.f32 %v7224_v58, %v1739_v32  ;;  %v2157_v3 = vadd.f32 %v2155_v42, %v5935_v44  ;;  %v6111_v58 = vmul.f32 %v7372_v12, %v1782_v41  ;;  %v7374_v31 = vstv %s5972_s15  ;;  %v2202_v32 = vld [vmem:[#allocation2 + $0x30] sm:$0x7e]  ;;  %s6349_s15 = sld [smem:[#allocation8 + $0xb1]] }
 0x15e   : > { %v6119_v44 = vmul.f32 %v7374_v31, %v1810_v23  ;;  %v1569_v42 = vrot.slane %v1562_v28, %v5206_v15  ;;  %v7375_v50 = vrot.slane %v4731_v57, 7  ;;  %v6133_v23 = vadd.f32 %v2675_v33, %v5938_v17 }
 0x15f   : > { %v1634_v1 = vld [vmem:[#allocation2 + $0x78] sm:$0xfc]  ;;  %v7377_v33 = vrot.slane %v4743_v53, 7  ;;  %v7378_v28 = vstv %s5908_s26  ;;  %v7379_v57 = vrot.slane %v5006_v18, 7  ;;  %v7381_v18 = vstv %s5910_s1  ;;  %s6212_s26 = sld [smem:[#allocation8 + $0xae]]  ;;  %s6244_s1 = sld [smem:[#allocation8 + $0xaf]] }
 0x160   : > { %v1652_v62 = vadd.f32 %v7375_v50, %v1638_v52  ;;  %v2153_v59 = vld [vmem:[#allocation2 + $0x78] sm:$0xfc]  ;;  %v7376_v52 = vstv %s5981_s14  ;;  %v1637_v12 = vmul.f32 %v1635_v54, %v1634_v1  ;;  %v1570_v50 = vcombine.high %v1569_v42, %v1569_v42  ;;  %v2216_v54 = vld [vmem:[#allocation2 + $0x40] sm:$0x7e]  ;;  %s6351_s14 = sld [smem:[#allocation8 + $0xb2]] }
 0x161   : > { %v6139_v35 = vmul.f32 %v7376_v52, %v1824_v47  ;;  %v2673_v31 = vld [vmem:[#allocation2 + $0x78] sm:$0xfc]  ;;  %v2171_v41 = vadd.f32 %v7377_v33, %v2157_v3  ;;  %v2156_v26 = vmul.f32 %v7378_v28, %v2153_v59  ;;  %v2204_v52 = vstv %s6055_s11  ;;  %s6395_s11 = sld [smem:[#allocation8 + $0xb4]] }
 0x162   : > { %v1740_v60 = vld [vmem:[#allocation2 + $0x78] sm:$0x7e]  ;;  %v1666_v47 = vadd.f32 %v7379_v57, %v1652_v62  ;;  %v2218_v1 = vstv %s6068_s27  ;;  %v1639_v42 = vadd.f32 %v1637_v12, %v5986_v45  ;;  %1572 = vst.msk [vmem:[#allocation2 + $0x70] ss:$8 sm:$0x3] %vm5232_vm0, %v1570_v50  ;;  %v7380_v33 = vstv %s5984_s5  ;;  %s6363_s5 = sld [smem:[#allocation8 + $0xb3]] }
 0x163   : > { %v6159_v59 = vmul.f32 %v7380_v33, %v1838_v34  ;;  %v2676_v62 = vmul.f32 %v7381_v18, %v2673_v31  ;;  %v7382_v28 = vrot.slane %v5298_v24, 7  ;;  %v7383_v45 = vstv %s5961_s12  ;;  %v2230_v31 = vld [vmem:[#allocation2 + $0x50] sm:$0x7e]  ;;  %s6338_s12 = sld [smem:[#allocation8 + $0x97]]  ;;  %s6397_s27 = sld [smem:[#allocation8 + $0xb5]] }
 0x164   : > { %v6169_v12 = vmul.f32 %v7383_v45, %v1740_v60  ;;  %v1817_v50 = vrot.slane %v6119_v44, 6  ;;  %v7384_v53 = vrot.slane %v4847_v5, 7  ;;  %v7385_v3 = vrot.slane %v5021_v36, 7 }
 0x165   : > { %v1680_v57 = vadd.f32 %v7382_v28, %v1666_v47  ;;  %v2205_v33 = vmul.f32 %v2204_v52, %v2202_v32  ;;  %v2219_v37 = vmul.f32 %v2218_v1, %v2216_v54  ;;  %v6181_v24 = vadd.f32 %v2156_v26, %v5988_v39  ;;  %v2244_v28 = vld [vmem:[#allocation2 + $0x60] sm:$0x7e]  ;;  %v2258_v26 = vld [vmem:[#allocation2 + $0x70] sm:$0x7e] }
 0x166   : > { %v1653_v17 = vadd.f32 %v7384_v53, %v1639_v42  ;;  %v2185_v34 = vadd.f32 %v7385_v3, %v2171_v41  ;;  %v7386_v60 = vrot.slane %v5979_v38, 7  ;;  %v2232_v18 = vstv %s6106_s17  ;;  %s6406_s17 = sld [smem:[#allocation8 + $0xb6]] }
 0x167   : > { %v2246_v5 = vstv %s6121_s13  ;;  %v7387_v36 = vrot.slane %v5163_v22, 7  ;;  %v7388_v41 = vrot.slane %v5311_v51, 7  ;;  %v2209_v39 = vrot.slane %v2205_v33, 7  ;;  %v2272_v33 = vld [vmem:[#allocation2] sm:$0x3f]  ;;  %s6408_s13 = sld [smem:[#allocation8 + $0xb7]] }
 0x168   : > { %v1694_v47 = vadd.f32 %v7386_v60, %v1680_v57  ;;  %v2260_v42 = vstv %s6123_s29  ;;  %v6197_v38 = vadd.f32 %v2676_v62, %v5990_v9  ;;  %v7389_v53 = vrot.slane %v6002_v14, 7  ;;  %s6454_s29 = sld [smem:[#allocation8 + $0x9c]] }
 0x169   : > { %v1667_v32 = vadd.f32 %v7387_v36, %v1653_v17  ;;  %v2199_v54 = vadd.f32 %v7388_v41, %v2185_v34  ;;  %v2223_v57 = vrot.slane %v2219_v37, 7  ;;  %v2233_v45 = vmul.f32 %v2232_v18, %v2230_v31  ;;  %v1851_v62 = vld [vmem:[#allocation2 + $0x70] sm:$0x3f]  ;;  %v1852_v60 = vld [vmem:[#allocation2 + $0x78] sm:$0x3f] }
 0x16a   : > { %v1708_v3 = vadd.f32 %v7389_v53, %v1694_v47  ;;  %v7390_v22 = vrot.slane %v5348_v30, 7  ;;  %v2247_v34 = vmul.f32 %v2246_v5, %v2244_v28  ;;  %v2274_v9 = vstv %s6130_s4  ;;  %v2328_v31 = vld [vmem:[#allocation2 + $0x40] sm:$0x3f]  ;;  %s6466_s4 = sld [smem:[#allocation8 + $0x9d]] }
 0x16b   : > { %v2213_v51 = vadd.f32 %v2209_v39, %v2199_v54  ;;  %v7391_v37 = vrot.slane %v6009_v55, 7  ;;  %v1747_v30 = vrot.slane %v6169_v12, 7  ;;  %v2261_v47 = vmul.f32 %v2260_v42, %v2258_v26  ;;  %v2286_v54 = vld [vmem:[#allocation2 + $0x10] sm:$0x3f] }
 0x16c   : > { %v1681_v17 = vadd.f32 %v7390_v22, %v1667_v32  ;;  %v7392_v28 = vrot.slane %v6062_v7, 7  ;;  %v2237_v41 = vrot.slane %v2233_v45, 7  ;;  %v2288_v55 = vstv %s6161_s22  ;;  %v2300_v7 = vld [vmem:[#allocation2 + $0x20] sm:$0x3f]  ;;  %s6468_s22 = sld [smem:[#allocation8 + $0x9e]] }
 0x16d   : > { %v1722_v14 = vadd.f32 %v7391_v37, %v1708_v3  ;;  %v2227_v32 = vadd.f32 %v2223_v57, %v2213_v51  ;;  %v7393_v39 = vrot.slane %v6013_v56, 7  ;;  %v7394_v3 = vstv %s6017_s0  ;;  %v2314_v56 = vld [vmem:[#allocation2 + $0x30] sm:$0x3f]  ;;  %s6367_s0 = scalar_lea.vmem [#allocation9], %s3779_s24  ;;  %s6535_s24 = sld [smem:[#allocation8 + $0xbf]] }
 0x16e   : > { %v1695_v36 = vadd.f32 %v7392_v28, %v1681_v17  ;;  %v6227_v12 = vmul.f32 %v7394_v3, %v1851_v62  ;;  %v2275_v26 = vmul.f32 %v2274_v9, %v2272_v33  ;;  %v7395_v17 = vrot.slane %v6074_v40, 7 }
 0x16f   : > { %v1736_v53 = vadd.f32 %v7393_v39, %v1722_v14  ;;  %v7396_v51 = vmov %v7394_v3  ;;  %v2241_v37 = vadd.f32 %v2237_v41, %v2227_v32  ;;  %v2251_v28 = vrot.slane %v2247_v34, 7 }
 0x170   : > { %v1709_v57 = vadd.f32 %v7395_v17, %v1695_v36  ;;  %v6236_v45 = vmul.f32 %v7396_v51, %v1852_v60  ;;  %v7397_v14 = vrot.slane %v6092_v16, 7  ;;  %v2289_v39 = vmul.f32 %v2288_v55, %v2286_v54 }
 0x171   : > { %v2302_v3 = vstv %s6187_s8  ;;  %v2316_v33 = vstv %s6189_s28  ;;  %v7398_v40 = vrot.slane %v6078_v13, 7  ;;  %v2255_v60 = vadd.f32 %v2251_v28, %v2241_v37  ;;  %s6473_s8 = sld [smem:[#allocation8 + $0x9f]]  ;;  %s6484_s28 = sld [smem:[#allocation8 + $0xb8]] }
 0x172   : > { %v1750_v62 = vadd.f32 %v7397_v14, %v1736_v53  ;;  %v2265_v17 = vrot.slane %v2261_v47, 7  ;;  %v2303_v34 = vmul.f32 %v2302_v3, %v2300_v7  ;;  %v7399_v32 = vrot.slane %v6021_v63, 6 }
 0x173   : > { %v1723_v36 = vadd.f32 %v7398_v40, %v1709_v57  ;;  %v1858_v41 = vrot.slane %v6227_v12, 6  ;;  %v2279_v53 = vrot.slane %v2275_v26, 6  ;;  %v2317_v54 = vmul.f32 %v2316_v33, %v2314_v56  ;;  %v2342_v57 = vld [vmem:[#allocation2 + $0x50] sm:$0x3f]  ;;  %v2356_v26 = vld [vmem:[#allocation2 + $0x60] sm:$0x3f] }
 0x174   : > { %v1764_v16 = vadd.f32 %v7399_v32, %v1750_v62  ;;  %v7400_v51 = vrot.slane %v6086_v11, 7  ;;  %v2269_v22 = vadd.f32 %v2265_v17, %v2255_v60  ;;  %v2330_v13 = vstv %s6203_s6  ;;  %v2203_v56 = vld [vmem:[#allocation2 + $0x38] sm:$0x7e]  ;;  %v2217_v32 = vld [vmem:[#allocation2 + $0x48] sm:$0x7e]  ;;  %s6502_s6 = sld [smem:[#allocation8 + $0xba]] }
 0x175   : > { %v2344_v47 = vstv %s6210_s25  ;;  %v7401_v7 = vrot.slane %v6026_v49, 6  ;;  %v1859_v63 = vrot.slane %v6236_v45, 6  ;;  %v2293_v28 = vrot.slane %v2289_v39, 6  ;;  %s6508_s25 = sld [smem:[#allocation8 + $0xbb]] }
 0x176   : > { %v1737_v14 = vadd.f32 %v7400_v51, %v1723_v36  ;;  %v2358_v62 = vstv %s6212_s26  ;;  %v2283_v11 = vadd.f32 %v2279_v53, %v2269_v22  ;;  %v2307_v36 = vrot.slane %v2303_v34, 6  ;;  %s6515_s26 = sld [smem:[#allocation8 + $0xbc]] }
 0x177   : > { %v1778_v37 = vadd.f32 %v7401_v7, %v1764_v16  ;;  %v7402_v60 = vrot.slane %v4877_v4, 7  ;;  %v7403_v49 = vrot.slane %v6030_v21, 6  ;;  %v2321_v51 = vrot.slane %v2317_v54, 6 }
 0x178   : > { %v1751_v40 = vadd.f32 %v1747_v30, %v1737_v14  ;;  %v2331_v39 = vmul.f32 %v2330_v13, %v2328_v31  ;;  %v2345_v7 = vmul.f32 %v2344_v47, %v2342_v57  ;;  %v2231_v30 = vld [vmem:[#allocation2 + $0x58] sm:$0x7e]  ;;  %v7404_v22 = vrot.slane %v6097_v6, 6 }
 0x179   : > { %v2172_v17 = vadd.f32 %v7402_v60, %v6181_v24  ;;  %v1792_v16 = vadd.f32 %v7403_v49, %v1778_v37  ;;  %v2297_v34 = vadd.f32 %v2293_v28, %v2283_v11  ;;  %v2359_v14 = vmul.f32 %v2358_v62, %v2356_v26  ;;  %v2370_v37 = vld [vmem:[#allocation2 + $0x70] sm:$0x3f]  ;;  %v2259_v11 = vld [vmem:[#allocation2 + $0x78] sm:$0x7e] }
 0x17a   : > { %v1765_v53 = vadd.f32 %v7404_v22, %v1751_v40  ;;  %v7405_v4 = vrot.slane %v5181_v46, 7  ;;  %v7406_v60 = vrot.slane %v6034_v10, 6  ;;  %v2372_v54 = vstv %s6244_s1  ;;  %v2245_v10 = vld [vmem:[#allocation2 + $0x68] sm:$0x7e]  ;;  %s6520_s1 = sld [smem:[#allocation8 + $0xbd]] }
 0x17b   : > { %v2206_v31 = vmul.f32 %v2204_v52, %v2203_v56  ;;  %v2220_v57 = vmul.f32 %v2218_v1, %v2217_v32  ;;  %v7407_v49 = vrot.slane %v6104_v29, 6  ;;  %v2311_v40 = vadd.f32 %v2307_v36, %v2297_v34 }
 0x17c   : > { %v2186_v24 = vadd.f32 %v7405_v4, %v2172_v17  ;;  %v1806_v21 = vadd.f32 %v7406_v60, %v1792_v16  ;;  %v7408_v28 = vrot.slane %v5381_v61, 7  ;;  %v2234_v46 = vmul.f32 %v2232_v18, %v2231_v30  ;;  %v2287_v18 = vld [vmem:[#allocation2 + $0x18] sm:$0x3f] }
 0x17d   : > { %v1779_v6 = vadd.f32 %v7407_v49, %v1765_v53  ;;  %v7409_v17 = vrot.slane %v6039_v2, 6  ;;  %v2335_v52 = vrot.slane %v2331_v39, 6  ;;  %v2349_v56 = vrot.slane %v2345_v7, 6  ;;  %v2273_v53 = vld [vmem:[#allocation2 + $0x8] sm:$0x3f] }
 0x17e   : > { %v2200_v26 = vadd.f32 %v7408_v28, %v2186_v24  ;;  %v2210_v1 = vrot.slane %v2206_v31, 7  ;;  %v7411_v29 = vrot.slane %v6111_v58, 6  ;;  %v2325_v36 = vadd.f32 %v2321_v51, %v2311_v40  ;;  %v2301_v7 = vld [vmem:[#allocation2 + $0x28] sm:$0x3f] }
 0x17f   : > { %v1820_v16 = vadd.f32 %v7409_v17, %v1806_v21  ;;  %v2373_v61 = vmul.f32 %v2372_v54, %v2370_v37  ;;  %v2224_v22 = vrot.slane %v2220_v57, 7  ;;  %v7412_v30 = vrot.slane %v6043_v20, 6  ;;  %v2329_v49 = vld [vmem:[#allocation2 + $0x48] sm:$0x3f] }
 0x180   : > { %v1793_v32 = vadd.f32 %v7411_v29, %v1779_v6  ;;  %v2214_v2 = vadd.f32 %v2210_v1, %v2200_v26  ;;  %v2248_v4 = vmul.f32 %v2246_v5, %v2245_v10  ;;  %v2262_v39 = vmul.f32 %v2260_v42, %v2259_v11  ;;  %v2315_v42 = vld [vmem:[#allocation2 + $0x38] sm:$0x3f] }
 0x181   : > { %v1834_v34 = vadd.f32 %v7412_v30, %v1820_v16  ;;  %v7413_v58 = vrot.slane %v6115_v43, 6  ;;  %v2339_v24 = vadd.f32 %v2335_v52, %v2325_v36  ;;  %v2363_v60 = vrot.slane %v2359_v14, 6  ;;  %v2343_v26 = vld [vmem:[#allocation2 + $0x58] sm:$0x3f] }
 0x182   : > { %v2238_v21 = vrot.slane %v2234_v46, 7  ;;  %v7414_v37 = vrot.slane %v6051_v0, 6  ;;  %v2228_v31 = vadd.f32 %v2224_v22, %v2214_v2  ;;  %v2276_v57 = vmul.f32 %v2274_v9, %v2273_v53  ;;  %v2722_v46 = vld [vmem:[#allocation2 + $0x30] sm:$0x7e] }
 0x183   : > { %v1807_v51 = vadd.f32 %v7413_v58, %v1793_v32  ;;  %v2290_v5 = vmul.f32 %v2288_v55, %v2287_v18  ;;  %v2353_v6 = vadd.f32 %v2349_v56, %v2339_v24  ;;  %v2377_v14 = vrot.slane %v2373_v61, 6  ;;  %v2736_v61 = vld [vmem:[#allocation2 + $0x40] sm:$0x7e]  ;;  %v2750_v22 = vld [vmem:[#allocation2 + $0x50] sm:$0x7e] }
 0x184   : > { %v1848_v20 = vadd.f32 %v7414_v37, %v1834_v34  ;;  %v6320_v40 = vmul.f32 %v2302_v3, %v2301_v7  ;;  %v2242_v9 = vadd.f32 %v2238_v21, %v2228_v31  ;;  %v2252_v55 = vrot.slane %v2248_v4, 7  ;;  %v7419_v21 = vld [vmem:[#allocation54_spill] sm:$0xff] }
 0x185   : > { %v1821_v43 = vadd.f32 %v1817_v50, %v1807_v51  ;;  %v2266_v28 = vrot.slane %v2262_v39, 7  ;;  %v7415_v10 = vrot.slane %v6139_v35, 6  ;;  %v2367_v50 = vadd.f32 %v2363_v60, %v2353_v6  ;;  %v2764_v51 = vld [vmem:[#allocation2 + $0x60] sm:$0x7e]  ;;  %v2371_v60 = vld [vmem:[#allocation2 + $0x78] sm:$0x3f] }
 0x186   : > { %v1862_v0 = vadd.f32 %v1858_v41, %v1848_v20  ;;  %v6330_v11 = vmul.f32 %v2316_v33, %v2315_v42  ;;  %v6334_v3 = vmul.f32 %v2330_v13, %v2329_v49  ;;  %v2256_v41 = vadd.f32 %v2252_v55, %v2242_v9 }
 0x187   : > { %v1835_v44 = vadd.f32 %v7415_v10, %v1821_v43  ;;  %v2280_v17 = vrot.slane %v2276_v57, 6  ;;  %v2294_v16 = vrot.slane %v2290_v5, 6  ;;  %v7416_v35 = vrot.slane %v6159_v59, 6  ;;  %v2792_v57 = vld [vmem:[#allocation2] sm:$0x3f] }
 0x188   : > { %v1864_v12 = vmul.f32 0.01, %v1862_v0  ;;  %v2381_v56 = vadd.f32 %v2377_v14, %v2367_v50  ;;  %v2308_v33 = vrot.slane %v6320_v40, 6  ;;  %v6347_v13 = vmul.f32 %v2344_v47, %v2343_v26  ;;  %v2778_v43 = vld [vmem:[#allocation2 + $0x70] sm:$0x7e] }
 0x189   : > { %v1849_v52 = vadd.f32 %v7416_v35, %v1835_v44  ;;  %v2270_v29 = vadd.f32 %v2266_v28, %v2256_v41  ;;  %v7417_v32 = vrot.slane %v4760_v27, 7  ;;  %v2724_v36 = vstv %s6303_s10  ;;  %v2806_v14 = vld [vmem:[#allocation2 + $0x10] sm:$0x3f]  ;;  %v2820_v40 = vld [vmem:[#allocation2 + $0x20] sm:$0x3f]  ;;  %s6527_s10 = sld [smem:[#allocation8 + $0xbe]] }
 0x18a   : > { %v6353_v1 = vmax.f32 %v1862_v0, %v1864_v12  ;;  %v2383_v53 = vmul.f32 0.01, %v2381_v56  ;;  %v2322_v18 = vrot.slane %v6330_v11, 6  ;;  %v2336_v30 = vrot.slane %v6334_v3, 6  ;;  %v2834_v44 = vld [vmem:[#allocation2 + $0x30] sm:$0x3f] }
 0x18b   : > { %v2691_v59 = vadd.f32 %v7417_v32, %v6133_v23  ;;  %v1863_v47 = vadd.f32 %v1859_v63, %v1849_v52  ;;  %v2284_v27 = vadd.f32 %v2280_v17, %v2270_v29  ;;  %v2357_v23 = vld [vmem:[#allocation2 + $0x68] sm:$0x3f]  ;;  %v7418_v45 = vrot.slane %v5059_v25, 7  ;;  %v3192_v11 = vld [vmem:[#allocation2 + $0x70] sm:$0xfc] }
 0x18c   : > { %2050 = vst [vmem:[%s6367_s0] sm:$0xf8] %v6353_v1  ;;  %v2725_v34 = vmul.f32 %v2724_v36, %v2722_v46  ;;  %v2738_v2 = vstv %s6314_s3  ;;  %v6376_v39 = vmax.f32 %v2381_v56, %v2383_v53  ;;  %v2752_v58 = vstv %s6322_s9  ;;  %v3185_v50 = vld [vmem:[#allocation2 + $0x68] sm:$0xfc]  ;;  %s6567_s3 = sld [smem:[#allocation8 + $0xc7]]  ;;  %s6569_s9 = sld [smem:[#allocation8 + $0xc8]] }
 0x18d   : > { %v2705_v63 = vadd.f32 %v7418_v45, %v2691_v59  ;;  %v1865_v4 = vmul.f32 0.01, %v1863_v47  ;;  %v2739_v7 = vmul.f32 %v2738_v2, %v2736_v61  ;;  %v2298_v24 = vadd.f32 %v2294_v16, %v2284_v27  ;;  %v2723_v27 = vld [vmem:[#allocation2 + $0x38] sm:$0x7e] }
 0x18e   : > { %v7420_v37 = vrot.slane %v7419_v21, 7  ;;  %v2729_v20 = vrot.slane %v2725_v34, 7  ;;  %v2753_v31 = vmul.f32 %v2752_v58, %v2750_v22  ;;  %4039 = vst [vmem:[%s6367_s0 + $0x10] sm:$0xf8] %v6376_v39  ;;  %v2360_v42 = vmul.f32 %v2358_v62, %v2357_v23 }
 0x18f   : > { %v6385_v5 = vmax.f32 %v1863_v47, %v1865_v4  ;;  %v2766_v49 = vstv %s6336_s2  ;;  %v2780_v6 = vstv %s6338_s12  ;;  %v2312_v0 = vadd.f32 %v2308_v33, %v2298_v24  ;;  %s6577_s2 = sld [smem:[#allocation8 + $0xc9]]  ;;  %s6583_s12 = sld [smem:[#allocation8 + $0xca]] }
 0x190   : > { %v2719_v25 = vadd.f32 %v7420_v37, %v2705_v63  ;;  %v2743_v55 = vrot.slane %v2739_v7, 7  ;;  %v2767_v28 = vmul.f32 %v2766_v49, %v2764_v51  ;;  %v2374_v62 = vmul.f32 %v2372_v54, %v2371_v60  ;;  %v7423_v7 = vld [vmem:[#allocation36_spill] sm:$0xff]  ;;  %v2737_v60 = vld [vmem:[#allocation2 + $0x48] sm:$0x7e] }
 0x191   : > { %2051 = vst [vmem:[%s6367_s0 + $0x8] sm:$0xf8] %v6385_v5  ;;  %v2794_v26 = vstv %s6340_s20  ;;  %v2808_v46 = vstv %s6349_s15  ;;  %v2822_v10 = vstv %s6351_s14  ;;  %v2326_v3 = vadd.f32 %v2322_v18, %v2312_v0  ;;  %v7425_v0 = vld [vmem:[#allocation48_spill] sm:$0xff]  ;;  %s6595_s20 = sld [smem:[#allocation8 + $0xcb]]  ;;  %s6599_s15 = sld [smem:[#allocation8 + $0xe5]] }
 0x192   : > { %v2733_v9 = vadd.f32 %v2729_v20, %v2719_v25  ;;  %v2757_v41 = vrot.slane %v2753_v31, 7  ;;  %v2781_v17 = vmul.f32 %v2780_v6, %v2778_v43  ;;  %v2795_v54 = vmul.f32 %v2794_v26, %v2792_v57  ;;  %v2848_v25 = vld [vmem:[#allocation2 + $0x40] sm:$0x3f]  ;;  %v2751_v57 = vld [vmem:[#allocation2 + $0x58] sm:$0x7e]  ;;  %s6611_s14 = sld [smem:[#allocation8 + $0xe6]] }
 0x193   : > { %v2809_v16 = vmul.f32 %v2808_v46, %v2806_v14  ;;  %v2823_v35 = vmul.f32 %v2822_v10, %v2820_v40  ;;  %v2836_v52 = vstv %s6363_s5  ;;  %v2340_v56 = vadd.f32 %v2336_v30, %v2326_v3  ;;  %v2862_v43 = vld [vmem:[#allocation2 + $0x50] sm:$0x3f]  ;;  %v2876_v14 = vld [vmem:[#allocation2 + $0x60] sm:$0x3f]  ;;  %v2765_v3 = vld [vmem:[#allocation2 + $0x68] sm:$0x7e] }
 0x194   : > { %v2747_v12 = vadd.f32 %v2743_v55, %v2733_v9  ;;  %v2350_v33 = vrot.slane %v6347_v13, 6  ;;  %v2771_v32 = vrot.slane %v2767_v28, 7  ;;  %v7421_v59 = vstv %s5867_s16  ;;  %s6452_s16 = sld [smem:[#allocation8 + $0x9b]]  ;;  %s6617_s5 = sld [smem:[#allocation8 + $0xe7]] }
 0x195   : > { %v3188_v61 = vmul.f32 %v7421_v59, %v3185_v50  ;;  %v7422_v22 = vstv %s5995_s18  ;;  %v2364_v53 = vrot.slane %v2360_v42, 6  ;;  %v6426_v18 = vmul.f32 %v2836_v52, %v2834_v44  ;;  %v2890_v44 = vld [vmem:[#allocation2 + $0x70] sm:$0x3f] }
 0x196   : > { %v2761_v29 = vadd.f32 %v2757_v41, %v2747_v12  ;;  %v3195_v47 = vmul.f32 %v7422_v22, %v3192_v11  ;;  %v2354_v23 = vadd.f32 %v2350_v33, %v2340_v56  ;;  %v2378_v45 = vrot.slane %v2374_v62, 6  ;;  %v2793_v12 = vld [vmem:[#allocation2 + $0x8] sm:$0x3f]  ;;  %v2779_v56 = vld [vmem:[#allocation2 + $0x78] sm:$0x7e] }
 0x197   : > { %v2785_v30 = vrot.slane %v2781_v17, 7  ;;  %v2799_v34 = vrot.slane %v2795_v54, 6  ;;  %v2813_v13 = vrot.slane %v2809_v16, 6  ;;  %v2827_v4 = vrot.slane %v2823_v35, 6  ;;  %v7427_v17 = vld [vmem:[#allocation58_spill] sm:$0xff] }
 0x198   : > { %v2775_v63 = vadd.f32 %v2771_v32, %v2761_v29  ;;  %v7424_v51 = vrot.slane %v7423_v7, 7  ;;  %v2368_v21 = vadd.f32 %v2364_v53, %v2354_v23  ;;  %v2850_v20 = vstv %s6395_s11  ;;  %v2807_v33 = vld [vmem:[#allocation2 + $0x18] sm:$0x3f]  ;;  %s6624_s11 = sld [smem:[#allocation8 + $0xe8]] }
 0x199   : > { %v2864_v31 = vstv %s6397_s27  ;;  %v2841_v42 = vrot.slane %v6426_v18, 6  ;;  %v2878_v40 = vstv %s6406_s17  ;;  %v7426_v9 = vrot.slane %v7425_v0, 7  ;;  %v3193_v22 = vld [vmem:[#allocation2 + $0x78] sm:$0xfc]  ;;  %s6630_s27 = sld [smem:[#allocation8 + $0xe9]]  ;;  %s6635_s17 = sld [smem:[#allocation8 + $0xea]] }
 0x19a   : > { %v2692_v24 = vadd.f32 %v7424_v51, %v6197_v38  ;;  %v2789_v37 = vadd.f32 %v2785_v30, %v2775_v63  ;;  %v2726_v38 = vmul.f32 %v2724_v36, %v2723_v27  ;;  %v2382_v28 = vadd.f32 %v2378_v45, %v2368_v21  ;;  %v2821_v21 = vld [vmem:[#allocation2 + $0x28] sm:$0x3f] }
 0x19b   : > { %v2892_v50 = vstv %s6408_s13  ;;  %v2740_v11 = vmul.f32 %v2738_v2, %v2737_v60  ;;  %v2851_v41 = vmul.f32 %v2850_v20, %v2848_v25  ;;  %v7428_v54 = vrot.slane %v7427_v17, 7  ;;  %v7432_v17 = vld [vmem:[#allocation43_spill] sm:$0xff]  ;;  %s6643_s13 = sld [smem:[#allocation8 + $0xeb]] }
 0x19c   : > { %v2706_v55 = vadd.f32 %v7426_v9, %v2692_v24  ;;  %v2803_v62 = vadd.f32 %v2799_v34, %v2789_v37  ;;  %v2730_v35 = vrot.slane %v2726_v38, 7  ;;  %v2754_v36 = vmul.f32 %v2752_v58, %v2751_v57  ;;  %v7430_v38 = vld [vmem:[#allocation30_spill] sm:$0xff] }
 0x19d   : > { %v2384_v29 = vmul.f32 0.01, %v2382_v28  ;;  %v2865_v2 = vmul.f32 %v2864_v31, %v2862_v43  ;;  %v2879_v59 = vmul.f32 %v2878_v40, %v2876_v14  ;;  %v2893_v53 = vmul.f32 %v2892_v50, %v2890_v44 }
 0x19e   : > { %v2720_v16 = vadd.f32 %v7428_v54, %v2706_v55  ;;  %v2817_v32 = vadd.f32 %v2813_v13, %v2803_v62  ;;  %v2744_v58 = vrot.slane %v2740_v11, 7  ;;  %v2768_v27 = vmul.f32 %v2766_v49, %v2765_v3  ;;  %v3242_v49 = vld [vmem:[#allocation2 + $0x30] sm:$0x7e]  ;;  %v2849_v55 = vld [vmem:[#allocation2 + $0x48] sm:$0x3f] }
 0x19f   : > { %v6460_v23 = vmax.f32 %v2382_v28, %v2384_v29  ;;  %v2782_v63 = vmul.f32 %v2780_v6, %v2779_v56  ;;  %v2796_v30 = vmul.f32 %v2794_v26, %v2793_v12  ;;  %v3197_v34 = vadd.f32 %v3195_v47, %v5966_v19  ;;  %v2835_v19 = vld [vmem:[#allocation2 + $0x38] sm:$0x3f] }
 0x1a0   : > { %v2734_v18 = vadd.f32 %v2730_v35, %v2720_v16  ;;  %v2831_v45 = vadd.f32 %v2827_v4, %v2817_v32  ;;  %v2758_v7 = vrot.slane %v2754_v36, 7  ;;  %v2810_v51 = vmul.f32 %v2808_v46, %v2807_v33  ;;  %v3270_v36 = vld [vmem:[#allocation2 + $0x50] sm:$0x7e] }
 0x1a1   : > { %v6476_v24 = vadd.f32 %v3188_v61, %v5922_v48  ;;  %v7429_v4 = vstv %s5995_s18  ;;  %4040 = vst [vmem:[%s6367_s0 + $0x18] sm:$0xf8] %v6460_v23  ;;  %v2855_v60 = vrot.slane %v2851_v41, 6  ;;  %v2869_v47 = vrot.slane %v2865_v2, 6  ;;  %s6490_s18 = sld [smem:[#allocation8 + $0xb9]] }
 0x1a2   : > { %v2748_v13 = vadd.f32 %v2744_v58, %v2734_v18  ;;  %v6480_v6 = vmul.f32 %v7429_v4, %v3193_v22  ;;  %v2845_v26 = vadd.f32 %v2841_v42, %v2831_v45  ;;  %v2883_v37 = vrot.slane %v2879_v59, 6  ;;  %v3256_v42 = vld [vmem:[#allocation2 + $0x40] sm:$0x7e]  ;;  %v2863_v59 = vld [vmem:[#allocation2 + $0x58] sm:$0x3f]  ;;  %v7434_v22 = vld [vmem:[#allocation55_spill] sm:$0xff] }
 0x1a3   : > { %v2772_v25 = vrot.slane %v2768_v27, 7  ;;  %v2897_v61 = vrot.slane %v2893_v53, 6  ;;  %v2786_v57 = vrot.slane %v2782_v63, 7  ;;  %v2800_v43 = vrot.slane %v2796_v30, 6  ;;  %v3298_v27 = vld [vmem:[#allocation2 + $0x70] sm:$0x7e] }
 0x1a4   : > { %v2762_v46 = vadd.f32 %v2758_v7, %v2748_v13  ;;  %v2859_v48 = vadd.f32 %v2855_v60, %v2845_v26  ;;  %v2814_v0 = vrot.slane %v2810_v51, 6  ;;  %v2824_v9 = vmul.f32 %v2822_v10, %v2821_v21  ;;  %v2877_v7 = vld [vmem:[#allocation2 + $0x68] sm:$0x3f]  ;;  %v3312_v4 = vld [vmem:[#allocation2] sm:$0x3f] }
 0x1a5   : > { %v7431_v28 = vrot.slane %v7430_v38, 7  ;;  %v2838_v11 = vmul.f32 %v2836_v52, %v2835_v19  ;;  %v3244_v3 = vstv %s6452_s16  ;;  %v3258_v12 = vstv %s6454_s29  ;;  %v3284_v52 = vld [vmem:[#allocation2 + $0x60] sm:$0x7e]  ;;  %s6678_s16 = sld [smem:[#allocation8 + $0xcf]]  ;;  %s6684_s29 = sld [smem:[#allocation8 + $0xd0]] }
 0x1a6   : > { %v2776_v14 = vadd.f32 %v2772_v25, %v2762_v46  ;;  %v2873_v44 = vadd.f32 %v2869_v47, %v2859_v48  ;;  %v7433_v54 = vrot.slane %v7432_v17, 7  ;;  %v3245_v10 = vmul.f32 %v3244_v3, %v3242_v49  ;;  %v2891_v25 = vld [vmem:[#allocation2 + $0x78] sm:$0x3f]  ;;  %v3340_v38 = vld [vmem:[#allocation2 + $0x20] sm:$0x3f] }
 0x1a7   : > { %v3211_v62 = vadd.f32 %v7431_v28, %v3197_v34  ;;  %v3259_v35 = vmul.f32 %v3258_v12, %v3256_v42  ;;  %v2852_v33 = vmul.f32 %v2850_v20, %v2849_v55  ;;  %v3272_v29 = vstv %s6466_s4  ;;  %v3243_v17 = vld [vmem:[#allocation2 + $0x38] sm:$0x7e]  ;;  %s6686_s4 = sld [smem:[#allocation8 + $0xd1]] }
 0x1a8   : > { %v2790_v41 = vadd.f32 %v2786_v57, %v2776_v14  ;;  %v2887_v56 = vadd.f32 %v2883_v37, %v2873_v44  ;;  %v3286_v32 = vstv %s6468_s22  ;;  %v7435_v53 = vrot.slane %v7434_v22, 7  ;;  %v3326_v37 = vld [vmem:[#allocation2 + $0x10] sm:$0x3f]  ;;  %s6690_s22 = sld [smem:[#allocation8 + $0xd2]] }
 0x1a9   : > { %v3225_v16 = vadd.f32 %v7433_v54, %v3211_v62  ;;  %v3249_v58 = vrot.slane %v3245_v10, 7  ;;  %v3300_v45 = vstv %s6473_s8  ;;  %v2828_v30 = vrot.slane %v2824_v9, 6  ;;  %s6700_s8 = sld [smem:[#allocation8 + $0xd3]] }
 0x1aa   : > { %v2804_v2 = vadd.f32 %v2800_v43, %v2790_v41  ;;  %v2901_v63 = vadd.f32 %v2897_v61, %v2887_v56  ;;  %v3263_v20 = vrot.slane %v3259_v35, 7  ;;  %v3273_v34 = vmul.f32 %v3272_v29, %v3270_v36 }
 0x1ab   : > { %v3239_v18 = vadd.f32 %v7435_v53, %v3225_v16  ;;  %v3287_v49 = vmul.f32 %v3286_v32, %v3284_v52  ;;  %v3314_v26 = vstv %s6484_s28  ;;  %v2842_v21 = vrot.slane %v2838_v11, 6  ;;  %v3354_v11 = vld [vmem:[#allocation2 + $0x30] sm:$0x3f]  ;;  %v3257_v53 = vld [vmem:[#allocation2 + $0x48] sm:$0x7e]  ;;  %s6702_s28 = sld [smem:[#allocation8 + $0xec]] }
 0x1ac   : > { %v2818_v13 = vadd.f32 %v2814_v0, %v2804_v2  ;;  %v2903_v60 = vmul.f32 0.01, %v2901_v63  ;;  %v2866_v19 = vmul.f32 %v2864_v31, %v2863_v59  ;;  %v3301_v47 = vmul.f32 %v3300_v45, %v3298_v27  ;;  %v3382_v59 = vld [vmem:[#allocation2 + $0x50] sm:$0x3f]  ;;  %v7436_v27 = vld [vmem:[#allocation38_spill] sm:$0xff] }
 0x1ad   : > { %v3253_v51 = vadd.f32 %v3249_v58, %v3239_v18  ;;  %v3277_v61 = vrot.slane %v3273_v34, 7  ;;  %v3328_v57 = vstv %s6490_s18  ;;  %v2856_v42 = vrot.slane %v2852_v33, 6  ;;  %v1888_v34 = vld [vmem:[#allocation2 + $0x28] sm:$0x6]  ;;  %s6710_s18 = sld [smem:[#allocation8 + $0xed]] }
 0x1ae   : > { %v2832_v46 = vadd.f32 %v2828_v30, %v2818_v13  ;;  %v6529_v43 = vmax.f32 %v2901_v63, %v2903_v60  ;;  %v2880_v31 = vmul.f32 %v2878_v40, %v2877_v7  ;;  %v3315_v14 = vmul.f32 %v3314_v26, %v3312_v4  ;;  %v3271_v60 = vld [vmem:[#allocation2 + $0x58] sm:$0x7e] }
 0x1af   : > { %v3267_v48 = vadd.f32 %v3263_v20, %v3253_v51  ;;  %v3291_v55 = vrot.slane %v3287_v49, 7  ;;  %v3342_v28 = vstv %s6502_s6  ;;  %v3198_v62 = vadd.f32 %v6480_v6, %v6476_v24  ;;  %v3368_v6 = vld [vmem:[#allocation2 + $0x40] sm:$0x3f]  ;;  %s6720_s6 = sld [smem:[#allocation8 + $0xee]] }
 0x1b0   : > { %v2846_v0 = vadd.f32 %v2842_v21, %v2832_v46  ;;  %4086 = vst [vmem:[%s6367_s0 + $0x20] sm:$0xf8] %v6529_v43  ;;  %v2894_v44 = vmul.f32 %v2892_v50, %v2891_v25  ;;  %v3329_v40 = vmul.f32 %v3328_v57, %v3326_v37  ;;  %v3356_v41 = vstv %s6508_s25  ;;  %v3396_v49 = vld [vmem:[#allocation2 + $0x60] sm:$0x3f]  ;;  %v7438_v37 = vld [vmem:[#allocation49_spill] sm:$0xff]  ;;  %s6733_s25 = sld [smem:[#allocation8 + $0xef]] }
 0x1b1   : > { %v3281_v9 = vadd.f32 %v3277_v61, %v3267_v48  ;;  %v2870_v16 = vrot.slane %v2866_v19, 6  ;;  %v3305_v35 = vrot.slane %v3301_v47, 7  ;;  %v2884_v36 = vrot.slane %v2880_v31, 6  ;;  %v3410_v19 = vld [vmem:[#allocation2 + $0x70] sm:$0x3f] }
 0x1b2   : > { %v2860_v54 = vadd.f32 %v2856_v42, %v2846_v0  ;;  %v3319_v56 = vrot.slane %v3315_v14, 6  ;;  %v3343_v24 = vmul.f32 %v3342_v28, %v3340_v38  ;;  %v3370_v33 = vstv %s6515_s26  ;;  %v3313_v0 = vld [vmem:[#allocation2 + $0x8] sm:$0x3f]  ;;  %s6735_s26 = sld [smem:[#allocation8 + $0xf0]] }
 0x1b3   : > { %v3295_v10 = vadd.f32 %v3291_v55, %v3281_v9  ;;  %v3357_v2 = vmul.f32 %v3356_v41, %v3354_v11  ;;  %v3384_v22 = vstv %s6520_s1  ;;  %v2898_v18 = vrot.slane %v2894_v44, 6  ;;  %v7440_v55 = vld [vmem:[#allocation59_spill] sm:$0xff]  ;;  %s6748_s1 = sld [smem:[#allocation8 + $0xf1]] }
 0x1b4   : > { %v2874_v50 = vadd.f32 %v2870_v16, %v2860_v54  ;;  %v3333_v58 = vrot.slane %v3329_v40, 6  ;;  %v7437_v63 = vrot.slane %v7436_v27, 7  ;;  %v3246_v20 = vmul.f32 %v3244_v3, %v3243_v17  ;;  %v3285_v3 = vld [vmem:[#allocation2 + $0x68] sm:$0x7e]  ;;  %v3299_v40 = vld [vmem:[#allocation2 + $0x78] sm:$0x7e] }
 0x1b5   : > { %v3309_v52 = vadd.f32 %v3305_v35, %v3295_v10  ;;  %v3371_v51 = vmul.f32 %v3370_v33, %v3368_v6  ;;  %v3398_v4 = vstv %s6527_s10  ;;  %v3385_v21 = vmul.f32 %v3384_v22, %v3382_v59  ;;  %v3341_v59 = vld [vmem:[#allocation2 + $0x28] sm:$0x3f]  ;;  %v1895_v27 = vld [vmem:[#allocation2 + $0x30] sm:$0x6]  ;;  %s6754_s10 = sld [smem:[#allocation8 + $0xf2]] }
 0x1b6   : > { %v3212_v30 = vadd.f32 %v7437_v63, %v3198_v62  ;;  %v2888_v13 = vadd.f32 %v2884_v36, %v2874_v50  ;;  %v3412_v47 = vstv %s6535_s24  ;;  %v7439_v46 = vrot.slane %v7438_v37, 7  ;;  %s6763_s24 = sld [smem:[#allocation8 + $0xf3]] }
 0x1b7   : > { %v3323_v7 = vadd.f32 %v3319_v56, %v3309_v52  ;;  %v3260_v48 = vmul.f32 %v3258_v12, %v3257_v53  ;;  %v3347_v31 = vrot.slane %v3343_v24, 6  ;;  %v3361_v14 = vrot.slane %v3357_v2, 6 }
 0x1b8   : > { %v3226_v25 = vadd.f32 %v7439_v46, %v3212_v30  ;;  %v2902_v61 = vadd.f32 %v2898_v18, %v2888_v13  ;;  %v3399_v9 = vmul.f32 %v3398_v4, %v3396_v49  ;;  %v7441_v38 = vrot.slane %v7440_v55, 7  ;;  %v7443_v30 = vld [vmem:[#allocation31_spill] sm:$0xff]  ;;  %v3355_v49 = vld [vmem:[#allocation2 + $0x38] sm:$0x3f] }
 0x1b9   : > { %v3337_v42 = vadd.f32 %v3333_v58, %v3323_v7  ;;  %v3250_v44 = vrot.slane %v3246_v20, 7  ;;  %v3274_v12 = vmul.f32 %v3272_v29, %v3271_v60  ;;  %v3413_v54 = vmul.f32 %v3412_v47, %v3410_v19  ;;  %v3327_v29 = vld [vmem:[#allocation2 + $0x18] sm:$0x3f] }
 0x1ba   : > { %v3240_v62 = vadd.f32 %v7441_v38, %v3226_v25  ;;  %v2904_v11 = vmul.f32 0.01, %v2902_v61  ;;  %v3288_v16 = vmul.f32 %v3286_v32, %v3285_v3  ;;  %v7442_v10 = vstv %s7322_s30  ;;  %s6597_s30 = sld [smem:[#allocation8 + $0xe4]]  ;;  %v7444_v20 = vld [vmem:[#allocation41_spill] sm:$0xff]  ;;  %v1911_v3 = vld [vmem:[#allocation2 + $0x50] sm:$0x6] }
 0x1bb   : > { %v3351_v17 = vadd.f32 %v3347_v31, %v3337_v42  ;;  %v6587_v35 = vmul.f32 %v7442_v10, %v1888_v34  ;;  %v3375_v36 = vrot.slane %v3371_v51, 6  ;;  %v3264_v24 = vrot.slane %v3260_v48, 7  ;;  %v7445_v25 = vld [vmem:[#allocation53_spill] sm:$0xff]  ;;  %v3369_v42 = vld [vmem:[#allocation2 + $0x48] sm:$0x3f] }
 0x1bc   : > { %v3254_v56 = vadd.f32 %v3250_v44, %v3240_v62  ;;  %v6589_v6 = vmax.f32 %v2902_v61, %v2904_v11  ;;  %v3302_v52 = vmul.f32 %v3300_v45, %v3299_v40  ;;  %v3316_v2 = vmul.f32 %v3314_v26, %v3313_v0  ;;  %v1919_v38 = vld [vmem:[#allocation2 + $0x60] sm:$0x6]  ;;  %v3397_v40 = vld [vmem:[#allocation2 + $0x68] sm:$0x3f]  ;;  %v1927_v10 = vld [vmem:[#allocation2 + $0x70] sm:$0x6] }
 0x1bd   : > { %v3365_v50 = vadd.f32 %v3361_v14, %v3351_v17  ;;  %v3389_v32 = vrot.slane %v3385_v21, 6  ;;  %v3403_v53 = vrot.slane %v3399_v9, 6  ;;  %v3278_v58 = vrot.slane %v3274_v12, 7  ;;  %v1903_v21 = vld [vmem:[#allocation2 + $0x40] sm:$0x6] }
 0x1be   : > { %v3268_v18 = vadd.f32 %v3264_v24, %v3254_v56  ;;  %4087 = vst [vmem:[%s6367_s0 + $0x28] sm:$0xf8] %v6589_v6  ;;  %v3417_v63 = vrot.slane %v3413_v54, 6  ;;  %v3292_v26 = vrot.slane %v3288_v16, 7  ;;  %v1884_v34 = vadd.f32 %v7444_v20, %v7443_v30  ;;  %v3383_v9 = vld [vmem:[#allocation2 + $0x58] sm:$0x3f] }
 0x1bf   : > { %v3379_v45 = vadd.f32 %v3375_v36, %v3365_v50  ;;  %v3330_v7 = vmul.f32 %v3328_v57, %v3327_v29  ;;  %v3344_v51 = vmul.f32 %v3342_v28, %v3341_v59  ;;  %v1897_v60 = vstv %s6567_s3  ;;  %v1935_v54 = vld [vmem:[#allocation2] sm:$0x3]  ;;  %s6813_s3 = sld [smem:[#allocation8 + $0xda]] }
 0x1c0   : > { %v3282_v13 = vadd.f32 %v3278_v58, %v3268_v18  ;;  %v3306_v37 = vrot.slane %v3302_v52, 7  ;;  %v3320_v46 = vrot.slane %v3316_v2, 6  ;;  %v1892_v48 = vadd.f32 %v7445_v25, %v1884_v34  ;;  %v1949_v52 = vld [vmem:[#allocation2 + $0x10] sm:$0x3]  ;;  %v3411_v58 = vld [vmem:[#allocation2 + $0x78] sm:$0x3f] }
 0x1c1   : > { %v3393_v19 = vadd.f32 %v3389_v32, %v3379_v45  ;;  %v1898_v57 = vmul.f32 %v1897_v60, %v1895_v27  ;;  %v1905_v28 = vstv %s6569_s9  ;;  %v1913_v31 = vstv %s6577_s2  ;;  %s6822_s9 = sld [smem:[#allocation8 + $0xdb]]  ;;  %s6824_s2 = sld [smem:[#allocation8 + $0xf4]] }
 0x1c2   : > { %v3296_v61 = vadd.f32 %v3292_v26, %v3282_v13  ;;  %v3358_v0 = vmul.f32 %v3356_v41, %v3355_v49  ;;  %v1906_v55 = vmul.f32 %v1905_v28, %v1903_v21  ;;  %v1921_v62 = vstv %s6583_s12  ;;  %v1896_v21 = vld [vmem:[#allocation2 + $0x38] sm:$0x6]  ;;  %s6834_s12 = sld [smem:[#allocation8 + $0xf5]] }
 0x1c3   : > { %v3407_v14 = vadd.f32 %v3403_v53, %v3393_v19  ;;  %v3334_v12 = vrot.slane %v3330_v7, 6  ;;  %v1900_v11 = vadd.f32 %v1898_v57, %v1892_v48  ;;  %v1914_v17 = vmul.f32 %v1913_v31, %v1911_v3  ;;  %v1904_v57 = vld [vmem:[#allocation2 + $0x48] sm:$0x6] }
 0x1c4   : > { %v3310_v44 = vadd.f32 %v3306_v37, %v3296_v61  ;;  %v3348_v16 = vrot.slane %v3344_v51, 6  ;;  %v1929_v36 = vstv %s6595_s20  ;;  %v1937_v56 = vstv %s6597_s30  ;;  %v1977_v51 = vld [vmem:[#allocation2 + $0x30] sm:$0x3]  ;;  %s6843_s20 = sld [smem:[#allocation8 + $0xf6]]  ;;  %s6853_s30 = sld [smem:[#allocation8 + $0xf7]] }
 0x1c5   : > { %v3421_v41 = vadd.f32 %v3417_v63, %v3407_v14  ;;  %v1908_v29 = vadd.f32 %v1906_v55, %v1900_v11  ;;  %v1922_v50 = vmul.f32 %v1921_v62, %v1919_v38  ;;  %v1951_v2 = vstv %s6599_s15  ;;  %v7446_v38 = vld [vmem:[#allocation35_spill] sm:$0xff]  ;;  %s6861_s15 = sld [smem:[#allocation8 + $0xf8]] }
 0x1c6   : > { %v3324_v24 = vadd.f32 %v3320_v46, %v3310_v44  ;;  %v3372_v32 = vmul.f32 %v3370_v33, %v3369_v42  ;;  %v3386_v53 = vmul.f32 %v3384_v22, %v3383_v9  ;;  %v3400_v18 = vmul.f32 %v3398_v4, %v3397_v40  ;;  %v1963_v22 = vld [vmem:[#allocation2 + $0x20] sm:$0x3]  ;;  %v2005_v9 = vld [vmem:[#allocation2 + $0x50] sm:$0x3] }
 0x1c7   : > { %v3423_v59 = vmul.f32 0.01, %v3421_v41  ;;  %v1916_v45 = vadd.f32 %v1914_v17, %v1908_v29  ;;  %v1930_v63 = vmul.f32 %v1929_v36, %v1927_v10  ;;  %v1938_v26 = vmul.f32 %v1937_v56, %v1935_v54  ;;  %v1991_v42 = vld [vmem:[#allocation2 + $0x40] sm:$0x3]  ;;  %v2033_v29 = vld [vmem:[#allocation2 + $0x70] sm:$0x3] }
 0x1c8   : > { %v3338_v27 = vadd.f32 %v3334_v12, %v3324_v24  ;;  %v3362_v20 = vrot.slane %v3358_v0, 6  ;;  %v1952_v33 = vmul.f32 %v1951_v2, %v1949_v52  ;;  %v1965_v4 = vstv %s6611_s14  ;;  %v7447_v44 = vld [vmem:[#allocation46_spill] sm:$0xff]  ;;  %s6863_s14 = sld [smem:[#allocation8 + $0xf9]] }
 0x1c9   : > { %v6649_v30 = vmax.f32 %v3421_v41, %v3423_v59  ;;  %v3414_v13 = vmul.f32 %v3412_v47, %v3411_v58  ;;  %v1924_v7 = vadd.f32 %v1922_v50, %v1916_v45  ;;  %v1979_v49 = vstv %s6617_s5  ;;  %v2019_v17 = vld [vmem:[#allocation2 + $0x60] sm:$0x3]  ;;  %s6872_s5 = sld [smem:[#allocation8 + $0xfa]] }
 0x1ca   : > { %v3352_v34 = vadd.f32 %v3348_v16, %v3338_v27  ;;  %v3376_v19 = vrot.slane %v3372_v32, 6  ;;  %v3390_v37 = vrot.slane %v3386_v53, 6  ;;  %v3404_v46 = vrot.slane %v3400_v18, 6  ;;  %v1912_v16 = vld [vmem:[#allocation2 + $0x58] sm:$0x6] }
 0x1cb   : > { %4133 = vst [vmem:[%s6367_s0 + $0x30] sm:$0xf8] %v6649_v30  ;;  %v1993_v25 = vstv %s6624_s11  ;;  %v1932_v3 = vadd.f32 %v1930_v63, %v1924_v7  ;;  %v1942_v61 = vrot.slane %v1938_v26, 7  ;;  %v1966_v47 = vmul.f32 %v1965_v4, %v1963_v22  ;;  %v3446_v10 = vld [vmem:[#allocation2 + $0x20] sm:$0x6]  ;;  %s6883_s11 = sld [smem:[#allocation8 + $0xfb]] }
 0x1cc   : > { %v3366_v48 = vadd.f32 %v3362_v20, %v3352_v34  ;;  %v1956_v14 = vrot.slane %v1952_v33, 7  ;;  %v1980_v0 = vmul.f32 %v1979_v49, %v1977_v51  ;;  %v2007_v55 = vstv %s6630_s27  ;;  %v1920_v32 = vld [vmem:[#allocation2 + $0x68] sm:$0x6]  ;;  %v1928_v34 = vld [vmem:[#allocation2 + $0x78] sm:$0x6]  ;;  %s6919_s27 = sld [smem:[#allocation8 + $0xdf]] }
 0x1cd   : > { %v1885_v12 = vadd.f32 %v7447_v44, %v7446_v38  ;;  %v1946_v11 = vadd.f32 %v1942_v61, %v1932_v3  ;;  %v2021_v54 = vstv %s6635_s17  ;;  %v1899_v41 = vmul.f32 %v1897_v60, %v1896_v21  ;;  %v1936_v27 = vld [vmem:[#allocation2 + $0x8] sm:$0x3]  ;;  %v7449_v38 = vld [vmem:[#allocation32_spill] sm:$0xff]  ;;  %v7450_v44 = vld [vmem:[#allocation42_spill] sm:$0xff]  ;;  %s6924_s17 = sld [smem:[#allocation8 + $0xe0]] }
 0x1ce   : > { %v3380_v40 = vadd.f32 %v3376_v19, %v3366_v48  ;;  %v1994_v24 = vmul.f32 %v1993_v25, %v1991_v42  ;;  %v2035_v50 = vstv %s6643_s13  ;;  %v1907_v59 = vmul.f32 %v1905_v28, %v1904_v57  ;;  %v1950_v19 = vld [vmem:[#allocation2 + $0x18] sm:$0x3]  ;;  %s6926_s13 = sld [smem:[#allocation8 + $0xe1]] }
 0x1cf   : > { %v1893_v52 = vadd.f32 %v6587_v35, %v1885_v12  ;;  %v1960_v18 = vadd.f32 %v1956_v14, %v1946_v11  ;;  %v1970_v58 = vrot.slane %v1966_v47, 7  ;;  %v2008_v60 = vmul.f32 %v2007_v55, %v2005_v9  ;;  %v2414_v47 = vld [vmem:[#allocation2 + $0x30] sm:$0x6] }
 0x1d0   : > { %v3394_v53 = vadd.f32 %v3390_v37, %v3380_v40  ;;  %v3418_v45 = vrot.slane %v3414_v13, 6  ;;  %v2022_v63 = vmul.f32 %v2021_v54, %v2019_v17  ;;  %v1915_v35 = vmul.f32 %v1913_v31, %v1912_v16  ;;  %v1964_v37 = vld [vmem:[#allocation2 + $0x28] sm:$0x3]  ;;  %v2422_v16 = vld [vmem:[#allocation2 + $0x40] sm:$0x6] }
 0x1d1   : > { %v1901_v26 = vadd.f32 %v1899_v41, %v1893_v52  ;;  %v1974_v20 = vadd.f32 %v1970_v58, %v1960_v18  ;;  %v1984_v33 = vrot.slane %v1980_v0, 7  ;;  %v2036_v22 = vmul.f32 %v2035_v50, %v2033_v29  ;;  %v7451_v29 = vld [vmem:[#allocation56_spill] sm:$0xff]  ;;  %v1992_v18 = vld [vmem:[#allocation2 + $0x48] sm:$0x3] }
 0x1d2   : > { %v3408_v28 = vadd.f32 %v3404_v46, %v3394_v53  ;;  %v7448_v7 = vstv %s5098_s21  ;;  %v1923_v21 = vmul.f32 %v1921_v62, %v1920_v32  ;;  %v1939_v31 = vmul.f32 %v1937_v56, %v1936_v27  ;;  %v2430_v32 = vld [vmem:[#allocation2 + $0x50] sm:$0x6] }
 0x1d3   : > { %v6694_v51 = vmul.f32 %v7448_v7, %v3446_v10  ;;  %v1909_v13 = vadd.f32 %v1907_v59, %v1901_v26  ;;  %v1988_v46 = vadd.f32 %v1984_v33, %v1974_v20  ;;  %v1998_v3 = vrot.slane %v1994_v24, 7  ;;  %v2006_v20 = vld [vmem:[#allocation2 + $0x58] sm:$0x3]  ;;  %v2020_v7 = vld [vmem:[#allocation2 + $0x68] sm:$0x3] }
 0x1d4   : > { %v3422_v48 = vadd.f32 %v3418_v45, %v3408_v28  ;;  %v2012_v61 = vrot.slane %v2008_v60, 7  ;;  %v2026_v42 = vrot.slane %v2022_v63, 7  ;;  %v2055_v57 = vrot.slane %v6353_v1, %v4620_v8  ;;  %v2438_v63 = vld [vmem:[#allocation2 + $0x60] sm:$0x6] }
 0x1d5   : > { %v1917_v62 = vadd.f32 %v1915_v35, %v1909_v13  ;;  %v1931_v56 = vmul.f32 %v1929_v36, %v1928_v34  ;;  %v2002_v0 = vadd.f32 %v1998_v3, %v1988_v46  ;;  %v2040_v9 = vrot.slane %v2036_v22, 7  ;;  %v1978_v36 = vld [vmem:[#allocation2 + $0x38] sm:$0x3]  ;;  %v2446_v13 = vld [vmem:[#allocation2 + $0x70] sm:$0x6] }
 0x1d6   : > { %v3424_v14 = vmul.f32 0.01, %v3422_v48  ;;  %v2403_v12 = vadd.f32 %v7450_v44, %v7449_v38  ;;  %v1943_v11 = vrot.slane %v1939_v31, 7  ;;  %v1953_v17 = vmul.f32 %v1951_v2, %v1950_v19  ;;  %v2454_v31 = vld [vmem:[#allocation2] sm:$0x3] }
 0x1d7   : > { %v1925_v40 = vadd.f32 %v1923_v21, %v1917_v62  ;;  %v1967_v41 = vmul.f32 %v1965_v4, %v1964_v37  ;;  %v2016_v24 = vadd.f32 %v2012_v61, %v2002_v0  ;;  %v2416_v59 = vstv %s6678_s16  ;;  %v2034_v46 = vld [vmem:[#allocation2 + $0x78] sm:$0x3]  ;;  %s6937_s16 = sld [smem:[#allocation8 + $0xe2]] }
 0x1d8   : > { %v6716_v10 = vmax.f32 %v3422_v48, %v3424_v14  ;;  %v2411_v52 = vadd.f32 %v7451_v29, %v2403_v12  ;;  %v2417_v2 = vmul.f32 %v2416_v59, %v2414_v47  ;;  %v2424_v4 = vstv %s6684_s29  ;;  %v2468_v47 = vld [vmem:[#allocation2 + $0x10] sm:$0x3]  ;;  %s6945_s29 = sld [smem:[#allocation8 + $0xe3]] }
 0x1d9   : > { %v1933_v53 = vadd.f32 %v1931_v56, %v1925_v40  ;;  %v2432_v58 = vstv %s6686_s4  ;;  %v2030_v60 = vadd.f32 %v2026_v42, %v2016_v24  ;;  %v1981_v27 = vmul.f32 %v1979_v49, %v1978_v36  ;;  %v2482_v40 = vld [vmem:[#allocation2 + $0x20] sm:$0x3]  ;;  %s6947_s4 = sld [smem:[#allocation8 + $0xfc]] }
 0x1da   : > { %4134 = vst [vmem:[%s6367_s0 + $0x38] sm:$0xf8] %v6716_v10  ;;  %v2425_v45 = vmul.f32 %v2424_v4, %v2422_v16  ;;  %v2440_v26 = vstv %s6690_s22  ;;  %v1957_v28 = vrot.slane %v1953_v17, 7  ;;  %v2419_v33 = vadd.f32 %v2417_v2, %v2411_v52  ;;  %v2407_v17 = vld [vmem:[#allocation2 + $0x28] sm:$0x6]  ;;  %s6955_s22 = sld [smem:[#allocation8 + $0xfd]] }
 0x1db   : > { %v1947_v35 = vadd.f32 %v1943_v11, %v1933_v53  ;;  %v2433_v22 = vmul.f32 %v2432_v58, %v2430_v32  ;;  %v2044_v34 = vadd.f32 %v2040_v9, %v2030_v60  ;;  %v1995_v49 = vmul.f32 %v1993_v25, %v1992_v18  ;;  %v2496_v52 = vld [vmem:[#allocation2 + $0x30] sm:$0x3]  ;;  %v2415_v18 = vld [vmem:[#allocation2 + $0x38] sm:$0x6] }
 0x1dc   : > { %v2448_v21 = vstv %s6700_s8  ;;  %v2456_v19 = vstv %s6702_s28  ;;  %v1971_v48 = vrot.slane %v1967_v41, 7  ;;  %v2427_v3 = vadd.f32 %v2425_v45, %v2419_v33  ;;  %v2927_v41 = vld [vmem:[#allocation2 + $0x28] sm:$0x6]  ;;  %s6961_s8 = sld [smem:[#allocation8 + $0xfe]]  ;;  %s6978_s28 = sld [smem:[#allocation8 + $0xff]] }
 0x1dd   : > { %v1961_v37 = vadd.f32 %v1957_v28, %v1947_v35  ;;  %v2441_v61 = vmul.f32 %v2440_v26, %v2438_v63  ;;  %v2046_v42 = vmul.f32 0.01, %v2044_v34  ;;  %v1985_v62 = vrot.slane %v1981_v27, 7  ;;  %v2510_v63 = vld [vmem:[#allocation2 + $0x40] sm:$0x3] }
 0x1de   : > { %v2009_v25 = vmul.f32 %v2007_v55, %v2006_v20  ;;  %v2470_v56 = vstv %s6710_s18  ;;  %v2435_v0 = vadd.f32 %v2433_v22, %v2427_v3  ;;  %v2449_v9 = vmul.f32 %v2448_v21, %v2446_v13  ;;  %s6984_s18 = sld [smem:[#allocation8 + $0x100]] }
 0x1df   : > { %v1975_v14 = vadd.f32 %v1971_v48, %v1961_v37  ;;  %v2457_v38 = vmul.f32 %v2456_v19, %v2454_v31  ;;  %v6756_v44 = vmax.f32 %v2044_v34, %v2046_v42  ;;  %v2023_v12 = vmul.f32 %v2021_v54, %v2020_v7  ;;  %v3447_v34 = vld [vmem:[#allocation2 + $0x28] sm:$0x6] }
 0x1e0   : > { %v2037_v55 = vmul.f32 %v2035_v50, %v2034_v46  ;;  %v2484_v11 = vstv %s6720_s6  ;;  %v1999_v16 = vrot.slane %v1995_v49, 7  ;;  %v2443_v24 = vadd.f32 %v2441_v61, %v2435_v0  ;;  %v2423_v37 = vld [vmem:[#allocation2 + $0x48] sm:$0x6]  ;;  %v2524_v46 = vld [vmem:[#allocation2 + $0x50] sm:$0x3]  ;;  %v7454_v61 = vld [vmem:[#allocation37_spill] sm:$0xff] }
 0x1e1   : > { %v1989_v36 = vadd.f32 %v1985_v62, %v1975_v14  ;;  %v2471_v29 = vmul.f32 %v2470_v56, %v2468_v47  ;;  %v2060_v54 = vsub.f32 %v2055_v57, %v6756_v44  ;;  %v2013_v50 = vrot.slane %v2009_v25, 7  ;;  %v7455_v47 = vld [vmem:[#allocation47_spill] sm:$0xff]  ;;  %s6996_s6 = sld [smem:[#allocation8 + $0x101]] }
 0x1e2   : > { %v2498_v32 = vstv %s6733_s25  ;;  %v2512_v53 = vstv %s6735_s26  ;;  %v2451_v60 = vadd.f32 %v2449_v9, %v2443_v24  ;;  %v2461_v27 = vrot.slane %v2457_v38, 7  ;;  %v2538_v9 = vld [vmem:[#allocation2 + $0x60] sm:$0x3]  ;;  %v2439_v24 = vld [vmem:[#allocation2 + $0x68] sm:$0x6]  ;;  %s7002_s25 = sld [smem:[#allocation8 + $0x102]] }
 0x1e3   : > { %v2003_v2 = vadd.f32 %v1999_v16, %v1989_v36  ;;  %v2485_v45 = vmul.f32 %v2484_v11, %v2482_v40  ;;  %v7452_v35 = vstv %s5053_s19  ;;  %v7453_v20 = vstv %s5067_s7  ;;  %2062 = vst [vmem:[%s6367_s0] sm:$0x6] %v2060_v54  ;;  %s6799_s19 = sld [smem:[#allocation8 + $0xd7]]  ;;  %s6803_s7 = sld [smem:[#allocation8 + $0xd8]] }
 0x1e4   : > { %v2410_v28 = vmul.f32 %v7452_v35, %v2407_v17  ;;  %v6779_v33 = vmul.f32 %v7453_v20, %v2927_v41  ;;  %v2027_v57 = vrot.slane %v2023_v12, 7  ;;  %v2041_v22 = vrot.slane %v2037_v55, 7  ;;  %v2431_v12 = vld [vmem:[#allocation2 + $0x58] sm:$0x6]  ;;  %v2552_v17 = vld [vmem:[#allocation2 + $0x70] sm:$0x3] }
 0x1e5   : > { %v2017_v49 = vadd.f32 %v2013_v50, %v2003_v2  ;;  %v2465_v7 = vadd.f32 %v2461_v27, %v2451_v60  ;;  %v2475_v13 = vrot.slane %v2471_v29, 7  ;;  %v2499_v31 = vmul.f32 %v2498_v32, %v2496_v52  ;;  %v2447_v52 = vld [vmem:[#allocation2 + $0x78] sm:$0x6]  ;;  %v2455_v27 = vld [vmem:[#allocation2 + $0x8] sm:$0x3]  ;;  %s7022_s26 = sld [smem:[#allocation8 + $0x103]] }
 0x1e6   : > { %v2513_v48 = vmul.f32 %v2512_v53, %v2510_v63  ;;  %v2526_v3 = vstv %s6748_s1  ;;  %v2404_v42 = vadd.f32 %v7455_v47, %v7454_v61  ;;  %v2418_v62 = vmul.f32 %v2416_v59, %v2415_v18  ;;  %v2469_v20 = vld [vmem:[#allocation2 + $0x18] sm:$0x3]  ;;  %s7467_s1 = sld [smem:[#allocation16_spill]] }
 0x1e7   : > { %v2031_v25 = vadd.f32 %v2027_v57, %v2017_v49  ;;  %v2479_v14 = vadd.f32 %v2475_v13, %v2465_v7  ;;  %v2489_v0 = vrot.slane %v2485_v45, 7  ;;  %v2540_v38 = vstv %s6754_s10  ;;  %v7457_v47 = vld [vmem:[#allocation33_spill] sm:$0xff]  ;;  %s7468_s10 = sld [smem:[#allocation19_spill]] }
 0x1e8   : > { %v7456_v55 = vstv %s5098_s21  ;;  %v2554_v41 = vstv %s6763_s24  ;;  %v2412_v36 = vadd.f32 %v2410_v28, %v2404_v42  ;;  %v2426_v16 = vmul.f32 %v2424_v4, %v2423_v37  ;;  %s6811_s21 = sld [smem:[#allocation8 + $0xd9]]  ;;  %v2483_v37 = vld [vmem:[#allocation2 + $0x28] sm:$0x3]  ;;  %v7458_v42 = vld [vmem:[#allocation44_spill] sm:$0xff] }
 0x1e9   : > { %v6794_v40 = vmul.f32 %v7456_v55, %v3447_v34  ;;  %v2045_v59 = vadd.f32 %v2041_v22, %v2031_v25  ;;  %v2493_v29 = vadd.f32 %v2489_v0, %v2479_v14  ;;  %v2503_v54 = vrot.slane %v2499_v31, 7 }
 0x1ea   : > { %v2527_v50 = vmul.f32 %v2526_v3, %v2524_v46  ;;  %v2059_v18 = vrot.slane %v6385_v5, %v4620_v8  ;;  %v2541_v2 = vmul.f32 %v2540_v38, %v2538_v9  ;;  %v2420_v60 = vadd.f32 %v2418_v62, %v2412_v36  ;;  %v2942_v9 = vld [vmem:[#allocation2 + $0x40] sm:$0x6] }
 0x1eb   : > { %v2434_v4 = vmul.f32 %v2432_v58, %v2431_v12  ;;  %v2047_v45 = vmul.f32 0.01, %v2045_v59  ;;  %v2507_v63 = vadd.f32 %v2503_v54, %v2493_v29  ;;  %v2517_v35 = vrot.slane %v2513_v48, 7  ;;  %v2934_v48 = vld [vmem:[#allocation2 + $0x30] sm:$0x6] }
 0x1ec   : > { %v2555_v28 = vmul.f32 %v2554_v41, %v2552_v17  ;;  %v2066_v57 = vrot.slane %v6756_v44, 7  ;;  %v2575_v22 = vrot.slane %v6376_v39, %v4620_v8  ;;  %v2428_v34 = vadd.f32 %v2426_v16, %v2420_v60  ;;  %v7459_v17 = vld [vmem:[#allocation57_spill] sm:$0xff]  ;;  %s4144_s24 = sshll.u32 %s7467_s1, 10 }
 0x1ed   : > { %v2442_v58 = vmul.f32 %v2440_v26, %v2439_v24  ;;  %v6826_v49 = vmax.f32 %v2045_v59, %v2047_v45  ;;  %v2521_v7 = vadd.f32 %v2517_v35, %v2507_v63  ;;  %v2531_v13 = vrot.slane %v2527_v50, 7  ;;  %v2950_v24 = vld [vmem:[#allocation2 + $0x50] sm:$0x6]  ;;  %v2525_v45 = vld [vmem:[#allocation2 + $0x58] sm:$0x3]  ;;  %p7470_p0 = scmp.ne.s32.totalorder %s7468_s10, 0 }
 0x1ee   : > { %v2458_v31 = vmul.f32 %v2456_v19, %v2455_v27  ;;  %v2545_v46 = vrot.slane %v2541_v2, 7  ;;  %v2436_v61 = vadd.f32 %v2434_v4, %v2428_v34  ;;  %v2450_v26 = vmul.f32 %v2448_v21, %v2447_v52  ;;  %v2497_v21 = vld [vmem:[#allocation2 + $0x38] sm:$0x3]  ;;  %v2511_v52 = vld [vmem:[#allocation2 + $0x48] sm:$0x3] }
 0x1ef   : > { %v2923_v62 = vadd.f32 %v7458_v42, %v7457_v47  ;;  %v2061_v25 = vsub.f32 %v2059_v18, %v6826_v49  ;;  %v2535_v14 = vadd.f32 %v2531_v13, %v2521_v7  ;;  %v2559_v0 = vrot.slane %v2555_v28, 7  ;;  %v2958_v2 = vld [vmem:[#allocation2 + $0x60] sm:$0x6]  ;;  %v2966_v28 = vld [vmem:[#allocation2 + $0x70] sm:$0x6] }
 0x1f0   : > { %v2472_v19 = vmul.f32 %v2470_v56, %v2469_v20  ;;  %v2444_v12 = vadd.f32 %v2442_v58, %v2436_v61  ;;  %v2486_v55 = vmul.f32 %v2484_v11, %v2483_v37  ;;  %v2936_v16 = vstv %s6799_s19  ;;  %v2974_v20 = vld [vmem:[#allocation2] sm:$0x3]  ;;  %v2539_v37 = vld [vmem:[#allocation2 + $0x68] sm:$0x3]  ;;  %s3669_s19 = sshll.u32 %s6367_s0, 4  ;;  %s7111_s19 = int_to_ptr.vmem [resolvable:$true] %s3669_s19 }
 0x1f1   : > { %v2931_v36 = vadd.f32 %v7459_v17, %v2923_v62  ;;  %2063 = vst [vmem:[%s6367_s0 + $0x8] sm:$0x6] %v2061_v25  ;;  %v2549_v59 = vadd.f32 %v2545_v46, %v2535_v14  ;;  %v2462_v29 = vrot.slane %v2458_v31, 7  ;;  %v2937_v56 = vmul.f32 %v2936_v16, %v2934_v48  ;;  %v2553_v48 = vld [vmem:[#allocation2 + $0x78] sm:$0x3] }
 0x1f2   : > { %v2944_v54 = vstv %s6803_s7  ;;  %v2452_v50 = vadd.f32 %v2450_v26, %v2444_v12  ;;  %v2952_v18 = vstv %s6811_s21  ;;  %v2960_v60 = vstv %s6813_s3  ;;  %v2988_v62 = vld [vmem:[#allocation2 + $0x10] sm:$0x3]  ;;  %s7469_s3 = sld [smem:[#allocation62_spill]] }
 0x1f3   : > { %v2945_v11 = vmul.f32 %v2944_v54, %v2942_v9  ;;  %v2563_v4 = vadd.f32 %v2559_v0, %v2549_v59  ;;  %v2500_v27 = vmul.f32 %v2498_v32, %v2497_v21  ;;  %v2939_v63 = vadd.f32 %v2937_v56, %v2931_v36  ;;  %v3002_v21 = vld [vmem:[#allocation2 + $0x20] sm:$0x3] }
 0x1f4   : > { %v2953_v35 = vmul.f32 %v2952_v18, %v2950_v24  ;;  %v2466_v34 = vadd.f32 %v2462_v29, %v2452_v50  ;;  %v2476_v58 = vrot.slane %v2472_v19, 7  ;;  %v2968_v7 = vstv %s6822_s9  ;;  %v3016_v50 = vld [vmem:[#allocation2 + $0x30] sm:$0x3] }
 0x1f5   : > { %v2976_v13 = vstv %s6824_s2  ;;  %v2565_v32 = vmul.f32 0.01, %v2563_v4  ;;  %v2514_v31 = vmul.f32 %v2512_v53, %v2511_v52  ;;  %v2947_v46 = vadd.f32 %v2945_v11, %v2939_v63  ;;  %v2935_v11 = vld [vmem:[#allocation2 + $0x38] sm:$0x6]  ;;  %s3654_s2 = scalar_lea.sflag [#allocation6], %s7410_s23 }
 0x1f6   : > { %v2961_v61 = vmul.f32 %v2960_v60, %v2958_v2  ;;  %v2480_v26 = vadd.f32 %v2476_v58, %v2466_v34  ;;  %v2490_v47 = vrot.slane %v2486_v55, 7  ;;  %v2528_v42 = vmul.f32 %v2526_v3, %v2525_v45  ;;  %v3030_v45 = vld [vmem:[#allocation2 + $0x40] sm:$0x3]  ;;  %v2943_v58 = vld [vmem:[#allocation2 + $0x48] sm:$0x6] }
 0x1f7   : > { %v2990_v25 = vstv %s6834_s12  ;;  %v6874_v14 = vmax.f32 %v2563_v4, %v2565_v32  ;;  %v2955_v53 = vadd.f32 %v2953_v35, %v2947_v46  ;;  %v2969_v0 = vmul.f32 %v2968_v7, %v2966_v28  ;;  %v7461_v46 = vld [vmem:[#allocation51_spill] sm:$0xff]  ;;  %s4266_s12 = scalar_lea.vmem %s7111_s19, 1024 }
 0x1f8   : > { %v2977_v19 = vmul.f32 %v2976_v13, %v2974_v20  ;;  %v2494_v9 = vadd.f32 %v2490_v47, %v2480_v26  ;;  %v2504_v12 = vrot.slane %v2500_v27, 7  ;;  %v2542_v55 = vmul.f32 %v2540_v38, %v2539_v37  ;;  %s7109_s9 = scalar_lea.hbm %s7469_s3, %s4144_s24  ;;  %p4267_p13 = scmp.ne.s32.totalorder %s7111_s19, %s4266_s12 }
 0x1f9   : > { %v3004_v3 = vstv %s6843_s20  ;;  %v2580_v17 = vsub.f32 %v2575_v22, %v6874_v14  ;;  %v2556_v36 = vmul.f32 %v2554_v41, %v2553_v48  ;;  %v2963_v24 = vadd.f32 %v2961_v61, %v2955_v53  ;;  %v7460_v48 = vld [vmem:[#allocation39_spill] sm:$0xff]  ;;  %s4359_s20 = smov [#allocation9]  }
 0x1fa   : > { %v2991_v59 = vmul.f32 %v2990_v25, %v2988_v62  ;;  %v6896_v38 = vsub.f32 %v6353_v1, %v2066_v57  ;;  %v2508_v29 = vadd.f32 %v2504_v12, %v2494_v9  ;;  %v2518_v56 = vrot.slane %v2514_v31, 7  ;;  %v3044_v57 = vld [vmem:[#allocation2 + $0x50] sm:$0x3]  ;;  %v3058_v31 = vld [vmem:[#allocation2 + $0x60] sm:$0x3]  ;;  %p4268_p2 = pnand %p4267_p13, %p7470_p0 }
 0x1fb   : > { %v3018_v52 = vstv %s6853_s30  ;;  %4041 = vst [vmem:[%s6367_s0 + $0x10] sm:$0x6] %v2580_v17  ;;  %v2532_v22 = vrot.slane %v2528_v42, 7  ;;  %v2971_v2 = vadd.f32 %v2969_v0, %v2963_v24  ;;  %v2981_v41 = vrot.slane %v2977_v19, 7  ;;  %v2951_v0 = vld [vmem:[#allocation2 + $0x58] sm:$0x6] }
 0x1fc   : > { %v3005_v4 = vmul.f32 %v3004_v3, %v3002_v21  ;;  %v2522_v27 = vadd.f32 %v2518_v56, %v2508_v29  ;;  %v2546_v44 = vrot.slane %v2542_v55, 7  ;;  %v3032_v1 = vstv %s6861_s15  ;;  %v3072_v9 = vld [vmem:[#allocation2 + $0x70] sm:$0x3]  ;;  %v2959_v17 = vld [vmem:[#allocation2 + $0x68] sm:$0x6]  ;;  %p4269_p5 = pneg %p4268_p2  ;;  %s4270_s30 = sshll.u32 %s4359_s20, 4  ;;  %s4271_s30 = int_to_ptr.vmem [resolvable:$false] %s4270_s30 }
 0x1fd   : > { %v3046_v63 = vstv %s6863_s14  ;;  %v2560_v35 = vrot.slane %v2556_v36, 7  ;;  %v2985_v28 = vadd.f32 %v2981_v41, %v2971_v2  ;;  %v2995_v20 = vrot.slane %v2991_v59, 7  ;;  %s4272_s15 = scalar_lea.vmem %s4271_s30, 2048  ;;  %p4273_p11 = scmp.lt.s32.totalorder %s7111_s19, %s4271_s30 }
 0x1fe   : > { %v3019_v34 = vmul.f32 %v3018_v52, %v3016_v50  ;;  %v2536_v32 = vadd.f32 %v2532_v22, %v2522_v27  ;;  %v3060_v37 = vstv %s6872_s5  ;;  %v2924_v61 = vadd.f32 %v7461_v46, %v7460_v48  ;;  %v2967_v50 = vld [vmem:[#allocation2 + $0x78] sm:$0x6]  ;;  %v3003_v27 = vld [vmem:[#allocation2 + $0x28] sm:$0x3]  ;;  %v7462_v48 = vld [vmem:[#allocation34_spill] sm:$0xff]  ;;  %p4274_p1 = scmp.lt.s32.totalorder %s4272_s15, %s4266_s12 }
 0x1ff   : > { %v2938_v26 = vmul.f32 %v2936_v16, %v2935_v11  ;;  %v2999_v47 = vadd.f32 %v2995_v20, %v2985_v28  ;;  %v3009_v42 = vrot.slane %v3005_v4, 7  ;;  %v3033_v62 = vmul.f32 %v3032_v1, %v3030_v45  ;;  %v2975_v11 = vld [vmem:[#allocation2 + $0x8] sm:$0x3]  ;;  %v7463_v46 = vld [vmem:[#allocation45_spill] sm:$0xff] }
 0x200   : > { %v3047_v53 = vmul.f32 %v3046_v63, %v3044_v57  ;;  %v2550_v19 = vadd.f32 %v2546_v44, %v2536_v32  ;;  %v3074_v12 = vstv %s6883_s11  ;;  %v2932_v55 = vadd.f32 %v6779_v33, %v2924_v61  ;;  %p4275_p9 = por %p4274_p1, %p4273_p11 }
 0x201   : > { %v2946_v21 = vmul.f32 %v2944_v54, %v2943_v58  ;;  %v2067_v16 = vrot.slane %v6826_v49, 7  ;;  %v3013_v36 = vadd.f32 %v3009_v42, %v2999_v47  ;;  %v3023_v24 = vrot.slane %v3019_v34, 7  ;;  %v2989_v49 = vld [vmem:[#allocation2 + $0x18] sm:$0x3]  ;;  %v3454_v58 = vld [vmem:[#allocation2 + $0x30] sm:$0x6] }
 0x202   : > { %v3061_v59 = vmul.f32 %v3060_v37, %v3058_v31  ;;  %v2564_v29 = vadd.f32 %v2560_v35, %v2550_v19  ;;  %v2579_v33 = vrot.slane %v6460_v23, %v4620_v8  ;;  %v2940_v54 = vadd.f32 %v2938_v26, %v2932_v55  ;;  %v3017_v35 = vld [vmem:[#allocation2 + $0x38] sm:$0x3]  ;;  %v3031_v19 = vld [vmem:[#allocation2 + $0x48] sm:$0x3]  ;;  %p4276_p12 = pnand %p4275_p9, %p4269_p5 }
 0x203   : > { %v2954_v56 = vmul.f32 %v2952_v18, %v2951_v0  ;;  %v6933_v22 = vsub.f32 %v6385_v5, %v2067_v16  ;;  %v3027_v2 = vadd.f32 %v3023_v24, %v3013_v36  ;;  %v3037_v41 = vrot.slane %v3033_v62, 7  ;;  %v3462_v62 = vld [vmem:[#allocation2 + $0x40] sm:$0x6]  ;;  %v3045_v24 = vld [vmem:[#allocation2 + $0x58] sm:$0x3] }
 0x204   : > { %v3075_v4 = vmul.f32 %v3074_v12, %v3072_v9  ;;  %v2566_v44 = vmul.f32 0.01, %v2564_v29  ;;  %v3051_v45 = vrot.slane %v3047_v53, 7  ;;  %v2948_v57 = vadd.f32 %v2946_v21, %v2940_v54 }
 0x205   : > { %v2962_v18 = vmul.f32 %v2960_v60, %v2959_v17  ;;  %v3041_v28 = vadd.f32 %v3037_v41, %v3027_v2  ;;  %v3065_v20 = vrot.slane %v3061_v59, 7  ;;  %v3095_v5 = vrot.slane %v6529_v43, %v4620_v8  ;;  %v3470_v17 = vld [vmem:[#allocation2 + $0x50] sm:$0x6]  ;;  %v3059_v59 = vld [vmem:[#allocation2 + $0x68] sm:$0x3] }
 0x206   : > { %v2970_v34 = vmul.f32 %v2968_v7, %v2967_v50  ;;  %v6949_v32 = vmax.f32 %v2564_v29, %v2566_v44  ;;  %v2956_v31 = vadd.f32 %v2954_v56, %v2948_v57  ;;  %v2978_v60 = vmul.f32 %v2976_v13, %v2975_v11  ;;  %v3478_v56 = vld [vmem:[#allocation2 + $0x60] sm:$0x6] }
 0x207   : > { %v3443_v61 = vadd.f32 %v7463_v46, %v7462_v48  ;;  %v3055_v7 = vadd.f32 %v3051_v45, %v3041_v28  ;;  %v3079_v26 = vrot.slane %v3075_v4, 7  ;;  %v2992_v47 = vmul.f32 %v2990_v25, %v2989_v49  ;;  %v3486_v4 = vld [vmem:[#allocation2 + $0x70] sm:$0x6]  ;;  %v3522_v46 = vld [vmem:[#allocation2 + $0x20] sm:$0x3] }
 0x208   : > { %v3006_v42 = vmul.f32 %v3004_v3, %v3003_v27  ;;  %v2581_v13 = vsub.f32 %v2579_v33, %v6949_v32  ;;  %v2964_v53 = vadd.f32 %v2962_v18, %v2956_v31  ;;  %v3020_v0 = vmul.f32 %v3018_v52, %v3017_v35  ;;  %v3494_v27 = vld [vmem:[#allocation2] sm:$0x3]  ;;  %v3073_v35 = vld [vmem:[#allocation2 + $0x78] sm:$0x3] }
 0x209   : > { %v3451_v9 = vadd.f32 %v6694_v51, %v3443_v61  ;;  %v3069_v55 = vadd.f32 %v3065_v20, %v3055_v7  ;;  %v3456_v21 = vstv %s6919_s27  ;;  %v3464_v25 = vstv %s6924_s17 }
 0x20a   : > { %v3472_v3 = vstv %s6926_s13  ;;  %4042 = vst [vmem:[%s6367_s0 + $0x18] sm:$0x6] %v2581_v13  ;;  %v2972_v16 = vadd.f32 %v2970_v34, %v2964_v53  ;;  %v2982_v36 = vrot.slane %v2978_v60, 7  ;;  %v3457_v29 = vmul.f32 %v3456_v21, %v3454_v58  ;;  %v3508_v34 = vld [vmem:[#allocation2 + $0x10] sm:$0x3] }
 0x20b   : > { %v3465_v52 = vmul.f32 %v3464_v25, %v3462_v62  ;;  %v3083_v33 = vadd.f32 %v3079_v26, %v3069_v55  ;;  %v2996_v51 = vrot.slane %v2992_v47, 7  ;;  %v3034_v54 = vmul.f32 %v3032_v1, %v3031_v19 }
 0x20c   : > { %v3480_v50 = vstv %s6937_s16  ;;  %v2986_v11 = vadd.f32 %v2982_v36, %v2972_v16  ;;  %v3010_v49 = vrot.slane %v3006_v42, 7  ;;  %v3459_v2 = vadd.f32 %v3457_v29, %v3451_v9  ;;  %v3536_v16 = vld [vmem:[#allocation2 + $0x30] sm:$0x3] }
 0x20d   : > { %v3473_v41 = vmul.f32 %v3472_v3, %v3470_v17  ;;  %v3085_v44 = vmul.f32 0.01, %v3083_v33  ;;  %v3024_v45 = vrot.slane %v3020_v0, 7  ;;  %v3488_v57 = vstv %s6945_s29 }
 0x20e   : > { %v3496_v1 = vstv %s6947_s4  ;;  %v3000_v18 = vadd.f32 %v2996_v51, %v2986_v11  ;;  %v3467_v28 = vadd.f32 %v3465_v52, %v3459_v2  ;;  %v3481_v20 = vmul.f32 %v3480_v50, %v3478_v56  ;;  %v3550_v51 = vld [vmem:[#allocation2 + $0x40] sm:$0x3]  ;;  %v7464_v56 = vld [vmem:[#allocation40_spill] sm:$0xff] }
 0x20f   : > { %v3510_v58 = vstv %s6955_s22  ;;  %v6989_v31 = vmax.f32 %v3083_v33, %v3085_v44  ;;  %v3048_v60 = vmul.f32 %v3046_v63, %v3045_v24  ;;  %v3062_v48 = vmul.f32 %v3060_v37, %v3059_v59  ;;  %v7465_v11 = vld [vmem:[#allocation52_spill] sm:$0xff]  ;;  %v3471_v44 = vld [vmem:[#allocation2 + $0x58] sm:$0x6] }
 0x210   : > { %v3524_v61 = vstv %s6961_s8  ;;  %v3014_v7 = vadd.f32 %v3010_v49, %v3000_v18  ;;  %v3475_v26 = vadd.f32 %v3473_v41, %v3467_v28  ;;  %v3489_v47 = vmul.f32 %v3488_v57, %v3486_v4 }
 0x211   : > { %v3497_v42 = vmul.f32 %v3496_v1, %v3494_v27  ;;  %v2586_v62 = vrot.slane %v6874_v14, 7  ;;  %v3100_v63 = vsub.f32 %v3095_v5, %v6989_v31  ;;  %v3076_v37 = vmul.f32 %v3074_v12, %v3073_v35  ;;  %v3455_v12 = vld [vmem:[#allocation2 + $0x38] sm:$0x6] }
 0x212   : > { %v3511_v13 = vmul.f32 %v3510_v58, %v3508_v34  ;;  %v3028_v53 = vadd.f32 %v3024_v45, %v3014_v7  ;;  %v3038_v0 = vrot.slane %v3034_v54, 7  ;;  %v3483_v19 = vadd.f32 %v3481_v20, %v3475_v26  ;;  %v3564_v45 = vld [vmem:[#allocation2 + $0x50] sm:$0x3]  ;;  %v3479_v26 = vld [vmem:[#allocation2 + $0x68] sm:$0x6] }
 0x213   : > { %v3525_v9 = vmul.f32 %v3524_v61, %v3522_v46  ;;  %v7016_v55 = vsub.f32 %v6376_v39, %v2586_v62  ;;  %4088 = vst [vmem:[%s6367_s0 + $0x20] sm:$0x6] %v3100_v63  ;;  %v3052_v14 = vrot.slane %v3048_v60, 7  ;;  %v3099_v17 = vrot.slane %v6589_v6, %v4620_v8  ;;  %v3463_v39 = vld [vmem:[#allocation2 + $0x48] sm:$0x6] }
 0x214   : > { %v3538_v5 = vstv %s6978_s28  ;;  %v3042_v36 = vadd.f32 %v3038_v0, %v3028_v53  ;;  %v3066_v24 = vrot.slane %v3062_v48, 7  ;;  %v3491_v59 = vadd.f32 %v3489_v47, %v3483_v19  ;;  %v3578_v46 = vld [vmem:[#allocation2 + $0x60] sm:$0x3]  ;;  %v3495_v53 = vld [vmem:[#allocation2 + $0x8] sm:$0x3] }
 0x215   : > { %v3501_v29 = vrot.slane %v3497_v42, 7  ;;  %v3080_v52 = vrot.slane %v3076_v37, 7  ;;  %v3515_v33 = vrot.slane %v3511_v13, 7  ;;  %v3552_v54 = vstv %s6984_s18  ;;  %v3487_v13 = vld [vmem:[#allocation2 + $0x78] sm:$0x6] }
 0x216   : > { %v3444_v49 = vadd.f32 %v7465_v11, %v7464_v56  ;;  %v3056_v2 = vadd.f32 %v3052_v14, %v3042_v36  ;;  %v3529_v4 = vrot.slane %v3525_v9, 7  ;;  %v3539_v27 = vmul.f32 %v3538_v5, %v3536_v16  ;;  %v3592_v19 = vld [vmem:[#allocation2 + $0x70] sm:$0x3]  ;;  %v3509_v36 = vld [vmem:[#allocation2 + $0x18] sm:$0x3] }
 0x217   : > { %v3505_v41 = vadd.f32 %v3501_v29, %v3491_v59  ;;  %v3566_v18 = vstv %s6996_s6  ;;  %v3458_v28 = vmul.f32 %v3456_v21, %v3455_v12  ;;  %v3466_v20 = vmul.f32 %v3464_v25, %v3463_v39 }
 0x218   : > { %v3452_v35 = vadd.f32 %v6794_v40, %v3444_v49  ;;  %v3070_v34 = vadd.f32 %v3066_v24, %v3056_v2  ;;  %v3553_v48 = vmul.f32 %v3552_v54, %v3550_v51  ;;  %v3580_v7 = vstv %s7002_s25  ;;  %v3537_v2 = vld [vmem:[#allocation2 + $0x38] sm:$0x3] }
 0x219   : > { %v3519_v60 = vadd.f32 %v3515_v33, %v3505_v41  ;;  %v2587_v47 = vrot.slane %v6949_v32, 7  ;;  %v3106_v42 = vrot.slane %v6989_v31, 7  ;;  %v3474_v62 = vmul.f32 %v3472_v3, %v3471_v44 }
 0x21a   : > { %v3460_v40 = vadd.f32 %v3458_v28, %v3452_v35  ;;  %v3084_v21 = vadd.f32 %v3080_v52, %v3070_v34  ;;  %v3543_v25 = vrot.slane %v3539_v27, 7  ;;  %v3567_v37 = vmul.f32 %v3566_v18, %v3564_v45  ;;  %v3523_v52 = vld [vmem:[#allocation2 + $0x28] sm:$0x3] }
 0x21b   : > { %v3533_v63 = vadd.f32 %v3529_v4, %v3519_v60  ;;  %v3581_v0 = vmul.f32 %v3580_v7, %v3578_v46  ;;  %v3594_v9 = vstv %s7022_s26  ;;  %v3482_v31 = vmul.f32 %v3480_v50, %v3479_v26  ;;  %v3551_v45 = vld [vmem:[#allocation2 + $0x48] sm:$0x3]  ;;  %v3565_v26 = vld [vmem:[#allocation2 + $0x58] sm:$0x3] }
 0x21c   : > { %v3468_v32 = vadd.f32 %v3466_v20, %v3460_v40  ;;  %v2591_v14 = vsub.f32 %v6460_v23, %v2587_v47  ;;  %v3086_v3 = vmul.f32 0.01, %v3084_v21  ;;  %v3557_v12 = vrot.slane %v3553_v48, 7 }
 0x21d   : > { %v3547_v16 = vadd.f32 %v3543_v25, %v3533_v63  ;;  %v3110_v24 = vsub.f32 %v6529_v43, %v3106_v42  ;;  %v3490_v29 = vmul.f32 %v3488_v57, %v3487_v13  ;;  %v3498_v39 = vmul.f32 %v3496_v1, %v3495_v53 }
 0x21e   : > { %v3476_v59 = vadd.f32 %v3474_v62, %v3468_v32  ;;  %v3088_v33 = vmax.f32 %v3084_v21, %v3086_v3  ;;  %v3571_v56 = vrot.slane %v3567_v37, 7  ;;  %v3595_v23 = vmul.f32 %v3594_v9, %v3592_v19  ;;  %v3579_v21 = vld [vmem:[#allocation2 + $0x68] sm:$0x3]  ;;  %v3593_v19 = vld [vmem:[#allocation2 + $0x78] sm:$0x3] }
 0x21f   : > { %v3561_v51 = vadd.f32 %v3557_v12, %v3547_v16  ;;  %v3585_v50 = vrot.slane %v3581_v0, 7  ;;  %v3512_v49 = vmul.f32 %v3510_v58, %v3509_v36  ;;  %v2074_v43 = vcombine.low %v6896_v38, %v6933_v22 }
 0x220   : > { %v3484_v11 = vadd.f32 %v3482_v31, %v3476_v59  ;;  %v3101_v57 = vsub.f32 %v3099_v17, %v3088_v33  ;;  %v3107_v1 = vrot.slane %v3088_v33, 7  ;;  %v3526_v4 = vmul.f32 %v3524_v61, %v3523_v52 }
 0x221   : > { %v3575_v41 = vadd.f32 %v3571_v56, %v3561_v51  ;;  %v3502_v44 = vrot.slane %v3498_v39, 7  ;;  %v2081_v35 = vrot.slane %v2074_v43, %v5206_v15  ;;  %v2594_v58 = vcombine.low %v7016_v55, %v2591_v14 }
 0x222   : > { %v3492_v27 = vadd.f32 %v3490_v29, %v3484_v11  ;;  %4089 = vst [vmem:[%s6367_s0 + $0x28] sm:$0x6] %v3101_v57  ;;  %v3111_v28 = vsub.f32 %v6589_v6, %v3107_v1  ;;  %v3599_v22 = vrot.slane %v3595_v23, 7  ;;  %v3540_v20 = vmul.f32 %v3538_v5, %v3537_v2 }
 0x223   : > { %v3589_v38 = vadd.f32 %v3585_v50, %v3575_v41  ;;  %v3516_v34 = vrot.slane %v3512_v49, 7  ;;  %v2088_v60 = vrot.slane %v2081_v35, %v5206_v15  ;;  %v2601_v61 = vrot.slane %v2594_v58, %v5206_v15 }
 0x224   : > { %v3506_v17 = vadd.f32 %v3502_v44, %v3492_v27  ;;  %v3554_v46 = vmul.f32 %v3552_v54, %v3551_v45  ;;  %v3114_v55 = vcombine.low %v3110_v24, %v3111_v28  ;;  %v3530_v42 = vrot.slane %v3526_v4, 7 }
 0x225   : > { %v3603_v48 = vadd.f32 %v3599_v22, %v3589_v38  ;;  %v2089_v6 = vcombine.high %v2088_v60, %v2088_v60  ;;  %v2608_v40 = vrot.slane %v2601_v61, %v5206_v15  ;;  %v3615_v62 = vrot.slane %v6649_v30, %v4620_v8 }
 0x226   : > { %v3520_v47 = vadd.f32 %v3516_v34, %v3506_v17  ;;  %v3121_v63 = vrot.slane %v3114_v55, %v5206_v15  ;;  %v3544_v37 = vrot.slane %v3540_v20, 7  ;;  %v3568_v54 = vmul.f32 %v3566_v18, %v3565_v26 }
 0x227   : > { %v3605_v5 = vmul.f32 0.01, %v3603_v48  ;;  %2091 = vst.msk [vmem:[%s6367_s0] ss:$8 sm:$0x3] %vm5232_vm0, %v2089_v6  ;;  %v2609_v53 = vcombine.high %v2608_v40, %v2608_v40  ;;  %v3558_v14 = vrot.slane %v3554_v46, 7  ;;  %v3582_v3 = vmul.f32 %v3580_v7, %v3579_v21 }
 0x228   : > { %v3534_v25 = vadd.f32 %v3530_v42, %v3520_v47  ;;  %v3128_v32 = vrot.slane %v3121_v63, %v5206_v15  ;;  %v3572_v18 = vrot.slane %v3568_v54, 7  ;;  %v3596_v24 = vmul.f32 %v3594_v9, %v3593_v19 }
 0x229   : > { %v3607_v0 = vmax.f32 %v3603_v48, %v3605_v5  ;;  %4043 = vst.msk [vmem:[%s6367_s0 + $0x10] ss:$8 sm:$0x3] %vm5232_vm0, %v2609_v53  ;;  %v3586_v29 = vrot.slane %v3582_v3, 7  ;;  %v3619_v51 = vrot.slane %v6716_v10, %v4620_v8 }
 0x22a   : > { %v3548_v31 = vadd.f32 %v3544_v37, %v3534_v25  ;;  %v3129_v12 = vcombine.high %v3128_v32, %v3128_v32  ;;  %v3600_v7 = vrot.slane %v3596_v24, 7 }
 0x22b   : > { %v3620_v16 = vsub.f32 %v3615_v62, %v3607_v0  ;;  %v3626_v56 = vrot.slane %v3607_v0, 7 }
 0x22c   : > { %v3562_v36 = vadd.f32 %v3558_v14, %v3548_v31  ;;  %4090 = vst.msk [vmem:[%s6367_s0 + $0x20] ss:$8 sm:$0x3] %vm5232_vm0, %v3129_v12 }
 0x22d   : > { %4135 = vst [vmem:[%s6367_s0 + $0x30] sm:$0x6] %v3620_v16  ;;  %v3630_v9 = vsub.f32 %v6649_v30, %v3626_v56 }
 0x22e   : > { %v3576_v59 = vadd.f32 %v3572_v18, %v3562_v36 }
 0x230   : > { %v3590_v39 = vadd.f32 %v3586_v29, %v3576_v59 }
 0x232   : > { %v3604_v52 = vadd.f32 %v3600_v7, %v3590_v39 }
 0x234   : > { %v3606_v33 = vmul.f32 0.01, %v3604_v52 }
 0x236   : > { %v3608_v23 = vmax.f32 %v3604_v52, %v3606_v33 }
 0x238   : > { %v3621_v50 = vsub.f32 %v3619_v51, %v3608_v23  ;;  %v3627_v11 = vrot.slane %v3608_v23, 7 }
 0x23a   : > { %4136 = vst [vmem:[%s6367_s0 + $0x38] sm:$0x6] %v3621_v50  ;;  %v3631_v49 = vsub.f32 %v6716_v10, %v3627_v11 }
 0x23c   : > { %v3634_v2 = vcombine.low %v3630_v9, %v3631_v49 }
 0x23e   : > { %v3641_v43 = vrot.slane %v3634_v2, %v5206_v15 }
 0x240   : > { %v3648_v57 = vrot.slane %v3641_v43, %v5206_v15 }
 0x242   : > { %v3649_v8 = vcombine.high %v3648_v57, %v3648_v57 }
 0x244   : > { %4137 = vst.msk [vmem:[%s6367_s0 + $0x30] ss:$8 sm:$0x3] %vm5232_vm0, %v3649_v8 }
 0x245   : > { %4279 = shalt.err (!%p4276_p12)
}
 0x246   : > { %s4280_s0 = scalar_lea.hbm %s7109_s9, 1024  ;;  %s4284_s11 = scalar_lea.hbm %s7469_s3, 2048 }
 0x247   : > { %p4281_p4 = scmp.ne.s32.totalorder %s7109_s9, %s4280_s0  ;;  %p4285_p10 = scmp.lt.u32.totalorder %s7109_s9, %s7469_s3 }
 0x248   : > { %p4286_p3 = scmp.lt.u32.totalorder %s4284_s11, %s4280_s0  ;;  %p4288_p13 = scmp.lt.u32.totalorder %s4280_s0, %s7109_s9 }
 0x249   : > { %p4282_p6 = pnand %p4281_p4, %p7470_p0 }
 0x24a   : > { %p4287_p8 = por %p4286_p3, %p4285_p10 }
 0x24b   : > { %p4283_p7 = pneg %p4282_p6 }
 0x24c   : > { %p4289_p2 = por %p4288_p13, %p4287_p8 }
 0x24e   : > { %p4290_p5 = pnand %p4289_p2, %p4283_p7 }
 0x250   : > { %4293 = shalt.err (!%p4290_p5)
}
 0x251   : > { %s4360_s13 = smov 256   ;;  %s4361_s16 = smov 16  }
 0x252   : > { %4151 = dma.vmem_to_hbm [thread:$0]  (%p7470_p0), %s7111_s19, 1024, %s7109_s9, %s3654_s2, %s4360_s13, %s4360_s13, %s4361_s16  }
 0x253 PF: > { %s7471_s29 = sld [smem:[#allocation13_spill]]  ;;  %s7472_s4 = sld [smem:[#allocation20_spill]] }
 0x254   : > { %s7473_s22 = sld [smem:[#allocation18_spill]] }
 0x259   : > { %s3684_s8 = sand.u32 1, %s7471_s29   ;;  %p7474_p11 = scmp.ne.s32.totalorder %s7472_s4, 0 }
 0x25a   : > { %p7475_p1 = scmp.ge.s32.totalorder %s7473_s22, 2  ;;  %s3685_s28 = scalar_lea.sflag [#allocation6], %s3684_s8 }
 0x25c   : > { %p4162_p9 = pnand %p7475_p1, %p7474_p11 }
 0x25e   : > { %4327 = dma.done.wait (!%p4162_p9), %s3685_s28, 1024  }
 0x25f   : > { %4329 = vsyncadd (!%p4162_p9), %s3685_s28, 4294966272  ;;  %s19_s14 = sadd.s32 1, %s7473_s22   ;;  %s7476_s9 = sld [smem:[#allocation14_spill]] }
 0x260   : > { %p16_p12 = scmp.ge.s32.totalorder %s19_s14, 4   ;;  %s7477_s10 = sld [smem:[#allocation15_spill]] }
 0x261   : > { %s7478_s11 = sld [smem:[#allocation22_spill]]  ;;  %s7479_s12 = sld [smem:[#allocation17_spill]] }
 0x262   : > { %s7480_s13 = sld [smem:[#allocation21_spill]]  ;;  %18 = sbr.rel (!%p16_p12) target bundleno = 11 (0xb), region = 89 }
 0x269   :  { %3690 = vsyncpa [#allocation5], 1 }
 0x26a   :  { %3692 = vsyncpa [#allocation5 + $0x1], 1 }
 0x26b   :  { %3693 = vsyncpa [#allocation6], 1 }
 0x26c   :  { %3695 = vsyncpa [#allocation6 + $0x1], 1 }
 0x26d   :  { %3696 = vsyncpa [#allocation7], 1 }
 0x26e   :  { %3698 = vsyncpa [#allocation7 + $0x1], 1 }

</bundles_post_ra>
